<compile_context>
chip_gen: v7x
topology: tpu7x:2x2x1
jax: 0.10.0
libtpu: 0.0.40
codegen_flags: <defaults>
</compile_context>

<pallas_src>
import jax
import jax.numpy as jnp
from jax.experimental import pallas as pl
from jax.experimental.pallas import tpu as pltpu


def _round_up(x, m):
    return (x + m - 1) // m * m


def _sg_loss_kernel(w_idx_ref, w_msk_ref, c_idx_ref, c_msk_ref,
                    n_idx_ref, n_msk_ref, pn_msk_ref,
                    emb0_ref, emb1_ref, out_ref):
    f32 = jnp.float32
    TB, M = w_idx_ref.shape
    NEG = pn_msk_ref.shape[1] - 1
    V0 = emb0_ref.shape[0]
    V1 = emb1_ref.shape[0]

    emb0 = emb0_ref[...]                       # (V0, Dp) VMEM-resident table
    emb1 = emb1_ref[...]                       # (V1, Dp)

    w_idx = w_idx_ref[...]                     # (TB, M) int32
    w_msk = w_msk_ref[...].astype(f32)         # (TB, M)
    c_idx = c_idx_ref[...]
    c_msk = c_msk_ref[...].astype(f32)
    n_idx = n_idx_ref[...]                     # (TB, NEG*M) int32
    n_msk = n_msk_ref[...].astype(f32)
    pn = pn_msk_ref[...].astype(f32)           # (TB, 1+NEG): col0 = pos validity

    iota0 = jax.lax.broadcasted_iota(jnp.int32, (TB, V0), 1)
    iota1 = jax.lax.broadcasted_iota(jnp.int32, (TB, V1), 1)

    def masked_counts(idx, msk, iota, col0, ncols, out_dtype):
        # Weighted one-hot counts: counts[b, v] = sum_m mask[b, m] * [idx[b, m] == v]
        # Per-morph accumulation (unrolled: M is small) keeps one (TB, V) live.
        acc = jnp.where(idx[:, col0:col0 + 1] == iota, msk[:, col0:col0 + 1], 0.0)
        for m in range(1, ncols):
            c = col0 + m
            acc = acc + jnp.where(idx[:, c:c + 1] == iota, msk[:, c:c + 1], 0.0)
        return acc.astype(out_dtype)

    # Masked morph-sum embeddings via counts @ table on the MXU (f32 accumulate).
    w_embs = jnp.dot(masked_counts(w_idx, w_msk, iota0, 0, M, emb0.dtype),
                     emb0, preferred_element_type=f32)          # (TB, Dp)
    c_embs = jnp.dot(masked_counts(c_idx, c_msk, iota1, 0, M, emb1.dtype),
                     emb1, preferred_element_type=f32)          # (TB, Dp)

    def nls(x):
        # == -logsigmoid(clamp(x, -10, 10)); clamp keeps exp() safe in f32.
        xc = jnp.clip(x, -10.0, 10.0)
        return jnp.log(1.0 + jnp.exp(-xc))

    pos_ips = jnp.sum(w_embs * c_embs, axis=-1, keepdims=True)  # (TB, 1)
    loss = jnp.sum(nls(pos_ips) * pn[:, 0:1])

    # Negatives: one small (TB, V1)@(V1, Dp) matmul per negative; MXU is idle
    # otherwise, and looping keeps the live set at a single counts block.
    for k in range(NEG):
        cnt = masked_counts(n_idx, n_msk, iota1, k * M, M, emb1.dtype)
        n_emb = jnp.dot(cnt, emb1, preferred_element_type=f32)  # (TB, Dp)
        nip = jnp.sum(n_emb * w_embs, axis=-1, keepdims=True)   # (TB, 1)
        loss = loss + jnp.sum(nls(-nip) * pn[:, k + 1:k + 2])

    # Lane-dense per-tile partial sum; grid axis is "parallel" (no carried acc).
    out_ref[...] = jnp.full(out_ref.shape, loss, dtype=out_ref.dtype)


def sg_forward_pallas(emb0, emb1, data, word2morph, word2morph_mask,
                      ctx2morph, ctx2morph_mask, negative,
                      batch_tile=None, emb_dtype=jnp.float32):
    B = data.shape[0]
    M = word2morph.shape[1]
    D = emb0.shape[1]
    NEG = negative
    f32 = jnp.float32

    # Lane-dense embedding dim, sublane-aligned vocab rows (tables are small,
    # one-time pad). Padded rows are all-zero and never indexed.
    Dp = _round_up(D, 128)
    V0p = _round_up(emb0.shape[0], 8)
    V1p = _round_up(emb1.shape[0], 8)
    emb0p = jnp.pad(emb0, ((0, V0p - emb0.shape[0]), (0, Dp - D))).astype(emb_dtype)
    emb1p = jnp.pad(emb1, ((0, V1p - emb1.shape[0]), (0, Dp - D))).astype(emb_dtype)

    # Squeeze the trailing broadcast dim of the masks if present.
    w_msk = word2morph_mask
    if w_msk.ndim == 3:
        w_msk = w_msk[..., 0]                                   # (B, M)
    cn_msk = ctx2morph_mask
    if cn_msk.ndim == 4:
        cn_msk = cn_msk[..., 0]                                 # (B, 1+NEG, M)

    w_idx = word2morph.astype(jnp.int32)                        # (B, M)
    w_mskf = w_msk.astype(f32)                                  # (B, M)
    c_idx = ctx2morph[:, 0, :].astype(jnp.int32)                # (B, M)
    c_mskf = cn_msk[:, 0, :].astype(f32)                        # (B, M)
    n_idx = ctx2morph[:, 1:1 + NEG, :].reshape(B, NEG * M).astype(jnp.int32)
    n_mskf = cn_msk[:, 1:1 + NEG, :].reshape(B, NEG * M).astype(f32)

    # Column 0 = positive-term validity (1 for real rows, 0 for batch padding),
    # columns 1.. = negative-sample mask from `data`.
    neg_mask = data[:, 2 + NEG:].astype(f32)                    # (B, NEG)
    pn_msk = jnp.concatenate([jnp.ones((B, 1), f32), neg_mask], axis=1)

    itemsize = jnp.dtype(emb_dtype).itemsize
    table_bytes = (V0p + V1p) * Dp * itemsize

    # Generation-aware VMEM budget (v7x: 64 MiB/TC, v5e/v6e: 128 MiB).
    try:
        vmem_cap = int(pltpu.get_tpu_info().vmem_capacity_bytes)
    except Exception:
        vmem_cap = 64 * 1024 * 1024   # conservative default (v7x per-TC)
    budget = int(vmem_cap * (0.7 if vmem_cap >= (96 << 20) else 0.4))

    # Per-batch-row bytes: double-buffered index/mask input rows + live f32
    # intermediates inside the kernel (counts block + a few (Dp,) slabs).
    in_row = 4 * (4 * M + 2 * NEG * M + 1 + NEG)
    interm_row = 4 * (2 * max(V0p, V1p) + 4 * Dp)
    per_row = 2 * in_row + interm_row

    avail = max(per_row * 8, budget - 2 * table_bytes - (2 << 20))
    if batch_tile is None:
        TB = max(8, (avail // per_row) // 8 * 8)
        TB = min(TB, _round_up(B, 8))
        # Prefer >= 2 tiles so both TensorCores on v7x get work ("parallel"
        # grid axis); the extra grid step is negligible on 1-TC chips.
        if TB >= B and B > 8:
            TB = _round_up((B + 1) // 2, 8)
    else:
        TB = batch_tile
        assert TB % 8 == 0, "batch_tile must be a multiple of 8"

    Bp = ((B + TB - 1) // TB) * TB
    num_tiles = Bp // TB

    # Pad the batch to a whole number of tiles: padded rows have mask 0 and
    # pos-validity 0, so they contribute exactly 0 to the loss.
    pad_rows = Bp - B
    if pad_rows:
        def _pad_b(x):
            return jnp.pad(x, ((0, pad_rows),) + ((0, 0),) * (x.ndim - 1))
        w_idx, w_mskf, c_idx, c_mskf, n_idx, n_mskf, pn_msk = (
            _pad_b(a) for a in (w_idx, w_mskf, c_idx, c_mskf,
                                n_idx, n_mskf, pn_msk))

    # VMEM accounting: double-buffered per-tile input blocks + tables (budgeted
    # twice to be conservative) + in-kernel intermediates; clamp to the chip.
    blk_in = TB * in_row
    need = 2 * blk_in + 2 * table_bytes + TB * interm_row + (4 << 20)
    assert need <= vmem_cap - (4 << 20), (
        "SG tile does not fit VMEM; shrink batch_tile or use a DMA-gather path "
        "for very large morph tables")
    vmem_limit = int(min(vmem_cap - (4 << 20), max(32 << 20, need)))

    out = pl.pallas_call(
        _sg_loss_kernel,
        out_shape=jax.ShapeDtypeStruct((num_tiles, 8, 128), jnp.float32),
        grid_spec=pltpu.PrefetchScalarGridSpec(
            num_scalar_prefetch=0,
            grid=(num_tiles,),
            in_specs=[
                pl.BlockSpec((TB, M), lambda i: (i, 0)),            # w_idx
                pl.BlockSpec((TB, M), lambda i: (i, 0)),            # w_mask
                pl.BlockSpec((TB, M), lambda i: (i, 0)),            # c_idx
                pl.BlockSpec((TB, M), lambda i: (i, 0)),            # c_mask
                pl.BlockSpec((TB, NEG * M), lambda i: (i, 0)),      # n_idx
                pl.BlockSpec((TB, NEG * M), lambda i: (i, 0)),      # n_mask
                pl.BlockSpec((TB, 1 + NEG), lambda i: (i, 0)),      # pos/neg mask
                pl.BlockSpec((V0p, Dp), lambda i: (0, 0)),          # emb0 (resident)
                pl.BlockSpec((V1p, Dp), lambda i: (0, 0)),          # emb1 (resident)
            ],
            out_specs=pl.BlockSpec((1, 8, 128), lambda i: (i, 0, 0)),
        ),
        compiler_params=pltpu.CompilerParams(
            dimension_semantics=("parallel",),   # independent per-tile partials
            vmem_limit_bytes=vmem_limit),
    )(w_idx, w_mskf, c_idx, c_mskf, n_idx, n_mskf, pn_msk, emb0p, emb1p)

    # Per-tile partial sums (same value across each (8,128) block) -> scalar.
    return jnp.sum(out[:, 0, 0])


def sg_forward_ref(emb0, emb1, data, word2morph, word2morph_mask,
                   ctx2morph, ctx2morph_mask, negative):
    """Pure-JAX reference mirroring the PyTorch forward."""
    neg_mask = data[:, 2 + negative:].astype(jnp.float32)
    w_embs = jnp.sum(emb0[word2morph] * word2morph_mask, axis=1)
    c_embs = jnp.sum(emb1[ctx2morph[:, 0]] * ctx2morph_mask[:, 0], axis=1)
    n_embs = jnp.sum(emb1[ctx2morph[:, 1:1 + negative]]
                     * ctx2morph_mask[:, 1:1 + negative], axis=2)
    pos_ips = jnp.sum(w_embs * c_embs, axis=1)
    neg_ips = jnp.einsum('bnd,bd->bn', n_embs, w_embs)
    pos_loss = jnp.sum(-jax.nn.log_sigmoid(jnp.clip(pos_ips, -10.0, 10.0)))
    neg_loss = jnp.sum(-jax.nn.log_sigmoid(jnp.clip(-neg_ips, -10.0, 10.0)) * neg_mask)
    return pos_loss + neg_loss


if __name__ == "__main__":
    key = jax.random.PRNGKey(0)
    # Small but layout-realistic shapes: batch, args.size, morphs/word, args.negative.
    # B=250 deliberately exercises the pad-B / relaxed-tiling path; D=100 the
    # pad-to-128 lane path.
    B, D, M, NEG = 250, 100, 4, 5
    morph_size, ctxmorph_size, vocab_size = 20, 24, 50

    ks = jax.random.split(key, 10)

    # Parameters (shapes per the module __init__).
    emb0 = jax.random.uniform(ks[0], (morph_size + 2, D), jnp.float32,
                              minval=-0.5 / D, maxval=0.5 / D)
    emb0 = emb0.at[morph_size + 1].set(0.0)   # module: weight.data[morph_size+1].fill_(0)
    # NOTE: the module zero-inits emb1morph_lookup; use small random values so
    # the numeric check against the reference is non-trivial.
    emb1 = jax.random.uniform(ks[1], (ctxmorph_size + 2, D), jnp.float32,
                              minval=-0.5 / D, maxval=0.5 / D)

    # Inputs.
    word_idx = jax.random.randint(ks[2], (B, 1), 0, vocab_size)
    ctx_idx = jax.random.randint(ks[3], (B, 1), 0, vocab_size)
    neg_idx = jax.random.randint(ks[4], (B, NEG), 0, vocab_size)
    neg_msk = jax.random.bernoulli(ks[5], 0.8, (B, NEG)).astype(jnp.int32)
    data = jnp.concatenate([word_idx, ctx_idx, neg_idx, neg_msk], axis=1).astype(jnp.int32)

    word2morph = jax.random.randint(ks[6], (B, M), 0, morph_size)
    word2morph_mask = jax.random.bernoulli(ks[7], 0.7, (B, M, 1)).astype(jnp.float32)
    ctx2morph = jax.random.randint(ks[8], (B, 1 + NEG, M), 0, ctxmorph_size)
    ctx2morph_mask = jax.random.bernoulli(ks[9], 0.7, (B, 1 + NEG, M, 1)).astype(jnp.float32)

    ref = sg_forward_ref(emb0, emb1, data, word2morph, word2morph_mask,
                         ctx2morph, ctx2morph_mask, NEG)

    # f32 tables (strict check), auto batch tile.
    loss = jax.block_until_ready(
        sg_forward_pallas(emb0, emb1, data, word2morph, word2morph_mask,
                          ctx2morph, ctx2morph_mask, NEG))
    assert jnp.allclose(loss, ref, rtol=1e-4, atol=1e-3), (loss, ref)

    # bf16-stored tables (halves table VMEM, native-rate MXU); looser tolerance.
    loss_bf16 = jax.block_until_ready(
        sg_forward_pallas(emb0, emb1, data, word2morph, word2morph_mask,
                          ctx2morph, ctx2morph_mask, NEG,
                          emb_dtype=jnp.bfloat16))
    assert jnp.allclose(loss_bf16, ref, rtol=5e-3, atol=5e-2), (loss_bf16, ref)

    # Explicit small batch tile (exercises the user-supplied TB path).
    loss_tb = jax.block_until_ready(
        sg_forward_pallas(emb0, emb1, data, word2morph, word2morph_mask,
                          ctx2morph, ctx2morph_mask, NEG, batch_tile=64))
    assert jnp.allclose(loss_tb, ref, rtol=1e-4, atol=1e-3), (loss_tb, ref)

    print("KERNEL_OK")
</pallas_src>

<mosaic_0001>
module attributes {stable_mosaic.version = 11 : i64} {
  func.func @_sg_loss_kernel(%arg0: i32, %arg1: memref<128x4xi32, #tpu.memory_space<vmem>>, %arg2: memref<128x4xf32, #tpu.memory_space<vmem>>, %arg3: memref<128x4xi32, #tpu.memory_space<vmem>>, %arg4: memref<128x4xf32, #tpu.memory_space<vmem>>, %arg5: memref<128x20xi32, #tpu.memory_space<vmem>>, %arg6: memref<128x20xf32, #tpu.memory_space<vmem>>, %arg7: memref<128x6xf32, #tpu.memory_space<vmem>>, %arg8: memref<24x128xf32, #tpu.memory_space<vmem>>, %arg9: memref<32x128xf32, #tpu.memory_space<vmem>>, %arg10: memref<1x8x128xf32, #tpu.memory_space<vmem>>) attributes {dimension_semantics = [#tpu.dimension_semantics<parallel>], iteration_bounds = array<i64: 2>, scalar_prefetch = 0 : i64, scratch_operands = 0 : i64, tpu.core_type = #tpu.core_type<tc>, window_params = [{transform_indices = @transform_0, window_bounds = array<i64: 128, 4>}, {transform_indices = @transform_1, window_bounds = array<i64: 128, 4>}, {transform_indices = @transform_2, window_bounds = array<i64: 128, 4>}, {transform_indices = @transform_3, window_bounds = array<i64: 128, 4>}, {transform_indices = @transform_4, window_bounds = array<i64: 128, 20>}, {transform_indices = @transform_5, window_bounds = array<i64: 128, 20>}, {transform_indices = @transform_6, window_bounds = array<i64: 128, 6>}, {pipeline_mode = #tpu.pipeline_mode<synchronous>, transform_indices = @transform_7, window_bounds = array<i64: 24, 128>}, {pipeline_mode = #tpu.pipeline_mode<synchronous>, transform_indices = @transform_8, window_bounds = array<i64: 32, 128>}, {transform_indices = @transform_9, window_bounds = array<i64: 1, 8, 128>}]} {
    %c0 = arith.constant 0 : index
    %c0_0 = arith.constant 0 : index
    %0 = vector.load %arg8[%c0, %c0_0] : memref<24x128xf32, #tpu.memory_space<vmem>>, vector<24x128xf32>
    %c0_1 = arith.constant 0 : index
    %c0_2 = arith.constant 0 : index
    %1 = vector.load %arg9[%c0_1, %c0_2] : memref<32x128xf32, #tpu.memory_space<vmem>>, vector<32x128xf32>
    %c0_3 = arith.constant 0 : index
    %c0_4 = arith.constant 0 : index
    %2 = vector.load %arg1[%c0_3, %c0_4] : memref<128x4xi32, #tpu.memory_space<vmem>>, vector<128x4xi32>
    %c0_5 = arith.constant 0 : index
    %c0_6 = arith.constant 0 : index
    %3 = vector.load %arg2[%c0_5, %c0_6] : memref<128x4xf32, #tpu.memory_space<vmem>>, vector<128x4xf32>
    %c0_7 = arith.constant 0 : index
    %c0_8 = arith.constant 0 : index
    %4 = vector.load %arg3[%c0_7, %c0_8] : memref<128x4xi32, #tpu.memory_space<vmem>>, vector<128x4xi32>
    %c0_9 = arith.constant 0 : index
    %c0_10 = arith.constant 0 : index
    %5 = vector.load %arg4[%c0_9, %c0_10] : memref<128x4xf32, #tpu.memory_space<vmem>>, vector<128x4xf32>
    %c0_11 = arith.constant 0 : index
    %c0_12 = arith.constant 0 : index
    %6 = vector.load %arg5[%c0_11, %c0_12] : memref<128x20xi32, #tpu.memory_space<vmem>>, vector<128x20xi32>
    %c0_13 = arith.constant 0 : index
    %c0_14 = arith.constant 0 : index
    %7 = vector.load %arg6[%c0_13, %c0_14] : memref<128x20xf32, #tpu.memory_space<vmem>>, vector<128x20xf32>
    %c0_15 = arith.constant 0 : index
    %c0_16 = arith.constant 0 : index
    %8 = vector.load %arg7[%c0_15, %c0_16] : memref<128x6xf32, #tpu.memory_space<vmem>>, vector<128x6xf32>
    %9 = tpu.iota {dimensions = array<i32: 1>} : vector<128x24xi32>
    %10 = tpu.iota {dimensions = array<i32: 1>} : vector<128x32xi32>
    %11 = vector.extract_strided_slice %2 {offsets = [0, 0], sizes = [128, 1], strides = [1, 1]} : vector<128x4xi32> to vector<128x1xi32>
    %12 = vector.broadcast %11 : vector<128x1xi32> to vector<128x24xi32>
    %13 = arith.cmpi eq, %12, %9 : vector<128x24xi32>
    %14 = vector.extract_strided_slice %3 {offsets = [0, 0], sizes = [128, 1], strides = [1, 1]} : vector<128x4xf32> to vector<128x1xf32>
    %cst = arith.constant 0.000000e+00 : f32
    %15 = vector.shape_cast %14 : vector<128x1xf32> to vector<128x1xf32>
    %16 = vector.broadcast %15 : vector<128x1xf32> to vector<128x24xf32>
    %17 = vector.broadcast %cst : f32 to vector<128x24xf32>
    %18 = arith.select %13, %16, %17 : vector<128x24xi1>, vector<128x24xf32>
    %19 = vector.extract_strided_slice %2 {offsets = [0, 1], sizes = [128, 1], strides = [1, 1]} : vector<128x4xi32> to vector<128x1xi32>
    %20 = vector.broadcast %19 : vector<128x1xi32> to vector<128x24xi32>
    %21 = arith.cmpi eq, %20, %9 : vector<128x24xi32>
    %22 = vector.extract_strided_slice %3 {offsets = [0, 1], sizes = [128, 1], strides = [1, 1]} : vector<128x4xf32> to vector<128x1xf32>
    %cst_17 = arith.constant 0.000000e+00 : f32
    %23 = vector.shape_cast %22 : vector<128x1xf32> to vector<128x1xf32>
    %24 = vector.broadcast %23 : vector<128x1xf32> to vector<128x24xf32>
    %25 = vector.broadcast %cst_17 : f32 to vector<128x24xf32>
    %26 = arith.select %21, %24, %25 : vector<128x24xi1>, vector<128x24xf32>
    %27 = arith.addf %18, %26 : vector<128x24xf32>
    %28 = vector.extract_strided_slice %2 {offsets = [0, 2], sizes = [128, 1], strides = [1, 1]} : vector<128x4xi32> to vector<128x1xi32>
    %29 = vector.broadcast %28 : vector<128x1xi32> to vector<128x24xi32>
    %30 = arith.cmpi eq, %29, %9 : vector<128x24xi32>
    %31 = vector.extract_strided_slice %3 {offsets = [0, 2], sizes = [128, 1], strides = [1, 1]} : vector<128x4xf32> to vector<128x1xf32>
    %cst_18 = arith.constant 0.000000e+00 : f32
    %32 = vector.shape_cast %31 : vector<128x1xf32> to vector<128x1xf32>
    %33 = vector.broadcast %32 : vector<128x1xf32> to vector<128x24xf32>
    %34 = vector.broadcast %cst_18 : f32 to vector<128x24xf32>
    %35 = arith.select %30, %33, %34 : vector<128x24xi1>, vector<128x24xf32>
    %36 = arith.addf %27, %35 : vector<128x24xf32>
    %37 = vector.extract_strided_slice %2 {offsets = [0, 3], sizes = [128, 1], strides = [1, 1]} : vector<128x4xi32> to vector<128x1xi32>
    %38 = vector.broadcast %37 : vector<128x1xi32> to vector<128x24xi32>
    %39 = arith.cmpi eq, %38, %9 : vector<128x24xi32>
    %40 = vector.extract_strided_slice %3 {offsets = [0, 3], sizes = [128, 1], strides = [1, 1]} : vector<128x4xf32> to vector<128x1xf32>
    %cst_19 = arith.constant 0.000000e+00 : f32
    %41 = vector.shape_cast %40 : vector<128x1xf32> to vector<128x1xf32>
    %42 = vector.broadcast %41 : vector<128x1xf32> to vector<128x24xf32>
    %43 = vector.broadcast %cst_19 : f32 to vector<128x24xf32>
    %44 = arith.select %39, %42, %43 : vector<128x24xi1>, vector<128x24xf32>
    %45 = arith.addf %36, %44 : vector<128x24xf32>
    %cst_20 = arith.constant dense<0.000000e+00> : vector<128x128xf32>
    %46 = tpu.matmul %45, %0, %cst_20 {dimension_numbers = #tpu.dot_dimension_numbers<[1], [0], [0], [1], [0, 0, 1, 1], [], []>} : vector<128x24xf32>, vector<24x128xf32>, vector<128x128xf32> -> vector<128x128xf32>
    %47 = vector.extract_strided_slice %4 {offsets = [0, 0], sizes = [128, 1], strides = [1, 1]} : vector<128x4xi32> to vector<128x1xi32>
    %48 = vector.broadcast %47 : vector<128x1xi32> to vector<128x32xi32>
    %49 = arith.cmpi eq, %48, %10 : vector<128x32xi32>
    %50 = vector.extract_strided_slice %5 {offsets = [0, 0], sizes = [128, 1], strides = [1, 1]} : vector<128x4xf32> to vector<128x1xf32>
    %cst_21 = arith.constant 0.000000e+00 : f32
    %51 = vector.shape_cast %50 : vector<128x1xf32> to vector<128x1xf32>
    %52 = vector.broadcast %51 : vector<128x1xf32> to vector<128x32xf32>
    %53 = vector.broadcast %cst_21 : f32 to vector<128x32xf32>
    %54 = arith.select %49, %52, %53 : vector<128x32xi1>, vector<128x32xf32>
    %55 = vector.extract_strided_slice %4 {offsets = [0, 1], sizes = [128, 1], strides = [1, 1]} : vector<128x4xi32> to vector<128x1xi32>
    %56 = vector.broadcast %55 : vector<128x1xi32> to vector<128x32xi32>
    %57 = arith.cmpi eq, %56, %10 : vector<128x32xi32>
    %58 = vector.extract_strided_slice %5 {offsets = [0, 1], sizes = [128, 1], strides = [1, 1]} : vector<128x4xf32> to vector<128x1xf32>
    %cst_22 = arith.constant 0.000000e+00 : f32
    %59 = vector.shape_cast %58 : vector<128x1xf32> to vector<128x1xf32>
    %60 = vector.broadcast %59 : vector<128x1xf32> to vector<128x32xf32>
    %61 = vector.broadcast %cst_22 : f32 to vector<128x32xf32>
    %62 = arith.select %57, %60, %61 : vector<128x32xi1>, vector<128x32xf32>
    %63 = arith.addf %54, %62 : vector<128x32xf32>
    %64 = vector.extract_strided_slice %4 {offsets = [0, 2], sizes = [128, 1], strides = [1, 1]} : vector<128x4xi32> to vector<128x1xi32>
    %65 = vector.broadcast %64 : vector<128x1xi32> to vector<128x32xi32>
    %66 = arith.cmpi eq, %65, %10 : vector<128x32xi32>
    %67 = vector.extract_strided_slice %5 {offsets = [0, 2], sizes = [128, 1], strides = [1, 1]} : vector<128x4xf32> to vector<128x1xf32>
    %cst_23 = arith.constant 0.000000e+00 : f32
    %68 = vector.shape_cast %67 : vector<128x1xf32> to vector<128x1xf32>
    %69 = vector.broadcast %68 : vector<128x1xf32> to vector<128x32xf32>
    %70 = vector.broadcast %cst_23 : f32 to vector<128x32xf32>
    %71 = arith.select %66, %69, %70 : vector<128x32xi1>, vector<128x32xf32>
    %72 = arith.addf %63, %71 : vector<128x32xf32>
    %73 = vector.extract_strided_slice %4 {offsets = [0, 3], sizes = [128, 1], strides = [1, 1]} : vector<128x4xi32> to vector<128x1xi32>
    %74 = vector.broadcast %73 : vector<128x1xi32> to vector<128x32xi32>
    %75 = arith.cmpi eq, %74, %10 : vector<128x32xi32>
    %76 = vector.extract_strided_slice %5 {offsets = [0, 3], sizes = [128, 1], strides = [1, 1]} : vector<128x4xf32> to vector<128x1xf32>
    %cst_24 = arith.constant 0.000000e+00 : f32
    %77 = vector.shape_cast %76 : vector<128x1xf32> to vector<128x1xf32>
    %78 = vector.broadcast %77 : vector<128x1xf32> to vector<128x32xf32>
    %79 = vector.broadcast %cst_24 : f32 to vector<128x32xf32>
    %80 = arith.select %75, %78, %79 : vector<128x32xi1>, vector<128x32xf32>
    %81 = arith.addf %72, %80 : vector<128x32xf32>
    %cst_25 = arith.constant dense<0.000000e+00> : vector<128x128xf32>
    %82 = tpu.matmul %81, %1, %cst_25 {dimension_numbers = #tpu.dot_dimension_numbers<[1], [0], [0], [1], [0, 0, 1, 1], [], []>} : vector<128x32xf32>, vector<32x128xf32>, vector<128x128xf32> -> vector<128x128xf32>
    %83 = arith.mulf %46, %82 : vector<128x128xf32>
    %cst_26 = arith.constant dense<0.000000e+00> : vector<128xf32>
    %84 = vector.multi_reduction <add>, %83, %cst_26 [1] : vector<128x128xf32> to vector<128xf32>
    %85 = vector.shape_cast %84 : vector<128xf32> to vector<128x1xf32>
    %cst_27 = arith.constant -1.000000e+01 : f32
    %cst_28 = arith.constant 1.000000e+01 : f32
    %86 = vector.broadcast %cst_27 : f32 to vector<128x1xf32>
    %87 = arith.maximumf %86, %85 : vector<128x1xf32>
    %88 = vector.broadcast %cst_28 : f32 to vector<128x1xf32>
    %89 = arith.minimumf %88, %87 : vector<128x1xf32>
    %cst_29 = arith.constant 0.000000e+00 : f32
    %90 = vector.broadcast %cst_29 : f32 to vector<128x1xf32>
    %91 = arith.subf %90, %89 : vector<128x1xf32>
    %92 = math.exp %91 : vector<128x1xf32>
    %cst_30 = arith.constant 1.000000e+00 : f32
    %93 = vector.broadcast %cst_30 : f32 to vector<128x1xf32>
    %94 = arith.addf %93, %92 : vector<128x1xf32>
    %95 = math.log %94 : vector<128x1xf32>
    %96 = vector.extract_strided_slice %8 {offsets = [0, 0], sizes = [128, 1], strides = [1, 1]} : vector<128x6xf32> to vector<128x1xf32>
    %97 = arith.mulf %95, %96 : vector<128x1xf32>
    %98 = vector.shape_cast %97 : vector<128x1xf32> to vector<1x128x1xf32>
    %cst_31 = arith.constant dense<0.000000e+00> : vector<1xf32>
    %99 = vector.multi_reduction <add>, %98, %cst_31 [1, 2] : vector<1x128x1xf32> to vector<1xf32>
    %100 = vector.shape_cast %99 : vector<1xf32> to vector<1x1x1xf32>
    %101 = vector.extract %100[0, 0, 0] : f32 from vector<1x1x1xf32>
    %102 = vector.extract_strided_slice %6 {offsets = [0, 0], sizes = [128, 1], strides = [1, 1]} : vector<128x20xi32> to vector<128x1xi32>
    %103 = vector.broadcast %102 : vector<128x1xi32> to vector<128x32xi32>
    %104 = arith.cmpi eq, %103, %10 : vector<128x32xi32>
    %105 = vector.extract_strided_slice %7 {offsets = [0, 0], sizes = [128, 1], strides = [1, 1]} : vector<128x20xf32> to vector<128x1xf32>
    %cst_32 = arith.constant 0.000000e+00 : f32
    %106 = vector.shape_cast %105 : vector<128x1xf32> to vector<128x1xf32>
    %107 = vector.broadcast %106 : vector<128x1xf32> to vector<128x32xf32>
    %108 = vector.broadcast %cst_32 : f32 to vector<128x32xf32>
    %109 = arith.select %104, %107, %108 : vector<128x32xi1>, vector<128x32xf32>
    %110 = vector.extract_strided_slice %6 {offsets = [0, 1], sizes = [128, 1], strides = [1, 1]} : vector<128x20xi32> to vector<128x1xi32>
    %111 = vector.broadcast %110 : vector<128x1xi32> to vector<128x32xi32>
    %112 = arith.cmpi eq, %111, %10 : vector<128x32xi32>
    %113 = vector.extract_strided_slice %7 {offsets = [0, 1], sizes = [128, 1], strides = [1, 1]} : vector<128x20xf32> to vector<128x1xf32>
    %cst_33 = arith.constant 0.000000e+00 : f32
    %114 = vector.shape_cast %113 : vector<128x1xf32> to vector<128x1xf32>
    %115 = vector.broadcast %114 : vector<128x1xf32> to vector<128x32xf32>
    %116 = vector.broadcast %cst_33 : f32 to vector<128x32xf32>
    %117 = arith.select %112, %115, %116 : vector<128x32xi1>, vector<128x32xf32>
    %118 = arith.addf %109, %117 : vector<128x32xf32>
    %119 = vector.extract_strided_slice %6 {offsets = [0, 2], sizes = [128, 1], strides = [1, 1]} : vector<128x20xi32> to vector<128x1xi32>
    %120 = vector.broadcast %119 : vector<128x1xi32> to vector<128x32xi32>
    %121 = arith.cmpi eq, %120, %10 : vector<128x32xi32>
    %122 = vector.extract_strided_slice %7 {offsets = [0, 2], sizes = [128, 1], strides = [1, 1]} : vector<128x20xf32> to vector<128x1xf32>
    %cst_34 = arith.constant 0.000000e+00 : f32
    %123 = vector.shape_cast %122 : vector<128x1xf32> to vector<128x1xf32>
    %124 = vector.broadcast %123 : vector<128x1xf32> to vector<128x32xf32>
    %125 = vector.broadcast %cst_34 : f32 to vector<128x32xf32>
    %126 = arith.select %121, %124, %125 : vector<128x32xi1>, vector<128x32xf32>
    %127 = arith.addf %118, %126 : vector<128x32xf32>
    %128 = vector.extract_strided_slice %6 {offsets = [0, 3], sizes = [128, 1], strides = [1, 1]} : vector<128x20xi32> to vector<128x1xi32>
    %129 = vector.broadcast %128 : vector<128x1xi32> to vector<128x32xi32>
    %130 = arith.cmpi eq, %129, %10 : vector<128x32xi32>
    %131 = vector.extract_strided_slice %7 {offsets = [0, 3], sizes = [128, 1], strides = [1, 1]} : vector<128x20xf32> to vector<128x1xf32>
    %cst_35 = arith.constant 0.000000e+00 : f32
    %132 = vector.shape_cast %131 : vector<128x1xf32> to vector<128x1xf32>
    %133 = vector.broadcast %132 : vector<128x1xf32> to vector<128x32xf32>
    %134 = vector.broadcast %cst_35 : f32 to vector<128x32xf32>
    %135 = arith.select %130, %133, %134 : vector<128x32xi1>, vector<128x32xf32>
    %136 = arith.addf %127, %135 : vector<128x32xf32>
    %cst_36 = arith.constant dense<0.000000e+00> : vector<128x128xf32>
    %137 = tpu.matmul %136, %1, %cst_36 {dimension_numbers = #tpu.dot_dimension_numbers<[1], [0], [0], [1], [0, 0, 1, 1], [], []>} : vector<128x32xf32>, vector<32x128xf32>, vector<128x128xf32> -> vector<128x128xf32>
    %138 = arith.mulf %137, %46 : vector<128x128xf32>
    %cst_37 = arith.constant dense<0.000000e+00> : vector<128xf32>
    %139 = vector.multi_reduction <add>, %138, %cst_37 [1] : vector<128x128xf32> to vector<128xf32>
    %140 = vector.shape_cast %139 : vector<128xf32> to vector<128x1xf32>
    %cst_38 = arith.constant 0.000000e+00 : f32
    %141 = vector.broadcast %cst_38 : f32 to vector<128x1xf32>
    %142 = arith.subf %141, %140 : vector<128x1xf32>
    %cst_39 = arith.constant -1.000000e+01 : f32
    %cst_40 = arith.constant 1.000000e+01 : f32
    %143 = vector.broadcast %cst_39 : f32 to vector<128x1xf32>
    %144 = arith.maximumf %143, %142 : vector<128x1xf32>
    %145 = vector.broadcast %cst_40 : f32 to vector<128x1xf32>
    %146 = arith.minimumf %145, %144 : vector<128x1xf32>
    %cst_41 = arith.constant 0.000000e+00 : f32
    %147 = vector.broadcast %cst_41 : f32 to vector<128x1xf32>
    %148 = arith.subf %147, %146 : vector<128x1xf32>
    %149 = math.exp %148 : vector<128x1xf32>
    %cst_42 = arith.constant 1.000000e+00 : f32
    %150 = vector.broadcast %cst_42 : f32 to vector<128x1xf32>
    %151 = arith.addf %150, %149 : vector<128x1xf32>
    %152 = math.log %151 : vector<128x1xf32>
    %153 = vector.extract_strided_slice %8 {offsets = [0, 1], sizes = [128, 1], strides = [1, 1]} : vector<128x6xf32> to vector<128x1xf32>
    %154 = arith.mulf %152, %153 : vector<128x1xf32>
    %155 = vector.shape_cast %154 : vector<128x1xf32> to vector<1x128x1xf32>
    %cst_43 = arith.constant dense<0.000000e+00> : vector<1xf32>
    %156 = vector.multi_reduction <add>, %155, %cst_43 [1, 2] : vector<1x128x1xf32> to vector<1xf32>
    %157 = vector.shape_cast %156 : vector<1xf32> to vector<1x1x1xf32>
    %158 = vector.extract %157[0, 0, 0] : f32 from vector<1x1x1xf32>
    %159 = arith.addf %101, %158 : f32
    %160 = vector.extract_strided_slice %6 {offsets = [0, 4], sizes = [128, 1], strides = [1, 1]} : vector<128x20xi32> to vector<128x1xi32>
    %161 = vector.broadcast %160 : vector<128x1xi32> to vector<128x32xi32>
    %162 = arith.cmpi eq, %161, %10 : vector<128x32xi32>
    %163 = vector.extract_strided_slice %7 {offsets = [0, 4], sizes = [128, 1], strides = [1, 1]} : vector<128x20xf32> to vector<128x1xf32>
    %cst_44 = arith.constant 0.000000e+00 : f32
    %164 = vector.shape_cast %163 : vector<128x1xf32> to vector<128x1xf32>
    %165 = vector.broadcast %164 : vector<128x1xf32> to vector<128x32xf32>
    %166 = vector.broadcast %cst_44 : f32 to vector<128x32xf32>
    %167 = arith.select %162, %165, %166 : vector<128x32xi1>, vector<128x32xf32>
    %168 = vector.extract_strided_slice %6 {offsets = [0, 5], sizes = [128, 1], strides = [1, 1]} : vector<128x20xi32> to vector<128x1xi32>
    %169 = vector.broadcast %168 : vector<128x1xi32> to vector<128x32xi32>
    %170 = arith.cmpi eq, %169, %10 : vector<128x32xi32>
    %171 = vector.extract_strided_slice %7 {offsets = [0, 5], sizes = [128, 1], strides = [1, 1]} : vector<128x20xf32> to vector<128x1xf32>
    %cst_45 = arith.constant 0.000000e+00 : f32
    %172 = vector.shape_cast %171 : vector<128x1xf32> to vector<128x1xf32>
    %173 = vector.broadcast %172 : vector<128x1xf32> to vector<128x32xf32>
    %174 = vector.broadcast %cst_45 : f32 to vector<128x32xf32>
    %175 = arith.select %170, %173, %174 : vector<128x32xi1>, vector<128x32xf32>
    %176 = arith.addf %167, %175 : vector<128x32xf32>
    %177 = vector.extract_strided_slice %6 {offsets = [0, 6], sizes = [128, 1], strides = [1, 1]} : vector<128x20xi32> to vector<128x1xi32>
    %178 = vector.broadcast %177 : vector<128x1xi32> to vector<128x32xi32>
    %179 = arith.cmpi eq, %178, %10 : vector<128x32xi32>
    %180 = vector.extract_strided_slice %7 {offsets = [0, 6], sizes = [128, 1], strides = [1, 1]} : vector<128x20xf32> to vector<128x1xf32>
    %cst_46 = arith.constant 0.000000e+00 : f32
    %181 = vector.shape_cast %180 : vector<128x1xf32> to vector<128x1xf32>
    %182 = vector.broadcast %181 : vector<128x1xf32> to vector<128x32xf32>
    %183 = vector.broadcast %cst_46 : f32 to vector<128x32xf32>
    %184 = arith.select %179, %182, %183 : vector<128x32xi1>, vector<128x32xf32>
    %185 = arith.addf %176, %184 : vector<128x32xf32>
    %186 = vector.extract_strided_slice %6 {offsets = [0, 7], sizes = [128, 1], strides = [1, 1]} : vector<128x20xi32> to vector<128x1xi32>
    %187 = vector.broadcast %186 : vector<128x1xi32> to vector<128x32xi32>
    %188 = arith.cmpi eq, %187, %10 : vector<128x32xi32>
    %189 = vector.extract_strided_slice %7 {offsets = [0, 7], sizes = [128, 1], strides = [1, 1]} : vector<128x20xf32> to vector<128x1xf32>
    %cst_47 = arith.constant 0.000000e+00 : f32
    %190 = vector.shape_cast %189 : vector<128x1xf32> to vector<128x1xf32>
    %191 = vector.broadcast %190 : vector<128x1xf32> to vector<128x32xf32>
    %192 = vector.broadcast %cst_47 : f32 to vector<128x32xf32>
    %193 = arith.select %188, %191, %192 : vector<128x32xi1>, vector<128x32xf32>
    %194 = arith.addf %185, %193 : vector<128x32xf32>
    %cst_48 = arith.constant dense<0.000000e+00> : vector<128x128xf32>
    %195 = tpu.matmul %194, %1, %cst_48 {dimension_numbers = #tpu.dot_dimension_numbers<[1], [0], [0], [1], [0, 0, 1, 1], [], []>} : vector<128x32xf32>, vector<32x128xf32>, vector<128x128xf32> -> vector<128x128xf32>
    %196 = arith.mulf %195, %46 : vector<128x128xf32>
    %cst_49 = arith.constant dense<0.000000e+00> : vector<128xf32>
    %197 = vector.multi_reduction <add>, %196, %cst_49 [1] : vector<128x128xf32> to vector<128xf32>
    %198 = vector.shape_cast %197 : vector<128xf32> to vector<128x1xf32>
    %cst_50 = arith.constant 0.000000e+00 : f32
    %199 = vector.broadcast %cst_50 : f32 to vector<128x1xf32>
    %200 = arith.subf %199, %198 : vector<128x1xf32>
    %cst_51 = arith.constant -1.000000e+01 : f32
    %cst_52 = arith.constant 1.000000e+01 : f32
    %201 = vector.broadcast %cst_51 : f32 to vector<128x1xf32>
    %202 = arith.maximumf %201, %200 : vector<128x1xf32>
    %203 = vector.broadcast %cst_52 : f32 to vector<128x1xf32>
    %204 = arith.minimumf %203, %202 : vector<128x1xf32>
    %cst_53 = arith.constant 0.000000e+00 : f32
    %205 = vector.broadcast %cst_53 : f32 to vector<128x1xf32>
    %206 = arith.subf %205, %204 : vector<128x1xf32>
    %207 = math.exp %206 : vector<128x1xf32>
    %cst_54 = arith.constant 1.000000e+00 : f32
    %208 = vector.broadcast %cst_54 : f32 to vector<128x1xf32>
    %209 = arith.addf %208, %207 : vector<128x1xf32>
    %210 = math.log %209 : vector<128x1xf32>
    %211 = vector.extract_strided_slice %8 {offsets = [0, 2], sizes = [128, 1], strides = [1, 1]} : vector<128x6xf32> to vector<128x1xf32>
    %212 = arith.mulf %210, %211 : vector<128x1xf32>
    %213 = vector.shape_cast %212 : vector<128x1xf32> to vector<1x128x1xf32>
    %cst_55 = arith.constant dense<0.000000e+00> : vector<1xf32>
    %214 = vector.multi_reduction <add>, %213, %cst_55 [1, 2] : vector<1x128x1xf32> to vector<1xf32>
    %215 = vector.shape_cast %214 : vector<1xf32> to vector<1x1x1xf32>
    %216 = vector.extract %215[0, 0, 0] : f32 from vector<1x1x1xf32>
    %217 = arith.addf %159, %216 : f32
    %218 = vector.extract_strided_slice %6 {offsets = [0, 8], sizes = [128, 1], strides = [1, 1]} : vector<128x20xi32> to vector<128x1xi32>
    %219 = vector.broadcast %218 : vector<128x1xi32> to vector<128x32xi32>
    %220 = arith.cmpi eq, %219, %10 : vector<128x32xi32>
    %221 = vector.extract_strided_slice %7 {offsets = [0, 8], sizes = [128, 1], strides = [1, 1]} : vector<128x20xf32> to vector<128x1xf32>
    %cst_56 = arith.constant 0.000000e+00 : f32
    %222 = vector.shape_cast %221 : vector<128x1xf32> to vector<128x1xf32>
    %223 = vector.broadcast %222 : vector<128x1xf32> to vector<128x32xf32>
    %224 = vector.broadcast %cst_56 : f32 to vector<128x32xf32>
    %225 = arith.select %220, %223, %224 : vector<128x32xi1>, vector<128x32xf32>
    %226 = vector.extract_strided_slice %6 {offsets = [0, 9], sizes = [128, 1], strides = [1, 1]} : vector<128x20xi32> to vector<128x1xi32>
    %227 = vector.broadcast %226 : vector<128x1xi32> to vector<128x32xi32>
    %228 = arith.cmpi eq, %227, %10 : vector<128x32xi32>
    %229 = vector.extract_strided_slice %7 {offsets = [0, 9], sizes = [128, 1], strides = [1, 1]} : vector<128x20xf32> to vector<128x1xf32>
    %cst_57 = arith.constant 0.000000e+00 : f32
    %230 = vector.shape_cast %229 : vector<128x1xf32> to vector<128x1xf32>
    %231 = vector.broadcast %230 : vector<128x1xf32> to vector<128x32xf32>
    %232 = vector.broadcast %cst_57 : f32 to vector<128x32xf32>
    %233 = arith.select %228, %231, %232 : vector<128x32xi1>, vector<128x32xf32>
    %234 = arith.addf %225, %233 : vector<128x32xf32>
    %235 = vector.extract_strided_slice %6 {offsets = [0, 10], sizes = [128, 1], strides = [1, 1]} : vector<128x20xi32> to vector<128x1xi32>
    %236 = vector.broadcast %235 : vector<128x1xi32> to vector<128x32xi32>
    %237 = arith.cmpi eq, %236, %10 : vector<128x32xi32>
    %238 = vector.extract_strided_slice %7 {offsets = [0, 10], sizes = [128, 1], strides = [1, 1]} : vector<128x20xf32> to vector<128x1xf32>
    %cst_58 = arith.constant 0.000000e+00 : f32
    %239 = vector.shape_cast %238 : vector<128x1xf32> to vector<128x1xf32>
    %240 = vector.broadcast %239 : vector<128x1xf32> to vector<128x32xf32>
    %241 = vector.broadcast %cst_58 : f32 to vector<128x32xf32>
    %242 = arith.select %237, %240, %241 : vector<128x32xi1>, vector<128x32xf32>
    %243 = arith.addf %234, %242 : vector<128x32xf32>
    %244 = vector.extract_strided_slice %6 {offsets = [0, 11], sizes = [128, 1], strides = [1, 1]} : vector<128x20xi32> to vector<128x1xi32>
    %245 = vector.broadcast %244 : vector<128x1xi32> to vector<128x32xi32>
    %246 = arith.cmpi eq, %245, %10 : vector<128x32xi32>
    %247 = vector.extract_strided_slice %7 {offsets = [0, 11], sizes = [128, 1], strides = [1, 1]} : vector<128x20xf32> to vector<128x1xf32>
    %cst_59 = arith.constant 0.000000e+00 : f32
    %248 = vector.shape_cast %247 : vector<128x1xf32> to vector<128x1xf32>
    %249 = vector.broadcast %248 : vector<128x1xf32> to vector<128x32xf32>
    %250 = vector.broadcast %cst_59 : f32 to vector<128x32xf32>
    %251 = arith.select %246, %249, %250 : vector<128x32xi1>, vector<128x32xf32>
    %252 = arith.addf %243, %251 : vector<128x32xf32>
    %cst_60 = arith.constant dense<0.000000e+00> : vector<128x128xf32>
    %253 = tpu.matmul %252, %1, %cst_60 {dimension_numbers = #tpu.dot_dimension_numbers<[1], [0], [0], [1], [0, 0, 1, 1], [], []>} : vector<128x32xf32>, vector<32x128xf32>, vector<128x128xf32> -> vector<128x128xf32>
    %254 = arith.mulf %253, %46 : vector<128x128xf32>
    %cst_61 = arith.constant dense<0.000000e+00> : vector<128xf32>
    %255 = vector.multi_reduction <add>, %254, %cst_61 [1] : vector<128x128xf32> to vector<128xf32>
    %256 = vector.shape_cast %255 : vector<128xf32> to vector<128x1xf32>
    %cst_62 = arith.constant 0.000000e+00 : f32
    %257 = vector.broadcast %cst_62 : f32 to vector<128x1xf32>
    %258 = arith.subf %257, %256 : vector<128x1xf32>
    %cst_63 = arith.constant -1.000000e+01 : f32
    %cst_64 = arith.constant 1.000000e+01 : f32
    %259 = vector.broadcast %cst_63 : f32 to vector<128x1xf32>
    %260 = arith.maximumf %259, %258 : vector<128x1xf32>
    %261 = vector.broadcast %cst_64 : f32 to vector<128x1xf32>
    %262 = arith.minimumf %261, %260 : vector<128x1xf32>
    %cst_65 = arith.constant 0.000000e+00 : f32
    %263 = vector.broadcast %cst_65 : f32 to vector<128x1xf32>
    %264 = arith.subf %263, %262 : vector<128x1xf32>
    %265 = math.exp %264 : vector<128x1xf32>
    %cst_66 = arith.constant 1.000000e+00 : f32
    %266 = vector.broadcast %cst_66 : f32 to vector<128x1xf32>
    %267 = arith.addf %266, %265 : vector<128x1xf32>
    %268 = math.log %267 : vector<128x1xf32>
    %269 = vector.extract_strided_slice %8 {offsets = [0, 3], sizes = [128, 1], strides = [1, 1]} : vector<128x6xf32> to vector<128x1xf32>
    %270 = arith.mulf %268, %269 : vector<128x1xf32>
    %271 = vector.shape_cast %270 : vector<128x1xf32> to vector<1x128x1xf32>
    %cst_67 = arith.constant dense<0.000000e+00> : vector<1xf32>
    %272 = vector.multi_reduction <add>, %271, %cst_67 [1, 2] : vector<1x128x1xf32> to vector<1xf32>
    %273 = vector.shape_cast %272 : vector<1xf32> to vector<1x1x1xf32>
    %274 = vector.extract %273[0, 0, 0] : f32 from vector<1x1x1xf32>
    %275 = arith.addf %217, %274 : f32
    %276 = vector.extract_strided_slice %6 {offsets = [0, 12], sizes = [128, 1], strides = [1, 1]} : vector<128x20xi32> to vector<128x1xi32>
    %277 = vector.broadcast %276 : vector<128x1xi32> to vector<128x32xi32>
    %278 = arith.cmpi eq, %277, %10 : vector<128x32xi32>
    %279 = vector.extract_strided_slice %7 {offsets = [0, 12], sizes = [128, 1], strides = [1, 1]} : vector<128x20xf32> to vector<128x1xf32>
    %cst_68 = arith.constant 0.000000e+00 : f32
    %280 = vector.shape_cast %279 : vector<128x1xf32> to vector<128x1xf32>
    %281 = vector.broadcast %280 : vector<128x1xf32> to vector<128x32xf32>
    %282 = vector.broadcast %cst_68 : f32 to vector<128x32xf32>
    %283 = arith.select %278, %281, %282 : vector<128x32xi1>, vector<128x32xf32>
    %284 = vector.extract_strided_slice %6 {offsets = [0, 13], sizes = [128, 1], strides = [1, 1]} : vector<128x20xi32> to vector<128x1xi32>
    %285 = vector.broadcast %284 : vector<128x1xi32> to vector<128x32xi32>
    %286 = arith.cmpi eq, %285, %10 : vector<128x32xi32>
    %287 = vector.extract_strided_slice %7 {offsets = [0, 13], sizes = [128, 1], strides = [1, 1]} : vector<128x20xf32> to vector<128x1xf32>
    %cst_69 = arith.constant 0.000000e+00 : f32
    %288 = vector.shape_cast %287 : vector<128x1xf32> to vector<128x1xf32>
    %289 = vector.broadcast %288 : vector<128x1xf32> to vector<128x32xf32>
    %290 = vector.broadcast %cst_69 : f32 to vector<128x32xf32>
    %291 = arith.select %286, %289, %290 : vector<128x32xi1>, vector<128x32xf32>
    %292 = arith.addf %283, %291 : vector<128x32xf32>
    %293 = vector.extract_strided_slice %6 {offsets = [0, 14], sizes = [128, 1], strides = [1, 1]} : vector<128x20xi32> to vector<128x1xi32>
    %294 = vector.broadcast %293 : vector<128x1xi32> to vector<128x32xi32>
    %295 = arith.cmpi eq, %294, %10 : vector<128x32xi32>
    %296 = vector.extract_strided_slice %7 {offsets = [0, 14], sizes = [128, 1], strides = [1, 1]} : vector<128x20xf32> to vector<128x1xf32>
    %cst_70 = arith.constant 0.000000e+00 : f32
    %297 = vector.shape_cast %296 : vector<128x1xf32> to vector<128x1xf32>
    %298 = vector.broadcast %297 : vector<128x1xf32> to vector<128x32xf32>
    %299 = vector.broadcast %cst_70 : f32 to vector<128x32xf32>
    %300 = arith.select %295, %298, %299 : vector<128x32xi1>, vector<128x32xf32>
    %301 = arith.addf %292, %300 : vector<128x32xf32>
    %302 = vector.extract_strided_slice %6 {offsets = [0, 15], sizes = [128, 1], strides = [1, 1]} : vector<128x20xi32> to vector<128x1xi32>
    %303 = vector.broadcast %302 : vector<128x1xi32> to vector<128x32xi32>
    %304 = arith.cmpi eq, %303, %10 : vector<128x32xi32>
    %305 = vector.extract_strided_slice %7 {offsets = [0, 15], sizes = [128, 1], strides = [1, 1]} : vector<128x20xf32> to vector<128x1xf32>
    %cst_71 = arith.constant 0.000000e+00 : f32
    %306 = vector.shape_cast %305 : vector<128x1xf32> to vector<128x1xf32>
    %307 = vector.broadcast %306 : vector<128x1xf32> to vector<128x32xf32>
    %308 = vector.broadcast %cst_71 : f32 to vector<128x32xf32>
    %309 = arith.select %304, %307, %308 : vector<128x32xi1>, vector<128x32xf32>
    %310 = arith.addf %301, %309 : vector<128x32xf32>
    %cst_72 = arith.constant dense<0.000000e+00> : vector<128x128xf32>
    %311 = tpu.matmul %310, %1, %cst_72 {dimension_numbers = #tpu.dot_dimension_numbers<[1], [0], [0], [1], [0, 0, 1, 1], [], []>} : vector<128x32xf32>, vector<32x128xf32>, vector<128x128xf32> -> vector<128x128xf32>
    %312 = arith.mulf %311, %46 : vector<128x128xf32>
    %cst_73 = arith.constant dense<0.000000e+00> : vector<128xf32>
    %313 = vector.multi_reduction <add>, %312, %cst_73 [1] : vector<128x128xf32> to vector<128xf32>
    %314 = vector.shape_cast %313 : vector<128xf32> to vector<128x1xf32>
    %cst_74 = arith.constant 0.000000e+00 : f32
    %315 = vector.broadcast %cst_74 : f32 to vector<128x1xf32>
    %316 = arith.subf %315, %314 : vector<128x1xf32>
    %cst_75 = arith.constant -1.000000e+01 : f32
    %cst_76 = arith.constant 1.000000e+01 : f32
    %317 = vector.broadcast %cst_75 : f32 to vector<128x1xf32>
    %318 = arith.maximumf %317, %316 : vector<128x1xf32>
    %319 = vector.broadcast %cst_76 : f32 to vector<128x1xf32>
    %320 = arith.minimumf %319, %318 : vector<128x1xf32>
    %cst_77 = arith.constant 0.000000e+00 : f32
    %321 = vector.broadcast %cst_77 : f32 to vector<128x1xf32>
    %322 = arith.subf %321, %320 : vector<128x1xf32>
    %323 = math.exp %322 : vector<128x1xf32>
    %cst_78 = arith.constant 1.000000e+00 : f32
    %324 = vector.broadcast %cst_78 : f32 to vector<128x1xf32>
    %325 = arith.addf %324, %323 : vector<128x1xf32>
    %326 = math.log %325 : vector<128x1xf32>
    %327 = vector.extract_strided_slice %8 {offsets = [0, 4], sizes = [128, 1], strides = [1, 1]} : vector<128x6xf32> to vector<128x1xf32>
    %328 = arith.mulf %326, %327 : vector<128x1xf32>
    %329 = vector.shape_cast %328 : vector<128x1xf32> to vector<1x128x1xf32>
    %cst_79 = arith.constant dense<0.000000e+00> : vector<1xf32>
    %330 = vector.multi_reduction <add>, %329, %cst_79 [1, 2] : vector<1x128x1xf32> to vector<1xf32>
    %331 = vector.shape_cast %330 : vector<1xf32> to vector<1x1x1xf32>
    %332 = vector.extract %331[0, 0, 0] : f32 from vector<1x1x1xf32>
    %333 = arith.addf %275, %332 : f32
    %334 = vector.extract_strided_slice %6 {offsets = [0, 16], sizes = [128, 1], strides = [1, 1]} : vector<128x20xi32> to vector<128x1xi32>
    %335 = vector.broadcast %334 : vector<128x1xi32> to vector<128x32xi32>
    %336 = arith.cmpi eq, %335, %10 : vector<128x32xi32>
    %337 = vector.extract_strided_slice %7 {offsets = [0, 16], sizes = [128, 1], strides = [1, 1]} : vector<128x20xf32> to vector<128x1xf32>
    %cst_80 = arith.constant 0.000000e+00 : f32
    %338 = vector.shape_cast %337 : vector<128x1xf32> to vector<128x1xf32>
    %339 = vector.broadcast %338 : vector<128x1xf32> to vector<128x32xf32>
    %340 = vector.broadcast %cst_80 : f32 to vector<128x32xf32>
    %341 = arith.select %336, %339, %340 : vector<128x32xi1>, vector<128x32xf32>
    %342 = vector.extract_strided_slice %6 {offsets = [0, 17], sizes = [128, 1], strides = [1, 1]} : vector<128x20xi32> to vector<128x1xi32>
    %343 = vector.broadcast %342 : vector<128x1xi32> to vector<128x32xi32>
    %344 = arith.cmpi eq, %343, %10 : vector<128x32xi32>
    %345 = vector.extract_strided_slice %7 {offsets = [0, 17], sizes = [128, 1], strides = [1, 1]} : vector<128x20xf32> to vector<128x1xf32>
    %cst_81 = arith.constant 0.000000e+00 : f32
    %346 = vector.shape_cast %345 : vector<128x1xf32> to vector<128x1xf32>
    %347 = vector.broadcast %346 : vector<128x1xf32> to vector<128x32xf32>
    %348 = vector.broadcast %cst_81 : f32 to vector<128x32xf32>
    %349 = arith.select %344, %347, %348 : vector<128x32xi1>, vector<128x32xf32>
    %350 = arith.addf %341, %349 : vector<128x32xf32>
    %351 = vector.extract_strided_slice %6 {offsets = [0, 18], sizes = [128, 1], strides = [1, 1]} : vector<128x20xi32> to vector<128x1xi32>
    %352 = vector.broadcast %351 : vector<128x1xi32> to vector<128x32xi32>
    %353 = arith.cmpi eq, %352, %10 : vector<128x32xi32>
    %354 = vector.extract_strided_slice %7 {offsets = [0, 18], sizes = [128, 1], strides = [1, 1]} : vector<128x20xf32> to vector<128x1xf32>
    %cst_82 = arith.constant 0.000000e+00 : f32
    %355 = vector.shape_cast %354 : vector<128x1xf32> to vector<128x1xf32>
    %356 = vector.broadcast %355 : vector<128x1xf32> to vector<128x32xf32>
    %357 = vector.broadcast %cst_82 : f32 to vector<128x32xf32>
    %358 = arith.select %353, %356, %357 : vector<128x32xi1>, vector<128x32xf32>
    %359 = arith.addf %350, %358 : vector<128x32xf32>
    %360 = vector.extract_strided_slice %6 {offsets = [0, 19], sizes = [128, 1], strides = [1, 1]} : vector<128x20xi32> to vector<128x1xi32>
    %361 = vector.broadcast %360 : vector<128x1xi32> to vector<128x32xi32>
    %362 = arith.cmpi eq, %361, %10 : vector<128x32xi32>
    %363 = vector.extract_strided_slice %7 {offsets = [0, 19], sizes = [128, 1], strides = [1, 1]} : vector<128x20xf32> to vector<128x1xf32>
    %cst_83 = arith.constant 0.000000e+00 : f32
    %364 = vector.shape_cast %363 : vector<128x1xf32> to vector<128x1xf32>
    %365 = vector.broadcast %364 : vector<128x1xf32> to vector<128x32xf32>
    %366 = vector.broadcast %cst_83 : f32 to vector<128x32xf32>
    %367 = arith.select %362, %365, %366 : vector<128x32xi1>, vector<128x32xf32>
    %368 = arith.addf %359, %367 : vector<128x32xf32>
    %cst_84 = arith.constant dense<0.000000e+00> : vector<128x128xf32>
    %369 = tpu.matmul %368, %1, %cst_84 {dimension_numbers = #tpu.dot_dimension_numbers<[1], [0], [0], [1], [0, 0, 1, 1], [], []>} : vector<128x32xf32>, vector<32x128xf32>, vector<128x128xf32> -> vector<128x128xf32>
    %370 = arith.mulf %369, %46 : vector<128x128xf32>
    %cst_85 = arith.constant dense<0.000000e+00> : vector<128xf32>
    %371 = vector.multi_reduction <add>, %370, %cst_85 [1] : vector<128x128xf32> to vector<128xf32>
    %372 = vector.shape_cast %371 : vector<128xf32> to vector<128x1xf32>
    %cst_86 = arith.constant 0.000000e+00 : f32
    %373 = vector.broadcast %cst_86 : f32 to vector<128x1xf32>
    %374 = arith.subf %373, %372 : vector<128x1xf32>
    %cst_87 = arith.constant -1.000000e+01 : f32
    %cst_88 = arith.constant 1.000000e+01 : f32
    %375 = vector.broadcast %cst_87 : f32 to vector<128x1xf32>
    %376 = arith.maximumf %375, %374 : vector<128x1xf32>
    %377 = vector.broadcast %cst_88 : f32 to vector<128x1xf32>
    %378 = arith.minimumf %377, %376 : vector<128x1xf32>
    %cst_89 = arith.constant 0.000000e+00 : f32
    %379 = vector.broadcast %cst_89 : f32 to vector<128x1xf32>
    %380 = arith.subf %379, %378 : vector<128x1xf32>
    %381 = math.exp %380 : vector<128x1xf32>
    %cst_90 = arith.constant 1.000000e+00 : f32
    %382 = vector.broadcast %cst_90 : f32 to vector<128x1xf32>
    %383 = arith.addf %382, %381 : vector<128x1xf32>
    %384 = math.log %383 : vector<128x1xf32>
    %385 = vector.extract_strided_slice %8 {offsets = [0, 5], sizes = [128, 1], strides = [1, 1]} : vector<128x6xf32> to vector<128x1xf32>
    %386 = arith.mulf %384, %385 : vector<128x1xf32>
    %387 = vector.shape_cast %386 : vector<128x1xf32> to vector<1x128x1xf32>
    %cst_91 = arith.constant dense<0.000000e+00> : vector<1xf32>
    %388 = vector.multi_reduction <add>, %387, %cst_91 [1, 2] : vector<1x128x1xf32> to vector<1xf32>
    %389 = vector.shape_cast %388 : vector<1xf32> to vector<1x1x1xf32>
    %390 = vector.extract %389[0, 0, 0] : f32 from vector<1x1x1xf32>
    %391 = arith.addf %333, %390 : f32
    %392 = vector.broadcast %391 : f32 to vector<1x8x128xf32>
    %c0_92 = arith.constant 0 : index
    %c0_93 = arith.constant 0 : index
    %c0_94 = arith.constant 0 : index
    %393 = vector.load %arg10[%c0_92, %c0_93, %c0_94] : memref<1x8x128xf32, #tpu.memory_space<vmem>>, vector<1x8x128xf32>
    tpu.vector_store %arg10[%c0_92, %c0_93, %c0_94], %392 {strides = array<i32>} : memref<1x8x128xf32, #tpu.memory_space<vmem>>, vector<1x8x128xf32>,
    return
  }
  func.func @transform_0(%arg0: i32) -> (i32, i32) {
    %c0_i32 = arith.constant 0 : i32
    %c0_i32_0 = arith.constant 0 : i32
    return %arg0, %c0_i32 : i32, i32
  }
  func.func @transform_1(%arg0: i32) -> (i32, i32) {
    %c0_i32 = arith.constant 0 : i32
    %c0_i32_0 = arith.constant 0 : i32
    return %arg0, %c0_i32 : i32, i32
  }
  func.func @transform_2(%arg0: i32) -> (i32, i32) {
    %c0_i32 = arith.constant 0 : i32
    %c0_i32_0 = arith.constant 0 : i32
    return %arg0, %c0_i32 : i32, i32
  }
  func.func @transform_3(%arg0: i32) -> (i32, i32) {
    %c0_i32 = arith.constant 0 : i32
    %c0_i32_0 = arith.constant 0 : i32
    return %arg0, %c0_i32 : i32, i32
  }
  func.func @transform_4(%arg0: i32) -> (i32, i32) {
    %c0_i32 = arith.constant 0 : i32
    %c0_i32_0 = arith.constant 0 : i32
    return %arg0, %c0_i32 : i32, i32
  }
  func.func @transform_5(%arg0: i32) -> (i32, i32) {
    %c0_i32 = arith.constant 0 : i32
    %c0_i32_0 = arith.constant 0 : i32
    return %arg0, %c0_i32 : i32, i32
  }
  func.func @transform_6(%arg0: i32) -> (i32, i32) {
    %c0_i32 = arith.constant 0 : i32
    %c0_i32_0 = arith.constant 0 : i32
    return %arg0, %c0_i32 : i32, i32
  }
  func.func @transform_7(%arg0: i32) -> (i32, i32) {
    %c0_i32 = arith.constant 0 : i32
    %c0_i32_0 = arith.constant 0 : i32
    %c0_i32_1 = arith.constant 0 : i32
    return %c0_i32, %c0_i32_0 : i32, i32
  }
  func.func @transform_8(%arg0: i32) -> (i32, i32) {
    %c0_i32 = arith.constant 0 : i32
    %c0_i32_0 = arith.constant 0 : i32
    %c0_i32_1 = arith.constant 0 : i32
    return %c0_i32, %c0_i32_0 : i32, i32
  }
  func.func @transform_9(%arg0: i32) -> (i32, i32, i32) {
    %c0_i32 = arith.constant 0 : i32
    %c0_i32_0 = arith.constant 0 : i32
    %c0_i32_1 = arith.constant 0 : i32
    return %arg0, %c0_i32, %c0_i32_0 : i32, i32, i32
  }
}

</mosaic_0001>

<bundles_post_ra>
// kernel: tpu_custom_call.1
= control target key start
LH: loop header
LB: loop body
LE: loop exit
PB: predicated region body
PF: predicated region fallthrough
CT: control target
= control target key end

     0   :  { %s15243_s0 = inlined_call_operand.vmem [shape: s32[256,4], index: 0, kind: input, shape index: {}]   ;;  %s15244_s1 = inlined_call_operand.vmem [shape: f32[256,4], index: 1, kind: input, shape index: {}]   ;;  %s15245_s2 = inlined_call_operand.vmem [shape: s32[256,4], index: 2, kind: input, shape index: {}]   ;;  %s15246_s3 = inlined_call_operand.vmem [shape: f32[256,4], index: 3, kind: input, shape index: {}]   ;;  %s15247_s4 = inlined_call_operand.vmem [shape: s32[256,20], index: 4, kind: input, shape index: {}]   ;;  %s15248_s5 = inlined_call_operand.vmem [shape: f32[256,20], index: 5, kind: input, shape index: {}]   ;;  %s15249_s6 = inlined_call_operand.vmem [shape: f32[256,6], index: 6, kind: input, shape index: {}]   ;;  %s15250_s7 = inlined_call_operand.vmem [shape: f32[24,128], index: 7, kind: input, shape index: {}]   ;;  %s15251_s8 = inlined_call_operand.vmem [shape: f32[32,128], index: 8, kind: input, shape index: {}]   ;;  %s15252_s9 = inlined_call_operand.hbm [shape: f32[2,8,128], index: 9, kind: output, shape index: {}]  }
   0x1   :  { %15385 = sst [smem:[#allocation172_spill]] %s15243_s0 }
   0x2   :  { %15386 = sst [smem:[#allocation173_spill]] %s15244_s1 }
   0x3   :  { %15387 = sst [smem:[#allocation174_spill]] %s15245_s2 }
   0x4   :  { %15388 = sst [smem:[#allocation175_spill]] %s15246_s3 }
   0x5   :  { %15389 = sst [smem:[#allocation176_spill]] %s15247_s4 }
   0x6   :  { %15390 = sst [smem:[#allocation177_spill]] %s15248_s5 }
   0x7   :  { %15391 = sst [smem:[#allocation178_spill]] %s15249_s6 }
   0x8   :  { %14 = vsyncpa [#allocation3], 0 }
   0x9   :  { %16 = vsyncpa [#allocation3 + $0x1], 0  ;;  %s9865_s30 = smov 0   ;;  %s9867_s10 = smov 0  }
   0xa   :  { %s9869_s11 = smov 0   ;;  %s9871_s12 = smov 0  }
   0xb LB: > { %s9886_s13 = sadd.s32 4294967295, %s9787_s12   ;;  %s8300_s14 = sadd.s32 4294967294, %s9787_s12   ;;  %s9787_s12 = sphi %s9871_s12, %s16273_s12   ;;  %s9783_s11 = sphi %s9869_s11, %s16272_s11   ;;  %s9779_s10 = sphi %s9867_s10, %s16271_s10   ;;  %s9775_s30 = sphi %s9865_s30, %s16270_s30  }
   0xc   : > { %s9890_s15 = sadd.s32 1, %s9787_s12   ;;  %s253_s16 = sadd.s32 1, %s9783_s11 }
   0xd   : > { %s250_s17 = ssub.s32 %s9787_s12, %s9890_s15  ;;  %p263_p0 = scmp.ne.s32.totalorder %s9783_s11, %s9779_s10 }
   0xe   : > { %p251_p1 = scmp.eq.s32.totalorder %s250_s17, 0  ;;  %p264_p2 = scmp.eq.s32.totalorder %s9886_s13, 1 }
   0xf   : > { %p269_p3 = scmp.ne.s32.totalorder %s9779_s10, %s9775_s30  ;;  %p270_p4 = scmp.eq.s32.totalorder %s8300_s14, 1 }
  0x10   : > { %s9901_s18 = scalar_select %p251_p1, %s9783_s11, %s253_s16  }
  0x11   : > { %p9903_p5 = por %p264_p2, %p263_p0  ;;  %p9907_p6 = por %p270_p4, %p269_p3 }
  0x12   : > { %p8303_p7 = scmp.ge.s32.totalorder %s9787_s12, 1  ;;  %p357_p8 = scmp.lt.s32.totalorder %s9787_s12, 3 }
  0x14   : > { %p358_p9 = pnand %p8303_p7, %p357_p8 }
  0x16   : > { %361 = sbr.rel (%p358_p9) target bundleno = 5959 (0x1747), region = 56 }
  0x1d   : > { %s8305_s21 = sshll.u32 %s9886_s13, 4  ;;  %v15255_v0 = vmov 1   ;;  %v15257_v1 = vmov 0   ;;  %s15394_s0 = sld [smem:[#allocation172_spill]]  ;;  %v15253_v52 = vmov 2  }
  0x1e   : > { %9025 = vset.pattern.permute.xlu0 %v15255_v0  ;;  %9024 = vset.pattern.permute.xlu1 %v15257_v1  ;;  %p424_p10 = scmp.lt.s32.totalorder %s8305_s21, 31  ;;  %s15395_s1 = sld [smem:[#allocation173_spill]] }
  0x1f   : > { %s15396_s2 = sld [smem:[#allocation174_spill]]  ;;  %s15398_s3 = sld [smem:[#allocation175_spill]] }
  0x20   : > { %s16275_s21 = smov (!%p424_p10, %s8305_s21), 31  ;;  %s15769_s4 = sld [smem:[#allocation176_spill]] }
  0x21   : > { %s9916_s22 = sshll.u32 %s16275_s21, 3  ;;  %s15770_s5 = sld [smem:[#allocation177_spill]] }
  0x22   : > { %s15772_s6 = sld [smem:[#allocation178_spill]]  ;;  %s9804_s26 = smov 125  }
  0x23   : > { %s9922_s25 = scalar_lea.vmem %s15394_s0, %s9916_s22  ;;  %s9809_s27 = smov 124  }
  0x24   : > { %v9925_v2 = vld [vmem:[%s9922_s25 + $0x10] sm:$0xff]  ;;  %v9928_v3 = vld [vmem:[%s9922_s25] sm:$0xff]  ;;  %v9933_v4 = vld [vmem:[%s9922_s25 + $0x18] sm:$0xff]  ;;  %s9969_s28 = scalar_lea.vmem %s15395_s1, %s9916_s22 }
  0x25   : > { %593 = vperm.xlu1 %9024, %v9925_v2   ;;  %747 = vperm.xlu0 %9025, %v9928_v3   ;;  %v9938_v5 = vld [vmem:[%s9922_s25 + $0x28] sm:$0xff]  ;;  %v9943_v6 = vld [vmem:[%s9922_s25 + $0x38] sm:$0xff]  ;;  %s10015_s16 = scalar_lea.vmem %s15396_s2, %s9916_s22  ;;  %v10037_v23 = vld [vmem:[%s9922_s25 + $0x20] sm:$0xff]  ;;  %s10083_s23 = scalar_lea.vmem %s15398_s3, %s9916_s22 }
  0x26   : > { %v9948_v7 = vld [vmem:[%s9922_s25 + $0x48] sm:$0xff]  ;;  %v9953_v8 = vld [vmem:[%s9922_s25 + $0x58] sm:$0xff]  ;;  %v10020_v19 = vld [vmem:[%s10015_s16] sm:$0xff]  ;;  %s11482_s29 = scalar_lea.vmem %s15769_s4, %s9916_s22 }
  0x27   : > { %v9958_v9 = vld [vmem:[%s9922_s25 + $0x68] sm:$0xff]  ;;  %v9963_v10 = vld [vmem:[%s9922_s25 + $0x78] sm:$0xff]  ;;  %v10045_v25 = vld [vmem:[%s9922_s25 + $0x30] sm:$0xff]  ;;  %s11535_s17 = scalar_lea.vmem %s15770_s5, %s9916_s22 }
  0x28   : > { %v9974_v11 = vld [vmem:[%s9969_s28 + $0x8] sm:$0xff]  ;;  %v9979_v12 = vld [vmem:[%s9969_s28 + $0x18] sm:$0xff]  ;;  %v10053_v27 = vld [vmem:[%s9922_s25 + $0x40] sm:$0xff]  ;;  %s11607_s24 = scalar_lea.vmem %s15772_s6, %s9916_s22  ;;  %s9794_s22 = smov 127  }
  0x29   : > { %596 = vperm.xlu1 %9024, %v9933_v4   ;;  %756 = vperm.xlu0 %9025, %v9933_v4   ;;  %v9984_v13 = vld [vmem:[%s9969_s28 + $0x28] sm:$0xff]  ;;  %v9989_v14 = vld [vmem:[%s9969_s28 + $0x38] sm:$0xff]  ;;  %v10061_v29 = vld [vmem:[%s9922_s25 + $0x50] sm:$0xff] }
  0x2a   : > { %v9994_v15 = vld [vmem:[%s9969_s28 + $0x48] sm:$0xff]  ;;  %v9999_v16 = vld [vmem:[%s9969_s28 + $0x58] sm:$0xff]  ;;  %v10069_v31 = vld [vmem:[%s9922_s25 + $0x60] sm:$0xff] }
  0x2b   : > { %v10004_v17 = vld [vmem:[%s9969_s28 + $0x68] sm:$0xff]  ;;  %v10009_v18 = vld [vmem:[%s9969_s28 + $0x78] sm:$0xff]  ;;  %v10077_v33 = vld [vmem:[%s9922_s25 + $0x70] sm:$0xff] }
  0x2c   : > { %v10023_v20 = vld [vmem:[%s9922_s25 + $0x8] sm:$0xff]  ;;  %v10029_v21 = vld [vmem:[%s10015_s16 + $0x18] sm:$0xff]  ;;  %15397 = vst [vmem:[#allocation5_spill] sm:$0xff] %v10077_v33  ;;  %v10091_v35 = vld [vmem:[%s9969_s28] sm:$0xff]  ;;  %s9799_s25 = smov 126  }
  0x2d   : > { %602 = vperm.xlu1 %9024, %v9938_v5   ;;  %762 = vperm.xlu0 %9025, %v9938_v5   ;;  %v10034_v22 = vld [vmem:[%s10015_s16 + $0x28] sm:$0xff]  ;;  %v10042_v24 = vld [vmem:[%s10015_s16 + $0x38] sm:$0xff]  ;;  %15399 = vst [vmem:[#allocation6_spill] sm:$0xff] %v10091_v35  ;;  %v10099_v37 = vld [vmem:[%s9969_s28 + $0x10] sm:$0xff] }
  0x2e   : > { %v10050_v26 = vld [vmem:[%s10015_s16 + $0x48] sm:$0xff]  ;;  %v10058_v28 = vld [vmem:[%s10015_s16 + $0x58] sm:$0xff]  ;;  %15400 = vst [vmem:[#allocation7_spill] sm:$0xff] %v10099_v37  ;;  %v10107_v39 = vld [vmem:[%s9969_s28 + $0x20] sm:$0xff] }
  0x2f   : > { %v10066_v30 = vld [vmem:[%s10015_s16 + $0x68] sm:$0xff]  ;;  %v10074_v32 = vld [vmem:[%s10015_s16 + $0x78] sm:$0xff]  ;;  %15401 = vst [vmem:[#allocation8_spill] sm:$0xff] %v10107_v39  ;;  %v10115_v41 = vld [vmem:[%s9969_s28 + $0x30] sm:$0xff] }
  0x30   : > { %v10088_v34 = vld [vmem:[%s10083_s23 + $0x8] sm:$0xff]  ;;  %v10096_v36 = vld [vmem:[%s10083_s23 + $0x18] sm:$0xff]  ;;  %v10123_v43 = vld [vmem:[%s9969_s28 + $0x40] sm:$0xff] }
  0x31   : > { %608 = vperm.xlu1 %9024, %v9943_v6   ;;  %768 = vperm.xlu0 %9025, %v9943_v6   ;;  %v10104_v38 = vld [vmem:[%s10083_s23 + $0x28] sm:$0xff]  ;;  %v10112_v40 = vld [vmem:[%s10083_s23 + $0x38] sm:$0xff]  ;;  %v10131_v45 = vld [vmem:[%s9969_s28 + $0x50] sm:$0xff] }
  0x32   : > { %v10120_v42 = vld [vmem:[%s10083_s23 + $0x48] sm:$0xff]  ;;  %v10128_v44 = vld [vmem:[%s10083_s23 + $0x58] sm:$0xff]  ;;  %v10139_v47 = vld [vmem:[%s9969_s28 + $0x60] sm:$0xff] }
  0x33   : > { %v10136_v46 = vld [vmem:[%s10083_s23 + $0x68] sm:$0xff]  ;;  %v10144_v48 = vld [vmem:[%s10083_s23 + $0x78] sm:$0xff]  ;;  %v10147_v49 = vld [vmem:[%s9969_s28 + $0x70] sm:$0xff]  ;;  %s9813_s28 = smov 123  }
  0x35   : > { %614 = vperm.xlu1 %9024, %v9948_v7   ;;  %774 = vperm.xlu0 %9025, %v9948_v7  }
  0x39   : > { %620 = vperm.xlu1 %9024, %v9953_v8   ;;  %780 = vperm.xlu0 %9025, %v9953_v8  }
  0x3d   : > { %626 = vperm.xlu1 %9024, %v9958_v9   ;;  %786 = vperm.xlu0 %9025, %v9958_v9  }
  0x41   : > { %632 = vperm.xlu1 %9024, %v9963_v10   ;;  %792 = vperm.xlu0 %9025, %v9963_v10  }
  0x45   : > { %657 = vperm.xlu1 %9024, %v9974_v11   ;;  %815 = vperm.xlu0 %9025, %v9974_v11  }
  0x49   : > { %667 = vperm.xlu1 %9024, %v9979_v12   ;;  %823 = vperm.xlu0 %9025, %v9979_v12  }
  0x4d   : > { %677 = vperm.xlu1 %9024, %v9984_v13   ;;  %831 = vperm.xlu0 %9025, %v9984_v13  }
  0x51   : > { %687 = vperm.xlu1 %9024, %v9989_v14   ;;  %839 = vperm.xlu0 %9025, %v9989_v14  }
  0x55   : > { %697 = vperm.xlu1 %9024, %v9994_v15   ;;  %847 = vperm.xlu0 %9025, %v9994_v15  }
  0x59   : > { %707 = vperm.xlu1 %9024, %v9999_v16   ;;  %855 = vperm.xlu0 %9025, %v9999_v16  }
  0x5d   : > { %717 = vperm.xlu1 %9024, %v10004_v17   ;;  %863 = vperm.xlu0 %9025, %v10004_v17  }
  0x61   : > { %727 = vperm.xlu1 %9024, %v10009_v18   ;;  %871 = vperm.xlu0 %9025, %v10009_v18  }
  0x65   : > { %9026 = vset.pattern.permute.xlu1 %v15255_v0  ;;  %1581 = vperm.xlu0 %9025, %v10020_v19  }
  0x66   : > { %750 = vperm.xlu1 %9026, %v10023_v20  }
  0x69   : > { %1590 = vperm.xlu0 %9025, %v10029_v21  }
  0x6a   : > { %753 = vperm.xlu1 %9026, %v9925_v2  }
  0x6d   : > { %1596 = vperm.xlu0 %9025, %v10034_v22  }
  0x6e   : > { %759 = vperm.xlu1 %9026, %v10037_v23  }
  0x71   : > { %1602 = vperm.xlu0 %9025, %v10042_v24  }
  0x72   : > { %765 = vperm.xlu1 %9026, %v10045_v25  }
  0x75   : > { %1608 = vperm.xlu0 %9025, %v10050_v26  }
  0x76   : > { %771 = vperm.xlu1 %9026, %v10053_v27  }
  0x79   : > { %1614 = vperm.xlu0 %9025, %v10058_v28  }
  0x7a   : > { %777 = vperm.xlu1 %9026, %v10061_v29  }
  0x7d   : > { %1620 = vperm.xlu0 %9025, %v10066_v30  }
  0x7e   : > { %783 = vperm.xlu1 %9026, %v10069_v31  }
  0x81   : > { %1626 = vperm.xlu0 %9025, %v10074_v32  }
  0x82   : > { %789 = vperm.xlu1 %9026, %v10077_v33  }
  0x85   : > { %1649 = vperm.xlu0 %9025, %v10088_v34  }
  0x86   : > { %811 = vperm.xlu1 %9026, %v10091_v35  }
  0x89   : > { %1657 = vperm.xlu0 %9025, %v10096_v36  }
  0x8a   : > { %819 = vperm.xlu1 %9026, %v10099_v37  }
  0x8d   : > { %1665 = vperm.xlu0 %9025, %v10104_v38  }
  0x8e   : > { %827 = vperm.xlu1 %9026, %v10107_v39  }
  0x91   : > { %1673 = vperm.xlu0 %9025, %v10112_v40  }
  0x92   : > { %835 = vperm.xlu1 %9026, %v10115_v41  }
  0x95   : > { %1681 = vperm.xlu0 %9025, %v10120_v42  }
  0x96   : > { %843 = vperm.xlu1 %9026, %v10123_v43  }
  0x99   : > { %1689 = vperm.xlu0 %9025, %v10128_v44  }
  0x9a   : > { %851 = vperm.xlu1 %9026, %v10131_v45  }
  0x9d   : > { %1697 = vperm.xlu0 %9025, %v10136_v46  }
  0x9e   : > { %859 = vperm.xlu1 %9026, %v10139_v47  }
  0xa1   : > { %1705 = vperm.xlu0 %9025, %v10144_v48  }
  0xa2   : > { %867 = vperm.xlu1 %9026, %v10147_v49  }
  0xa4   : > { %v10151_v50 = vpop.permute.xlu1 %593  ;;  %v10153_v51 = vpop.permute.xlu0 %747 }
  0xa5   : > { %15402 = vst [vmem:[#allocation9_spill] sm:$0xff] %v10151_v50  ;;  %15403 = vst [vmem:[#allocation10_spill] sm:$0xff] %v10153_v51  ;;  %9031 = vset.pattern.permute.xlu0 %v15253_v52 }
  0xa6   : > { %9027 = vset.pattern.permute.xlu1 %v15253_v52  ;;  %910 = vperm.xlu0 %9031, %v10023_v20  }
  0xa7   : > { %907 = vperm.xlu1 %9027, %v9928_v3  }
  0xa8   : > { %v10159_v53 = vpop.permute.xlu1 %596  ;;  %v10161_v54 = vpop.permute.xlu0 %756 }
  0xa9   : > { %15404 = vst [vmem:[#allocation11_spill] sm:$0xff] %v10159_v53  ;;  %15405 = vst [vmem:[#allocation12_spill] sm:$0xff] %v10161_v54  ;;  %v10343_v54 = vld [vmem:[%s10083_s23 + $0x40] sm:$0xff]  ;;  %v10352_v53 = vld [vmem:[%s10083_s23 + $0x50] sm:$0xff] }
  0xaa   : > { %919 = vperm.xlu0 %9031, %v10037_v23  }
  0xab   : > { %913 = vperm.xlu1 %9027, %v9925_v2  }
  0xac   : > { %v10165_v55 = vpop.permute.xlu1 %602  ;;  %v10167_v56 = vpop.permute.xlu0 %762 }
  0xad   : > { %15406 = vst [vmem:[#allocation13_spill] sm:$0xff] %v10165_v55  ;;  %15407 = vst [vmem:[#allocation14_spill] sm:$0xff] %v10167_v56  ;;  %v10325_v56 = vld [vmem:[%s10083_s23 + $0x20] sm:$0xff]  ;;  %v10334_v55 = vld [vmem:[%s10083_s23 + $0x30] sm:$0xff] }
  0xae   : > { %925 = vperm.xlu0 %9031, %v10045_v25  }
  0xaf   : > { %916 = vperm.xlu1 %9027, %v9933_v4  }
  0xb0   : > { %v10171_v57 = vpop.permute.xlu1 %608  ;;  %v10173_v58 = vpop.permute.xlu0 %768 }
  0xb1   : > { %15408 = vst [vmem:[#allocation15_spill] sm:$0xff] %v10171_v57  ;;  %15409 = vst [vmem:[#allocation16_spill] sm:$0xff] %v10173_v58  ;;  %v10298_v58 = vld [vmem:[%s10015_s16 + $0x70] sm:$0xff] }
  0xb2   : > { %931 = vperm.xlu0 %9031, %v10053_v27   ;;  %v10316_v57 = vld [vmem:[%s10083_s23 + $0x10] sm:$0xff] }
  0xb3   : > { %922 = vperm.xlu1 %9027, %v9938_v5  }
  0xb4   : > { %v10177_v59 = vpop.permute.xlu1 %614  ;;  %v10179_v60 = vpop.permute.xlu0 %774 }
  0xb5   : > { %15410 = vst [vmem:[#allocation17_spill] sm:$0xff] %v10177_v59  ;;  %15411 = vst [vmem:[#allocation18_spill] sm:$0xff] %v10179_v60 }
  0xb6   : > { %937 = vperm.xlu0 %9031, %v10061_v29  }
  0xb7   : > { %928 = vperm.xlu1 %9027, %v9943_v6  }
  0xb8   : > { %v10183_v61 = vpop.permute.xlu1 %620  ;;  %v10185_v62 = vpop.permute.xlu0 %780 }
  0xb9   : > { %15412 = vst [vmem:[#allocation19_spill] sm:$0xff] %v10183_v61  ;;  %15413 = vst [vmem:[#allocation20_spill] sm:$0xff] %v10185_v62  ;;  %v10262_v62 = vld [vmem:[%s10015_s16 + $0x30] sm:$0xff]  ;;  %v15266_v61 = vmov 3  }
  0xba   : > { %943 = vperm.xlu0 %9031, %v10069_v31  }
  0xbb   : > { %934 = vperm.xlu1 %9027, %v9948_v7  }
  0xbc   : > { %v10189_v63 = vpop.permute.xlu1 %626  ;;  %v10191_v52 = vpop.permute.xlu0 %786 }
  0xbd   : > { %15414 = vst [vmem:[#allocation21_spill] sm:$0xff] %v10189_v63  ;;  %15415 = vst [vmem:[#allocation22_spill] sm:$0xff] %v10191_v52 }
  0xbe   : > { %949 = vperm.xlu0 %9031, %v10077_v33  }
  0xbf   : > { %940 = vperm.xlu1 %9027, %v9953_v8  }
  0xc0   : > { %v10195_v0 = vpop.permute.xlu1 %632  ;;  %v10197_v1 = vpop.permute.xlu0 %792 }
  0xc1   : > { %15416 = vst [vmem:[#allocation23_spill] sm:$0xff] %v10195_v0  ;;  %15417 = vst [vmem:[#allocation24_spill] sm:$0xff] %v10197_v1 }
  0xc2   : > { %971 = vperm.xlu0 %9031, %v10091_v35  }
  0xc3   : > { %946 = vperm.xlu1 %9027, %v9958_v9  }
  0xc4   : > { %v10201_v51 = vpop.permute.xlu1 %657  ;;  %v10203_v50 = vpop.permute.xlu0 %815 }
  0xc5   : > { %15418 = vst [vmem:[#allocation25_spill] sm:$0xff] %v10201_v51  ;;  %15419 = vst [vmem:[#allocation26_spill] sm:$0xff] %v10203_v50 }
  0xc6   : > { %979 = vperm.xlu0 %9031, %v10099_v37  }
  0xc7   : > { %952 = vperm.xlu1 %9027, %v9963_v10  }
  0xc8   : > { %v10207_v52 = vpop.permute.xlu1 %667  ;;  %v10209_v63 = vpop.permute.xlu0 %823 }
  0xc9   : > { %15420 = vst [vmem:[#allocation27_spill] sm:$0xff] %v10207_v52  ;;  %15421 = vst [vmem:[#allocation28_spill] sm:$0xff] %v10209_v63 }
  0xca   : > { %987 = vperm.xlu0 %9031, %v10107_v39  }
  0xcb   : > { %975 = vperm.xlu1 %9027, %v9974_v11  }
  0xcc   : > { %v10213_v1 = vpop.permute.xlu1 %677  ;;  %v10215_v0 = vpop.permute.xlu0 %831 }
  0xcd   : > { %15422 = vst [vmem:[#allocation29_spill] sm:$0xff] %v10213_v1  ;;  %15423 = vst [vmem:[#allocation30_spill] sm:$0xff] %v10215_v0 }
  0xce   : > { %995 = vperm.xlu0 %9031, %v10115_v41  }
  0xcf   : > { %983 = vperm.xlu1 %9027, %v9979_v12  }
  0xd0   : > { %v10219_v50 = vpop.permute.xlu1 %687  ;;  %v10221_v51 = vpop.permute.xlu0 %839 }
  0xd1   : > { %15424 = vst [vmem:[#allocation31_spill] sm:$0xff] %v10219_v50  ;;  %15425 = vst [vmem:[#allocation32_spill] sm:$0xff] %v10221_v51 }
  0xd2   : > { %1003 = vperm.xlu0 %9031, %v10123_v43  }
  0xd3   : > { %991 = vperm.xlu1 %9027, %v9984_v13  }
  0xd4   : > { %v10225_v63 = vpop.permute.xlu1 %697  ;;  %v10227_v52 = vpop.permute.xlu0 %847 }
  0xd5   : > { %15426 = vst [vmem:[#allocation33_spill] sm:$0xff] %v10225_v63  ;;  %15427 = vst [vmem:[#allocation34_spill] sm:$0xff] %v10227_v52  ;;  %v10244_v52 = vld [vmem:[%s10015_s16 + $0x8] sm:$0xff] }
  0xd6   : > { %1011 = vperm.xlu0 %9031, %v10131_v45  }
  0xd7   : > { %999 = vperm.xlu1 %9027, %v9989_v14  }
  0xd8   : > { %v10231_v0 = vpop.permute.xlu1 %707  ;;  %v10233_v1 = vpop.permute.xlu0 %855 }
  0xd9   : > { %15428 = vst [vmem:[#allocation35_spill] sm:$0xff] %v10231_v0  ;;  %15429 = vst [vmem:[#allocation36_spill] sm:$0xff] %v10233_v1  ;;  %v10253_v1 = vld [vmem:[%s10015_s16 + $0x20] sm:$0xff] }
  0xda   : > { %1019 = vperm.xlu0 %9031, %v10139_v47  }
  0xdb   : > { %1007 = vperm.xlu1 %9027, %v9994_v15  }
  0xdc   : > { %v10237_v51 = vpop.permute.xlu1 %717  ;;  %v10239_v50 = vpop.permute.xlu0 %863 }
  0xdd   : > { %15430 = vst [vmem:[#allocation37_spill] sm:$0xff] %v10237_v51  ;;  %15431 = vst [vmem:[#allocation38_spill] sm:$0xff] %v10239_v50 }
  0xde   : > { %1027 = vperm.xlu0 %9031, %v10147_v49  }
  0xdf   : > { %1015 = vperm.xlu1 %9027, %v9999_v16  }
  0xe0   : > { %v10246_v63 = vpop.permute.xlu1 %727  ;;  %v10248_v0 = vpop.permute.xlu0 %871 }
  0xe1   : > { %15432 = vst [vmem:[#allocation39_spill] sm:$0xff] %v10246_v63  ;;  %15433 = vst [vmem:[#allocation40_spill] sm:$0xff] %v10248_v0 }
  0xe2   : > { %1744 = vperm.xlu0 %9031, %v10244_v52  }
  0xe3   : > { %1023 = vperm.xlu1 %9027, %v10004_v17  }
  0xe4   : > { %v10255_v51 = vpop.permute.xlu0 %1581 }
  0xe5   : > { %15434 = vst [vmem:[#allocation41_spill] sm:$0xff] %v10255_v51  ;;  %v10257_v50 = vpop.permute.xlu1 %750  ;;  %v10271_v51 = vld [vmem:[%s10015_s16 + $0x40] sm:$0xff] }
  0xe6   : > { %15435 = vst [vmem:[#allocation42_spill] sm:$0xff] %v10257_v50  ;;  %1753 = vperm.xlu0 %9031, %v10253_v1  }
  0xe7   : > { %1031 = vperm.xlu1 %9027, %v10009_v18  }
  0xe8   : > { %v10264_v63 = vpop.permute.xlu0 %1590 }
  0xe9   : > { %15436 = vst [vmem:[#allocation43_spill] sm:$0xff] %v10264_v63  ;;  %v10266_v0 = vpop.permute.xlu1 %753  ;;  %v10280_v63 = vld [vmem:[%s10015_s16 + $0x50] sm:$0xff] }
  0xea   : > { %15437 = vst [vmem:[#allocation44_spill] sm:$0xff] %v10266_v0  ;;  %1759 = vperm.xlu0 %9031, %v10262_v62  }
  0xeb   : > { %9028 = vset.pattern.permute.xlu1 %v15266_v61  ;;  %v10289_v61 = vld [vmem:[%s10015_s16 + $0x60] sm:$0xff] }
  0xec   : > { %1070 = vperm.xlu1 %9028, %v10023_v20   ;;  %v10274_v50 = vpop.permute.xlu0 %1596 }
  0xed   : > { %15438 = vst [vmem:[#allocation45_spill] sm:$0xff] %v10274_v50  ;;  %v10276_v60 = vpop.permute.xlu1 %759 }
  0xee   : > { %15439 = vst [vmem:[#allocation46_spill] sm:$0xff] %v10276_v60  ;;  %1765 = vperm.xlu0 %9031, %v10271_v51  }
  0xf0   : > { %1073 = vperm.xlu1 %9028, %v9925_v2   ;;  %v10283_v0 = vpop.permute.xlu0 %1602 }
  0xf1   : > { %15440 = vst [vmem:[#allocation47_spill] sm:$0xff] %v10283_v0  ;;  %v10285_v59 = vpop.permute.xlu1 %765 }
  0xf2   : > { %15441 = vst [vmem:[#allocation48_spill] sm:$0xff] %v10285_v59  ;;  %1771 = vperm.xlu0 %9031, %v10280_v63   ;;  %v10307_v59 = vld [vmem:[%s10083_s23] sm:$0xff] }
  0xf4   : > { %1079 = vperm.xlu1 %9028, %v10037_v23   ;;  %v10292_v50 = vpop.permute.xlu0 %1608 }
  0xf5   : > { %15442 = vst [vmem:[#allocation49_spill] sm:$0xff] %v10292_v50  ;;  %v10294_v60 = vpop.permute.xlu1 %771 }
  0xf6   : > { %15443 = vst [vmem:[#allocation50_spill] sm:$0xff] %v10294_v60  ;;  %1777 = vperm.xlu0 %9031, %v10289_v61  }
  0xf8   : > { %1085 = vperm.xlu1 %9028, %v10045_v25   ;;  %v10301_v2 = vpop.permute.xlu0 %1614 }
  0xf9   : > { %15444 = vst [vmem:[#allocation51_spill] sm:$0xff] %v10301_v2  ;;  %v10303_v0 = vpop.permute.xlu1 %777 }
  0xfa   : > { %15445 = vst [vmem:[#allocation52_spill] sm:$0xff] %v10303_v0  ;;  %1783 = vperm.xlu0 %9031, %v10298_v58  }
  0xfc   : > { %1091 = vperm.xlu1 %9028, %v10053_v27   ;;  %v10310_v50 = vpop.permute.xlu0 %1620 }
  0xfd   : > { %15446 = vst [vmem:[#allocation53_spill] sm:$0xff] %v10310_v50  ;;  %v10312_v60 = vpop.permute.xlu1 %783 }
  0xfe   : > { %15447 = vst [vmem:[#allocation54_spill] sm:$0xff] %v10312_v60  ;;  %1805 = vperm.xlu0 %9031, %v10307_v59  }
 0x100   : > { %1097 = vperm.xlu1 %9028, %v10061_v29   ;;  %v10319_v2 = vpop.permute.xlu0 %1626 }
 0x101   : > { %15448 = vst [vmem:[#allocation55_spill] sm:$0xff] %v10319_v2  ;;  %v10321_v0 = vpop.permute.xlu1 %789 }
 0x102   : > { %15449 = vst [vmem:[#allocation56_spill] sm:$0xff] %v10321_v0  ;;  %1813 = vperm.xlu0 %9031, %v10316_v57  }
 0x104   : > { %1103 = vperm.xlu1 %9028, %v10069_v31   ;;  %v10328_v50 = vpop.permute.xlu0 %1649 }
 0x105   : > { %15450 = vst [vmem:[#allocation57_spill] sm:$0xff] %v10328_v50  ;;  %v10330_v60 = vpop.permute.xlu1 %811 }
 0x106   : > { %15451 = vst [vmem:[#allocation58_spill] sm:$0xff] %v10330_v60  ;;  %1821 = vperm.xlu0 %9031, %v10325_v56  }
 0x108   : > { %1109 = vperm.xlu1 %9028, %v10077_v33   ;;  %v10337_v2 = vpop.permute.xlu0 %1657  ;;  %v10361_v33 = vld [vmem:[%s10083_s23 + $0x60] sm:$0xff] }
 0x109   : > { %15452 = vst [vmem:[#allocation59_spill] sm:$0xff] %v10337_v2  ;;  %v10339_v0 = vpop.permute.xlu1 %819 }
 0x10a   : > { %15453 = vst [vmem:[#allocation60_spill] sm:$0xff] %v10339_v0  ;;  %1829 = vperm.xlu0 %9031, %v10334_v55  }
 0x10c   : > { %1131 = vperm.xlu1 %9028, %v10091_v35   ;;  %v10346_v50 = vpop.permute.xlu0 %1665 }
 0x10d   : > { %15454 = vst [vmem:[#allocation61_spill] sm:$0xff] %v10346_v50  ;;  %v10348_v60 = vpop.permute.xlu1 %827 }
 0x10e   : > { %15455 = vst [vmem:[#allocation62_spill] sm:$0xff] %v10348_v60  ;;  %1837 = vperm.xlu0 %9031, %v10343_v54   ;;  %v10370_v60 = vld [vmem:[%s10083_s23 + $0x70] sm:$0xff] }
 0x110   : > { %1139 = vperm.xlu1 %9028, %v10099_v37   ;;  %v10355_v2 = vpop.permute.xlu0 %1673 }
 0x111   : > { %15456 = vst [vmem:[#allocation63_spill] sm:$0xff] %v10355_v2  ;;  %v10357_v0 = vpop.permute.xlu1 %835 }
 0x112   : > { %15457 = vst [vmem:[#allocation64_spill] sm:$0xff] %v10357_v0  ;;  %1845 = vperm.xlu0 %9031, %v10352_v53  }
 0x114   : > { %1147 = vperm.xlu1 %9028, %v10107_v39   ;;  %v10364_v35 = vpop.permute.xlu0 %1681 }
 0x115   : > { %15458 = vst [vmem:[#allocation65_spill] sm:$0xff] %v10364_v35  ;;  %v10366_v50 = vpop.permute.xlu1 %843  ;;  %v15464_v35 = vmov 3  }
 0x116   : > { %15459 = vst [vmem:[#allocation66_spill] sm:$0xff] %v10366_v50  ;;  %1853 = vperm.xlu0 %9031, %v10361_v33  }
 0x118   : > { %1155 = vperm.xlu1 %9028, %v10115_v41   ;;  %v10373_v37 = vpop.permute.xlu0 %1689 }
 0x119   : > { %15460 = vst [vmem:[#allocation67_spill] sm:$0xff] %v10373_v37  ;;  %v10375_v2 = vpop.permute.xlu1 %851 }
 0x11a   : > { %15461 = vst [vmem:[#allocation68_spill] sm:$0xff] %v10375_v2  ;;  %1861 = vperm.xlu0 %9031, %v10370_v60  }
 0x11c   : > { %1163 = vperm.xlu1 %9028, %v10123_v43   ;;  %v10379_v0 = vpop.permute.xlu0 %1697 }
 0x11d   : > { %15462 = vst [vmem:[#allocation69_spill] sm:$0xff] %v10379_v0  ;;  %v10381_v39 = vpop.permute.xlu1 %859 }
 0x11e   : > { %15463 = vst [vmem:[#allocation70_spill] sm:$0xff] %v10381_v39  ;;  %9033 = vset.pattern.permute.xlu0 %v15464_v35 }
 0x11f   : > { %1067 = vperm.xlu0 %9033, %v9928_v3  }
 0x120   : > { %1171 = vperm.xlu1 %9028, %v10131_v45   ;;  %v10386_v50 = vpop.permute.xlu0 %1705 }
 0x121   : > { %15465 = vst [vmem:[#allocation71_spill] sm:$0xff] %v10386_v50  ;;  %v10388_v37 = vpop.permute.xlu1 %867  ;;  %v15470_v50 = vmov 0  }
 0x122   : > { %15466 = vst [vmem:[#allocation72_spill] sm:$0xff] %v10388_v37 }
 0x123   : > { %1076 = vperm.xlu0 %9033, %v9933_v4  }
 0x124   : > { %1179 = vperm.xlu1 %9028, %v10139_v47  }
 0x125   : > { %v10392_v2 = vpop.permute.xlu0 %910 }
 0x126   : > { %15467 = vst [vmem:[#allocation73_spill] sm:$0xff] %v10392_v2  ;;  %v10394_v0 = vpop.permute.xlu1 %907  ;;  %v10410_v2 = vld [vmem:[%s10015_s16 + $0x10] sm:$0xff]  ;;  %s420_s16 = sand.u32 1, %s9779_s10  }
 0x127   : > { %1082 = vperm.xlu0 %9033, %v9938_v5  }
 0x128   : > { %1187 = vperm.xlu1 %9028, %v10147_v49  }
 0x129   : > { %v10398_v39 = vpop.permute.xlu0 %919 }
 0x12a   : > { %15468 = vst [vmem:[#allocation74_spill] sm:$0xff] %v10398_v39  ;;  %v10400_v35 = vpop.permute.xlu1 %913 }
 0x12b   : > { %15469 = vst [vmem:[#allocation75_spill] sm:$0xff] %v10400_v35  ;;  %1088 = vperm.xlu0 %9033, %v9943_v6  }
 0x12c   : > { %9029 = vset.pattern.permute.xlu1 %v15470_v50 }
 0x12d   : > { %1421 = vperm.xlu1 %9029, %v10020_v19   ;;  %v10405_v4 = vpop.permute.xlu0 %925 }
 0x12e   : > { %15471 = vst [vmem:[#allocation76_spill] sm:$0xff] %v10405_v4  ;;  %v10407_v37 = vpop.permute.xlu1 %916 }
 0x12f   : > { %1094 = vperm.xlu0 %9033, %v9948_v7  }
 0x131   : > { %1427 = vperm.xlu1 %9029, %v10410_v2   ;;  %v10414_v5 = vpop.permute.xlu0 %931 }
 0x132   : > { %15472 = vst [vmem:[#allocation77_spill] sm:$0xff] %v10414_v5  ;;  %v10416_v39 = vpop.permute.xlu1 %922 }
 0x133   : > { %1100 = vperm.xlu0 %9033, %v9953_v8  }
 0x135   : > { %1430 = vperm.xlu1 %9029, %v10029_v21   ;;  %v10420_v6 = vpop.permute.xlu0 %937 }
 0x136   : > { %15473 = vst [vmem:[#allocation78_spill] sm:$0xff] %v10420_v6  ;;  %v10422_v35 = vpop.permute.xlu1 %928 }
 0x137   : > { %15474 = vst [vmem:[#allocation79_spill] sm:$0xff] %v10422_v35  ;;  %1106 = vperm.xlu0 %9033, %v9958_v9  }
 0x139   : > { %1436 = vperm.xlu1 %9029, %v10034_v22   ;;  %v10426_v4 = vpop.permute.xlu0 %943 }
 0x13a   : > { %15475 = vst [vmem:[#allocation80_spill] sm:$0xff] %v10426_v4  ;;  %v10428_v7 = vpop.permute.xlu1 %934 }
 0x13b   : > { %15476 = vst [vmem:[#allocation81_spill] sm:$0xff] %v10428_v7  ;;  %1112 = vperm.xlu0 %9033, %v9963_v10  }
 0x13d   : > { %1442 = vperm.xlu1 %9029, %v10042_v24   ;;  %v10432_v5 = vpop.permute.xlu0 %949 }
 0x13e   : > { %15477 = vst [vmem:[#allocation82_spill] sm:$0xff] %v10432_v5  ;;  %v10434_v8 = vpop.permute.xlu1 %940 }
 0x13f   : > { %15478 = vst [vmem:[#allocation83_spill] sm:$0xff] %v10434_v8  ;;  %1135 = vperm.xlu0 %9033, %v9974_v11  }
 0x141   : > { %1448 = vperm.xlu1 %9029, %v10050_v26   ;;  %v10438_v6 = vpop.permute.xlu0 %971 }
 0x142   : > { %v10440_v9 = vpop.permute.xlu1 %946 }
 0x143   : > { %15479 = vst [vmem:[#allocation84_spill] sm:$0xff] %v10440_v9  ;;  %1143 = vperm.xlu0 %9033, %v9979_v12  }
 0x145   : > { %1454 = vperm.xlu1 %9029, %v10058_v28   ;;  %v10444_v4 = vpop.permute.xlu0 %979 }
 0x146   : > { %v10446_v10 = vpop.permute.xlu1 %952 }
 0x147   : > { %15480 = vst [vmem:[#allocation85_spill] sm:$0xff] %v10446_v10  ;;  %1151 = vperm.xlu0 %9033, %v9984_v13  }
 0x149   : > { %1460 = vperm.xlu1 %9029, %v10066_v30   ;;  %v10450_v5 = vpop.permute.xlu0 %987 }
 0x14a   : > { %v10452_v11 = vpop.permute.xlu1 %975 }
 0x14b   : > { %1159 = vperm.xlu0 %9033, %v9989_v14  }
 0x14d   : > { %1466 = vperm.xlu1 %9029, %v10074_v32   ;;  %v10456_v9 = vpop.permute.xlu0 %995 }
 0x14e   : > { %15481 = vst [vmem:[#allocation86_spill] sm:$0xff] %v10456_v9  ;;  %v10458_v12 = vpop.permute.xlu1 %983 }
 0x14f   : > { %1167 = vperm.xlu0 %9033, %v9994_v15  }
 0x151   : > { %1491 = vperm.xlu1 %9029, %v10088_v34   ;;  %v10462_v10 = vpop.permute.xlu0 %1003 }
 0x152   : > { %15482 = vst [vmem:[#allocation87_spill] sm:$0xff] %v10462_v10  ;;  %v10464_v13 = vpop.permute.xlu1 %991 }
 0x153   : > { %1175 = vperm.xlu0 %9033, %v9999_v16  }
 0x155   : > { %1501 = vperm.xlu1 %9029, %v10096_v36   ;;  %v10468_v8 = vpop.permute.xlu0 %1011 }
 0x156   : > { %15483 = vst [vmem:[#allocation88_spill] sm:$0xff] %v10468_v8  ;;  %v10470_v14 = vpop.permute.xlu1 %999 }
 0x157   : > { %15484 = vst [vmem:[#allocation89_spill] sm:$0xff] %v10470_v14  ;;  %1183 = vperm.xlu0 %9033, %v10004_v17  }
 0x159   : > { %1511 = vperm.xlu1 %9029, %v10104_v38   ;;  %v10474_v7 = vpop.permute.xlu0 %1019 }
 0x15a   : > { %15485 = vst [vmem:[#allocation90_spill] sm:$0xff] %v10474_v7  ;;  %v10476_v15 = vpop.permute.xlu1 %1007 }
 0x15b   : > { %15486 = vst [vmem:[#allocation91_spill] sm:$0xff] %v10476_v15  ;;  %1191 = vperm.xlu0 %9033, %v10009_v18  }
 0x15d   : > { %1521 = vperm.xlu1 %9029, %v10112_v40   ;;  %v10480_v10 = vpop.permute.xlu0 %1027 }
 0x15e   : > { %15487 = vst [vmem:[#allocation92_spill] sm:$0xff] %v10480_v10  ;;  %v10482_v16 = vpop.permute.xlu1 %1015 }
 0x15f   : > { %15488 = vst [vmem:[#allocation93_spill] sm:$0xff] %v10482_v16  ;;  %1901 = vperm.xlu0 %9033, %v10020_v19  }
 0x161   : > { %1531 = vperm.xlu1 %9029, %v10120_v42   ;;  %v10486_v8 = vpop.permute.xlu0 %1744 }
 0x162   : > { %15489 = vst [vmem:[#allocation94_spill] sm:$0xff] %v10486_v8  ;;  %v10488_v17 = vpop.permute.xlu1 %1023 }
 0x163   : > { %15490 = vst [vmem:[#allocation95_spill] sm:$0xff] %v10488_v17  ;;  %1910 = vperm.xlu0 %9033, %v10029_v21  }
 0x165   : > { %1541 = vperm.xlu1 %9029, %v10128_v44   ;;  %v10492_v7 = vpop.permute.xlu0 %1753 }
 0x166   : > { %15491 = vst [vmem:[#allocation96_spill] sm:$0xff] %v10492_v7  ;;  %v10494_v18 = vpop.permute.xlu1 %1031  ;;  %v15495_v7 = vmov 1  }
 0x167   : > { %15492 = vst [vmem:[#allocation97_spill] sm:$0xff] %v10494_v18  ;;  %1916 = vperm.xlu0 %9033, %v10034_v22  }
 0x169   : > { %1551 = vperm.xlu1 %9029, %v10136_v46   ;;  %v10498_v10 = vpop.permute.xlu0 %1759 }
 0x16a   : > { %15493 = vst [vmem:[#allocation98_spill] sm:$0xff] %v10498_v10 }
 0x16b   : > { %v10500_v16 = vpop.permute.xlu1 %1070  ;;  %1922 = vperm.xlu0 %9033, %v10042_v24  }
 0x16d   : > { %1561 = vperm.xlu1 %9029, %v10144_v48   ;;  %v10504_v8 = vpop.permute.xlu0 %1765 }
 0x16e   : > { %15494 = vst [vmem:[#allocation99_spill] sm:$0xff] %v10504_v8 }
 0x16f   : > { %v10506_v17 = vpop.permute.xlu1 %1073  ;;  %1928 = vperm.xlu0 %9033, %v10050_v26  }
 0x171   : > { %9030 = vset.pattern.permute.xlu1 %v15495_v7  ;;  %v10510_v18 = vpop.permute.xlu0 %1771 }
 0x172   : > { %15496 = vst [vmem:[#allocation100_spill] sm:$0xff] %v10510_v18  ;;  %1584 = vperm.xlu1 %9030, %v10244_v52  }
 0x173   : > { %v10513_v15 = vpop.permute.xlu1 %1079  ;;  %1934 = vperm.xlu0 %9033, %v10058_v28  }
 0x174   : > { %15497 = vst [vmem:[#allocation101_spill] sm:$0xff] %v10513_v15 }
 0x175   : > { %v10516_v10 = vpop.permute.xlu0 %1777 }
 0x176   : > { %15498 = vst [vmem:[#allocation102_spill] sm:$0xff] %v10516_v10  ;;  %1587 = vperm.xlu1 %9030, %v10410_v2  }
 0x177   : > { %v10519_v9 = vpop.permute.xlu1 %1085  ;;  %1940 = vperm.xlu0 %9033, %v10066_v30  }
 0x178   : > { %15499 = vst [vmem:[#allocation103_spill] sm:$0xff] %v10519_v9 }
 0x179   : > { %v10522_v8 = vpop.permute.xlu0 %1783 }
 0x17a   : > { %15500 = vst [vmem:[#allocation104_spill] sm:$0xff] %v10522_v8  ;;  %1593 = vperm.xlu1 %9030, %v10253_v1  }
 0x17b   : > { %v10525_v7 = vpop.permute.xlu1 %1091  ;;  %1946 = vperm.xlu0 %9033, %v10074_v32  }
 0x17c   : > { %15501 = vst [vmem:[#allocation105_spill] sm:$0xff] %v10525_v7 }
 0x17d   : > { %v10528_v18 = vpop.permute.xlu0 %1805 }
 0x17e   : > { %15502 = vst [vmem:[#allocation106_spill] sm:$0xff] %v10528_v18  ;;  %1599 = vperm.xlu1 %9030, %v10262_v62  }
 0x17f   : > { %v10531_v14 = vpop.permute.xlu1 %1097  ;;  %1969 = vperm.xlu0 %9033, %v10088_v34  }
 0x180   : > { %15503 = vst [vmem:[#allocation107_spill] sm:$0xff] %v10531_v14 }
 0x181   : > { %v10534_v10 = vpop.permute.xlu0 %1813 }
 0x182   : > { %15504 = vst [vmem:[#allocation108_spill] sm:$0xff] %v10534_v10  ;;  %1605 = vperm.xlu1 %9030, %v10271_v51  }
 0x183   : > { %v10537_v9 = vpop.permute.xlu1 %1103  ;;  %1977 = vperm.xlu0 %9033, %v10096_v36  }
 0x184   : > { %15505 = vst [vmem:[#allocation109_spill] sm:$0xff] %v10537_v9 }
 0x185   : > { %v10540_v8 = vpop.permute.xlu0 %1821 }
 0x186   : > { %15506 = vst [vmem:[#allocation110_spill] sm:$0xff] %v10540_v8  ;;  %1611 = vperm.xlu1 %9030, %v10280_v63  }
 0x187   : > { %v10543_v7 = vpop.permute.xlu1 %1109  ;;  %1985 = vperm.xlu0 %9033, %v10104_v38  }
 0x188   : > { %15507 = vst [vmem:[#allocation111_spill] sm:$0xff] %v10543_v7 }
 0x189   : > { %v10546_v18 = vpop.permute.xlu0 %1829 }
 0x18a   : > { %15508 = vst [vmem:[#allocation112_spill] sm:$0xff] %v10546_v18  ;;  %1617 = vperm.xlu1 %9030, %v10289_v61  }
 0x18b   : > { %v10549_v14 = vpop.permute.xlu1 %1131  ;;  %1993 = vperm.xlu0 %9033, %v10112_v40  }
 0x18d   : > { %v10552_v10 = vpop.permute.xlu0 %1837 }
 0x18e   : > { %15509 = vst [vmem:[#allocation113_spill] sm:$0xff] %v10552_v10  ;;  %1623 = vperm.xlu1 %9030, %v10298_v58  }
 0x18f   : > { %v10555_v9 = vpop.permute.xlu1 %1139  ;;  %2001 = vperm.xlu0 %9033, %v10120_v42  }
 0x191   : > { %v10558_v8 = vpop.permute.xlu0 %1845 }
 0x192   : > { %15510 = vst [vmem:[#allocation114_spill] sm:$0xff] %v10558_v8  ;;  %1645 = vperm.xlu1 %9030, %v10307_v59  }
 0x193   : > { %v10561_v7 = vpop.permute.xlu1 %1147  ;;  %2009 = vperm.xlu0 %9033, %v10128_v44  }
 0x194   : > { %15511 = vst [vmem:[#allocation115_spill] sm:$0xff] %v10561_v7 }
 0x195   : > { %v10564_v18 = vpop.permute.xlu0 %1853 }
 0x196   : > { %15512 = vst [vmem:[#allocation116_spill] sm:$0xff] %v10564_v18  ;;  %1653 = vperm.xlu1 %9030, %v10316_v57  }
 0x197   : > { %v10567_v35 = vpop.permute.xlu1 %1155  ;;  %2017 = vperm.xlu0 %9033, %v10136_v46  }
 0x198   : > { %15513 = vst [vmem:[#allocation117_spill] sm:$0xff] %v10567_v35 }
 0x199   : > { %v10570_v10 = vpop.permute.xlu0 %1861 }
 0x19a   : > { %15514 = vst [vmem:[#allocation118_spill] sm:$0xff] %v10570_v10  ;;  %1661 = vperm.xlu1 %9030, %v10325_v56  }
 0x19b   : > { %v10573_v15 = vpop.permute.xlu1 %1163  ;;  %2025 = vperm.xlu0 %9033, %v10144_v48  }
 0x19c   : > { %15515 = vst [vmem:[#allocation119_spill] sm:$0xff] %v10573_v15 }
 0x19e   : > { %1669 = vperm.xlu1 %9030, %v10334_v55   ;;  %v10577_v8 = vpop.permute.xlu0 %1067 }
 0x19f   : > { %v10579_v7 = vpop.permute.xlu1 %1171  ;;  %9035 = vset.pattern.permute.xlu0 %v15470_v50 }
 0x1a0   : > { %15516 = vst [vmem:[#allocation120_spill] sm:$0xff] %v10579_v7  ;;  %587 = vperm.xlu0 %9035, %v9928_v3  }
 0x1a2   : > { %1677 = vperm.xlu1 %9030, %v10343_v54   ;;  %v10584_v18 = vpop.permute.xlu0 %1076 }
 0x1a3   : > { %v10586_v10 = vpop.permute.xlu1 %1179 }
 0x1a4   : > { %15517 = vst [vmem:[#allocation121_spill] sm:$0xff] %v10586_v10  ;;  %590 = vperm.xlu0 %9035, %v10023_v20  }
 0x1a6   : > { %1685 = vperm.xlu1 %9030, %v10352_v53   ;;  %v10590_v15 = vpop.permute.xlu0 %1082 }
 0x1a7   : > { %15518 = vst [vmem:[#allocation122_spill] sm:$0xff] %v10590_v15  ;;  %v10592_v35 = vpop.permute.xlu1 %1187  ;;  %v15522_v15 = vmov 2  }
 0x1a8   : > { %15519 = vst [vmem:[#allocation123_spill] sm:$0xff] %v10592_v35  ;;  %599 = vperm.xlu0 %9035, %v10037_v23  }
 0x1aa   : > { %1693 = vperm.xlu1 %9030, %v10361_v33   ;;  %v10596_v7 = vpop.permute.xlu0 %1088 }
 0x1ac   : > { %v10598_v3 = vpop.permute.xlu1 %1421  ;;  %605 = vperm.xlu0 %9035, %v10045_v25  }
 0x1ad   : > { %15520 = vst [vmem:[#allocation124_spill] sm:$0xff] %v10598_v3 }
 0x1ae   : > { %1701 = vperm.xlu1 %9030, %v10370_v60   ;;  %v10602_v10 = vpop.permute.xlu0 %1094 }
 0x1b0   : > { %v10604_v20 = vpop.permute.xlu1 %1427  ;;  %611 = vperm.xlu0 %9035, %v10053_v27  }
 0x1b1   : > { %15521 = vst [vmem:[#allocation125_spill] sm:$0xff] %v10604_v20 }
 0x1b2   : > { %9032 = vset.pattern.permute.xlu1 %v15522_v15  ;;  %v10608_v35 = vpop.permute.xlu0 %1100  ;;  %v15527_v15 = vld [vmem:[#allocation5_spill] sm:$0xff] }
 0x1b3   : > { %1741 = vperm.xlu1 %9032, %v10020_v19  }
 0x1b4   : > { %v10611_v23 = vpop.permute.xlu1 %1430  ;;  %617 = vperm.xlu0 %9035, %v10061_v29   ;;  %v465_v29 = vld [vmem:[%s15250_s7] sm:$0xff] }
 0x1b5   : > { %15523 = vst [vmem:[#allocation126_spill] sm:$0xff] %v10611_v23  ;;  %v15529_v23 = vld [vmem:[#allocation6_spill] sm:$0xff] }
 0x1b6   : > { %v10614_v3 = vpop.permute.xlu0 %1106 }
 0x1b7   : > { %1747 = vperm.xlu1 %9032, %v10410_v2  }
 0x1b8   : > { %v10617_v25 = vpop.permute.xlu1 %1436  ;;  %623 = vperm.xlu0 %9035, %v10069_v31   ;;  %v466_v31 = vld [vmem:[%s15250_s7 + $0x8] sm:$0xff] }
 0x1b9   : > { %15524 = vst [vmem:[#allocation127_spill] sm:$0xff] %v10617_v25 }
 0x1ba   : > { %v10620_v20 = vpop.permute.xlu0 %1112 }
 0x1bb   : > { %15525 = vst [vmem:[#allocation128_spill] sm:$0xff] %v10620_v20  ;;  %1750 = vperm.xlu1 %9032, %v10029_v21   ;;  %v8892_v21 = vpack.c.bf16 %v466_v31, %v465_v29  ;;  %v467_v20 = vld [vmem:[%s15250_s7 + $0x10] sm:$0xff] }
 0x1bc   : > { %v10623_v27 = vpop.permute.xlu1 %1442  ;;  %629 = vperm.xlu0 %9035, %v15527_v15   ;;  %v15531_v15 = vld [vmem:[#allocation7_spill] sm:$0xff] }
 0x1bd   : > { %15526 = vst [vmem:[#allocation129_spill] sm:$0xff] %v10623_v27  ;;  %8893 = vmatprep.subr.bf16.mxu0 %v8892_v21  ;;  %8944 = vmatprep.subr.bf16.mxu1 %v8892_v21 }
 0x1be   : > { %v10626_v19 = vpop.permute.xlu0 %1135  ;;  %8895 = vmatpush3.bf16.msra.mxu0 %v8892_v21  ;;  %8946 = vmatpush3.bf16.msra.mxu1 %v8892_v21 }
 0x1bf   : > { %1756 = vperm.xlu1 %9032, %v10034_v22   ;;  %8674 = vmatprep.subr.mxu0 %v467_v20 }
 0x1c0   : > { %v10635_v25 = vpop.permute.xlu1 %1448  ;;  %652 = vperm.xlu0 %9035, %v15529_v23   ;;  %8945 = vmatprep.subr.mxu1 %v467_v20 }
 0x1c1   : > { %15528 = vst [vmem:[#allocation5_spill] sm:$0xff] %v10635_v25 }
 0x1c2   : > { %v10638_v27 = vpop.permute.xlu0 %1143  ;;  %8675 = vmatpush3.msra.mxu0 %v467_v20  ;;  %8947 = vmatpush3.msra.mxu1 %v467_v20 }
 0x1c3   : > { %1762 = vperm.xlu1 %9032, %v10042_v24   ;;  %v15533_v24 = vld [vmem:[#allocation8_spill] sm:$0xff] }
 0x1c4   : > { %v10641_v22 = vpop.permute.xlu1 %1454  ;;  %662 = vperm.xlu0 %9035, %v15531_v15  }
 0x1c5   : > { %15530 = vst [vmem:[#allocation6_spill] sm:$0xff] %v10641_v22  ;;  %v15594_v22 = vld [vmem:[#allocation30_spill] sm:$0xff] }
 0x1c6   : > { %v10647_v25 = vpop.permute.xlu0 %1151 }
 0x1c7   : > { %1768 = vperm.xlu1 %9032, %v10050_v26  }
 0x1c8   : > { %v10650_v23 = vpop.permute.xlu1 %1460  ;;  %672 = vperm.xlu0 %9035, %v15533_v24  }
 0x1c9   : > { %15532 = vst [vmem:[#allocation7_spill] sm:$0xff] %v10650_v23  ;;  %v15588_v23 = vld [vmem:[#allocation20_spill] sm:$0xff] }
 0x1ca   : > { %v10653_v29 = vpop.permute.xlu0 %1159 }
 0x1cb   : > { %1774 = vperm.xlu1 %9032, %v10058_v28  }
 0x1cc   : > { %v10656_v31 = vpop.permute.xlu1 %1466  ;;  %682 = vperm.xlu0 %9035, %v10115_v41  }
 0x1cd   : > { %15534 = vst [vmem:[#allocation8_spill] sm:$0xff] %v10656_v31 }
 0x1ce   : > { %v10659_v21 = vpop.permute.xlu0 %1167 }
 0x1cf   : > { %1780 = vperm.xlu1 %9032, %v10066_v30  }
 0x1d0   : > { %v10662_v15 = vpop.permute.xlu1 %1491  ;;  %692 = vperm.xlu0 %9035, %v10123_v43  }
 0x1d1   : > { %15535 = vst [vmem:[#allocation130_spill] sm:$0xff] %v10662_v15 }
 0x1d2   : > { %v10665_v26 = vpop.permute.xlu0 %1175 }
 0x1d3   : > { %1786 = vperm.xlu1 %9032, %v10074_v32  }
 0x1d4   : > { %v10668_v20 = vpop.permute.xlu1 %1501  ;;  %702 = vperm.xlu0 %9035, %v10131_v45  }
 0x1d5   : > { %15536 = vst [vmem:[#allocation131_spill] sm:$0xff] %v10668_v20 }
 0x1d6   : > { %v10671_v28 = vpop.permute.xlu0 %1183 }
 0x1d7   : > { %1809 = vperm.xlu1 %9032, %v10088_v34  }
 0x1d8   : > { %v10674_v41 = vpop.permute.xlu1 %1511  ;;  %712 = vperm.xlu0 %9035, %v10139_v47  }
 0x1d9   : > { %15537 = vst [vmem:[#allocation132_spill] sm:$0xff] %v10674_v41 }
 0x1da   : > { %v10677_v30 = vpop.permute.xlu0 %1191 }
 0x1db   : > { %1817 = vperm.xlu1 %9032, %v10096_v36  }
 0x1dc   : > { %v10680_v43 = vpop.permute.xlu1 %1521  ;;  %722 = vperm.xlu0 %9035, %v10147_v49  }
 0x1dd   : > { %15538 = vst [vmem:[#allocation133_spill] sm:$0xff] %v10680_v43 }
 0x1de   : > { %v10683_v32 = vpop.permute.xlu0 %1901 }
 0x1df   : > { %15539 = vst [vmem:[#allocation134_spill] sm:$0xff] %v10683_v32  ;;  %1825 = vperm.xlu1 %9032, %v10104_v38   ;;  %v15599_v32 = vld [vmem:[#allocation35_spill] sm:$0xff] }
 0x1e0   : > { %v10686_v45 = vpop.permute.xlu1 %1531  ;;  %1424 = vperm.xlu0 %9035, %v10244_v52  }
 0x1e1   : > { %15540 = vst [vmem:[#allocation135_spill] sm:$0xff] %v10686_v45  ;;  %v15592_v45 = vld [vmem:[#allocation28_spill] sm:$0xff] }
 0x1e2   : > { %v10689_v34 = vpop.permute.xlu0 %1910 }
 0x1e3   : > { %15541 = vst [vmem:[#allocation136_spill] sm:$0xff] %v10689_v34  ;;  %1833 = vperm.xlu1 %9032, %v10112_v40   ;;  %v15591_v34 = vld [vmem:[#allocation27_spill] sm:$0xff] }
 0x1e4   : > { %v10692_v47 = vpop.permute.xlu1 %1541  ;;  %1433 = vperm.xlu0 %9035, %v10253_v1  }
 0x1e5   : > { %15542 = vst [vmem:[#allocation137_spill] sm:$0xff] %v10692_v47 }
 0x1e6   : > { %v10695_v36 = vpop.permute.xlu0 %1916 }
 0x1e7   : > { %15543 = vst [vmem:[#allocation138_spill] sm:$0xff] %v10695_v36  ;;  %1841 = vperm.xlu1 %9032, %v10120_v42  }
 0x1e8   : > { %v10698_v49 = vpop.permute.xlu1 %1551  ;;  %1439 = vperm.xlu0 %9035, %v10262_v62  }
 0x1e9   : > { %15544 = vst [vmem:[#allocation139_spill] sm:$0xff] %v10698_v49 }
 0x1ea   : > { %v10701_v38 = vpop.permute.xlu0 %1922 }
 0x1eb   : > { %15545 = vst [vmem:[#allocation140_spill] sm:$0xff] %v10701_v38  ;;  %1849 = vperm.xlu1 %9032, %v10128_v44  }
 0x1ec   : > { %v10704_v24 = vpop.permute.xlu1 %1561  ;;  %1445 = vperm.xlu0 %9035, %v10271_v51  }
 0x1ed   : > { %15546 = vst [vmem:[#allocation141_spill] sm:$0xff] %v10704_v24  ;;  %v15552_v24 = vmov 3  }
 0x1ee   : > { %v10707_v40 = vpop.permute.xlu0 %1928 }
 0x1ef   : > { %15547 = vst [vmem:[#allocation142_spill] sm:$0xff] %v10707_v40  ;;  %1857 = vperm.xlu1 %9032, %v10136_v46  }
 0x1f0   : > { %1451 = vperm.xlu0 %9035, %v10280_v63  }
 0x1f1   : > { %v10711_v31 = vpop.permute.xlu1 %1584 }
 0x1f2   : > { %15548 = vst [vmem:[#allocation143_spill] sm:$0xff] %v10711_v31  ;;  %v10713_v42 = vpop.permute.xlu0 %1934 }
 0x1f3   : > { %15549 = vst [vmem:[#allocation144_spill] sm:$0xff] %v10713_v42  ;;  %1865 = vperm.xlu1 %9032, %v10144_v48  }
 0x1f4   : > { %1457 = vperm.xlu0 %9035, %v10289_v61  }
 0x1f5   : > { %v10717_v49 = vpop.permute.xlu1 %1587 }
 0x1f6   : > { %15550 = vst [vmem:[#allocation145_spill] sm:$0xff] %v10717_v49  ;;  %v10719_v44 = vpop.permute.xlu0 %1940 }
 0x1f7   : > { %15551 = vst [vmem:[#allocation146_spill] sm:$0xff] %v10719_v44  ;;  %9034 = vset.pattern.permute.xlu1 %v15552_v24 }
 0x1f8   : > { %1904 = vperm.xlu1 %9034, %v10244_v52   ;;  %1463 = vperm.xlu0 %9035, %v10298_v58  }
 0x1f9   : > { %v10724_v46 = vpop.permute.xlu1 %1593 }
 0x1fa   : > { %15553 = vst [vmem:[#allocation147_spill] sm:$0xff] %v10724_v46  ;;  %v10726_v40 = vpop.permute.xlu0 %1946 }
 0x1fb   : > { %15554 = vst [vmem:[#allocation148_spill] sm:$0xff] %v10726_v40 }
 0x1fc   : > { %1907 = vperm.xlu1 %9034, %v10410_v2   ;;  %1486 = vperm.xlu0 %9035, %v10307_v59  }
 0x1fd   : > { %v10730_v48 = vpop.permute.xlu1 %1599 }
 0x1fe   : > { %15555 = vst [vmem:[#allocation149_spill] sm:$0xff] %v10730_v48  ;;  %v10732_v42 = vpop.permute.xlu0 %1969  ;;  %v15590_v48 = vld [vmem:[#allocation22_spill] sm:$0xff] }
 0x1ff   : > { %15556 = vst [vmem:[#allocation150_spill] sm:$0xff] %v10732_v42 }
 0x200   : > { %1913 = vperm.xlu1 %9034, %v10253_v1   ;;  %1496 = vperm.xlu0 %9035, %v10316_v57   ;;  %v468_v1 = vld [vmem:[%s15251_s8] sm:$0xff] }
 0x201   : > { %v10736_v24 = vpop.permute.xlu1 %1605 }
 0x202   : > { %15557 = vst [vmem:[#allocation151_spill] sm:$0xff] %v10736_v24  ;;  %v10738_v52 = vpop.permute.xlu0 %1977 }
 0x203   : > { %15558 = vst [vmem:[#allocation152_spill] sm:$0xff] %v10738_v52 }
 0x204   : > { %1919 = vperm.xlu1 %9034, %v10262_v62   ;;  %1506 = vperm.xlu0 %9035, %v10325_v56   ;;  %v469_v62 = vld [vmem:[%s15251_s8 + $0x8] sm:$0xff] }
 0x205   : > { %v10742_v40 = vpop.permute.xlu1 %1611  ;;  %v10758_v24 = vpack.c.bf16 %v469_v62, %v468_v1 }
 0x206   : > { %15559 = vst [vmem:[#allocation153_spill] sm:$0xff] %v10742_v40  ;;  %v10744_v2 = vpop.permute.xlu0 %1985 }
 0x207   : > { %15560 = vst [vmem:[#allocation154_spill] sm:$0xff] %v10744_v2  ;;  %15563 = vst [vmem:[#allocation157_spill] sm:$0xff] %v10758_v24  ;;  %8897 = vmatprep.subr.bf16.mxu1 %v10758_v24  ;;  %8905 = vmatprep.subr.bf16.mxu0 %v10758_v24 }
 0x208   : > { %1925 = vperm.xlu1 %9034, %v10271_v51   ;;  %1516 = vperm.xlu0 %9035, %v10334_v55  }
 0x209   : > { %v10748_v44 = vpop.permute.xlu1 %1617 }
 0x20a   : > { %15561 = vst [vmem:[#allocation155_spill] sm:$0xff] %v10748_v44  ;;  %v10756_v38 = vpop.permute.xlu0 %1993 }
 0x20b   : > { %15562 = vst [vmem:[#allocation156_spill] sm:$0xff] %v10756_v38 }
 0x20c   : > { %1931 = vperm.xlu1 %9034, %v10280_v63   ;;  %1526 = vperm.xlu0 %9035, %v10343_v54  }
 0x20d   : > { %v10762_v51 = vpop.permute.xlu1 %1623 }
 0x20e   : > { %15564 = vst [vmem:[#allocation158_spill] sm:$0xff] %v10762_v51  ;;  %v10766_v44 = vpop.permute.xlu0 %2001 }
 0x20f   : > { %15565 = vst [vmem:[#allocation159_spill] sm:$0xff] %v10766_v44 }
 0x210   : > { %1937 = vperm.xlu1 %9034, %v10289_v61   ;;  %1536 = vperm.xlu0 %9035, %v10352_v53  }
 0x211   : > { %v10770_v40 = vpop.permute.xlu1 %1645 }
 0x212   : > { %15566 = vst [vmem:[#allocation160_spill] sm:$0xff] %v10770_v40  ;;  %v10772_v1 = vpop.permute.xlu0 %2009 }
 0x213   : > { %15567 = vst [vmem:[#allocation161_spill] sm:$0xff] %v10772_v1 }
 0x214   : > { %1943 = vperm.xlu1 %9034, %v10298_v58   ;;  %1546 = vperm.xlu0 %9035, %v10361_v33  }
 0x215   : > { %v10776_v63 = vpop.permute.xlu1 %1653 }
 0x216   : > { %15568 = vst [vmem:[#allocation162_spill] sm:$0xff] %v10776_v63  ;;  %v10778_v62 = vpop.permute.xlu0 %2017  ;;  %v15595_v63 = vld [vmem:[#allocation31_spill] sm:$0xff] }
 0x217   : > { %15569 = vst [vmem:[#allocation163_spill] sm:$0xff] %v10778_v62 }
 0x218   : > { %1965 = vperm.xlu1 %9034, %v10307_v59   ;;  %1556 = vperm.xlu0 %9035, %v10370_v60  }
 0x219   : > { %v10782_v51 = vpop.permute.xlu1 %1661 }
 0x21a   : > { %15570 = vst [vmem:[#allocation164_spill] sm:$0xff] %v10782_v51  ;;  %v10784_v61 = vpop.permute.xlu0 %2025 }
 0x21b   : > { %15571 = vst [vmem:[#allocation165_spill] sm:$0xff] %v10784_v61 }
 0x21c   : > { %1973 = vperm.xlu1 %9034, %v10316_v57  }
 0x21d   : > { %v10787_v44 = vpop.permute.xlu1 %1669 }
 0x21e   : > { %15572 = vst [vmem:[#allocation166_spill] sm:$0xff] %v10787_v44  ;;  %v15589_v44 = vld [vmem:[#allocation21_spill] sm:$0xff] }
 0x21f   : > { %v10789_v1 = vpop.permute.xlu0 %587 }
 0x220   : > { %1981 = vperm.xlu1 %9034, %v10325_v56   ;;  %v584_v56 = vlaneseq }
 0x221   : > { %v10792_v58 = vpop.permute.xlu1 %1677 }
 0x222   : > { %15573 = vst [vmem:[#allocation167_spill] sm:$0xff] %v10792_v58 }
 0x223   : > { %v591_v38 = vpop.permute.xlu0 %590 }
 0x224   : > { %1989 = vperm.xlu1 %9034, %v10334_v55  }
 0x225   : > { %v10795_v59 = vpop.permute.xlu1 %1685 }
 0x226   : > { %15574 = vst [vmem:[#allocation168_spill] sm:$0xff] %v10795_v59  ;;  %v10812_v59 = vand.u32 127, %v584_v56  ;;  %v15583_v56 = vld [vmem:[#allocation16_spill] sm:$0xff] }
 0x227   : > { %v10797_v62 = vpop.permute.xlu0 %599 }
 0x228   : > { %1997 = vperm.xlu1 %9034, %v10343_v54   ;;  %v15578_v54 = vld [vmem:[#allocation11_spill] sm:$0xff]  ;;  %vm801_vm5 = vcmp.eq.s32.totalorder %v15583_v56, %v10812_v59  ;;  %vm805_vm9 = vcmp.eq.s32.totalorder %v15588_v23, %v10812_v59  ;;  %vm647_vm10 = vcmp.eq.s32.totalorder %v15589_v44, %v10812_v59  ;;  %vm807_vm11 = vcmp.eq.s32.totalorder %v15590_v48, %v10812_v59  ;;  %v15603_v56 = vld [vmem:[#allocation37_spill] sm:$0xff]  ;;  %v15607_v23 = vld [vmem:[#allocation10_spill] sm:$0xff] }
 0x229   : > { %v10800_v61 = vpop.permute.xlu1 %1693  ;;  %vm637_vm0 = vcmp.eq.s32.totalorder %v15578_v54, %v10812_v59  ;;  %v15586_v54 = vld [vmem:[#allocation18_spill] sm:$0xff]  ;;  %vm635_vm12 = vcmp.eq.s32.totalorder %v591_v38, %v10812_v59  ;;  %v15597_v38 = vld [vmem:[#allocation33_spill] sm:$0xff]  ;;  %vm794_vm15 = vcmp.eq.s32.totalorder %v15607_v23, %v10812_v59  ;;  %v15609_v44 = vld [vmem:[#allocation24_spill] sm:$0xff] }
 0x22a   : > { %15575 = vst [vmem:[#allocation169_spill] sm:$0xff] %v10800_v61  ;;  %v15581_v61 = vld [vmem:[#allocation14_spill] sm:$0xff]  ;;  %vm803_vm7 = vcmp.eq.s32.totalorder %v15586_v54, %v10812_v59  ;;  %v733_v51 = vsel %vm637_vm0, %v15591_v34, 0.0  ;;  %v15593_v54 = vld [vmem:[#allocation29_spill] sm:$0xff] }
 0x22b   : > { %v10802_v57 = vpop.permute.xlu0 %605  ;;  %vm799_vm3 = vcmp.eq.s32.totalorder %v15581_v61, %v10812_v59 }
 0x22c   : > { %2005 = vperm.xlu1 %9034, %v10352_v53   ;;  %v15579_v53 = vld [vmem:[#allocation12_spill] sm:$0xff] }
 0x22d   : > { %v10805_v2 = vpop.permute.xlu1 %1701  ;;  %vm797_vm1 = vcmp.eq.s32.totalorder %v15579_v53, %v10812_v59  ;;  %v15587_v53 = vld [vmem:[#allocation19_spill] sm:$0xff] }
 0x22e   : > { %15576 = vst [vmem:[#allocation170_spill] sm:$0xff] %v10805_v2  ;;  %v15580_v2 = vld [vmem:[#allocation13_spill] sm:$0xff]  ;;  %vm645_vm8 = vcmp.eq.s32.totalorder %v15587_v53, %v10812_v59  ;;  %v877_v42 = vsel %vm797_vm1, %v15592_v45, 0.0  ;;  %v15596_v45 = vld [vmem:[#allocation32_spill] sm:$0xff]  ;;  %vm809_vm1 = vcmp.eq.s32.totalorder %v15609_v44, %v10812_v59 }
 0x22f   : > { %v10807_v36 = vpop.permute.xlu0 %611  ;;  %vm639_vm2 = vcmp.eq.s32.totalorder %v15580_v2, %v10812_v59  ;;  %v741_v61 = vsel %vm645_vm8, %v15599_v32, 0.0  ;;  %v15612_v44 = vld [vmem:[#allocation40_spill] sm:$0xff] }
 0x230   : > { %2013 = vperm.xlu1 %9034, %v10361_v33   ;;  %v15582_v33 = vld [vmem:[#allocation15_spill] sm:$0xff]  ;;  %v735_v53 = vsel %vm639_vm2, %v15593_v54, 0.0  ;;  %v15598_v54 = vld [vmem:[#allocation34_spill] sm:$0xff] }
 0x231   : > { %vm641_vm4 = vcmp.eq.s32.totalorder %v15582_v33, %v10812_v59  ;;  %v883_v46 = vsel %vm803_vm7, %v15598_v54, 0.0  ;;  %vm1114_vm7 = vcmp.eq.s32.totalorder %v10577_v8, %v10812_v59 }
 0x232   : > { %v10810_v55 = vpop.permute.xlu1 %1741  ;;  %v737_v34 = vsel %vm641_vm4, %v15595_v63, 0.0  ;;  %v15602_v63 = vld [vmem:[#allocation36_spill] sm:$0xff] }
 0x233   : > { %15577 = vst [vmem:[#allocation171_spill] sm:$0xff] %v10810_v55  ;;  %v10814_v58 = vpop.permute.xlu0 %617  ;;  %v885_v33 = vsel %vm805_vm9, %v15602_v63, 0.0  ;;  %v15608_v63 = vld [vmem:[#allocation23_spill] sm:$0xff] }
 0x234   : > { %2021 = vperm.xlu1 %9034, %v10370_v60   ;;  %v15584_v60 = vld [vmem:[#allocation17_spill] sm:$0xff]  ;;  %vm649_vm0 = vcmp.eq.s32.totalorder %v15608_v63, %v10812_v59  ;;  %v10905_v15 = vadd.f32 %v885_v33, %v741_v61  ;;  %v15611_v63 = vld [vmem:[#allocation39_spill] sm:$0xff]  ;;  %v15617_v33 = vld [vmem:[#allocation48_spill] sm:$0xff] }
 0x235   : > { %vm643_vm6 = vcmp.eq.s32.totalorder %v15584_v60, %v10812_v59  ;;  %v743_v60 = vsel %vm647_vm10, %v15603_v56, 0.0  ;;  %v893_v56 = vadd.f32 %v877_v42, %v733_v51  ;;  %v10912_v20 = vsel %vm649_vm0, %v15611_v63, 0.0  ;;  %v15614_v51 = vld [vmem:[#allocation46_spill] sm:$0xff] }
 0x236   : > { %v10831_v47 = vpop.permute.xlu1 %1747  ;;  %v739_v2 = vsel %vm643_vm6, %v15597_v38, 0.0  ;;  %v15605_v38 = vld [vmem:[#allocation25_spill] sm:$0xff]  ;;  %v10915_v42 = vsel %vm809_vm1, %v15612_v44, 0.0  ;;  %vm798_vm4 = vcmp.eq.s32.totalorder %v15614_v51, %v10812_v59  ;;  %vm954_vm6 = vcmp.eq.s32.totalorder %v10394_v0, %v10812_v59  ;;  %v15620_v0 = vld [vmem:[#allocation75_spill] sm:$0xff]  ;;  %v15621_v44 = vld [vmem:[#allocation50_spill] sm:$0xff] }
 0x237   : > { %15585 = vst [vmem:[#allocation11_spill] sm:$0xff] %v10831_v47  ;;  %v10841_v52 = vpop.permute.xlu0 %623  ;;  %v879_v47 = vsel %vm799_vm3, %v15594_v22, 0.0  ;;  %v15600_v22 = vld [vmem:[#allocation42_spill] sm:$0xff]  ;;  %v731_v54 = vsel %vm635_vm12, %v15605_v38, 0.0  ;;  %v10903_v40 = vadd.f32 %v883_v46, %v739_v2  ;;  %vm634_vm3 = vcmp.eq.s32.totalorder %v10789_v1, %v10812_v59 }
 0x238   : > { %9036 = vset.pattern.permute.xlu1 %v15470_v50  ;;  %v881_v50 = vsel %vm801_vm5, %v15596_v45, 0.0  ;;  %vm795_vm13 = vcmp.eq.s32.totalorder %v15600_v22, %v10812_v59  ;;  %v15604_v45 = vld [vmem:[#allocation38_spill] sm:$0xff]  ;;  %v10898_v55 = vadd.f32 %v879_v47, %v735_v53  ;;  %v15613_v47 = vld [vmem:[#allocation44_spill] sm:$0xff]  ;;  %vm800_vm8 = vcmp.eq.s32.totalorder %v15617_v33, %v10812_v59 }
 0x239   : > { %v887_v32 = vsel %vm807_vm11, %v15604_v45, 0.0  ;;  %v10900_v48 = vadd.f32 %v881_v50, %v737_v34  ;;  %v15610_v45 = vld [vmem:[#allocation26_spill] sm:$0xff]  ;;  %vm796_vm2 = vcmp.eq.s32.totalorder %v15613_v47, %v10812_v59  ;;  %v15616_v50 = vld [vmem:[#allocation73_spill] sm:$0xff]  ;;  %vm956_vm9 = vcmp.eq.s32.totalorder %v15620_v0, %v10812_v59 }
 0x23a   : > { %v10873_v49 = vpop.permute.xlu1 %1750  ;;  %v875_v38 = vsel %vm795_vm13, %v15610_v45, 0.0  ;;  %v10907_v31 = vadd.f32 %v887_v32, %v743_v60  ;;  %v15615_v53 = vld [vmem:[#allocation58_spill] sm:$0xff]  ;;  %vm955_vm5 = vcmp.eq.s32.totalorder %v15616_v50, %v10812_v59  ;;  %v15618_v60 = vld [vmem:[#allocation60_spill] sm:$0xff]  ;;  %vm957_vm10 = vcmp.eq.s32.totalorder %v10407_v37, %v10812_v59 }
 0x23b   : > { %15601 = vst [vmem:[#allocation12_spill] sm:$0xff] %v10873_v49  ;;  %v10888_v22 = vpop.permute.xlu0 %629  ;;  %v15606_v49 = vld [vmem:[#allocation9_spill] sm:$0xff]  ;;  %v891_v43 = vadd.f32 %v875_v38, %v731_v54  ;;  %v874_v34 = vsel %vm794_vm15, %v15615_v53, 0.0  ;;  %v1035_v61 = vsel %vm955_vm5, %v10452_v11, 0.0  ;;  %v876_v32 = vsel %vm796_vm2, %v15618_v60, 0.0  ;;  %v15619_v38 = vld [vmem:[#allocation62_spill] sm:$0xff] }
 0x23c   : > { %vm636_vm14 = vcmp.eq.s32.totalorder %v15606_v49, %v10812_v59  ;;  %v1034_v54 = vsel %vm954_vm6, %v10438_v6, 0.0  ;;  %v878_v63 = vsel %vm798_vm4, %v15619_v38, 0.0  ;;  %vm1115_vm11 = vcmp.eq.s32.totalorder %v10500_v16, %v10812_v59  ;;  %v470_v16 = vld [vmem:[%s15251_s8 + $0x10] sm:$0xff]  ;;  %v471_v49 = vld [vmem:[%s15251_s8 + $0x18] sm:$0xff] }
 0x23d   : > { %v1051_v23 = vadd.f32 %v1035_v61, %v891_v43  ;;  %v1194_v43 = vsel %vm1114_vm7, %v10549_v14, 0.0  ;;  %vm1226_vm12 = vcmask 195584   ;;  %vm802_vm13 = vcmp.eq.s32.totalorder %v15621_v44, %v10812_v59 }
 0x23e   : > { %v10909_v41 = vpop.permute.xlu1 %1756  ;;  %v1037_v47 = vsel %vm957_vm10, %v10458_v12, 0.0  ;;  %v1036_v12 = vsel %vm956_vm9, %v10444_v4, 0.0  ;;  %vm1117_vm15 = vcmp.eq.s32.totalorder %v10584_v18, %v10812_v59  ;;  %vm1116_vm0 = vcmp.eq.s32.totalorder %v10506_v17, %v10812_v59  ;;  %v15624_v17 = vld [vmem:[#allocation74_spill] sm:$0xff] }
 0x23f   : > { %v653_v46 = vpop.permute.xlu0 %652  ;;  %v1197_v53 = vsel %vm1117_vm15, %v10638_v27, 0.0  ;;  %vm638_vm1 = vcmp.eq.s32.totalorder %v10797_v62, %v10812_v59  ;;  %v1196_v4 = vsel %vm1116_vm0, %v10555_v9, 0.0  ;;  %v10979_v18 = vpack.c.bf16 %v471_v49, %v470_v16  ;;  %v15625_v9 = vld [vmem:[#allocation64_spill] sm:$0xff]  ;;  %v15634_v16 = vld [vmem:[#allocation86_spill] sm:$0xff] }
 0x240   : > { %v730_v2 = vsel %vm634_vm3, %v653_v46, 0.0  ;;  %v1195_v46 = vsel %vm1115_vm11, %v10626_v19, 0.0  ;;  %vm958_vm3 = vcmp.eq.s32.totalorder %v15624_v17, %v10812_v59  ;;  %v880_v60 = vsel %vm800_vm8, %v15625_v9, 0.0 }
 0x241   : > { %v890_v1 = vadd.f32 %v874_v34, %v730_v2  ;;  %v1211_v19 = vadd.f32 %v1195_v46, %v1051_v23  ;;  %v1053_v2 = vadd.f32 %v1037_v47, %v893_v56  ;;  %15622 = vst [vmem:[#allocation13_spill] sm:$0xff] %v10979_v18  ;;  %vm640_vm6 = vcmp.eq.s32.totalorder %v10802_v57, %v10812_v59  ;;  %v15632_v57 = vld [vmem:[#allocation89_spill] sm:$0xff] }
 0x242   : > { %v10938_v45 = vpop.permute.xlu1 %1762  ;;  %vm1121_vm10 = vcmp.eq.s32.totalorder %v10596_v7, %v10812_v59 }
 0x243   : > { %v663_v8 = vpop.permute.xlu0 %662  ;;  %v1050_v11 = vadd.f32 %v1034_v54, %v890_v1  ;;  %v15623_v1 = vld [vmem:[#allocation52_spill] sm:$0xff]  ;;  %v15626_v54 = vld [vmem:[#allocation122_spill] sm:$0xff]  ;;  %v1213_v23 = vadd.f32 %v1197_v53, %v1053_v2  ;;  %v15635_v53 = vld [vmem:[#allocation103_spill] sm:$0xff] }
 0x244   : > { %v732_v6 = vsel %vm636_vm14, %v663_v8, 0.0  ;;  %vm959_vm14 = vcmp.eq.s32.totalorder %v10416_v39, %v10812_v59  ;;  %vm804_vm2 = vcmp.eq.s32.totalorder %v15623_v1, %v10812_v59  ;;  %vm1119_vm4 = vcmp.eq.s32.totalorder %v15626_v54, %v10812_v59  ;;  %v15627_v39 = vld [vmem:[#allocation101_spill] sm:$0xff]  ;;  %v15629_v8 = vld [vmem:[#allocation115_spill] sm:$0xff] }
 0x245   : > { %v892_v37 = vadd.f32 %v876_v32, %v732_v6  ;;  %v1210_v51 = vadd.f32 %v1194_v43, %v1050_v11  ;;  %v1039_v27 = vsel %vm959_vm14, %v10464_v13, 0.0  ;;  %v1038_v32 = vsel %vm958_vm3, %v10450_v5, 0.0  ;;  %v15630_v43 = vld [vmem:[#allocation54_spill] sm:$0xff]  ;;  %v15636_v2 = vld [vmem:[#allocation81_spill] sm:$0xff] }
 0x246   : > { %v10969_v14 = vpop.permute.xlu1 %1768  ;;  %vm1118_vm5 = vcmp.eq.s32.totalorder %v15627_v39, %v10812_v59  ;;  %v1199_v13 = vsel %vm1119_vm4, %v10647_v25, 0.0  ;;  %v1055_v0 = vadd.f32 %v1039_v27, %v10898_v55  ;;  %vm806_vm8 = vcmp.eq.s32.totalorder %v15630_v43, %v10812_v59  ;;  %v15631_v25 = vld [vmem:[#allocation76_spill] sm:$0xff] }
 0x247   : > { %v1052_v34 = vadd.f32 %v1036_v12, %v892_v37  ;;  %8676 = vmatprep.mubr.msk.f32.mxu0 %vm1226_vm12, %v1210_v51  ;;  %v673_v50 = vpop.permute.xlu0 %672  ;;  %v1198_v11 = vsel %vm1118_vm5, %v15629_v8, 0.0  ;;  %vm960_vm9 = vcmp.eq.s32.totalorder %v15631_v25, %v10812_v59  ;;  %v15633_v51 = vld [vmem:[#allocation66_spill] sm:$0xff]  ;;  %vm1120_vm11 = vcmp.eq.s32.totalorder %v15635_v53, %v10812_v59  ;;  %v15638_v27 = vld [vmem:[#allocation56_spill] sm:$0xff] }
 0x248   : > { %v734_v61 = vsel %vm638_vm1, %v673_v50, 0.0  ;;  %8677 = vmatmul.mubr.msk.f32.vlgmr.msra.gmra.mrb[0].mxu0 %vm1226_vm12, %v1211_v19  ;;  %v882_v55 = vsel %vm802_vm13, %v15633_v51, 0.0  ;;  %v1040_v49 = vsel %vm960_vm9, %v15634_v16, 0.0  ;;  %v1215_v12 = vadd.f32 %v1199_v13, %v1055_v0  ;;  %v15643_v13 = vld [vmem:[#allocation105_spill] sm:$0xff]  ;;  %v15645_v0 = vld [vmem:[#allocation119_spill] sm:$0xff]  ;;  %v15651_v53 = vld [vmem:[#allocation84_spill] sm:$0xff] }
 0x249   : > { %v1212_v62 = vadd.f32 %v1196_v4, %v1052_v34  ;;  %v894_v56 = vadd.f32 %v878_v63, %v734_v61  ;;  %8907 = vmatpush3.bf16.msra.mxu0 %v10758_v24  ;;  %v15628_v63 = vld [vmem:[#allocation79_spill] sm:$0xff]  ;;  %v1201_v34 = vsel %vm1121_vm10, %v10653_v29, 0.0  ;;  %vm642_vm14 = vcmp.eq.s32.totalorder %v10807_v36, %v10812_v59  ;;  %v15637_v4 = vld [vmem:[#allocation117_spill] sm:$0xff] }
 0x24a   : > { %v10997_v38 = vpop.permute.xlu1 %1774  ;;  %8909 = vmatprep.subr.bf16.mxu0 %v10979_v18  ;;  %vm961_vm7 = vcmp.eq.s32.totalorder %v15628_v63, %v10812_v59  ;;  %vm963_vm13 = vcmp.eq.s32.totalorder %v15636_v2, %v10812_v59  ;;  %v1200_v61 = vsel %vm1120_vm11, %v15637_v4, 0.0  ;;  %vm808_vm15 = vcmp.eq.s32.totalorder %v15638_v27, %v10812_v59  ;;  %v15639_v29 = vld [vmem:[#allocation77_spill] sm:$0xff]  ;;  %v15640_v36 = vld [vmem:[#allocation91_spill] sm:$0xff]  ;;  %v15653_v2 = vld [vmem:[#allocation80_spill] sm:$0xff] }
 0x24b   : > { %v1054_v33 = vadd.f32 %v1038_v32, %v894_v56  ;;  %8679 = vmatprep.mubr.msk.f32.mxu0 %vm1226_vm12, %v1212_v62  ;;  %v683_v5 = vpop.permute.xlu0 %682  ;;  %v1041_v47 = vsel %vm961_vm7, %v15632_v57, 0.0  ;;  %vm962_vm0 = vcmp.eq.s32.totalorder %v15639_v29, %v10812_v59  ;;  %v1043_v62 = vsel %vm963_vm13, %v15640_v36, 0.0  ;;  %v15642_v32 = vld [vmem:[#allocation87_spill] sm:$0xff] }
 0x24c   : > { %v736_v6 = vsel %vm640_vm6, %v683_v5, 0.0  ;;  %8680 = vmatmul.mubr.msk.f32.gmra.mrb[2].mxu0 %vm1226_vm12, %v1213_v23  ;;  %v1057_v7 = vadd.f32 %v1041_v47, %v10900_v48  ;;  %v1042_v54 = vsel %vm962_vm0, %v15642_v32, 0.0  ;;  %vm1123_vm1 = vcmp.eq.s32.totalorder %v10602_v10, %v10812_v59  ;;  %v15644_v63 = vld [vmem:[#allocation83_spill] sm:$0xff]  ;;  %v15648_v47 = vld [vmem:[#allocation70_spill] sm:$0xff]  ;;  %v15659_v32 = vld [vmem:[#allocation121_spill] sm:$0xff] }
 0x24d   : > { %v1214_v46 = vadd.f32 %v1198_v11, %v1054_v33  ;;  %v896_v37 = vadd.f32 %v880_v60, %v736_v6  ;;  %8911 = vmatpush3.bf16.msra.mxu0 %v10979_v18  ;;  %v15641_v60 = vld [vmem:[#allocation68_spill] sm:$0xff]  ;;  %vm1122_vm3 = vcmp.eq.s32.totalorder %v15643_v13, %v10812_v59  ;;  %v1203_v33 = vsel %vm1123_vm1, %v10659_v21, 0.0  ;;  %v15646_v6 = vld [vmem:[#allocation78_spill] sm:$0xff]  ;;  %v15647_v21 = vld [vmem:[#allocation93_spill] sm:$0xff] }
 0x24e   : > { %v11024_v19 = vpop.permute.xlu1 %1780  ;;  %8921 = vmatprep.subr.bf16.mxu0 %v10758_v24  ;;  %v884_v48 = vsel %vm804_vm2, %v15641_v60, 0.0  ;;  %v1217_v23 = vadd.f32 %v1201_v34, %v1057_v7  ;;  %vm644_vm4 = vcmp.eq.s32.totalorder %v10814_v58, %v10812_v59  ;;  %vm965_vm2 = vcmp.eq.s32.totalorder %v15644_v63, %v10812_v59  ;;  %v15650_v16 = vld [vmem:[#allocation107_spill] sm:$0xff]  ;;  %v15652_v34 = vld [vmem:[#allocation120_spill] sm:$0xff]  ;;  %v15660_v13 = vld [vmem:[#allocation82_spill] sm:$0xff] }
 0x24f   : > { %v1056_v44 = vadd.f32 %v1040_v49, %v896_v37  ;;  %8682 = vmatprep.mubr.msk.f32.mxu0 %vm1226_vm12, %v1214_v46  ;;  %v693_v50 = vpop.permute.xlu0 %692  ;;  %v1059_v10 = vadd.f32 %v1043_v62, %v10903_v40  ;;  %v1202_v8 = vsel %vm1122_vm3, %v15645_v0, 0.0  ;;  %vm964_vm5 = vcmp.eq.s32.totalorder %v15646_v6, %v10812_v59  ;;  %v15649_v37 = vld [vmem:[#allocation88_spill] sm:$0xff] }
 0x250   : > { %v738_v17 = vsel %vm642_vm14, %v693_v50, 0.0  ;;  %8683 = vmatmul.mubr.msk.f32.gmra.mrb[4].mxu0 %vm1226_vm12, %v1215_v12  ;;  %v1045_v25 = vsel %vm965_vm2, %v15647_v21, 0.0  ;;  %v886_v46 = vsel %vm806_vm8, %v15648_v47, 0.0  ;;  %v1044_v51 = vsel %vm964_vm5, %v15649_v37, 0.0  ;;  %v15662_v63 = vld [vmem:[#allocation92_spill] sm:$0xff] }
 0x251   : > { %v1216_v56 = vadd.f32 %v1200_v61, %v1056_v44  ;;  %v898_v9 = vadd.f32 %v882_v55, %v738_v17  ;;  %vm1125_vm6 = vcmp.eq.s32.totalorder %v10608_v35, %v10812_v59  ;;  %v1219_v40 = vadd.f32 %v1203_v33, %v1059_v10  ;;  %v15655_v61 = vld [vmem:[#allocation72_spill] sm:$0xff] }
 0x252   : > { %v11050_v39 = vpop.permute.xlu1 %1786  ;;  %vm1124_vm7 = vcmp.eq.s32.totalorder %v15650_v16, %v10812_v59  ;;  %v1205_v49 = vsel %vm1125_vm6, %v10665_v26, 0.0  ;;  %vm646_vm9 = vcmp.eq.s32.totalorder %v10841_v52, %v10812_v59  ;;  %vm967_vm8 = vcmp.eq.s32.totalorder %v15651_v53, %v10812_v59  ;;  %v15654_v26 = vld [vmem:[#allocation95_spill] sm:$0xff] }
 0x253   : > { %8685 = vmatprep.mubr.msk.f32.mxu0 %vm1226_vm12, %v1216_v56  ;;  %v703_v1 = vpop.permute.xlu0 %702  ;;  %v1058_v5 = vadd.f32 %v1042_v54, %v898_v9  ;;  %v1061_v35 = vadd.f32 %v1045_v25, %v10905_v15  ;;  %v1204_v44 = vsel %vm1124_vm7, %v15652_v34, 0.0  ;;  %vm966_vm10 = vcmp.eq.s32.totalorder %v15653_v2, %v10812_v59  ;;  %v15656_v15 = vld [vmem:[#allocation90_spill] sm:$0xff]  ;;  %v15657_v56 = vld [vmem:[#allocation109_spill] sm:$0xff] }
 0x254   : > { %v740_v11 = vsel %vm644_vm4, %v703_v1, 0.0  ;;  %8686 = vmatmul.mubr.msk.f32.gmra.mrb[6].mxu0 %vm1226_vm12, %v1217_v23  ;;  %v1047_v7 = vsel %vm967_vm8, %v15654_v26, 0.0  ;;  %v888_v17 = vsel %vm808_vm15, %v15655_v61, 0.0  ;;  %v1046_v29 = vsel %vm966_vm10, %v15656_v15, 0.0  ;;  %v15667_v61 = vld [vmem:[#allocation43_spill] sm:$0xff] }
 0x255   : > { %v900_v58 = vadd.f32 %v884_v48, %v740_v11  ;;  %v1218_v57 = vadd.f32 %v1202_v8, %v1058_v5  ;;  %vm1127_vm11 = vcmp.eq.s32.totalorder %v10614_v3, %v10812_v59  ;;  %v1221_v36 = vadd.f32 %v1205_v49, %v1061_v35  ;;  %v15658_v48 = vld [vmem:[#allocation85_spill] sm:$0xff]  ;;  %v15664_v11 = vld [vmem:[#allocation111_spill] sm:$0xff] }
 0x256   : > { %v11073_v55 = vpop.permute.xlu1 %1809  ;;  %vm1126_vm14 = vcmp.eq.s32.totalorder %v15657_v56, %v10812_v59  ;;  %v1207_v9 = vsel %vm1127_vm11, %v10671_v28, 0.0  ;;  %vm648_vm13 = vcmp.eq.s32.totalorder %v10888_v22, %v10812_v59  ;;  %vm969_vm15 = vcmp.eq.s32.totalorder %v15658_v48, %v10812_v59  ;;  %v15661_v28 = vld [vmem:[#allocation97_spill] sm:$0xff]  ;;  %v15669_v15 = vld [vmem:[#allocation47_spill] sm:$0xff] }
 0x257   : > { %v1060_v12 = vadd.f32 %v1044_v51, %v900_v58  ;;  %8688 = vmatprep.mubr.msk.f32.mxu1 %vm1226_vm12, %v1218_v57  ;;  %v713_v43 = vpop.permute.xlu0 %712  ;;  %v1063_v3 = vadd.f32 %v1047_v7, %v10907_v31  ;;  %v1206_v54 = vsel %vm1126_vm14, %v15659_v32, 0.0  ;;  %vm968_vm0 = vcmp.eq.s32.totalorder %v15660_v13, %v10812_v59  ;;  %v15663_v31 = vld [vmem:[#allocation128_spill] sm:$0xff]  ;;  %v15672_v56 = vld [vmem:[#allocation53_spill] sm:$0xff]  ;;  %v15676_v32 = vld [vmem:[#allocation63_spill] sm:$0xff] }
 0x258   : > { %v742_v50 = vsel %vm646_vm9, %v713_v43, 0.0  ;;  %8689 = vmatmul.mubr.msk.f32.vlgmr.msra.gmra.mrb[0].mxu1 %vm1226_vm12, %v1219_v40  ;;  %v1049_v33 = vsel %vm969_vm15, %v15661_v28, 0.0  ;;  %v905_v5 = vadd.f32 %v10915_v42, %v10912_v20  ;;  %v1048_v10 = vsel %vm968_vm0, %v15662_v63, 0.0  ;;  %v15665_v42 = vld [vmem:[#allocation123_spill] sm:$0xff]  ;;  %v15675_v48 = vld [vmem:[#allocation61_spill] sm:$0xff] }
 0x259   : > { %v1220_v52 = vadd.f32 %v1204_v44, %v1060_v12  ;;  %v902_v4 = vadd.f32 %v886_v46, %v742_v50  ;;  %8899 = vmatpush3.bf16.msra.mxu1 %v10758_v24  ;;  %vm1129_vm1 = vcmp.eq.s32.totalorder %v15663_v31, %v10812_v59  ;;  %v1223_v0 = vadd.f32 %v1207_v9, %v1063_v3  ;;  %v15673_v9 = vld [vmem:[#allocation55_spill] sm:$0xff] }
 0x25a   : > { %v11097_v62 = vpop.permute.xlu1 %1817  ;;  %8901 = vmatprep.subr.bf16.mxu1 %v10979_v18  ;;  %vm1128_vm3 = vcmp.eq.s32.totalorder %v15664_v11, %v10812_v59  ;;  %v1209_v6 = vsel %vm1129_vm1, %v10677_v30, 0.0  ;;  %v1065_v20 = vadd.f32 %v1049_v33, %v905_v5  ;;  %vm1631_vm4 = vcmp.eq.s32.totalorder %v15667_v61, %v10812_v59  ;;  %v15678_v28 = vld [vmem:[#allocation67_spill] sm:$0xff]  ;;  %v15679_v5 = vld [vmem:[#allocation69_spill] sm:$0xff]  ;;  %v15683_v11 = vld [vmem:[#allocation98_spill] sm:$0xff] }
 0x25b   : > { %v1062_v27 = vadd.f32 %v1046_v29, %v902_v4  ;;  %8691 = vmatprep.mubr.msk.f32.mxu1 %vm1226_vm12, %v1220_v52  ;;  %v723_v60 = vpop.permute.xlu0 %722  ;;  %v1208_v58 = vsel %vm1128_vm3, %v15665_v42, 0.0  ;;  %v15666_v4 = vld [vmem:[#allocation41_spill] sm:$0xff]  ;;  %vm1635_vm5 = vcmp.eq.s32.totalorder %v15669_v15, %v10812_v59  ;;  %vm1641_vm9 = vcmp.eq.s32.totalorder %v15672_v56, %v10812_v59  ;;  %v15687_v42 = vld [vmem:[#allocation102_spill] sm:$0xff]  ;;  %v15691_v15 = vld [vmem:[#allocation127_spill] sm:$0xff] }
 0x25c   : > { %v744_v23 = vsel %vm648_vm13, %v723_v60, 0.0  ;;  %8692 = vmatmul.mubr.msk.f32.gmra.mrb[2].mxu1 %vm1226_vm12, %v1221_v36  ;;  %v1225_v47 = vadd.f32 %v1209_v6, %v1065_v20  ;;  %v15670_v29 = vld [vmem:[#allocation49_spill] sm:$0xff]  ;;  %v15671_v36 = vld [vmem:[#allocation51_spill] sm:$0xff]  ;;  %vm1643_vm8 = vcmp.eq.s32.totalorder %v15673_v9, %v10812_v59  ;;  %v11193_v63 = vsel %vm1641_vm9, %v15679_v5, 0.0  ;;  %v15684_v6 = vld [vmem:[#allocation94_spill] sm:$0xff] }
 0x25d   : > { %v1222_v22 = vadd.f32 %v1206_v54, %v1062_v27  ;;  %v904_v1 = vadd.f32 %v888_v17, %v744_v23  ;;  %8903 = vmatpush3.bf16.msra.mxu1 %v10979_v18  ;;  %v15668_v17 = vld [vmem:[#allocation45_spill] sm:$0xff]  ;;  %vm1637_vm6 = vcmp.eq.s32.totalorder %v15670_v29, %v10812_v59  ;;  %vm1639_vm7 = vcmp.eq.s32.totalorder %v15671_v36, %v10812_v59  ;;  %v15674_v27 = vld [vmem:[#allocation59_spill] sm:$0xff]  ;;  %v15686_v20 = vld [vmem:[#allocation100_spill] sm:$0xff] }
 0x25e   : > { %v11120_v8 = vpop.permute.xlu1 %1825  ;;  %8913 = vmatprep.subr.bf16.mxu1 %v10758_v24  ;;  %vm1633_vm2 = vcmp.eq.s32.totalorder %v15668_v17, %v10812_v59  ;;  %v1711_v60 = vsel %vm1631_vm4, %v15674_v27, 0.0  ;;  %v1715_v54 = vsel %vm1635_vm5, %v15676_v32, 0.0  ;;  %v15677_v23 = vld [vmem:[#allocation65_spill] sm:$0xff]  ;;  %v11188_v33 = vsel %vm1639_vm7, %v15678_v28, 0.0  ;;  %v15690_v17 = vld [vmem:[#allocation126_spill] sm:$0xff]  ;;  %v15692_v29 = vld [vmem:[#allocation124_spill] sm:$0xff] }
 0x25f   : > { %v1064_v21 = vadd.f32 %v1048_v10, %v904_v1  ;;  %8694 = vmatprep.mubr.msk.f32.mxu1 %vm1226_vm12, %v1222_v22  ;;  %v11127_v25 = vpop.permute.xlu0 %1424  ;;  %v1713_v3 = vsel %vm1633_vm2, %v15675_v48, 0.0  ;;  %v11185_v13 = vsel %vm1637_vm6, %v15677_v23, 0.0  ;;  %v15680_v10 = vld [vmem:[#allocation71_spill] sm:$0xff]  ;;  %vm1794_vm11 = vcmp.eq.s32.totalorder %v15683_v11, %v10812_v59  ;;  %v15693_v36 = vld [vmem:[#allocation129_spill] sm:$0xff]  ;;  %v15695_v27 = vld [vmem:[#allocation132_spill] sm:$0xff] }
 0x260   : > { %8695 = vmatmul.mubr.msk.f32.gmra.mrb[4].mxu1 %vm1226_vm12, %v1223_v0  ;;  %v11196_v31 = vsel %vm1643_vm8, %v15680_v10, 0.0  ;;  %v15682_v0 = vld [vmem:[#allocation96_spill] sm:$0xff]  ;;  %vm1789_vm14 = vcmp.eq.s32.totalorder %v15684_v6, %v10812_v59  ;;  %vm1798_vm15 = vcmp.eq.s32.totalorder %v15686_v20, %v10812_v59  ;;  %vm1800_vm0 = vcmp.eq.s32.totalorder %v15687_v42, %v10812_v59  ;;  %v15694_v56 = vld [vmem:[#allocation131_spill] sm:$0xff]  ;;  %v15696_v23 = vld [vmem:[#allocation113_spill] sm:$0xff] }
 0x261   : > { %v1224_v57 = vadd.f32 %v1208_v58, %v1064_v21  ;;  %15681 = vst [vmem:[#allocation14_spill] sm:$0xff] %v11196_v31  ;;  %vm1792_vm10 = vcmp.eq.s32.totalorder %v15682_v0, %v10812_v59  ;;  %v15685_v21 = vld [vmem:[#allocation99_spill] sm:$0xff]  ;;  %v15688_v58 = vld [vmem:[#allocation110_spill] sm:$0xff]  ;;  %vm1471_vm1 = vcmp.eq.s32.totalorder %v15690_v17, %v10812_v59  ;;  %vm1473_vm3 = vcmp.eq.s32.totalorder %v15691_v15, %v10812_v59  ;;  %v15697_v5 = vld [vmem:[#allocation133_spill] sm:$0xff] }
 0x262   : > { %v11131_v46 = vpop.permute.xlu1 %1833  ;;  %vm1796_vm13 = vcmp.eq.s32.totalorder %v15685_v21, %v10812_v59  ;;  %vm1469_vm4 = vcmp.eq.s32.totalorder %v11127_v25, %v10812_v59  ;;  %vm1468_vm2 = vcmp.eq.s32.totalorder %v15692_v29, %v10812_v59  ;;  %vm1475_vm5 = vcmp.eq.s32.totalorder %v15693_v36, %v10812_v59  ;;  %v15698_v0 = vld [vmem:[#allocation143_spill] sm:$0xff]  ;;  %v15699_v11 = vld [vmem:[#allocation114_spill] sm:$0xff]  ;;  %v15701_v17 = vld [vmem:[#allocation125_spill] sm:$0xff] }
 0x263   : > { %8697 = vmatprep.mubr.msk.f32.mxu1 %vm1226_vm12, %v1224_v57  ;;  %v11134_v37 = vpop.permute.xlu0 %1433  ;;  %v11211_v57 = vsel %vm1792_vm10, %v15688_v58, 0.0  ;;  %v1567_v9 = vsel %vm1471_vm1, %v15694_v56, 0.0  ;;  %v1569_v48 = vsel %vm1473_vm3, %v15695_v27, 0.0  ;;  %v11231_v28 = vsel %vm1796_vm13, %v15696_v23, 0.0  ;;  %v15700_v58 = vld [vmem:[#allocation116_spill] sm:$0xff]  ;;  %v15702_v15 = vld [vmem:[#allocation130_spill] sm:$0xff] }
 0x264   : > { %8698 = vmatmul.mubr.msk.f32.gmra.mrb[6].mxu1 %vm1226_vm12, %v1225_v47  ;;  %vm1628_vm12 = vcmp.eq.s32.totalorder %v15666_v4, %v10812_v59  ;;  %v15689_v47 = vld [vmem:[#allocation112_spill] sm:$0xff]  ;;  %v1571_v10 = vsel %vm1475_vm5, %v15697_v5, 0.0  ;;  %vm1629_vm6 = vcmp.eq.s32.totalorder %v15698_v0, %v10812_v59  ;;  %v11240_v21 = vsel %vm1798_vm15, %v15699_v11, 0.0  ;;  %v15705_v42 = vld [vmem:[#allocation57_spill] sm:$0xff]  ;;  %v15706_v11 = vld [vmem:[#allocation171_spill] sm:$0xff] }
 0x265   : > { %v11214_v61 = vsel %vm1794_vm11, %v15689_v47, 0.0  ;;  %v11246_v47 = vsel %vm1800_vm0, %v15700_v58, 0.0  ;;  %vm1470_vm7 = vcmp.eq.s32.totalorder %v15701_v17, %v10812_v59  ;;  %v1565_v29 = vsel %vm1469_vm4, %v15702_v15, 0.0  ;;  %v15704_v20 = vld [vmem:[#allocation160_spill] sm:$0xff]  ;;  %v15708_v15 = vld [vmem:[#allocation145_spill] sm:$0xff]  ;;  %v15709_v4 = vld [vmem:[#allocation134_spill] sm:$0xff] }
 0x266   : > { %v11137_v30 = vpop.permute.xlu1 %1841  ;;  %v1727_v56 = vadd.f32 %v1711_v60, %v1567_v9  ;;  %v1729_v27 = vadd.f32 %v1713_v3, %v1569_v48  ;;  %v1708_v23 = vsel %vm1628_vm12, %v15704_v20, 0.0  ;;  %v11257_v5 = vadd.f32 %v1715_v54, %v1571_v10  ;;  %v15710_v54 = vld [vmem:[#allocation147_spill] sm:$0xff]  ;;  %v15711_v9 = vld [vmem:[#allocation162_spill] sm:$0xff]  ;;  %v15712_v10 = vld [vmem:[#allocation12_spill] sm:$0xff] }
 0x267   : > { %v11139_v51 = vpop.permute.xlu0 %1439  ;;  %v1709_v0 = vsel %vm1629_vm6, %v15705_v42, 0.0  ;;  %vm1788_vm8 = vcmp.eq.s32.totalorder %v15706_v11, %v10812_v59  ;;  %vm1630_vm10 = vcmp.eq.s32.totalorder %v15708_v15, %v10812_v59  ;;  %vm1948_vm12 = vcmp.eq.s32.totalorder %v15709_v4, %v10812_v59  ;;  %v15716_v42 = vld [vmem:[#allocation150_spill] sm:$0xff]  ;;  %v15718_v31 = vld [vmem:[#allocation164_spill] sm:$0xff] }
 0x268   : > { %v1725_v60 = vadd.f32 %v1709_v0, %v1565_v29  ;;  %vm1632_vm13 = vcmp.eq.s32.totalorder %v15710_v54, %v10812_v59  ;;  %v1710_v48 = vsel %vm1630_vm10, %v15711_v9, 0.0  ;;  %vm1791_vm15 = vcmp.eq.s32.totalorder %v15712_v10, %v10812_v59  ;;  %v15715_v29 = vld [vmem:[#allocation6_spill] sm:$0xff] }
 0x269   : > { %vm1479_vm1 = vcmp.eq.s32.totalorder %v15715_v29, %v10812_v59  ;;  %vm1472_vm3 = vcmp.eq.s32.totalorder %v11134_v37, %v10812_v59  ;;  %v1712_v37 = vsel %vm1632_vm13, %v15718_v31, 0.0  ;;  %vm1793_vm4 = vcmp.eq.s32.totalorder %v10909_v41, %v10812_v59  ;;  %v15729_v29 = vld [vmem:[#allocation167_spill] sm:$0xff] }
 0x26a   : > { %v11141_v40 = vpop.permute.xlu1 %1849  ;;  %v1873_v4 = vsel %vm1793_vm4, %v11120_v8, 0.0  ;;  %v15721_v8 = vld [vmem:[#allocation149_spill] sm:$0xff] }
 0x26b   : > { %v11143_v16 = vpop.permute.xlu0 %1445 }
 0x26c   : > { %vm1476_vm10 = vcmp.eq.s32.totalorder %v11143_v16, %v10812_v59  ;;  %v15727_v16 = vld [vmem:[#allocation151_spill] sm:$0xff] }
 0x26d   : > { %vm1636_vm13 = vcmp.eq.s32.totalorder %v15727_v16, %v10812_v59 }
 0x26e   : > { %v11145_v49 = vpop.permute.xlu1 %1857 }
 0x26f   : > { %v11147_v12 = vpop.permute.xlu0 %1451 }
 0x272   : > { %v11149_v43 = vpop.permute.xlu1 %1865 }
 0x273   : > { %v11151_v53 = vpop.permute.xlu0 %1457 }
 0x277   : > { %v11153_v35 = vpop.permute.xlu1 %1904  ;;  %v11155_v34 = vpop.permute.xlu0 %1463 }
 0x278   : > { %vm1949_vm11 = vcmp.eq.s32.totalorder %v11153_v35, %v10812_v59  ;;  %v1869_v35 = vsel %vm1789_vm14, %v11073_v55, 0.0  ;;  %vm2060_vm14 = vcmask 261120  }
 0x279   : > { %v2029_v0 = vsel %vm1949_vm11, %v15716_v42, 0.0 }
 0x27b   : > { %v11157_v44 = vpop.permute.xlu1 %1907  ;;  %v1487_v50 = vpop.permute.xlu0 %1486 }
 0x27c   : > { %v1564_v25 = vsel %vm1468_vm2, %v1487_v50, 0.0  ;;  %v15703_v50 = vld [vmem:[#allocation5_spill] sm:$0xff]  ;;  %vm1474_vm2 = vcmp.eq.s32.totalorder %v11139_v51, %v10812_v59  ;;  %vm1950_vm5 = vcmp.eq.s32.totalorder %v11157_v44, %v10812_v59  ;;  %v15722_v51 = vld [vmem:[#allocation152_spill] sm:$0xff] }
 0x27d   : > { %vm1477_vm9 = vcmp.eq.s32.totalorder %v15703_v50, %v10812_v59  ;;  %v1724_v58 = vadd.f32 %v1708_v23, %v1564_v25  ;;  %v15713_v25 = vld [vmem:[#allocation106_spill] sm:$0xff]  ;;  %v15714_v23 = vld [vmem:[#allocation11_spill] sm:$0xff] }
 0x27e   : > { %v1868_v20 = vsel %vm1788_vm8, %v15713_v25, 0.0  ;;  %vm1790_vm0 = vcmp.eq.s32.totalorder %v15714_v23, %v10812_v59  ;;  %v1885_v25 = vadd.f32 %v1869_v35, %v1725_v60 }
 0x27f   : > { %v11159_v2 = vpop.permute.xlu1 %1913  ;;  %v1497_v7 = vpop.permute.xlu0 %1496  ;;  %v1884_v10 = vadd.f32 %v1868_v20, %v1724_v58  ;;  %v15720_v20 = vld [vmem:[#allocation136_spill] sm:$0xff] }
 0x280   : > { %v1566_v3 = vsel %vm1470_vm7, %v1497_v7, 0.0  ;;  %v1871_v7 = vsel %vm1791_vm15, %v11097_v62, 0.0  ;;  %v15717_v62 = vld [vmem:[#allocation135_spill] sm:$0xff]  ;;  %vm1951_vm6 = vcmp.eq.s32.totalorder %v15720_v20, %v10812_v59  ;;  %vm1634_vm7 = vcmp.eq.s32.totalorder %v15721_v8, %v10812_v59  ;;  %v15734_v20 = vld [vmem:[#allocation168_spill] sm:$0xff] }
 0x281   : > { %v1726_v11 = vadd.f32 %v1710_v48, %v1566_v3  ;;  %v1573_v6 = vsel %vm1477_vm9, %v15717_v62, 0.0  ;;  %v1887_v3 = vadd.f32 %v1871_v7, %v1727_v56  ;;  %v2045_v48 = vadd.f32 %v2029_v0, %v1885_v25  ;;  %v15726_v25 = vld [vmem:[#allocation138_spill] sm:$0xff] }
 0x282   : > { %v1733_v41 = vadd.f32 %v11185_v13, %v1573_v6  ;;  %v2031_v35 = vsel %vm1951_vm6, %v15722_v51, 0.0  ;;  %vm1795_vm9 = vcmp.eq.s32.totalorder %v10938_v45, %v10812_v59  ;;  %v15723_v13 = vld [vmem:[#allocation166_spill] sm:$0xff]  ;;  %v1889_v0 = vadd.f32 %v1873_v4, %v1729_v27  ;;  %v15725_v27 = vld [vmem:[#allocation137_spill] sm:$0xff] }
 0x283   : > { %v11161_v26 = vpop.permute.xlu1 %1919  ;;  %v1507_v22 = vpop.permute.xlu0 %1506  ;;  %v1714_v7 = vsel %vm1634_vm7, %v15723_v13, 0.0  ;;  %v2047_v42 = vadd.f32 %v2031_v35, %v1887_v3  ;;  %vm1952_vm11 = vcmp.eq.s32.totalorder %v11159_v2, %v10812_v59  ;;  %v15728_v2 = vld [vmem:[#allocation154_spill] sm:$0xff]  ;;  %vm1797_vm15 = vcmp.eq.s32.totalorder %v10969_v14, %v10812_v59 }
 0x284   : > { %vm1480_vm6 = vcmp.eq.s32.totalorder %v11151_v53, %v10812_v59  ;;  %v15737_v53 = vld [vmem:[#allocation155_spill] sm:$0xff] }
 0x287   : > { %v11163_v52 = vpop.permute.xlu1 %1925  ;;  %v1517_v36 = vpop.permute.xlu0 %1516 }
 0x288   : > { %v1570_v56 = vsel %vm1474_vm2, %v1517_v36, 0.0  ;;  %v1875_v36 = vsel %vm1795_vm9, %v11131_v46, 0.0  ;;  %v1575_v46 = vsel %vm1479_vm1, %v15725_v27, 0.0  ;;  %vm1954_vm1 = vcmp.eq.s32.totalorder %v11161_v26, %v10812_v59  ;;  %v15732_v26 = vld [vmem:[#allocation153_spill] sm:$0xff] }
 0x289   : > { %v1730_v45 = vadd.f32 %v1714_v7, %v1570_v56  ;;  %vm1638_vm2 = vcmp.eq.s32.totalorder %v15732_v26, %v10812_v59  ;;  %vm1956_vm7 = vcmp.eq.s32.totalorder %v11163_v52, %v10812_v59  ;;  %v15738_v52 = vld [vmem:[#allocation159_spill] sm:$0xff] }
 0x28a   : > { %v1718_v56 = vsel %vm1638_vm2, %v15734_v20, 0.0  ;;  %v15752_v20 = vld [vmem:[#allocation165_spill] sm:$0xff] }
 0x28b   : > { %v11190_v1 = vpop.permute.xlu1 %1931  ;;  %v1527_v15 = vpop.permute.xlu0 %1526  ;;  %v1890_v4 = vadd.f32 %v11214_v61, %v1730_v45 }
 0x28f   : > { %v11228_v32 = vpop.permute.xlu1 %1937  ;;  %v1537_v44 = vpop.permute.xlu0 %1536 }
 0x293   : > { %v11262_v17 = vpop.permute.xlu1 %1943  ;;  %v1547_v14 = vpop.permute.xlu0 %1546 }
 0x294   : > { %15707 = vst [vmem:[#allocation15_spill] sm:$0xff] %v11262_v17  ;;  %v1568_v17 = vsel %vm1472_vm3, %v1507_v22, 0.0  ;;  %v15719_v22 = vld [vmem:[#allocation108_spill] sm:$0xff] }
 0x295   : > { %v1870_v60 = vsel %vm1790_vm0, %v15719_v22, 0.0  ;;  %v1728_v31 = vadd.f32 %v1712_v37, %v1568_v17  ;;  %v1716_v37 = vsel %vm1636_vm13, %v15729_v29, 0.0  ;;  %v1891_v22 = vadd.f32 %v1875_v36, %v11257_v5  ;;  %v15731_v5 = vld [vmem:[#allocation140_spill] sm:$0xff] }
 0x296   : > { %v1886_v54 = vadd.f32 %v1870_v60, %v1726_v11  ;;  %v15724_v11 = vld [vmem:[#allocation7_spill] sm:$0xff]  ;;  %vm1478_vm0 = vcmp.eq.s32.totalorder %v11147_v12, %v10812_v59  ;;  %vm1955_vm4 = vcmp.eq.s32.totalorder %v15731_v5, %v10812_v59 }
 0x297   : > { %v1966_v9 = vpop.permute.xlu1 %1965  ;;  %vm1481_vm8 = vcmp.eq.s32.totalorder %v15724_v11, %v10812_v59 }
 0x298   : > { %v2028_v55 = vsel %vm1948_vm12, %v1966_v9, 0.0  ;;  %vm1953_vm12 = vcmp.eq.s32.totalorder %v15726_v25, %v10812_v59  ;;  %v15740_v25 = vld [vmem:[#allocation144_spill] sm:$0xff] }
 0x299   : > { %v2044_v58 = vadd.f32 %v2028_v55, %v1884_v10  ;;  %v1888_v10 = vadd.f32 %v11211_v57, %v1728_v31  ;;  %v1572_v55 = vsel %vm1476_vm10, %v1527_v15, 0.0  ;;  %v2033_v6 = vsel %vm1953_vm12, %v15728_v2, 0.0 }
 0x29a   : > { %v1877_v15 = vsel %vm1797_vm15, %v11137_v30, 0.0  ;;  %v1732_v60 = vadd.f32 %v1716_v37, %v1572_v55  ;;  %v1735_v30 = vadd.f32 %v11188_v33, %v1575_v46  ;;  %v1574_v31 = vsel %vm1478_vm0, %v1537_v44, 0.0 }
 0x29b   : > { %v1974_v50 = vpop.permute.xlu1 %1973  ;;  %8708 = vmatprep.mubr.msk.f32.mxu1 %vm2060_vm14, %v2044_v58  ;;  %v2049_v58 = vadd.f32 %v2033_v6, %v1889_v0  ;;  %v1893_v33 = vadd.f32 %v1877_v15, %v1733_v41  ;;  %v1734_v51 = vadd.f32 %v1718_v56, %v1574_v31  ;;  %v15736_v41 = vld [vmem:[#allocation142_spill] sm:$0xff]  ;;  %vm1640_vm10 = vcmp.eq.s32.totalorder %v15737_v53, %v10812_v59  ;;  %v15739_v0 = vld [vmem:[#allocation169_spill] sm:$0xff] }
 0x29c   : > { %v2030_v23 = vsel %vm1950_vm5, %v1974_v50, 0.0  ;;  %8709 = vmatmul.mubr.msk.f32.vlgmr.msra.gmra.mrb[8].mxu1 %vm2060_vm14, %v2045_v48  ;;  %v15730_v48 = vld [vmem:[#allocation8_spill] sm:$0xff]  ;;  %vm1799_vm5 = vcmp.eq.s32.totalorder %v10997_v38, %v10812_v59  ;;  %v1892_v44 = vadd.f32 %v11231_v28, %v1732_v60  ;;  %v15735_v38 = vld [vmem:[#allocation139_spill] sm:$0xff]  ;;  %vm1957_vm9 = vcmp.eq.s32.totalorder %v15736_v41, %v10812_v59  ;;  %v1557_v28 = vpop.permute.xlu0 %1556  ;;  %v15744_v6 = vld [vmem:[#allocation170_spill] sm:$0xff] }
 0x29d   : > { %v2046_v17 = vadd.f32 %v2030_v23, %v1886_v54  ;;  %8915 = vmatpush3.bf16.msra.mxu1 %v10758_v24  ;;  %vm1483_vm3 = vcmp.eq.s32.totalorder %v15730_v48, %v10812_v59  ;;  %v15733_v50 = vld [vmem:[#allocation156_spill] sm:$0xff]  ;;  %v1879_v8 = vsel %vm1799_vm5, %v11141_v40, 0.0  ;;  %v1576_v40 = vsel %vm1480_vm6, %v1547_v14, 0.0  ;;  %v15745_v60 = vld [vmem:[#allocation14_spill] sm:$0xff] }
 0x29e   : > { %8917 = vmatprep.subr.bf16.mxu1 %v10979_v18  ;;  %v2035_v54 = vsel %vm1955_vm4, %v15733_v50, 0.0  ;;  %v2037_v7 = vsel %vm1957_vm9, %v15738_v52, 0.0  ;;  %v1720_v36 = vsel %vm1640_vm10, %v15739_v0, 0.0  ;;  %v1895_v45 = vadd.f32 %v1879_v8, %v1735_v30  ;;  %v15749_v30 = vld [vmem:[#allocation118_spill] sm:$0xff] }
 0x29f   : > { %v1982_v9 = vpop.permute.xlu1 %1981  ;;  %8711 = vmatprep.mubr.msk.f32.mxu1 %vm2060_vm14, %v2046_v17  ;;  %v2051_v23 = vadd.f32 %v2035_v54, %v1891_v22  ;;  %v1577_v17 = vsel %vm1481_vm8, %v15735_v38, 0.0  ;;  %v2053_v11 = vadd.f32 %v2037_v7, %v1893_v33  ;;  %vm1482_vm8 = vcmp.eq.s32.totalorder %v11155_v34, %v10812_v59  ;;  %v15751_v54 = vld [vmem:[#allocation148_spill] sm:$0xff] }
 0x2a0   : > { %v2032_v62 = vsel %vm1952_vm11, %v1982_v9, 0.0  ;;  %8712 = vmatmul.mubr.msk.f32.gmra.mrb[10].mxu1 %vm2060_vm14, %v2047_v42  ;;  %vm1801_vm11 = vcmp.eq.s32.totalorder %v11024_v19, %v10812_v59  ;;  %vm1958_vm12 = vcmp.eq.s32.totalorder %v11190_v1, %v10812_v59  ;;  %v1894_v46 = vadd.f32 %v11240_v21, %v1734_v51  ;;  %v15742_v1 = vld [vmem:[#allocation158_spill] sm:$0xff]  ;;  %v15743_v21 = vld [vmem:[#allocation161_spill] sm:$0xff] }
 0x2a1   : > { %v2048_v57 = vadd.f32 %v2032_v62, %v1888_v10  ;;  %8919 = vmatpush3.bf16.msra.mxu1 %v10979_v18  ;;  %v1881_v9 = vsel %vm1801_vm11, %v11145_v49, 0.0  ;;  %v1736_v10 = vadd.f32 %v1720_v36, %v1576_v40  ;;  %v1737_v19 = vadd.f32 %v11193_v63, %v1577_v17  ;;  %v15741_v49 = vld [vmem:[#allocation141_spill] sm:$0xff] }
 0x2a2   : > { %8929 = vmatprep.subr.bf16.mxu1 %v10758_v24  ;;  %vm1959_vm13 = vcmp.eq.s32.totalorder %v15740_v25, %v10812_v59  ;;  %v1578_v55 = vsel %vm1482_vm8, %v1557_v28, 0.0  ;;  %v1579_v34 = vsel %vm1483_vm3, %v15741_v49, 0.0  ;;  %vm1642_vm15 = vcmp.eq.s32.totalorder %v15742_v1, %v10812_v59 }
 0x2a3   : > { %v1990_v3 = vpop.permute.xlu1 %1989  ;;  %8714 = vmatprep.mubr.msk.f32.mxu1 %vm2060_vm14, %v2048_v57  ;;  %v2039_v16 = vsel %vm1959_vm13, %v15743_v21, 0.0  ;;  %v1722_v63 = vsel %vm1642_vm15, %v15744_v6, 0.0  ;;  %vm1803_vm0 = vcmp.eq.s32.totalorder %v11050_v39, %v10812_v59  ;;  %v1897_v29 = vadd.f32 %v1881_v9, %v1737_v19  ;;  %v15747_v39 = vld [vmem:[#allocation104_spill] sm:$0xff] }
 0x2a4   : > { %v2034_v12 = vsel %vm1954_vm1, %v1990_v3, 0.0  ;;  %8715 = vmatmul.mubr.msk.f32.gmra.mrb[12].mxu1 %vm2060_vm14, %v2049_v58  ;;  %v2055_v57 = vadd.f32 %v2039_v16, %v1895_v45  ;;  %v1883_v37 = vsel %vm1803_vm0, %v11149_v43, 0.0  ;;  %vm1960_vm1 = vcmp.eq.s32.totalorder %v11228_v32, %v10812_v59  ;;  %v15746_v3 = vld [vmem:[#allocation146_spill] sm:$0xff]  ;;  %v15748_v43 = vld [vmem:[#allocation163_spill] sm:$0xff] }
 0x2a5   : > { %v2050_v61 = vadd.f32 %v2034_v12, %v1890_v4  ;;  %v1738_v58 = vadd.f32 %v1722_v63, %v1578_v55  ;;  %v1896_v15 = vadd.f32 %v11246_v47, %v1736_v10  ;;  %v1739_v14 = vadd.f32 %v15745_v60, %v1579_v34  ;;  %v15750_v12 = vld [vmem:[#allocation15_spill] sm:$0xff] }
 0x2a6   : > { %vm1961_vm3 = vcmp.eq.s32.totalorder %v15746_v3, %v10812_v59  ;;  %vm1802_vm4 = vcmp.eq.s32.totalorder %v15747_v39, %v10812_v59  ;;  %vm1962_vm2 = vcmp.eq.s32.totalorder %v15750_v12, %v10812_v59  ;;  %vm1963_vm5 = vcmp.eq.s32.totalorder %v15751_v54, %v10812_v59  ;;  %v11501_v12 = vld [vmem:[%s11482_s29 + $0x28] sm:$0xff]  ;;  %v11513_v54 = vld [vmem:[%s11482_s29 + $0x40] sm:$0xff] }
 0x2a7   : > { %v1998_v35 = vpop.permute.xlu1 %1997  ;;  %8717 = vmatprep.mubr.msk.f32.mxu1 %vm2060_vm14, %v2050_v61  ;;  %v2041_v48 = vsel %vm1961_vm3, %v15748_v43, 0.0  ;;  %v1882_v5 = vsel %vm1802_vm4, %v15749_v30, 0.0  ;;  %v1899_v47 = vadd.f32 %v1883_v37, %v1739_v14  ;;  %v2043_v56 = vsel %vm1963_vm5, %v15752_v20, 0.0  ;;  %v11485_v30 = vld [vmem:[%s11482_s29] sm:$0xff]  ;;  %v11521_v20 = vld [vmem:[%s11482_s29 + $0x58] sm:$0xff] }
 0x2a8   : > { %v2036_v13 = vsel %vm1956_vm7, %v1998_v35, 0.0  ;;  %8718 = vmatmul.mubr.msk.f32.gmra.mrb[14].mxu1 %vm2060_vm14, %v2051_v23  ;;  %v2057_v31 = vadd.f32 %v2041_v48, %v1897_v29  ;;  %v1898_v50 = vadd.f32 %v1882_v5, %v1738_v58  ;;  %v11489_v5 = vld [vmem:[%s11482_s29 + $0x10] sm:$0xff]  ;;  %vm2446_vm6 = vcmask 7168  }
 0x2a9   : > { %v2052_v42 = vadd.f32 %v2036_v13, %v1892_v44  ;;  %v2059_v33 = vadd.f32 %v2043_v56, %v1899_v47  ;;  %v11497_v47 = vld [vmem:[%s11482_s29 + $0x20] sm:$0xff]  ;;  %v11525_v56 = vld [vmem:[%s11482_s29 + $0x68] sm:$0xff] }
 0x2ab   : > { %v2006_v27 = vpop.permute.xlu1 %2005  ;;  %8720 = vmatprep.mubr.msk.f32.mxu1 %vm2060_vm14, %v2052_v42 }
 0x2ac   : > { %v2038_v62 = vsel %vm1958_vm12, %v2006_v27, 0.0  ;;  %8721 = vmatmul.mubr.msk.f32.gmra.mrb[16].mxu1 %vm2060_vm14, %v2053_v11 }
 0x2ad   : > { %v2054_v2 = vadd.f32 %v2038_v62, %v1894_v46 }
 0x2af   : > { %v2014_v22 = vpop.permute.xlu1 %2013  ;;  %8723 = vmatprep.mubr.msk.f32.mxu1 %vm2060_vm14, %v2054_v2 }
 0x2b0   : > { %v2040_v4 = vsel %vm1960_vm1, %v2014_v22, 0.0  ;;  %8724 = vmatmul.mubr.msk.f32.gmra.mrb[18].mxu1 %vm2060_vm14, %v2055_v57 }
 0x2b1   : > { %v2056_v32 = vadd.f32 %v2040_v4, %v1896_v15 }
 0x2b3   : > { %v2022_v26 = vpop.permute.xlu1 %2021  ;;  %8726 = vmatprep.mubr.msk.f32.mxu1 %vm2060_vm14, %v2056_v32 }
 0x2b4   : > { %v2042_v61 = vsel %vm1962_vm2, %v2022_v26, 0.0  ;;  %8727 = vmatmul.mubr.msk.f32.gmra.mrb[20].mxu1 %vm2060_vm14, %v2057_v31  ;;  %v11493_v31 = vld [vmem:[%s11482_s29 + $0x18] sm:$0xff]  ;;  %v11505_v26 = vld [vmem:[%s11482_s29 + $0x30] sm:$0xff] }
 0x2b5   : > { %v2058_v23 = vadd.f32 %v2042_v61, %v1898_v50  ;;  %v11509_v50 = vld [vmem:[%s11482_s29 + $0x38] sm:$0xff]  ;;  %v11517_v61 = vld [vmem:[%s11482_s29 + $0x48] sm:$0xff] }
 0x2b7   : > { %8729 = vmatprep.mubr.msk.f32.mxu1 %vm2060_vm14, %v2058_v23  ;;  %v11529_v23 = vld [vmem:[%s11482_s29 + $0x78] sm:$0xff] }
 0x2b8   : > { %8730 = vmatmul.mubr.msk.f32.gmra.mrb[22].mxu1 %vm2060_vm14, %v2059_v33  ;;  %v11539_v33 = vld [vmem:[%s11535_s17 + $0x8] sm:$0xff] }
 0x31b   : > { %v11430_v8 = vpop.f32.mrb[0].mxu0 }
 0x31c   : > { %15753 = vst [vmem:[#allocation16_spill] sm:$0xff] %v11430_v8  ;;  %v11432_v51 = vpop.f32.mrb[1].mxu0 }
 0x31d   : > { %15754 = vst [vmem:[#allocation17_spill] sm:$0xff] %v11432_v51 }
 0x31f   : > { %v11434_v35 = vpop.f32.mrb[2].mxu0 }
 0x320   : > { %15755 = vst [vmem:[#allocation18_spill] sm:$0xff] %v11434_v35  ;;  %v11436_v44 = vpop.f32.mrb[3].mxu0 }
 0x321   : > { %15756 = vst [vmem:[#allocation19_spill] sm:$0xff] %v11436_v44 }
 0x323   : > { %v11438_v38 = vpop.f32.mrb[4].mxu0 }
 0x324   : > { %15757 = vst [vmem:[#allocation20_spill] sm:$0xff] %v11438_v38  ;;  %v11440_v17 = vpop.f32.mrb[5].mxu0 }
 0x325   : > { %15758 = vst [vmem:[#allocation21_spill] sm:$0xff] %v11440_v17 }
 0x327   : > { %v11442_v41 = vpop.f32.mrb[6].mxu0 }
 0x328   : > { %15759 = vst [vmem:[#allocation22_spill] sm:$0xff] %v11442_v41  ;;  %v11444_v40 = vpop.f32.mrb[7].mxu0 }
 0x329   : > { %15760 = vst [vmem:[#allocation27_spill] sm:$0xff] %v11444_v40 }
 0x32b   : > { %v11446_v13 = vpop.f32.mrb[0].mxu1 }
 0x32c   : > { %15761 = vst [vmem:[#allocation28_spill] sm:$0xff] %v11446_v13  ;;  %v11448_v53 = vpop.f32.mrb[1].mxu1 }
 0x32d   : > { %15762 = vst [vmem:[#allocation29_spill] sm:$0xff] %v11448_v53 }
 0x32f   : > { %v11450_v52 = vpop.f32.mrb[2].mxu1 }
 0x330   : > { %15763 = vst [vmem:[#allocation30_spill] sm:$0xff] %v11450_v52  ;;  %v11452_v7 = vpop.f32.mrb[3].mxu1 }
 0x331   : > { %15764 = vst [vmem:[#allocation31_spill] sm:$0xff] %v11452_v7 }
 0x333   : > { %v11454_v28 = vpop.f32.mrb[4].mxu1 }
 0x334   : > { %15765 = vst [vmem:[#allocation32_spill] sm:$0xff] %v11454_v28  ;;  %v11456_v42 = vpop.f32.mrb[5].mxu1 }
 0x335   : > { %15766 = vst [vmem:[#allocation33_spill] sm:$0xff] %v11456_v42 }
 0x337   : > { %v11458_v0 = vpop.f32.mrb[6].mxu1 }
 0x338   : > { %15767 = vst [vmem:[#allocation34_spill] sm:$0xff] %v11458_v0  ;;  %v11460_v36 = vpop.f32.mrb[7].mxu1 }
 0x339   : > { %15768 = vst [vmem:[#allocation35_spill] sm:$0xff] %v11460_v36 }
 0x36f   : > { %v8710_v11 = vpop.f32.mrb[8].mxu1 }
 0x370   : > { %v2255_v45 = vmul.f32 %v8710_v11, %v11430_v8  ;;  %v2175_v9 = vpop.f32.mrb[9].mxu1  ;;  %v11543_v11 = vld [vmem:[%s11535_s17 + $0x18] sm:$0xff] }
 0x371   : > { %v2254_v10 = vmul.f32 %v2175_v9, %v11432_v51  ;;  %v11551_v9 = vld [vmem:[%s11535_s17 + $0x38] sm:$0xff] }
 0x372   : > { %2272 = vadd.xlane.f32.xlu0 %v2255_v45  ;;  %v11547_v45 = vld [vmem:[%s11535_s17 + $0x28] sm:$0xff] }
 0x373   : > { %2270 = vadd.xlane.f32.xlu1 %v2254_v10  ;;  %v8713_v27 = vpop.f32.mrb[10].mxu1  ;;  %v11555_v10 = vld [vmem:[%s11535_s17 + $0x48] sm:$0xff] }
 0x374   : > { %v2257_v46 = vmul.f32 %v8713_v27, %v11434_v35  ;;  %v2185_v19 = vpop.f32.mrb[11].mxu1  ;;  %v11559_v27 = vld [vmem:[%s11535_s17 + $0x58] sm:$0xff]  ;;  %v578_v35 = vld [vmem:[%s11607_s24 + $0x50] sm:$0xff] }
 0x375   : > { %v2256_v25 = vmul.f32 %v2185_v19, %v11436_v44  ;;  %v11567_v19 = vld [vmem:[%s11535_s17 + $0x78] sm:$0xff] }
 0x377   : > { %2276 = vadd.xlane.f32.xlu1 %v2257_v46  ;;  %2274 = vadd.xlane.f32.xlu0 %v2256_v25  ;;  %v8716_v55 = vpop.f32.mrb[12].mxu1  ;;  %v11563_v46 = vld [vmem:[%s11535_s17 + $0x68] sm:$0xff] }
 0x378   : > { %v2259_v62 = vmul.f32 %v8716_v55, %v11438_v38  ;;  %v2195_v49 = vpop.f32.mrb[13].mxu1  ;;  %v11571_v25 = vld [vmem:[%s11482_s29 + $0x8] sm:$0xff]  ;;  %v15771_v55 = vmov 1   ;;  %v574_v38 = vld [vmem:[%s11607_s24 + $0x30] sm:$0xff] }
 0x379   : > { %v2258_v34 = vmul.f32 %v2195_v49, %v11440_v17 }
 0x37b   : > { %2280 = vadd.xlane.f32.xlu1 %v2259_v62  ;;  %2278 = vadd.xlane.f32.xlu0 %v2258_v34  ;;  %v8719_v1 = vpop.f32.mrb[14].mxu1 }
 0x37c   : > { %v2261_v21 = vmul.f32 %v8719_v1, %v11442_v41  ;;  %v2205_v16 = vpop.f32.mrb[15].mxu1 }
 0x37d   : > { %v2260_v2 = vmul.f32 %v2205_v16, %v11444_v40  ;;  %v11580_v16 = vld [vmem:[%s11482_s29 + $0x50] sm:$0xff]  ;;  %v573_v40 = vld [vmem:[%s11607_s24 + $0x28] sm:$0xff] }
 0x37f   : > { %2284 = vadd.xlane.f32.xlu1 %v2261_v21  ;;  %2282 = vadd.xlane.f32.xlu0 %v2260_v2  ;;  %v8722_v6 = vpop.f32.mrb[16].mxu1 }
 0x380   : > { %v2263_v63 = vmul.f32 %v8722_v6, %v11446_v13  ;;  %v2215_v57 = vpop.f32.mrb[17].mxu1 }
 0x381   : > { %v2262_v29 = vmul.f32 %v2215_v57, %v11448_v53 }
 0x383   : > { %2288 = vadd.xlane.f32.xlu1 %v2263_v63  ;;  %2286 = vadd.xlane.f32.xlu0 %v2262_v29  ;;  %v8725_v37 = vpop.f32.mrb[18].mxu1 }
 0x384   : > { %v2265_v58 = vmul.f32 %v8725_v37, %v11450_v52  ;;  %v2225_v22 = vpop.f32.mrb[19].mxu1 }
 0x385   : > { %v2264_v15 = vmul.f32 %v2225_v22, %v11452_v7  ;;  %v11584_v22 = vld [vmem:[%s11482_s29 + $0x60] sm:$0xff] }
 0x387   : > { %2292 = vadd.xlane.f32.xlu1 %v2265_v58  ;;  %2290 = vadd.xlane.f32.xlu0 %v2264_v15  ;;  %v8728_v60 = vpop.f32.mrb[20].mxu1 }
 0x388   : > { %v2267_v14 = vmul.f32 %v8728_v60, %v11454_v28  ;;  %v2235_v3 = vpop.f32.mrb[21].mxu1 }
 0x389   : > { %v2266_v4 = vmul.f32 %v2235_v3, %v11456_v42 }
 0x38b   : > { %2296 = vadd.xlane.f32.xlu1 %v2267_v14  ;;  %2294 = vadd.xlane.f32.xlu0 %v2266_v4  ;;  %v8731_v39 = vpop.f32.mrb[22].mxu1 }
 0x38c   : > { %v2269_v43 = vmul.f32 %v8731_v39, %v11458_v0  ;;  %v2245_v48 = vpop.f32.mrb[23].mxu1 }
 0x38d   : > { %v2268_v32 = vmul.f32 %v2245_v48, %v11460_v36  ;;  %v569_v36 = vld [vmem:[%s11607_s24 + $0x8] sm:$0xff] }
 0x38f   : > { %2300 = vadd.xlane.f32.xlu1 %v2269_v43  ;;  %2298 = vadd.xlane.f32.xlu0 %v2268_v32  ;;  %v11588_v32 = vld [vmem:[%s11482_s29 + $0x70] sm:$0xff] }
 0x3a0   : > { %2488 = vperm.xlu1 %9036, %v11485_v30  }
 0x3a4   : > { %2494 = vperm.xlu1 %9036, %v11489_v5  }
 0x3a8   : > { %2497 = vperm.xlu1 %9036, %v11493_v31  }
 0x3ac   : > { %2500 = vperm.xlu1 %9036, %v11497_v47  }
 0x3b0   : > { %2503 = vperm.xlu1 %9036, %v11501_v12  }
 0x3b4   : > { %2506 = vperm.xlu1 %9036, %v11505_v26  }
 0x3b8   : > { %2509 = vperm.xlu1 %9036, %v11509_v50  }
 0x3bc   : > { %2512 = vperm.xlu1 %9036, %v11513_v54  }
 0x3c0   : > { %2515 = vperm.xlu1 %9036, %v11517_v61  }
 0x3c4   : > { %2521 = vperm.xlu1 %9036, %v11521_v20  }
 0x3c8   : > { %2527 = vperm.xlu1 %9036, %v11525_v56  }
 0x3cc   : > { %2533 = vperm.xlu1 %9036, %v11529_v23  }
 0x3d0   : > { %2558 = vperm.xlu1 %9036, %v11539_v33  }
 0x3d4   : > { %2568 = vperm.xlu1 %9036, %v11543_v11  }
 0x3d8   : > { %2578 = vperm.xlu1 %9036, %v11547_v45  }
 0x3dc   : > { %2588 = vperm.xlu1 %9036, %v11551_v9  }
 0x3e0   : > { %2598 = vperm.xlu1 %9036, %v11555_v10  }
 0x3e4   : > { %2608 = vperm.xlu1 %9036, %v11559_v27  }
 0x3e8   : > { %2618 = vperm.xlu1 %9036, %v11563_v46  }
 0x3ec   : > { %2628 = vperm.xlu1 %9036, %v11567_v19  }
 0x3f0   : > { %9038 = vset.pattern.permute.xlu1 %v15771_v55 }
 0x3f1   : > { %2651 = vperm.xlu1 %9038, %v11571_v25  }
 0x3f5   : > { %2654 = vperm.xlu1 %9038, %v11489_v5  }
 0x3f9   : > { %2660 = vperm.xlu1 %9038, %v11497_v47  }
 0x3fd   : > { %2666 = vperm.xlu1 %9038, %v11505_v26  }
 0x3ff   : > { %v2273_v62 = vpop.xlane.xlu0 %2272 }
 0x400   : > { %v8352_v49 = vclamps-f32 %v2273_v62, 10.0  ;;  %v2271_v34 = vpop.xlane.xlu1 %2270 }
 0x401   : > { %v8351_v1 = vclamps-f32 %v2271_v34, 10.0  ;;  %2672 = vperm.xlu1 %9038, %v11513_v54  }
 0x402   : > { %v2335_v21 = vsub.f32 0.0, %v8352_v49 }
 0x403   : > { %v2334_v2 = vsub.f32 0.0, %v8351_v1 }
 0x404   : > { %v2352_v6 = vmul.f32 1.442695, %v2335_v21  ;;  %v2277_v63 = vpop.xlane.xlu1 %2276  ;;  %v2275_v57 = vpop.xlane.xlu0 %2274 }
 0x405   : > { %v2350_v29 = vmul.f32 1.442695, %v2334_v2  ;;  %v8354_v37 = vclamps-f32 %v2277_v63, 10.0  ;;  %v8353_v58 = vclamps-f32 %v2275_v57, 10.0  ;;  %2678 = vperm.xlu1 %9038, %v11580_v16   ;;  %v11592_v57 = vld [vmem:[%s11535_s17] sm:$0xff] }
 0x406   : > { %9133 = vpow2.f32 %v2352_v6 }
 0x407   : > { %9135 = vpow2.f32 %v2350_v29  ;;  %v2337_v15 = vsub.f32 0.0, %v8354_v37  ;;  %v2336_v60 = vsub.f32 0.0, %v8353_v58 }
 0x408   : > { %v2281_v14 = vpop.xlane.xlu1 %2280  ;;  %v2279_v3 = vpop.xlane.xlu0 %2278 }
 0x409   : > { %v2356_v4 = vmul.f32 1.442695, %v2337_v15  ;;  %v2354_v39 = vmul.f32 1.442695, %v2336_v60  ;;  %v8356_v43 = vclamps-f32 %v2281_v14, 10.0  ;;  %v8355_v48 = vclamps-f32 %v2279_v3, 10.0  ;;  %2684 = vperm.xlu1 %9038, %v11584_v22  }
 0x40b   : > { %9137 = vpow2.f32 %v2356_v4  ;;  %v2339_v62 = vsub.f32 0.0, %v8356_v43  ;;  %v2338_v49 = vsub.f32 0.0, %v8355_v48 }
 0x40c   : > { %9139 = vpow2.f32 %v2354_v39  ;;  %v2285_v34 = vpop.xlane.xlu1 %2284  ;;  %v2283_v1 = vpop.xlane.xlu0 %2282 }
 0x40d   : > { %v2360_v21 = vmul.f32 1.442695, %v2339_v62  ;;  %v2358_v2 = vmul.f32 1.442695, %v2338_v49  ;;  %v8358_v6 = vclamps-f32 %v2285_v34, 10.0  ;;  %v8357_v63 = vclamps-f32 %v2283_v1, 10.0  ;;  %2690 = vperm.xlu1 %9038, %v11588_v32  }
 0x40e   : > { %v11596_v49 = vld [vmem:[%s11535_s17 + $0x10] sm:$0xff] }
 0x40f   : > { %9141 = vpow2.f32 %v2360_v21  ;;  %v2341_v29 = vsub.f32 0.0, %v8358_v6  ;;  %v2340_v37 = vsub.f32 0.0, %v8357_v63 }
 0x410   : > { %v9134_v58 = vpop.eup %9133  ;;  %9143 = vpow2.f32 %v2358_v2  ;;  %v2289_v15 = vpop.xlane.xlu1 %2288 }
 0x411   : > { %v2287_v60 = vpop.xlane.xlu0 %2286  ;;  %v9136_v14 = vpop.eup %9135  ;;  %v2383_v3 = vadd.f32 1.0, %v9134_v58  ;;  %v2364_v4 = vmul.f32 1.442695, %v2341_v29  ;;  %v8360_v39 = vclamps-f32 %v2289_v15, 10.0  ;;  %2712 = vperm.xlu1 %9038, %v11592_v57   ;;  %v2362_v48 = vmul.f32 1.442695, %v2340_v37 }
 0x412   : > { %v2382_v43 = vadd.f32 1.0, %v9136_v14  ;;  %v8359_v62 = vclamps-f32 %v2287_v60, 10.0  ;;  %v11600_v60 = vld [vmem:[%s11535_s17 + $0x20] sm:$0xff] }
 0x413   : > { %9145 = vlog2.f32 %v2383_v3  ;;  %v2343_v34 = vsub.f32 0.0, %v8360_v39 }
 0x414   : > { %9147 = vlog2.f32 %v2382_v43  ;;  %v2342_v1 = vsub.f32 0.0, %v8359_v62  ;;  %v2293_v21 = vpop.xlane.xlu1 %2292 }
 0x415   : > { %v2291_v2 = vpop.xlane.xlu0 %2290  ;;  %v9138_v6 = vpop.eup %9137  ;;  %9149 = vpow2.f32 %v2364_v4  ;;  %v2368_v63 = vmul.f32 1.442695, %v2343_v34  ;;  %v8362_v58 = vclamps-f32 %v2293_v21, 10.0  ;;  %2720 = vperm.xlu1 %9038, %v11596_v49  }
 0x416   : > { %v8361_v29 = vclamps-f32 %v2291_v2, 10.0  ;;  %v9140_v15 = vpop.eup %9139  ;;  %v2385_v14 = vadd.f32 1.0, %v9138_v6  ;;  %9151 = vpow2.f32 %v2362_v48  ;;  %v2366_v37 = vmul.f32 1.442695, %v2342_v1 }
 0x417   : > { %v2384_v3 = vadd.f32 1.0, %v9140_v15  ;;  %9153 = vpow2.f32 %v2368_v63  ;;  %v2345_v39 = vsub.f32 0.0, %v8362_v58  ;;  %v11610_v58 = vld [vmem:[%s11535_s17 + $0x30] sm:$0xff] }
 0x418   : > { %v2344_v43 = vsub.f32 0.0, %v8361_v29  ;;  %9155 = vlog2.f32 %v2385_v14  ;;  %v2297_v62 = vpop.xlane.xlu1 %2296 }
 0x419   : > { %v2295_v4 = vpop.xlane.xlu0 %2294  ;;  %v9142_v34 = vpop.eup %9141  ;;  %9157 = vlog2.f32 %v2384_v3  ;;  %v2372_v21 = vmul.f32 1.442695, %v2345_v39  ;;  %v8364_v2 = vclamps-f32 %v2297_v62, 10.0  ;;  %2728 = vperm.xlu1 %9038, %v11600_v60  }
 0x41a   : > { %v9144_v6 = vpop.eup %9143  ;;  %v2387_v48 = vadd.f32 1.0, %v9142_v34  ;;  %9159 = vpow2.f32 %v2366_v37  ;;  %v2370_v1 = vmul.f32 1.442695, %v2344_v43  ;;  %v8363_v63 = vclamps-f32 %v2295_v4, 10.0  ;;  %v568_v4 = vld [vmem:[%s11607_s24] sm:$0xff] }
 0x41b   : > { %v2386_v29 = vadd.f32 1.0, %v9144_v6  ;;  %9161 = vpow2.f32 %v2372_v21  ;;  %v2347_v15 = vsub.f32 0.0, %v8364_v2  ;;  %v11616_v21 = vld [vmem:[%s11535_s17 + $0x40] sm:$0xff] }
 0x41c   : > { %9163 = vlog2.f32 %v2387_v48  ;;  %v2346_v14 = vsub.f32 0.0, %v8363_v63  ;;  %v2301_v3 = vpop.xlane.xlu1 %2300 }
 0x41d   : > { %v2299_v39 = vpop.xlane.xlu0 %2298  ;;  %v9146_v62 = vpop.eup %9145  ;;  %9165 = vlog2.f32 %v2386_v29  ;;  %v2376_v0 = vmul.f32 1.442695, %v2347_v15  ;;  %v8366_v42 = vclamps-f32 %v2301_v3, 10.0  ;;  %2736 = vperm.xlu1 %9038, %v11610_v58  }
 0x41e   : > { %v8365_v34 = vclamps-f32 %v2299_v39, 10.0  ;;  %v9148_v37 = vpop.eup %9147  ;;  %v2401_v43 = vmul.f32 0.6931472, %v9146_v62  ;;  %9167 = vpow2.f32 %v2370_v1  ;;  %v2374_v6 = vmul.f32 1.442695, %v2346_v14 }
 0x41f   : > { %v9150_v2 = vpop.eup %9149  ;;  %v2399_v48 = vmul.f32 0.6931472, %v9148_v37  ;;  %9169 = vpow2.f32 %v2376_v0  ;;  %v2349_v63 = vsub.f32 0.0, %v8366_v42 }
 0x420   : > { %v2348_v28 = vsub.f32 0.0, %v8365_v34  ;;  %v9152_v7 = vpop.eup %9151  ;;  %v2431_v29 = vmul.f32 %v2401_v43, %v569_v36  ;;  %v2389_v15 = vadd.f32 1.0, %v9150_v2  ;;  %9171 = vpow2.f32 %v2374_v6  ;;  %v11619_v42 = vpop.permute.xlu1 %2488  ;;  %v11622_v34 = vld [vmem:[%s11535_s17 + $0x50] sm:$0xff]  ;;  %v571_v43 = vld [vmem:[%s11607_s24 + $0x18] sm:$0xff] }
 0x421   : > { %v9154_v3 = vpop.eup %9153  ;;  %v2430_v39 = vmul.f32 %v2399_v48, %v568_v4  ;;  %v2388_v62 = vadd.f32 1.0, %v9152_v7  ;;  %v2380_v1 = vmul.f32 1.442695, %v2349_v63  ;;  %2744 = vperm.xlu1 %9038, %v11616_v21   ;;  %v570_v6 = vld [vmem:[%s11607_s24 + $0x10] sm:$0xff]  ;;  %vm2535_vm9 = vcmp.eq.s32.totalorder %v11619_v42, %v10812_v59 }
 0x422   : > { %v9156_v14 = vpop.eup %9155  ;;  %9173 = vlog2.f32 %v2389_v15  ;;  %v2391_v37 = vadd.f32 1.0, %v9154_v3  ;;  %v2378_v0 = vmul.f32 1.442695, %v2348_v28  ;;  %v2448_v7 = vsel %vm2446_vm6, %v2431_v29, 0.0 }
 0x423   : > { %v9158_v36 = vpop.eup %9157  ;;  %v2405_v2 = vmul.f32 0.6931472, %v9156_v14  ;;  %9175 = vlog2.f32 %v2388_v62  ;;  %v2447_v4 = vsel %vm2446_vm6, %v2430_v39, 0.0  ;;  %v11630_v62 = vld [vmem:[%s11535_s17 + $0x60] sm:$0xff] }
 0x424   : > { %v9160_v52 = vpop.eup %9159  ;;  %v2403_v48 = vmul.f32 0.6931472, %v9158_v36  ;;  %9177 = vlog2.f32 %v2391_v37  ;;  %v2449_v29 = vadd.f32 %v2448_v7, %v2447_v4  ;;  %v572_v39 = vld [vmem:[%s11607_s24 + $0x20] sm:$0xff]  ;;  %v11635_v36 = vpop.permute.xlu1 %2494 }
 0x425   : > { %v9162_v28 = vpop.eup %9161  ;;  %v2390_v63 = vadd.f32 1.0, %v9160_v52  ;;  %9179 = vpow2.f32 %v2380_v1  ;;  %2752 = vperm.xlu1 %9038, %v11622_v34   ;;  %v2433_v3 = vmul.f32 %v2405_v2, %v571_v43  ;;  %vm2537_vm0 = vcmp.eq.s32.totalorder %v11635_v36, %v10812_v59 }
 0x426   : > { %v9164_v15 = vpop.eup %9163  ;;  %v2432_v14 = vmul.f32 %v2403_v48, %v570_v6  ;;  %v2393_v53 = vadd.f32 1.0, %v9162_v28  ;;  %9181 = vpow2.f32 %v2378_v0 }
 0x427   : > { %v9166_v13 = vpop.eup %9165  ;;  %v2409_v41 = vmul.f32 0.6931472, %v9164_v15  ;;  %9183 = vlog2.f32 %v2390_v63  ;;  %v2452_v7 = vsel %vm2446_vm6, %v2433_v3, 0.0  ;;  %v11640_v63 = vld [vmem:[%s11535_s17 + $0x70] sm:$0xff] }
 0x428   : > { %v9168_v37 = vpop.eup %9167  ;;  %v2450_v52 = vsel %vm2446_vm6, %v2432_v14, 0.0  ;;  %v2407_v1 = vmul.f32 0.6931472, %v9166_v13  ;;  %9185 = vlog2.f32 %v2393_v53 }
 0x429   : > { %v9170_v43 = vpop.eup %9169  ;;  %v2451_v2 = vadd.f32 %v2450_v52, %v2449_v29  ;;  %v2392_v6 = vadd.f32 1.0, %v9168_v37  ;;  %2760 = vperm.xlu1 %9038, %v11630_v62   ;;  %v2435_v4 = vmul.f32 %v2409_v41, %v573_v40  ;;  %v575_v52 = vld [vmem:[%s11607_s24 + $0x38] sm:$0xff] }
 0x42a   : > { %v9172_v0 = vpop.eup %9171  ;;  %v2434_v48 = vmul.f32 %v2407_v1, %v572_v39  ;;  %v2395_v28 = vadd.f32 1.0, %v9170_v43  ;;  %v11647_v39 = vpop.permute.xlu1 %2497 }
 0x42b   : > { %v2453_v15 = vadd.f32 %v2452_v7, %v2451_v2  ;;  %9187 = vlog2.f32 %v2392_v6  ;;  %v2394_v13 = vadd.f32 1.0, %v9172_v0  ;;  %v2456_v40 = vsel %vm2446_vm6, %v2435_v4, 0.0 }
 0x42c   : > { %v9174_v53 = vpop.eup %9173  ;;  %v2454_v14 = vsel %vm2446_vm6, %v2434_v48, 0.0  ;;  %9189 = vlog2.f32 %v2395_v28  ;;  %v577_v48 = vld [vmem:[%s11607_s24 + $0x48] sm:$0xff]  ;;  %vm2538_vm8 = vcmp.eq.s32.totalorder %v11647_v39, %v10812_v59 }
 0x42d   : > { %v9176_v29 = vpop.eup %9175  ;;  %v2455_v37 = vadd.f32 %v2454_v14, %v2453_v15  ;;  %v2413_v17 = vmul.f32 0.6931472, %v9174_v53  ;;  %9191 = vlog2.f32 %v2394_v13  ;;  %2768 = vperm.xlu1 %9038, %v11640_v63   ;;  %v576_v53 = vld [vmem:[%s11607_s24 + $0x40] sm:$0xff]  ;;  %v15773_v13 = vmov 2  }
 0x42e   : > { %v9178_v41 = vpop.eup %9177  ;;  %v2411_v3 = vmul.f32 0.6931472, %v9176_v29 }
 0x42f   : > { %v9180_v1 = vpop.eup %9179  ;;  %v2457_v43 = vadd.f32 %v2456_v40, %v2455_v37  ;;  %v2417_v2 = vmul.f32 0.6931472, %v9178_v41  ;;  %v2437_v0 = vmul.f32 %v2413_v17, %v575_v52  ;;  %v11655_v40 = vpop.permute.xlu1 %2500 }
 0x430   : > { %v9182_v6 = vpop.eup %9181  ;;  %v2436_v7 = vmul.f32 %v2411_v3, %v574_v38  ;;  %v2397_v28 = vadd.f32 1.0, %v9180_v1  ;;  %vm2539_vm4 = vcmp.eq.s32.totalorder %v11655_v40, %v10812_v59 }
 0x431   : > { %v9184_v15 = vpop.eup %9183  ;;  %v2396_v14 = vadd.f32 1.0, %v9182_v6  ;;  %9039 = vset.pattern.permute.xlu1 %v15773_v13  ;;  %v2439_v41 = vmul.f32 %v2417_v2, %v577_v48  ;;  %v2460_v38 = vsel %vm2446_vm6, %v2437_v0, 0.0  ;;  %v579_v6 = vld [vmem:[%s11607_s24 + $0x58] sm:$0xff]  ;;  %v580_v0 = vld [vmem:[%s11607_s24 + $0x60] sm:$0xff] }
 0x432   : > { %v9186_v44 = vpop.eup %9185  ;;  %v2458_v4 = vsel %vm2446_vm6, %v2436_v7, 0.0  ;;  %v2415_v29 = vmul.f32 0.6931472, %v9184_v15  ;;  %9193 = vlog2.f32 %v2397_v28  ;;  %2808 = vperm.xlu1 %9039, %v11485_v30  }
 0x433   : > { %v2459_v37 = vadd.f32 %v2458_v4, %v2457_v43  ;;  %9195 = vlog2.f32 %v2396_v14  ;;  %v2421_v52 = vmul.f32 0.6931472, %v9186_v44  ;;  %v2464_v2 = vsel %vm2446_vm6, %v2439_v41, 0.0 }
 0x434   : > { %v2438_v17 = vmul.f32 %v2415_v29, %v576_v53  ;;  %v581_v29 = vld [vmem:[%s11607_s24 + $0x68] sm:$0xff] }
 0x435   : > { %v9188_v3 = vpop.eup %9187  ;;  %v2461_v1 = vadd.f32 %v2460_v38, %v2459_v37  ;;  %v2441_v53 = vmul.f32 %v2421_v52, %v579_v6  ;;  %v582_v6 = vld [vmem:[%s11607_s24 + $0x70] sm:$0xff] }
 0x436   : > { %v9190_v7 = vpop.eup %9189  ;;  %v2462_v28 = vsel %vm2446_vm6, %v2438_v17, 0.0  ;;  %v2419_v15 = vmul.f32 0.6931472, %v9188_v3  ;;  %2814 = vperm.xlu1 %9039, %v11489_v5   ;;  %v11665_v17 = vpop.permute.xlu1 %2503 }
 0x437   : > { %v9192_v43 = vpop.eup %9191  ;;  %v2463_v48 = vadd.f32 %v2462_v28, %v2461_v1  ;;  %v2425_v14 = vmul.f32 0.6931472, %v9190_v7  ;;  %v2468_v1 = vsel %vm2446_vm6, %v2441_v53, 0.0  ;;  %v583_v7 = vld [vmem:[%s11607_s24 + $0x78] sm:$0xff]  ;;  %vm2540_vm12 = vcmp.eq.s32.totalorder %v11665_v17, %v10812_v59 }
 0x438   : > { %v2440_v44 = vmul.f32 %v2419_v15, %v578_v35  ;;  %v2423_v4 = vmul.f32 0.6931472, %v9192_v43 }
 0x439   : > { %v2465_v37 = vadd.f32 %v2464_v2, %v2463_v48  ;;  %v2443_v41 = vmul.f32 %v2425_v14, %v581_v29 }
 0x43a   : > { %v2466_v38 = vsel %vm2446_vm6, %v2440_v44, 0.0  ;;  %v2442_v51 = vmul.f32 %v2423_v4, %v580_v0  ;;  %2817 = vperm.xlu1 %9039, %v11493_v31   ;;  %v11674_v4 = vpop.permute.xlu1 %2506 }
 0x43b   : > { %v2467_v3 = vadd.f32 %v2466_v38, %v2465_v37  ;;  %v2472_v44 = vsel %vm2446_vm6, %v2443_v41, 0.0  ;;  %15774 = vst [vmem:[#allocation42_spill] sm:$0xff] %v11674_v4 }
 0x43c   : > { %v9194_v8 = vpop.eup %9193  ;;  %v2470_v52 = vsel %vm2446_vm6, %v2442_v51, 0.0 }
 0x43d   : > { %v9196_v35 = vpop.eup %9195  ;;  %v2429_v28 = vmul.f32 0.6931472, %v9194_v8  ;;  %v2469_v15 = vadd.f32 %v2468_v1, %v2467_v3 }
 0x43e   : > { %v2427_v43 = vmul.f32 0.6931472, %v9196_v35  ;;  %2823 = vperm.xlu1 %9039, %v11501_v12   ;;  %v11679_v37 = vpop.permute.xlu1 %2509 }
 0x43f   : > { %v2471_v2 = vadd.f32 %v2470_v52, %v2469_v15  ;;  %v2445_v0 = vmul.f32 %v2429_v28, %v583_v7  ;;  %v15778_v28 = vmov 3   ;;  %vm2542_vm13 = vcmp.eq.s32.totalorder %v11679_v37, %v10812_v59 }
 0x440   : > { %v2444_v48 = vmul.f32 %v2427_v43, %v582_v6 }
 0x441   : > { %v2473_v14 = vadd.f32 %v2472_v44, %v2471_v2  ;;  %v2476_v29 = vsel %vm2446_vm6, %v2445_v0, 0.0 }
 0x442   : > { %v2474_v53 = vsel %vm2446_vm6, %v2444_v48, 0.0  ;;  %2829 = vperm.xlu1 %9039, %v11509_v50   ;;  %v11683_v38 = vpop.permute.xlu1 %2512 }
 0x443   : > { %v2475_v51 = vadd.f32 %v2474_v53, %v2473_v14  ;;  %15775 = vst [vmem:[#allocation36_spill] sm:$0xff] %v11683_v38 }
 0x445   : > { %v2477_v8 = vadd.f32 %v2476_v29, %v2475_v51 }
 0x446   : > { %2835 = vperm.xlu1 %9039, %v11517_v61   ;;  %v11686_v3 = vpop.permute.xlu1 %2515 }
 0x447   : > { %2478 = vadd.xlane.f32.xlu0 %v2477_v8  ;;  %vm2544_vm15 = vcmp.eq.s32.totalorder %v11686_v3, %v10812_v59 }
 0x44a   : > { %2841 = vperm.xlu1 %9039, %v11521_v20   ;;  %v11690_v41 = vpop.permute.xlu1 %2521 }
 0x44b   : > { %vm2546_vm1 = vcmp.eq.s32.totalorder %v11690_v41, %v10812_v59 }
 0x44e   : > { %2847 = vperm.xlu1 %9039, %v11525_v56   ;;  %v11694_v1 = vpop.permute.xlu1 %2527 }
 0x44f   : > { %vm2548_vm3 = vcmp.eq.s32.totalorder %v11694_v1, %v10812_v59 }
 0x452   : > { %2853 = vperm.xlu1 %9039, %v11529_v23   ;;  %v11699_v52 = vpop.permute.xlu1 %2533 }
 0x453   : > { %15776 = vst [vmem:[#allocation37_spill] sm:$0xff] %v11699_v52 }
 0x456   : > { %2876 = vperm.xlu1 %9039, %v11539_v33   ;;  %v11704_v35 = vpop.permute.xlu1 %2558 }
 0x457   : > { %15777 = vst [vmem:[#allocation38_spill] sm:$0xff] %v11704_v35 }
 0x45a   : > { %2884 = vperm.xlu1 %9039, %v11543_v11   ;;  %v11709_v6 = vpop.permute.xlu1 %2568 }
 0x45b   : > { %v2634_v39 = vsel %vm2538_vm8, %v11709_v6, 0.0 }
 0x45d   : > { %2491 = vperm.xlu0 %9035, %v11571_v25  }
 0x45e   : > { %2892 = vperm.xlu1 %9039, %v11547_v45   ;;  %v11714_v7 = vpop.permute.xlu1 %2578 }
 0x45f   : > { %v12004_v17 = vsel %vm2540_vm12, %v11714_v7, 0.0 }
 0x461   : > { %2518 = vperm.xlu0 %9035, %v11580_v16  }
 0x462   : > { %2900 = vperm.xlu1 %9039, %v11551_v9   ;;  %v11720_v15 = vpop.permute.xlu1 %2588 }
 0x463   : > { %v12013_v37 = vsel %vm2542_vm13, %v11720_v15, 0.0 }
 0x465   : > { %2524 = vperm.xlu0 %9035, %v11584_v22  }
 0x466   : > { %2908 = vperm.xlu1 %9039, %v11555_v10   ;;  %v11725_v43 = vpop.permute.xlu1 %2598 }
 0x467   : > { %v12016_v3 = vsel %vm2544_vm15, %v11725_v43, 0.0 }
 0x469   : > { %2530 = vperm.xlu0 %9035, %v11588_v32  }
 0x46a   : > { %2916 = vperm.xlu1 %9039, %v11559_v27   ;;  %v11730_v2 = vpop.permute.xlu1 %2608 }
 0x46b   : > { %v12023_v41 = vsel %vm2546_vm1, %v11730_v2, 0.0 }
 0x46d   : > { %2553 = vperm.xlu0 %9035, %v11592_v57  }
 0x46e   : > { %2924 = vperm.xlu1 %9039, %v11563_v46  }
 0x471   : > { %2563 = vperm.xlu0 %9035, %v11596_v49  }
 0x472   : > { %2932 = vperm.xlu1 %9039, %v11567_v19  }
 0x475   : > { %2573 = vperm.xlu0 %9035, %v11600_v60  }
 0x476   : > { %9042 = vset.pattern.permute.xlu1 %v15778_v28 }
 0x477   : > { %2971 = vperm.xlu1 %9042, %v11571_v25  }
 0x479   : > { %2583 = vperm.xlu0 %9035, %v11610_v58  }
 0x47b   : > { %2974 = vperm.xlu1 %9042, %v11489_v5   ;;  %v11736_v5 = vpop.permute.xlu1 %2618 }
 0x47c   : > { %v12026_v1 = vsel %vm2548_vm3, %v11736_v5, 0.0  ;;  %v15829_v5 = vld [vmem:[#allocation42_spill] sm:$0xff] }
 0x47d   : > { %2593 = vperm.xlu0 %9035, %v11616_v21   ;;  %vm2541_vm13 = vcmp.eq.s32.totalorder %v15829_v5, %v10812_v59 }
 0x47f   : > { %2980 = vperm.xlu1 %9042, %v11497_v47   ;;  %v11741_v48 = vpop.permute.xlu1 %2628 }
 0x480   : > { %15779 = vst [vmem:[#allocation25_spill] sm:$0xff] %v11741_v48 }
 0x481   : > { %2603 = vperm.xlu0 %9035, %v11622_v34  }
 0x483   : > { %2986 = vperm.xlu1 %9042, %v11505_v26   ;;  %v11745_v0 = vpop.permute.xlu1 %2651 }
 0x484   : > { %15780 = vst [vmem:[#allocation9_spill] sm:$0xff] %v11745_v0 }
 0x485   : > { %2613 = vperm.xlu0 %9035, %v11630_v62  }
 0x487   : > { %2992 = vperm.xlu1 %9042, %v11513_v54  }
 0x489   : > { %2623 = vperm.xlu0 %9035, %v11640_v63  }
 0x48b   : > { %2998 = vperm.xlu1 %9042, %v11580_v16   ;;  %v15827_v43 = vld [vmem:[#allocation9_spill] sm:$0xff] }
 0x48c   : > { %vm2696_vm12 = vcmp.eq.s32.totalorder %v15827_v43, %v10812_v59 }
 0x48d   : > { %9037 = vset.pattern.permute.xlu0 %v15771_v55  ;;  %v11750_v55 = vpop.permute.xlu1 %2654 }
 0x48e   : > { %2648 = vperm.xlu0 %9037, %v11485_v30   ;;  %vm2697_vm2 = vcmp.eq.s32.totalorder %v11750_v55, %v10812_v59 }
 0x48f   : > { %3004 = vperm.xlu1 %9042, %v11584_v22  }
 0x491   : > { %v11755_v44 = vpop.permute.xlu1 %2660 }
 0x492   : > { %2657 = vperm.xlu0 %9037, %v11493_v31   ;;  %vm2699_vm5 = vcmp.eq.s32.totalorder %v11755_v44, %v10812_v59 }
 0x493   : > { %3010 = vperm.xlu1 %9042, %v11588_v32  }
 0x495   : > { %v11760_v14 = vpop.permute.xlu1 %2666 }
 0x496   : > { %2663 = vperm.xlu0 %9037, %v11501_v12  }
 0x497   : > { %3032 = vperm.xlu1 %9042, %v11592_v57  }
 0x499   : > { %v11765_v53 = vpop.permute.xlu1 %2672 }
 0x49a   : > { %2669 = vperm.xlu0 %9037, %v11509_v50  }
 0x49b   : > { %3040 = vperm.xlu1 %9042, %v11596_v49  }
 0x49d   : > { %v11770_v51 = vpop.permute.xlu1 %2678 }
 0x49e   : > { %2675 = vperm.xlu0 %9037, %v11517_v61  }
 0x49f   : > { %3048 = vperm.xlu1 %9042, %v11600_v60  }
 0x4a1   : > { %v11773_v29 = vpop.permute.xlu1 %2684 }
 0x4a2   : > { %2681 = vperm.xlu0 %9037, %v11521_v20   ;;  %15781 = vst [vmem:[#allocation10_spill] sm:$0xff] %v11773_v29 }
 0x4a3   : > { %3056 = vperm.xlu1 %9042, %v11610_v58  }
 0x4a5   : > { %v11777_v8 = vpop.permute.xlu1 %2690 }
 0x4a6   : > { %2687 = vperm.xlu0 %9037, %v11525_v56   ;;  %15782 = vst [vmem:[#allocation23_spill] sm:$0xff] %v11777_v8 }
 0x4a7   : > { %3064 = vperm.xlu1 %9042, %v11616_v21  }
 0x4a9   : > { %v11780_v48 = vpop.permute.xlu1 %2712  ;;  %v15825_v6 = vld [vmem:[#allocation10_spill] sm:$0xff] }
 0x4aa   : > { %2693 = vperm.xlu0 %9037, %v11529_v23  }
 0x4ab   : > { %3072 = vperm.xlu1 %9042, %v11622_v34  }
 0x4ad   : > { %v11784_v52 = vpop.permute.xlu1 %2720  ;;  %v15826_v7 = vld [vmem:[#allocation23_spill] sm:$0xff] }
 0x4ae   : > { %2716 = vperm.xlu0 %9037, %v11539_v33   ;;  %15783 = vst [vmem:[#allocation24_spill] sm:$0xff] %v11784_v52  ;;  %vm2709_vm8 = vcmp.eq.s32.totalorder %v15826_v7, %v10812_v59 }
 0x4af   : > { %3080 = vperm.xlu1 %9042, %v11630_v62  }
 0x4b1   : > { %v11788_v24 = vpop.permute.xlu1 %2728 }
 0x4b2   : > { %2724 = vperm.xlu0 %9037, %v11543_v11  }
 0x4b3   : > { %3088 = vperm.xlu1 %9042, %v11640_v63  }
 0x4b5   : > { %v11791_v0 = vpop.permute.xlu1 %2736  ;;  %v15828_v55 = vld [vmem:[#allocation24_spill] sm:$0xff] }
 0x4b6   : > { %2732 = vperm.xlu0 %9037, %v11547_v45   ;;  %v2777_v44 = vsel %vm2697_vm2, %v15828_v55, 0.0 }
 0x4b9   : > { %v11799_v29 = vpop.permute.xlu1 %2744 }
 0x4ba   : > { %2740 = vperm.xlu0 %9037, %v11551_v9  }
 0x4be   : > { %2748 = vperm.xlu0 %9037, %v11555_v10  }
 0x4c2   : > { %2756 = vperm.xlu0 %9037, %v11559_v27  }
 0x4c6   : > { %2764 = vperm.xlu0 %9037, %v11563_v46  }
 0x4ca   : > { %2772 = vperm.xlu0 %9037, %v11567_v19  }
 0x4ce   : > { %9040 = vset.pattern.permute.xlu0 %v15773_v13 }
 0x4cf   : > { %2811 = vperm.xlu0 %9040, %v11571_v25  }
 0x4d3   : > { %2820 = vperm.xlu0 %9040, %v11497_v47  }
 0x4d4   : > { %v2479_v18 = vpop.xlane.xlu0 %2478 }
 0x4d5   : > { %v2480_v38 = vrot.slane %v2479_v18, 4 }
 0x4d7   : > { %v2481_v35 = vadd.f32 %v2480_v38, %v2479_v18  ;;  %2826 = vperm.xlu0 %9040, %v11505_v26   ;;  %v11804_v26 = vpop.permute.xlu1 %2752 }
 0x4d9   : > { %v2482_v4 = vrot.slane %v2481_v35, 2 }
 0x4db   : > { %2832 = vperm.xlu0 %9040, %v11513_v54   ;;  %v2483_v8 = vadd.f32 %v2482_v4, %v2481_v35 }
 0x4dc   : > { %v11794_v13 = vpop.permute.xlu0 %2491 }
 0x4dd   : > { %v2484_v52 = vrot.slane %v2483_v8, 1  ;;  %vm2536_vm15 = vcmp.eq.s32.totalorder %v11794_v13, %v10812_v59 }
 0x4df   : > { %2838 = vperm.xlu0 %9040, %v11580_v16   ;;  %v2485_v25 = vadd.f32 %v2484_v52, %v2483_v8  ;;  %v11812_v16 = vpop.permute.xlu1 %2760 }
 0x4e0   : > { %v11797_v47 = vpop.permute.xlu0 %2518 }
 0x4e1   : > { %8948 = vpush %v2485_v25 }
 0x4e3   : > { %2844 = vperm.xlu0 %9040, %v11584_v22   ;;  %v11817_v52 = vpop.permute.xlu1 %2768 }
 0x4e4   : > { %v11802_v18 = vpop.permute.xlu0 %2524 }
 0x4e5   : > { %15784 = vst [vmem:[#allocation26_spill] sm:$0xff] %v11802_v18 }
 0x4e7   : > { %2850 = vperm.xlu0 %9040, %v11588_v32   ;;  %v11825_v35 = vpop.permute.xlu1 %2808 }
 0x4e8   : > { %v11807_v54 = vpop.permute.xlu0 %2530  ;;  %vm2855_vm10 = vcmp.eq.s32.totalorder %v11825_v35, %v10812_v59 }
 0x4e9   : > { %15785 = vst [vmem:[#allocation39_spill] sm:$0xff] %v11807_v54 }
 0x4eb   : > { %2872 = vperm.xlu0 %9040, %v11592_v57   ;;  %v11830_v8 = vpop.permute.xlu1 %2814 }
 0x4ec   : > { %v11810_v4 = vpop.permute.xlu0 %2553  ;;  %vm2857_vm2 = vcmp.eq.s32.totalorder %v11830_v8, %v10812_v59  ;;  %v15839_v5 = vld [vmem:[#allocation26_spill] sm:$0xff] }
 0x4ef   : > { %2880 = vperm.xlu0 %9040, %v11596_v49   ;;  %v11838_v25 = vpop.permute.xlu1 %2817 }
 0x4f0   : > { %v11815_v38 = vpop.permute.xlu0 %2563  ;;  %vm2858_vm1 = vcmp.eq.s32.totalorder %v11838_v25, %v10812_v59 }
 0x4f3   : > { %2888 = vperm.xlu0 %9040, %v11600_v60   ;;  %v11843_v54 = vpop.permute.xlu1 %2823 }
 0x4f4   : > { %v11820_v22 = vpop.permute.xlu0 %2573 }
 0x4f7   : > { %2896 = vperm.xlu0 %9040, %v11610_v58  }
 0x4f8   : > { %v11823_v32 = vpop.permute.xlu0 %2583 }
 0x4f9   : > { %15786 = vst [vmem:[#allocation40_spill] sm:$0xff] %v11823_v32 }
 0x4fb   : > { %2904 = vperm.xlu0 %9040, %v11616_v21  }
 0x4fc   : > { %v11828_v57 = vpop.permute.xlu0 %2593 }
 0x4fd   : > { %15787 = vst [vmem:[#allocation44_spill] sm:$0xff] %v11828_v57 }
 0x4ff   : > { %2912 = vperm.xlu0 %9040, %v11622_v34   ;;  %v11850_v34 = vpop.permute.xlu1 %2829 }
 0x500   : > { %v11833_v49 = vpop.permute.xlu0 %2603 }
 0x501   : > { %15788 = vst [vmem:[#allocation46_spill] sm:$0xff] %v11833_v49 }
 0x503   : > { %2920 = vperm.xlu0 %9040, %v11630_v62  }
 0x504   : > { %v11836_v60 = vpop.permute.xlu0 %2613 }
 0x505   : > { %15789 = vst [vmem:[#allocation58_spill] sm:$0xff] %v11836_v60 }
 0x507   : > { %2928 = vperm.xlu0 %9040, %v11640_v63   ;;  %v11857_v63 = vpop.permute.xlu1 %2835 }
 0x508   : > { %v11841_v58 = vpop.permute.xlu0 %2623 }
 0x509   : > { %15790 = vst [vmem:[#allocation73_spill] sm:$0xff] %v11841_v58 }
 0x50b   : > { %9041 = vset.pattern.permute.xlu0 %v15778_v28 }
 0x50c   : > { %2968 = vperm.xlu0 %9041, %v11485_v30   ;;  %v11863_v30 = vpop.permute.xlu1 %2841 }
 0x50d   : > { %v11847_v21 = vpop.permute.xlu0 %2648  ;;  %15792 = vst [vmem:[#allocation60_spill] sm:$0xff] %v11863_v30 }
 0x50e   : > { %vm2695_vm7 = vcmp.eq.s32.totalorder %v11847_v21, %v10812_v59 }
 0x510   : > { %2977 = vperm.xlu0 %9041, %v11493_v31   ;;  %v11870_v49 = vpop.permute.xlu1 %2847 }
 0x511   : > { %v11852_v62 = vpop.permute.xlu0 %2657  ;;  %15795 = vst [vmem:[#allocation50_spill] sm:$0xff] %v11870_v49 }
 0x514   : > { %2983 = vperm.xlu0 %9041, %v11501_v12   ;;  %v11875_v57 = vpop.permute.xlu1 %2853 }
 0x515   : > { %v11855_v60 = vpop.permute.xlu0 %2663  ;;  %15797 = vst [vmem:[#allocation74_spill] sm:$0xff] %v11875_v57 }
 0x518   : > { %2989 = vperm.xlu0 %9041, %v11509_v50  }
 0x519   : > { %v11860_v58 = vpop.permute.xlu0 %2669 }
 0x51a   : > { %15791 = vst [vmem:[#allocation48_spill] sm:$0xff] %v11860_v58 }
 0x51c   : > { %2995 = vperm.xlu0 %9041, %v11517_v61  }
 0x51d   : > { %v11865_v28 = vpop.permute.xlu0 %2675 }
 0x51e   : > { %15793 = vst [vmem:[#allocation62_spill] sm:$0xff] %v11865_v28  ;;  %v11883_v28 = vpop.permute.xlu1 %2876 }
 0x520   : > { %3001 = vperm.xlu0 %9041, %v11521_v20  }
 0x521   : > { %v11868_v31 = vpop.permute.xlu0 %2681 }
 0x522   : > { %15794 = vst [vmem:[#allocation75_spill] sm:$0xff] %v11868_v31  ;;  %v11888_v49 = vpop.permute.xlu1 %2884 }
 0x524   : > { %3007 = vperm.xlu0 %9041, %v11525_v56  }
 0x525   : > { %v11873_v12 = vpop.permute.xlu0 %2687 }
 0x526   : > { %15796 = vst [vmem:[#allocation52_spill] sm:$0xff] %v11873_v12  ;;  %v11896_v57 = vpop.permute.xlu1 %2892 }
 0x528   : > { %3013 = vperm.xlu0 %9041, %v11529_v23  }
 0x529   : > { %v11878_v50 = vpop.permute.xlu0 %2693 }
 0x52a   : > { %15798 = vst [vmem:[#allocation64_spill] sm:$0xff] %v11878_v50  ;;  %v11901_v50 = vpop.permute.xlu1 %2900 }
 0x52b   : > { %15802 = vst [vmem:[#allocation115_spill] sm:$0xff] %v11901_v50 }
 0x52c   : > { %3036 = vperm.xlu0 %9041, %v11539_v33  }
 0x52d   : > { %v11881_v61 = vpop.permute.xlu0 %2716 }
 0x52e   : > { %v11909_v12 = vpop.permute.xlu1 %2908  ;;  %v2776_v36 = vsel %vm2696_vm12, %v11881_v61, 0.0  ;;  %vm2700_vm12 = vcmp.eq.s32.totalorder %v11855_v60, %v10812_v59 }
 0x52f   : > { %15805 = vst [vmem:[#allocation89_spill] sm:$0xff] %v11909_v12 }
 0x530   : > { %3044 = vperm.xlu0 %9041, %v11543_v11  }
 0x531   : > { %v11886_v20 = vpop.permute.xlu0 %2724 }
 0x532   : > { %v11914_v31 = vpop.permute.xlu1 %2916 }
 0x533   : > { %15807 = vst [vmem:[#allocation86_spill] sm:$0xff] %v11914_v31 }
 0x534   : > { %3052 = vperm.xlu0 %9041, %v11547_v45  }
 0x535   : > { %v11891_v56 = vpop.permute.xlu0 %2732 }
 0x536   : > { %15799 = vst [vmem:[#allocation122_spill] sm:$0xff] %v11891_v56 }
 0x538   : > { %3060 = vperm.xlu0 %9041, %v11551_v9  }
 0x539   : > { %v11894_v23 = vpop.permute.xlu0 %2740 }
 0x53a   : > { %15800 = vst [vmem:[#allocation101_spill] sm:$0xff] %v11894_v23 }
 0x53c   : > { %3068 = vperm.xlu0 %9041, %v11555_v10  }
 0x53d   : > { %v11899_v33 = vpop.permute.xlu0 %2748 }
 0x53e   : > { %15801 = vst [vmem:[#allocation79_spill] sm:$0xff] %v11899_v33  ;;  %v11918_v33 = vpop.permute.xlu1 %2924 }
 0x53f   : > { %15808 = vst [vmem:[#allocation103_spill] sm:$0xff] %v11918_v33 }
 0x540   : > { %3076 = vperm.xlu0 %9041, %v11559_v27  }
 0x541   : > { %v11904_v11 = vpop.permute.xlu0 %2756 }
 0x542   : > { %15803 = vst [vmem:[#allocation54_spill] sm:$0xff] %v11904_v11  ;;  %v11924_v11 = vpop.permute.xlu1 %2932 }
 0x543   : > { %15810 = vst [vmem:[#allocation117_spill] sm:$0xff] %v11924_v11 }
 0x544   : > { %3084 = vperm.xlu0 %9041, %v11563_v46  }
 0x545   : > { %v11907_v45 = vpop.permute.xlu0 %2764 }
 0x546   : > { %15804 = vst [vmem:[#allocation76_spill] sm:$0xff] %v11907_v45  ;;  %v11928_v45 = vpop.permute.xlu1 %2971 }
 0x548   : > { %3092 = vperm.xlu0 %9041, %v11567_v19  }
 0x549   : > { %v11912_v9 = vpop.permute.xlu0 %2772 }
 0x54a   : > { %15806 = vst [vmem:[#allocation66_spill] sm:$0xff] %v11912_v9  ;;  %v11932_v19 = vpop.permute.xlu1 %2974 }
 0x54e   : > { %v11916_v10 = vpop.permute.xlu0 %2811  ;;  %v11938_v23 = vpop.permute.xlu1 %2980 }
 0x54f   : > { %vm2856_vm3 = vcmp.eq.s32.totalorder %v11916_v10, %v10812_v59  ;;  %v15834_v10 = vld [vmem:[#allocation40_spill] sm:$0xff] }
 0x552   : > { %v11920_v30 = vpop.permute.xlu0 %2820  ;;  %v11940_v18 = vpop.permute.xlu1 %2986 }
 0x553   : > { %15815 = vst [vmem:[#allocation87_spill] sm:$0xff] %v11940_v18 }
 0x556   : > { %v11922_v27 = vpop.permute.xlu0 %2826 }
 0x557   : > { %15809 = vst [vmem:[#allocation81_spill] sm:$0xff] %v11922_v27 }
 0x55a   : > { %v11926_v46 = vpop.permute.xlu0 %2832 }
 0x55b   : > { %15811 = vst [vmem:[#allocation56_spill] sm:$0xff] %v11926_v46  ;;  %v11946_v46 = vpop.permute.xlu1 %2992 }
 0x55c   : > { %15816 = vst [vmem:[#allocation105_spill] sm:$0xff] %v11946_v46  ;;  %v2775_v46 = vsel %vm2695_vm7, %v11780_v48, 0.0  ;;  %vm2701_vm7 = vcmp.eq.s32.totalorder %v11760_v14, %v10812_v59  ;;  %v2779_v14 = vsel %vm2699_vm5, %v11788_v24, 0.0  ;;  %v2633_v24 = vsel %vm2537_vm0, %v11815_v38, 0.0 }
 0x55d   : > { %v2781_v2 = vsel %vm2701_vm7, %v11791_v0, 0.0  ;;  %vm2860_vm5 = vcmp.eq.s32.totalorder %v11843_v54, %v10812_v59  ;;  %vm2862_vm7 = vcmp.eq.s32.totalorder %v11850_v34, %v10812_v59  ;;  %vm2698_vm0 = vcmp.eq.s32.totalorder %v11852_v62, %v10812_v59 }
 0x55e   : > { %v11930_v12 = vpop.permute.xlu0 %2838  ;;  %v2793_v8 = vadd.f32 %v2777_v44, %v2633_v24  ;;  %v2778_v25 = vsel %vm2698_vm0, %v11886_v20, 0.0  ;;  %v2940_v61 = vsel %vm2860_vm5, %v11896_v57, 0.0 }
 0x55f   : > { %15812 = vst [vmem:[#allocation77_spill] sm:$0xff] %v11930_v12  ;;  %v11950_v12 = vpop.permute.xlu1 %2998 }
 0x560   : > { %15818 = vst [vmem:[#allocation119_spill] sm:$0xff] %v11950_v12 }
 0x562   : > { %v11934_v9 = vpop.permute.xlu0 %2844 }
 0x563   : > { %15813 = vst [vmem:[#allocation91_spill] sm:$0xff] %v11934_v9 }
 0x566   : > { %v11936_v31 = vpop.permute.xlu0 %2850 }
 0x567   : > { %15814 = vst [vmem:[#allocation68_spill] sm:$0xff] %v11936_v31  ;;  %v11956_v31 = vpop.permute.xlu1 %3004 }
 0x568   : > { %15821 = vst [vmem:[#allocation70_spill] sm:$0xff] %v11956_v31 }
 0x56a   : > { %v2873_v33 = vpop.permute.xlu0 %2872 }
 0x56b   : > { %v11962_v18 = vpop.permute.xlu1 %3010  ;;  %v2935_v31 = vsel %vm2855_vm10, %v2873_v33, 0.0  ;;  %vm2705_vm10 = vcmp.eq.s32.totalorder %v11770_v51, %v10812_v59  ;;  %v15832_v33 = vld [vmem:[#allocation115_spill] sm:$0xff] }
 0x56c   : > { %15823 = vst [vmem:[#allocation107_spill] sm:$0xff] %v11962_v18  ;;  %v2942_v60 = vsel %vm2862_vm7, %v15832_v33, 0.0  ;;  %vm2547_vm7 = vcmp.eq.s32.totalorder %v15839_v5, %v10812_v59  ;;  %v15850_v33 = vld [vmem:[#allocation79_spill] sm:$0xff] }
 0x56e   : > { %v11942_v27 = vpop.permute.xlu0 %2880 }
 0x572   : > { %v11944_v11 = vpop.permute.xlu0 %2888 }
 0x576   : > { %v11948_v58 = vpop.permute.xlu0 %2896 }
 0x577   : > { %15817 = vst [vmem:[#allocation83_spill] sm:$0xff] %v11948_v58  ;;  %v3033_v58 = vpop.permute.xlu1 %3032 }
 0x57a   : > { %v11952_v32 = vpop.permute.xlu0 %2904 }
 0x57b   : > { %15819 = vst [vmem:[#allocation78_spill] sm:$0xff] %v11952_v32 }
 0x57e   : > { %v11954_v9 = vpop.permute.xlu0 %2912  ;;  %v15838_v43 = vld [vmem:[#allocation83_spill] sm:$0xff] }
 0x57f   : > { %15820 = vst [vmem:[#allocation93_spill] sm:$0xff] %v11954_v9  ;;  %v2631_v9 = vsel %vm2535_vm9, %v11810_v4, 0.0  ;;  %v11984_v4 = vpop.permute.xlu1 %3040  ;;  %vm2703_vm9 = vcmp.eq.s32.totalorder %v11765_v53, %v10812_v59 }
 0x580   : > { %v2791_v12 = vadd.f32 %v2775_v46, %v2631_v9  ;;  %v12044_v51 = vsel %vm2703_vm9, %v11799_v29, 0.0  ;;  %v15830_v29 = vld [vmem:[#allocation38_spill] sm:$0xff]  ;;  %v15836_v46 = vld [vmem:[#allocation87_spill] sm:$0xff] }
 0x581   : > { %v2632_v13 = vsel %vm2536_vm15, %v15830_v29, 0.0  ;;  %vm2859_vm15 = vcmp.eq.s32.totalorder %v11920_v30, %v10812_v59  ;;  %v15833_v30 = vld [vmem:[#allocation122_spill] sm:$0xff]  ;;  %v15842_v29 = vld [vmem:[#allocation44_spill] sm:$0xff] }
 0x582   : > { %v11958_v56 = vpop.permute.xlu0 %2920  ;;  %v2951_v32 = vadd.f32 %v2935_v31, %v2791_v12  ;;  %v2936_v31 = vsel %vm2856_vm3, %v11883_v28, 0.0  ;;  %v2792_v62 = vadd.f32 %v2776_v36, %v2632_v13  ;;  %v2939_v54 = vsel %vm2859_vm15, %v11944_v11, 0.0  ;;  %v15835_v11 = vld [vmem:[#allocation48_spill] sm:$0xff]  ;;  %v15840_v36 = vld [vmem:[#allocation101_spill] sm:$0xff] }
 0x583   : > { %15822 = vst [vmem:[#allocation88_spill] sm:$0xff] %v11958_v56  ;;  %v3049_v15 = vpop.permute.xlu1 %3048  ;;  %vm2702_vm3 = vcmp.eq.s32.totalorder %v15835_v11, %v10812_v59  ;;  %v15843_v13 = vld [vmem:[#allocation60_spill] sm:$0xff] }
 0x584   : > { %v2952_v28 = vadd.f32 %v2936_v31, %v2792_v62  ;;  %vm2866_vm0 = vcmp.eq.s32.totalorder %v15843_v13, %v10812_v59 }
 0x586   : > { %v11964_v50 = vpop.permute.xlu0 %2928 }
 0x587   : > { %15824 = vst [vmem:[#allocation84_spill] sm:$0xff] %v11964_v50  ;;  %v3057_v12 = vpop.permute.xlu1 %3056 }
 0x58b   : > { %v2969_v56 = vpop.permute.xlu0 %2968 }
 0x58c   : > { %vm3015_vm11 = vcmp.eq.s32.totalorder %v2969_v56, %v10812_v59 }
 0x58d   : > { %v3095_v21 = vsel %vm3015_vm11, %v3033_v58, 0.0  ;;  %vm2707_vm11 = vcmp.eq.s32.totalorder %v15825_v6, %v10812_v59  ;;  %v12059_v58 = vsel %vm2709_vm8, %v11817_v52, 0.0  ;;  %v15831_v52 = vld [vmem:[#allocation36_spill] sm:$0xff]  ;;  %vm3016_vm8 = vcmp.eq.s32.totalorder %v11928_v45, %v10812_v59  ;;  %v3065_v6 = vpop.permute.xlu1 %3064 }
 0x58e   : > { %v3111_v18 = vadd.f32 %v3095_v21, %v2951_v32  ;;  %v12047_v32 = vsel %vm2705_vm10, %v11804_v26, 0.0  ;;  %v12056_v0 = vsel %vm2707_vm11, %v11812_v16, 0.0  ;;  %v2938_v26 = vsel %vm2858_vm1, %v11888_v49, 0.0  ;;  %v15837_v21 = vld [vmem:[#allocation81_spill] sm:$0xff] }
 0x58f   : > { %v11973_v50 = vpop.permute.xlu0 %2977  ;;  %v2937_v16 = vsel %vm2857_vm2, %v11942_v27, 0.0  ;;  %vm2543_vm9 = vcmp.eq.s32.totalorder %v15831_v52, %v10812_v59  ;;  %vm3017_vm10 = vcmp.eq.s32.totalorder %v11932_v19, %v10812_v59  ;;  %v2635_v49 = vsel %vm2539_vm4, %v11820_v22, 0.0 }
 0x590   : > { %8740 = vmatprep.mubr.msk.f32.mxu0 %vm2060_vm14, %v3111_v18  ;;  %vm2864_vm11 = vcmp.eq.s32.totalorder %v11857_v63, %v10812_v59  ;;  %vm3019_vm4 = vcmp.eq.s32.totalorder %v11938_v23, %v10812_v59  ;;  %v2953_v40 = vadd.f32 %v2937_v16, %v2793_v8  ;;  %v2794_v22 = vadd.f32 %v2778_v25, %v2634_v39  ;;  %v15846_v8 = vld [vmem:[#allocation13_spill] sm:$0xff]  ;;  %v15847_v25 = vld [vmem:[#allocation56_spill] sm:$0xff]  ;;  %v15853_v63 = vld [vmem:[#allocation119_spill] sm:$0xff] }
 0x591   : > { %v3097_v20 = vsel %vm3017_vm10, %v11984_v4, 0.0  ;;  %vm2545_vm1 = vcmp.eq.s32.totalorder %v11797_v47, %v10812_v59  ;;  %v2795_v56 = vadd.f32 %v2779_v14, %v2635_v49  ;;  %v2780_v45 = vsel %vm2700_vm12, %v15833_v30, 0.0 }
 0x592   : > { %v2637_v27 = vsel %vm2541_vm13, %v15834_v10, 0.0  ;;  %vm3021_vm2 = vcmp.eq.s32.totalorder %v15836_v46, %v10812_v59  ;;  %vm2861_vm5 = vcmp.eq.s32.totalorder %v15837_v21, %v10812_v59  ;;  %v3113_v34 = vadd.f32 %v3097_v20, %v2953_v40  ;;  %v15848_v40 = vld [vmem:[#allocation78_spill] sm:$0xff]  ;;  %v15855_v10 = vld [vmem:[#allocation77_spill] sm:$0xff] }
 0x593   : > { %v11976_v48 = vpop.permute.xlu0 %2983  ;;  %v2955_v4 = vadd.f32 %v2939_v54, %v2795_v56  ;;  %v3099_v39 = vsel %vm3019_vm4, %v3049_v15, 0.0  ;;  %v2796_v7 = vadd.f32 %v2780_v45, %v12004_v17  ;;  %v2941_v55 = vsel %vm2861_vm5, %v15838_v43, 0.0  ;;  %v15841_v17 = vld [vmem:[#allocation157_spill] sm:$0xff]  ;;  %v15858_v43 = vld [vmem:[#allocation54_spill] sm:$0xff] }
 0x594   : > { %vm3018_vm13 = vcmp.eq.s32.totalorder %v11973_v50, %v10812_v59  ;;  %v2954_v44 = vadd.f32 %v2938_v26, %v2794_v22  ;;  %v2797_v24 = vadd.f32 %v2781_v2, %v2637_v27  ;;  %v2782_v23 = vsel %vm2702_vm3, %v15840_v36, 0.0  ;;  %v15844_v2 = vld [vmem:[#allocation62_spill] sm:$0xff]  ;;  %v15845_v26 = vld [vmem:[#allocation105_spill] sm:$0xff] }
 0x595   : > { %v2639_v50 = vsel %vm2543_vm9, %v15842_v29, 0.0  ;;  %vm2704_vm10 = vcmp.eq.s32.totalorder %v15844_v2, %v10812_v59  ;;  %vm2863_vm12 = vcmp.eq.s32.totalorder %v15847_v25, %v10812_v59  ;;  %v3115_v31 = vadd.f32 %v3099_v39, %v2955_v4  ;;  %v15857_v39 = vld [vmem:[#allocation39_spill] sm:$0xff]  ;;  %v15863_v29 = vld [vmem:[#allocation88_spill] sm:$0xff]  ;;  %v15864_v25 = vld [vmem:[#allocation86_spill] sm:$0xff] }
 0x596   : > { %v2957_v49 = vadd.f32 %v2941_v55, %v2797_v24  ;;  %v3101_v52 = vsel %vm3021_vm2, %v3057_v12, 0.0  ;;  %v2798_v62 = vadd.f32 %v2782_v23, %v12013_v37  ;;  %v2943_v22 = vsel %vm2863_vm12, %v15848_v40, 0.0  ;;  %v3073_v12 = vpop.permute.xlu1 %3072  ;;  %v15859_v55 = vld [vmem:[#allocation58_spill] sm:$0xff]  ;;  %v15868_v40 = vld [vmem:[#allocation64_spill] sm:$0xff] }
 0x597   : > { %v11978_v42 = vpop.permute.xlu0 %2989  ;;  %vm3020_vm9 = vcmp.eq.s32.totalorder %v11976_v48, %v10812_v59  ;;  %v2799_v54 = vadd.f32 %v12044_v51, %v2639_v50  ;;  %v2784_v37 = vsel %vm2704_vm10, %v15850_v33, 0.0  ;;  %v15851_v48 = vld [vmem:[#allocation46_spill] sm:$0xff]  ;;  %vm2865_vm3 = vcmp.eq.s32.totalorder %v15855_v10, %v10812_v59 }
 0x598   : > { %v2641_v51 = vsel %vm2545_vm1, %v15851_v48, 0.0  ;;  %v3117_v27 = vadd.f32 %v3101_v52, %v2957_v49  ;;  %v2800_v46 = vadd.f32 %v2784_v37, %v12016_v3  ;;  %vm3022_vm1 = vcmp.eq.s32.totalorder %v11978_v42, %v10812_v59  ;;  %v15865_v49 = vld [vmem:[#allocation76_spill] sm:$0xff]  ;;  %v15871_v48 = vld [vmem:[#allocation66_spill] sm:$0xff] }
 0x599   : > { %v2959_v11 = vadd.f32 %v2943_v22, %v2799_v54  ;;  %vm2549_vm2 = vcmp.eq.s32.totalorder %v15857_v39, %v10812_v59  ;;  %v2643_v42 = vsel %vm2547_vm7, %v15859_v55, 0.0  ;;  %vm2710_vm12 = vcmp.eq.s32.totalorder %v15868_v40, %v10812_v59  ;;  %v15869_v22 = vld [vmem:[#allocation68_spill] sm:$0xff] }
 0x59b   : > { %v11980_v35 = vpop.permute.xlu0 %2995 }
 0x59c   : > { %vm3024_vm7 = vcmp.eq.s32.totalorder %v11980_v35, %v10812_v59  ;;  %v15866_v35 = vld [vmem:[#allocation73_spill] sm:$0xff] }
 0x59f   : > { %v11999_v18 = vpop.permute.xlu0 %3001 }
 0x5a3   : > { %v12037_v53 = vpop.permute.xlu0 %3007 }
 0x5a7   : > { %v12078_v38 = vpop.permute.xlu0 %3013 }
 0x5ab   : > { %v3037_v57 = vpop.permute.xlu0 %3036 }
 0x5ac   : > { %v3096_v9 = vsel %vm3016_vm8, %v3037_v57, 0.0  ;;  %vm3023_vm8 = vcmp.eq.s32.totalorder %v15845_v26, %v10812_v59  ;;  %v15849_v57 = vld [vmem:[#allocation89_spill] sm:$0xff] }
 0x5ad   : > { %v3112_v19 = vadd.f32 %v3096_v9, %v2952_v28  ;;  %v2956_v28 = vadd.f32 %v2940_v61, %v2796_v7  ;;  %v2944_v56 = vsel %vm2864_vm11, %v15849_v57, 0.0  ;;  %v15852_v61 = vld [vmem:[#allocation75_spill] sm:$0xff]  ;;  %vm3025_vm11 = vcmp.eq.s32.totalorder %v15853_v63, %v10812_v59  ;;  %v15854_v9 = vld [vmem:[#allocation37_spill] sm:$0xff] }
 0x5ae   : > { %vm2706_vm15 = vcmp.eq.s32.totalorder %v15852_v61, %v10812_v59  ;;  %vm2550_vm4 = vcmp.eq.s32.totalorder %v15854_v9, %v10812_v59  ;;  %v3103_v47 = vsel %vm3023_vm8, %v3065_v6, 0.0  ;;  %v2801_v7 = vadd.f32 %v12047_v32, %v2641_v51  ;;  %v15872_v61 = vld [vmem:[#allocation107_spill] sm:$0xff] }
 0x5af   : > { %8741 = vmatmul.mubr.msk.f32.vlgmr.msra.gmra.mrb[8].mxu0 %vm2060_vm14, %v3112_v19  ;;  %v3045_v14 = vpop.permute.xlu0 %3044  ;;  %v15856_v19 = vld [vmem:[#allocation93_spill] sm:$0xff]  ;;  %v2786_v6 = vsel %vm2706_vm15, %v15858_v43, 0.0  ;;  %v3119_v24 = vadd.f32 %v3103_v47, %v2959_v11  ;;  %v3105_v23 = vsel %vm3025_vm11, %v3073_v12, 0.0  ;;  %v2960_v2 = vadd.f32 %v2944_v56, %v2800_v46  ;;  %v15870_v56 = vld [vmem:[#allocation84_spill] sm:$0xff]  ;;  %v15875_v11 = vld [vmem:[#allocation103_spill] sm:$0xff] }
 0x5b0   : > { %v3098_v15 = vsel %vm3018_vm13, %v3045_v14, 0.0  ;;  %8743 = vmatprep.mubr.msk.f32.mxu0 %vm2060_vm14, %v3113_v34  ;;  %8923 = vmatpush3.bf16.msra.mxu0 %v15841_v17  ;;  %v2945_v21 = vsel %vm2865_vm3, %v15856_v19, 0.0  ;;  %v2958_v34 = vadd.f32 %v2942_v60, %v2798_v62  ;;  %v15860_v60 = vld [vmem:[#allocation52_spill] sm:$0xff]  ;;  %v15862_v14 = vld [vmem:[#allocation91_spill] sm:$0xff]  ;;  %v2802_v5 = vadd.f32 %v2786_v6, %v12023_v41 }
 0x5b1   : > { %v3114_v16 = vadd.f32 %v3098_v15, %v2954_v44  ;;  %8925 = vmatprep.subr.bf16.mxu0 %v15846_v8  ;;  %vm2708_vm5 = vcmp.eq.s32.totalorder %v15860_v60, %v10812_v59  ;;  %v15861_v44 = vld [vmem:[#allocation70_spill] sm:$0xff]  ;;  %vm2867_vm10 = vcmp.eq.s32.totalorder %v15862_v14, %v10812_v59  ;;  %v2961_v36 = vadd.f32 %v2945_v21, %v2801_v7  ;;  %v3081_v15 = vpop.permute.xlu1 %3080  ;;  %v15876_v7 = vld [vmem:[#allocation117_spill] sm:$0xff] }
 0x5b2   : > { %vm3027_vm13 = vcmp.eq.s32.totalorder %v15861_v44, %v10812_v59  ;;  %v2947_v50 = vsel %vm2867_vm10, %v15863_v29, 0.0  ;;  %v2788_v41 = vsel %vm2708_vm5, %v15865_v49, 0.0  ;;  %v2645_v62 = vsel %vm2549_vm2, %v15866_v35, 0.0  ;;  %v15877_v44 = vld [vmem:[#allocation16_spill] sm:$0xff]  ;;  %v15880_v29 = vld [vmem:[#allocation19_spill] sm:$0xff] }
 0x5b3   : > { %8744 = vmatmul.mubr.msk.f32.gmra.mrb[10].mxu0 %vm2060_vm14, %v3114_v16  ;;  %v3053_v20 = vpop.permute.xlu0 %3052  ;;  %v2803_v16 = vadd.f32 %v12056_v0, %v2643_v42  ;;  %v15867_v0 = vld [vmem:[#allocation50_spill] sm:$0xff]  ;;  %v3107_v54 = vsel %vm3027_vm13, %v3081_v15, 0.0  ;;  %v2804_v57 = vadd.f32 %v2788_v41, %v12026_v1  ;;  %v2790_v51 = vsel %vm2710_vm12, %v15871_v48, 0.0  ;;  %v15873_v1 = vld [vmem:[#allocation25_spill] sm:$0xff] }
 0x5b4   : > { %v3100_v30 = vsel %vm3020_vm9, %v3053_v20, 0.0  ;;  %8746 = vmatprep.mubr.msk.f32.mxu0 %vm2060_vm14, %v3115_v31  ;;  %8927 = vmatpush3.bf16.msra.mxu0 %v15846_v8  ;;  %v2946_v31 = vsel %vm2866_vm0, %v15864_v25, 0.0  ;;  %vm2868_vm8 = vcmp.eq.s32.totalorder %v15867_v0, %v10812_v59  ;;  %vm2869_vm0 = vcmp.eq.s32.totalorder %v15869_v22, %v10812_v59  ;;  %v15884_v0 = vld [vmem:[#allocation27_spill] sm:$0xff]  ;;  %v15885_v22 = vld [vmem:[#allocation28_spill] sm:$0xff] }
 0x5b5   : > { %v3116_v45 = vadd.f32 %v3100_v30, %v2956_v28  ;;  %8937 = vmatprep.subr.bf16.mxu0 %v15841_v17  ;;  %v3121_v28 = vadd.f32 %v3105_v23, %v2961_v36  ;;  %v2963_v20 = vadd.f32 %v2947_v50, %v2803_v16  ;;  %v2949_v33 = vsel %vm2869_vm0, %v15870_v56, 0.0  ;;  %v3089_v63 = vpop.permute.xlu1 %3088 }
 0x5b6   : > { %vm3026_vm9 = vcmp.eq.s32.totalorder %v11999_v18, %v10812_v59  ;;  %v2962_v37 = vadd.f32 %v2946_v31, %v2802_v5  ;;  %v2805_v30 = vadd.f32 %v12059_v58, %v2645_v62  ;;  %vm3029_vm15 = vcmp.eq.s32.totalorder %v15872_v61, %v10812_v59  ;;  %v15882_v31 = vld [vmem:[#allocation21_spill] sm:$0xff]  ;;  %v15889_v61 = vld [vmem:[#allocation32_spill] sm:$0xff] }
 0x5b7   : > { %8747 = vmatmul.mubr.msk.f32.gmra.mrb[12].mxu0 %vm2060_vm14, %v3116_v45  ;;  %v3061_v4 = vpop.permute.xlu0 %3060  ;;  %v2646_v18 = vsel %vm2550_vm4, %v15873_v1, 0.0  ;;  %v2948_v58 = vsel %vm2868_vm8, %v15875_v11, 0.0  ;;  %v3123_v47 = vadd.f32 %v3107_v54, %v2963_v20  ;;  %v3109_v21 = vsel %vm3029_vm15, %v3089_v63, 0.0  ;;  %v15886_v54 = vld [vmem:[#allocation29_spill] sm:$0xff] }
 0x5b8   : > { %v3102_v3 = vsel %vm3022_vm1, %v3061_v4, 0.0  ;;  %8749 = vmatprep.mubr.msk.f32.mxu0 %vm2060_vm14, %v3117_v27  ;;  %v15874_v27 = vld [vmem:[#allocation74_spill] sm:$0xff]  ;;  %v2965_v46 = vadd.f32 %v2949_v33, %v2805_v30  ;;  %v2806_v19 = vadd.f32 %v2790_v51, %v2646_v18  ;;  %vm3028_vm3 = vcmp.eq.s32.totalorder %v12037_v53, %v10812_v59  ;;  %v15888_v30 = vld [vmem:[#allocation31_spill] sm:$0xff]  ;;  %v15890_v1 = vld [vmem:[#allocation33_spill] sm:$0xff] }
 0x5b9   : > { %v3118_v32 = vadd.f32 %v3102_v3, %v2958_v34  ;;  %vm2870_vm11 = vcmp.eq.s32.totalorder %v15874_v27, %v10812_v59  ;;  %v2964_v9 = vadd.f32 %v2948_v58, %v2804_v57  ;;  %vm3030_vm4 = vcmp.eq.s32.totalorder %v12078_v38, %v10812_v59  ;;  %v15879_v38 = vld [vmem:[#allocation18_spill] sm:$0xff] }
 0x5ba   : > { %v2950_v43 = vsel %vm2870_vm11, %v15876_v7, 0.0  ;;  %v3125_v6 = vadd.f32 %v3109_v21, %v2965_v46  ;;  %v15887_v33 = vld [vmem:[#allocation30_spill] sm:$0xff] }
 0x5bb   : > { %8750 = vmatmul.mubr.msk.f32.gmra.mrb[14].mxu0 %vm2060_vm14, %v3118_v32  ;;  %v3069_v26 = vpop.permute.xlu0 %3068  ;;  %v2966_v3 = vadd.f32 %v2950_v43, %v2806_v19  ;;  %v15891_v27 = vld [vmem:[#allocation34_spill] sm:$0xff]  ;;  %v9793_v19 = vmov 4  }
 0x5bc   : > { %v3104_v52 = vsel %vm3024_vm7, %v3069_v26, 0.0  ;;  %8752 = vmatprep.mubr.msk.f32.mxu0 %vm2060_vm14, %v3119_v24  ;;  %v15878_v24 = vld [vmem:[#allocation17_spill] sm:$0xff]  ;;  %v15881_v26 = vld [vmem:[#allocation20_spill] sm:$0xff]  ;;  %9043 = vset.pattern.permute.xlu0 %v9793_v19 }
 0x5bd   : > { %v3120_v13 = vadd.f32 %v3104_v52, %v2960_v2  ;;  %v15883_v52 = vld [vmem:[#allocation22_spill] sm:$0xff]  ;;  %9044 = vset.pattern.permute.xlu1 %v9793_v19 }
 0x5bf   : > { %8753 = vmatmul.mubr.msk.f32.gmra.mrb[16].mxu0 %vm2060_vm14, %v3120_v13  ;;  %v3077_v12 = vpop.permute.xlu0 %3076 }
 0x5c0   : > { %v3106_v45 = vsel %vm3026_vm9, %v3077_v12, 0.0  ;;  %8755 = vmatprep.mubr.msk.f32.mxu0 %vm2060_vm14, %v3121_v28 }
 0x5c1   : > { %v3122_v10 = vadd.f32 %v3106_v45, %v2962_v37 }
 0x5c3   : > { %8756 = vmatmul.mubr.msk.f32.gmra.mrb[18].mxu0 %vm2060_vm14, %v3122_v10  ;;  %v3085_v34 = vpop.permute.xlu0 %3084 }
 0x5c4   : > { %v3108_v4 = vsel %vm3028_vm3, %v3085_v34, 0.0  ;;  %8758 = vmatprep.mubr.msk.f32.mxu0 %vm2060_vm14, %v3123_v47  ;;  %v15892_v47 = vld [vmem:[#allocation35_spill] sm:$0xff] }
 0x5c5   : > { %v3124_v39 = vadd.f32 %v3108_v4, %v2964_v9 }
 0x5c7   : > { %8759 = vmatmul.mubr.msk.f32.gmra.mrb[20].mxu0 %vm2060_vm14, %v3124_v39  ;;  %v3093_v55 = vpop.permute.xlu0 %3092 }
 0x5c8   : > { %v3110_v42 = vsel %vm3030_vm4, %v3093_v55, 0.0  ;;  %8761 = vmatprep.mubr.msk.f32.mxu0 %vm2060_vm14, %v3125_v6 }
 0x5c9   : > { %v3126_v53 = vadd.f32 %v3110_v42, %v2966_v3 }
 0x5cb   : > { %8762 = vmatmul.mubr.msk.f32.gmra.mrb[22].mxu0 %vm2060_vm14, %v3126_v53 }
 0x682   : > { %v8742_v60 = vpop.f32.mrb[8].mxu0 }
 0x683   : > { %v3321_v32 = vmul.f32 %v8742_v60, %v15877_v44  ;;  %v3241_v14 = vpop.f32.mrb[9].mxu0 }
 0x684   : > { %v3320_v36 = vmul.f32 %v3241_v14, %v15878_v24 }
 0x685   : > { %3338 = vadd.xlane.f32.xlu0 %v3321_v32 }
 0x686   : > { %3336 = vadd.xlane.f32.xlu1 %v3320_v36  ;;  %v8745_v23 = vpop.f32.mrb[10].mxu0 }
 0x687   : > { %v3323_v15 = vmul.f32 %v8745_v23, %v15879_v38  ;;  %v3251_v5 = vpop.f32.mrb[11].mxu0 }
 0x688   : > { %v3322_v50 = vmul.f32 %v3251_v5, %v15880_v29 }
 0x68a   : > { %3342 = vadd.xlane.f32.xlu1 %v3323_v15  ;;  %3340 = vadd.xlane.f32.xlu0 %v3322_v50  ;;  %v8748_v2 = vpop.f32.mrb[12].mxu0 }
 0x68b   : > { %v3325_v16 = vmul.f32 %v8748_v2, %v15881_v26  ;;  %v3261_v25 = vpop.f32.mrb[13].mxu0  ;;  %v15897_v26 = vmov 6  }
 0x68c   : > { %v3324_v49 = vmul.f32 %v3261_v25, %v15882_v31 }
 0x68e   : > { %3346 = vadd.xlane.f32.xlu1 %v3325_v16  ;;  %3344 = vadd.xlane.f32.xlu0 %v3324_v49  ;;  %v8751_v41 = vpop.f32.mrb[14].mxu0 }
 0x68f   : > { %v3327_v35 = vmul.f32 %v8751_v41, %v15883_v52  ;;  %v3271_v62 = vpop.f32.mrb[15].mxu0 }
 0x690   : > { %v3326_v40 = vmul.f32 %v3271_v62, %v15884_v0 }
 0x692   : > { %3350 = vadd.xlane.f32.xlu1 %v3327_v35  ;;  %3348 = vadd.xlane.f32.xlu0 %v3326_v40  ;;  %v8754_v13 = vpop.f32.mrb[16].mxu0 }
 0x693   : > { %v3329_v28 = vmul.f32 %v8754_v13, %v15885_v22  ;;  %v3281_v20 = vpop.f32.mrb[17].mxu0 }
 0x694   : > { %v3328_v57 = vmul.f32 %v3281_v20, %v15886_v54  ;;  %v15346_v54 = vmov 7  }
 0x696   : > { %3354 = vadd.xlane.f32.xlu1 %v3329_v28  ;;  %3352 = vadd.xlane.f32.xlu0 %v3328_v57  ;;  %v8757_v56 = vpop.f32.mrb[18].mxu0 }
 0x697   : > { %v3331_v37 = vmul.f32 %v8757_v56, %v15887_v33  ;;  %v3291_v12 = vpop.f32.mrb[19].mxu0 }
 0x698   : > { %v3330_v48 = vmul.f32 %v3291_v12, %v15888_v30 }
 0x69a   : > { %3358 = vadd.xlane.f32.xlu1 %v3331_v37  ;;  %3356 = vadd.xlane.f32.xlu0 %v3330_v48  ;;  %v8760_v51 = vpop.f32.mrb[20].mxu0 }
 0x69b   : > { %v3333_v63 = vmul.f32 %v8760_v51, %v15889_v61  ;;  %v3301_v45 = vpop.f32.mrb[21].mxu0 }
 0x69c   : > { %v3332_v18 = vmul.f32 %v3301_v45, %v15890_v1 }
 0x69e   : > { %3362 = vadd.xlane.f32.xlu1 %v3333_v63  ;;  %3360 = vadd.xlane.f32.xlu0 %v3332_v18  ;;  %v8763_v10 = vpop.f32.mrb[22].mxu0 }
 0x69f   : > { %v3335_v11 = vmul.f32 %v8763_v10, %v15891_v27  ;;  %v3311_v58 = vpop.f32.mrb[23].mxu0 }
 0x6a0   : > { %v3334_v46 = vmul.f32 %v3311_v58, %v15892_v47  ;;  %v15895_v47 = vmov 5  }
 0x6a2   : > { %3366 = vadd.xlane.f32.xlu1 %v3335_v11  ;;  %3364 = vadd.xlane.f32.xlu0 %v3334_v46 }
 0x712   : > { %v3339_v21 = vpop.xlane.xlu0 %3338 }
 0x713   : > { %v3369_v9 = vsub.f32 0.0, %v3339_v21  ;;  %v3337_v34 = vpop.xlane.xlu1 %3336 }
 0x714   : > { %v3368_v4 = vsub.f32 0.0, %v3337_v34 }
 0x715   : > { %v8384_v39 = vclamps-f32 %v3369_v9, 10.0 }
 0x716   : > { %v8383_v7 = vclamps-f32 %v3368_v4, 10.0 }
 0x717   : > { %v3417_v43 = vsub.f32 0.0, %v8384_v39  ;;  %v3343_v6 = vpop.xlane.xlu1 %3342  ;;  %v3341_v3 = vpop.xlane.xlu0 %3340 }
 0x718   : > { %v3416_v55 = vsub.f32 0.0, %v8383_v7  ;;  %v3371_v42 = vsub.f32 0.0, %v3343_v6  ;;  %v3370_v53 = vsub.f32 0.0, %v3341_v3 }
 0x719   : > { %v3434_v60 = vmul.f32 1.442695, %v3417_v43 }
 0x71a   : > { %v3432_v32 = vmul.f32 1.442695, %v3416_v55  ;;  %v8386_v14 = vclamps-f32 %v3371_v42, 10.0  ;;  %v8385_v36 = vclamps-f32 %v3370_v53, 10.0 }
 0x71b   : > { %9197 = vpow2.f32 %v3434_v60  ;;  %v3347_v23 = vpop.xlane.xlu1 %3346  ;;  %v3345_v15 = vpop.xlane.xlu0 %3344 }
 0x71c   : > { %9199 = vpow2.f32 %v3432_v32  ;;  %v3419_v5 = vsub.f32 0.0, %v8386_v14  ;;  %v3418_v50 = vsub.f32 0.0, %v8385_v36  ;;  %v3373_v2 = vsub.f32 0.0, %v3347_v23 }
 0x71d   : > { %v3372_v16 = vsub.f32 0.0, %v3345_v15 }
 0x71e   : > { %v3438_v25 = vmul.f32 1.442695, %v3419_v5  ;;  %v3436_v49 = vmul.f32 1.442695, %v3418_v50  ;;  %v8388_v41 = vclamps-f32 %v3373_v2, 10.0 }
 0x71f   : > { %v8387_v35 = vclamps-f32 %v3372_v16, 10.0  ;;  %v3351_v62 = vpop.xlane.xlu1 %3350  ;;  %v3349_v40 = vpop.xlane.xlu0 %3348 }
 0x720   : > { %9201 = vpow2.f32 %v3438_v25  ;;  %v3421_v13 = vsub.f32 0.0, %v8388_v41  ;;  %v3375_v28 = vsub.f32 0.0, %v3351_v62  ;;  %v3374_v20 = vsub.f32 0.0, %v3349_v40 }
 0x721   : > { %9203 = vpow2.f32 %v3436_v49  ;;  %v3420_v57 = vsub.f32 0.0, %v8387_v35 }
 0x722   : > { %v3442_v56 = vmul.f32 1.442695, %v3421_v13  ;;  %v8390_v37 = vclamps-f32 %v3375_v28, 10.0  ;;  %v8389_v12 = vclamps-f32 %v3374_v20, 10.0 }
 0x723   : > { %v3440_v48 = vmul.f32 1.442695, %v3420_v57  ;;  %v3355_v51 = vpop.xlane.xlu1 %3354  ;;  %v3353_v63 = vpop.xlane.xlu0 %3352 }
 0x724   : > { %9205 = vpow2.f32 %v3442_v56  ;;  %v3423_v45 = vsub.f32 0.0, %v8390_v37  ;;  %v3422_v18 = vsub.f32 0.0, %v8389_v12  ;;  %v3377_v10 = vsub.f32 0.0, %v3355_v51 }
 0x725   : > { %v9198_v11 = vpop.eup %9197  ;;  %9207 = vpow2.f32 %v3440_v48  ;;  %v3376_v58 = vsub.f32 0.0, %v3353_v63 }
 0x726   : > { %v9200_v46 = vpop.eup %9199  ;;  %v3465_v19 = vadd.f32 1.0, %v9198_v11  ;;  %v3446_v21 = vmul.f32 1.442695, %v3423_v45  ;;  %v8392_v9 = vclamps-f32 %v3377_v10, 10.0  ;;  %v3444_v4 = vmul.f32 1.442695, %v3422_v18 }
 0x727   : > { %v3464_v34 = vadd.f32 1.0, %v9200_v46  ;;  %v8391_v39 = vclamps-f32 %v3376_v58, 10.0  ;;  %v3359_v7 = vpop.xlane.xlu1 %3358  ;;  %v3357_v43 = vpop.xlane.xlu0 %3356 }
 0x728   : > { %9209 = vlog2.f32 %v3465_v19  ;;  %v3425_v6 = vsub.f32 0.0, %v8392_v9  ;;  %v3379_v3 = vsub.f32 0.0, %v3359_v7  ;;  %v3378_v55 = vsub.f32 0.0, %v3357_v43 }
 0x729   : > { %9211 = vlog2.f32 %v3464_v34  ;;  %v3424_v42 = vsub.f32 0.0, %v8391_v39 }
 0x72a   : > { %v9202_v53 = vpop.eup %9201  ;;  %9213 = vpow2.f32 %v3446_v21  ;;  %v3450_v60 = vmul.f32 1.442695, %v3425_v6  ;;  %v8394_v32 = vclamps-f32 %v3379_v3, 10.0  ;;  %v8393_v14 = vclamps-f32 %v3378_v55, 10.0  ;;  %v9517_v6 = vld [vmem:[%s11607_s24 + $0x8] sm:$0xff] }
 0x72b   : > { %v9204_v36 = vpop.eup %9203  ;;  %v3467_v23 = vadd.f32 1.0, %v9202_v53  ;;  %9215 = vpow2.f32 %v3444_v4  ;;  %v3448_v15 = vmul.f32 1.442695, %v3424_v42  ;;  %v3363_v5 = vpop.xlane.xlu1 %3362 }
 0x72c   : > { %v3361_v50 = vpop.xlane.xlu0 %3360  ;;  %v3466_v2 = vadd.f32 1.0, %v9204_v36  ;;  %9217 = vpow2.f32 %v3450_v60  ;;  %v3427_v16 = vsub.f32 0.0, %v8394_v32  ;;  %v3426_v25 = vsub.f32 0.0, %v8393_v14  ;;  %v9518_v36 = vld [vmem:[%s11607_s24] sm:$0xff] }
 0x72d   : > { %9219 = vlog2.f32 %v3467_v23  ;;  %v3381_v49 = vsub.f32 0.0, %v3363_v5  ;;  %v3380_v41 = vsub.f32 0.0, %v3361_v50 }
 0x72e   : > { %v9206_v35 = vpop.eup %9205  ;;  %9221 = vlog2.f32 %v3466_v2  ;;  %v3454_v62 = vmul.f32 1.442695, %v3427_v16  ;;  %v3452_v40 = vmul.f32 1.442695, %v3426_v25 }
 0x72f   : > { %v9208_v13 = vpop.eup %9207  ;;  %v3469_v28 = vadd.f32 1.0, %v9206_v35  ;;  %9223 = vpow2.f32 %v3448_v15  ;;  %v8396_v20 = vclamps-f32 %v3381_v49, 10.0  ;;  %v8395_v57 = vclamps-f32 %v3380_v41, 10.0  ;;  %v3367_v56 = vpop.xlane.xlu1 %3366  ;;  %v9519_v49 = vld [vmem:[%s11607_s24 + $0x18] sm:$0xff] }
 0x730   : > { %v3365_v37 = vpop.xlane.xlu0 %3364  ;;  %v3468_v12 = vadd.f32 1.0, %v9208_v13  ;;  %9225 = vpow2.f32 %v3454_v62  ;;  %v3383_v48 = vsub.f32 0.0, %v3367_v56 }
 0x731   : > { %v3382_v51 = vsub.f32 0.0, %v3365_v37  ;;  %9227 = vlog2.f32 %v3469_v28  ;;  %v3429_v63 = vsub.f32 0.0, %v8396_v20  ;;  %v3428_v45 = vsub.f32 0.0, %v8395_v57 }
 0x732   : > { %v9210_v18 = vpop.eup %9209  ;;  %9229 = vlog2.f32 %v3468_v12  ;;  %v8398_v10 = vclamps-f32 %v3383_v48, 10.0  ;;  %v9521_v12 = vld [vmem:[%s11607_s24 + $0x28] sm:$0xff] }
 0x733   : > { %v8397_v11 = vclamps-f32 %v3382_v51, 10.0  ;;  %v9212_v58 = vpop.eup %9211  ;;  %9231 = vpow2.f32 %v3452_v40  ;;  %v3458_v46 = vmul.f32 1.442695, %v3429_v63  ;;  %v3456_v19 = vmul.f32 1.442695, %v3428_v45  ;;  %v9520_v40 = vld [vmem:[%s11607_s24 + $0x10] sm:$0xff] }
 0x734   : > { %v3483_v21 = vmul.f32 0.6931472, %v9210_v18  ;;  %v9214_v9 = vpop.eup %9213  ;;  %v3431_v34 = vsub.f32 0.0, %v8398_v10  ;;  %v3481_v39 = vmul.f32 0.6931472, %v9212_v58  ;;  %v9522_v63 = vld [vmem:[%s11607_s24 + $0x20] sm:$0xff] }
 0x735   : > { %v3430_v4 = vsub.f32 0.0, %v8397_v11  ;;  %v9216_v7 = vpop.eup %9215  ;;  %v3471_v43 = vadd.f32 1.0, %v9214_v9  ;;  %9233 = vpow2.f32 %v3458_v46 }
 0x736   : > { %v3513_v3 = vmul.f32 %v9517_v6, %v3483_v21  ;;  %v9218_v55 = vpop.eup %9217  ;;  %v3470_v42 = vadd.f32 1.0, %v9216_v7  ;;  %9235 = vpow2.f32 %v3456_v19  ;;  %v3462_v53 = vmul.f32 1.442695, %v3431_v34 }
 0x737   : > { %v9220_v60 = vpop.eup %9219  ;;  %9237 = vlog2.f32 %v3471_v43  ;;  %v3473_v32 = vadd.f32 1.0, %v9218_v55  ;;  %v3460_v14 = vmul.f32 1.442695, %v3430_v4  ;;  %v3512_v23 = vmul.f32 %v9518_v36, %v3481_v39  ;;  %v9523_v4 = vld [vmem:[%s11607_s24 + $0x38] sm:$0xff] }
 0x738   : > { %3546 = vrot.lane.b32.xlu1 %v3513_v3, %s9794_s22  ;;  %v9222_v15 = vpop.eup %9221  ;;  %9239 = vlog2.f32 %v3470_v42  ;;  %v3487_v5 = vmul.f32 0.6931472, %v9220_v60  ;;  %v9524_v3 = vld [vmem:[%s11607_s24 + $0x30] sm:$0xff]  ;;  %v9525_v60 = vld [vmem:[%s11607_s24 + $0x48] sm:$0xff] }
 0x739   : > { %v9224_v50 = vpop.eup %9223  ;;  %9241 = vlog2.f32 %v3473_v32  ;;  %3544 = vrot.lane.b32.xlu0 %v3512_v23, %s9794_s22  ;;  %v3485_v2 = vmul.f32 0.6931472, %v9222_v15  ;;  %v9526_v15 = vld [vmem:[%s11607_s24 + $0x40] sm:$0xff] }
 0x73a   : > { %v9226_v16 = vpop.eup %9225  ;;  %v3472_v25 = vadd.f32 1.0, %v9224_v50  ;;  %9243 = vpow2.f32 %v3462_v53  ;;  %v3515_v41 = vmul.f32 %v9519_v49, %v3487_v5 }
 0x73b   : > { %v9228_v35 = vpop.eup %9227  ;;  %v3475_v62 = vadd.f32 1.0, %v9226_v16  ;;  %9245 = vpow2.f32 %v3460_v14  ;;  %v3514_v13 = vmul.f32 %v9520_v40, %v3485_v2  ;;  %v9527_v2 = vld [vmem:[%s11607_s24 + $0x58] sm:$0xff] }
 0x73c   : > { %v9230_v28 = vpop.eup %9229  ;;  %9247 = vlog2.f32 %v3472_v25  ;;  %v3491_v20 = vmul.f32 0.6931472, %v9228_v35  ;;  %v9528_v35 = vld [vmem:[%s11607_s24 + $0x50] sm:$0xff] }
 0x73d   : > { %v9232_v57 = vpop.eup %9231  ;;  %9249 = vlog2.f32 %v3475_v62  ;;  %3550 = vrot.lane.b32.xlu0 %v3515_v41, %s9794_s22  ;;  %3548 = vrot.lane.b32.xlu1 %v3514_v13, %s9794_s22  ;;  %v3489_v56 = vmul.f32 0.6931472, %v9230_v28  ;;  %v9529_v28 = vld [vmem:[%s11607_s24 + $0x68] sm:$0xff] }
 0x73e   : > { %v3474_v37 = vadd.f32 1.0, %v9232_v57  ;;  %v3517_v48 = vmul.f32 %v9521_v12, %v3491_v20  ;;  %v9530_v57 = vld [vmem:[%s11607_s24 + $0x60] sm:$0xff] }
 0x73f   : > { %v9234_v51 = vpop.eup %9233  ;;  %v3516_v45 = vmul.f32 %v9522_v63, %v3489_v56  ;;  %v9531_v63 = vld [vmem:[%s11607_s24 + $0x78] sm:$0xff] }
 0x740   : > { %v9236_v18 = vpop.eup %9235  ;;  %9251 = vlog2.f32 %v3474_v37  ;;  %v3477_v10 = vadd.f32 1.0, %v9234_v51 }
 0x741   : > { %v9238_v11 = vpop.eup %9237  ;;  %v3476_v58 = vadd.f32 1.0, %v9236_v18  ;;  %3554 = vrot.lane.b32.xlu0 %v3517_v48, %s9794_s22  ;;  %3552 = vrot.lane.b32.xlu1 %v3516_v45, %s9794_s22  ;;  %v9532_v18 = vld [vmem:[%s11607_s24 + $0x70] sm:$0xff] }
 0x742   : > { %v9240_v46 = vpop.eup %9239  ;;  %9253 = vlog2.f32 %v3477_v10  ;;  %v3495_v19 = vmul.f32 0.6931472, %v9238_v11  ;;  %v12320_v11 = vld [vmem:[%s11482_s29] sm:$0xff] }
 0x743   : > { %v9242_v21 = vpop.eup %9241  ;;  %9255 = vlog2.f32 %v3476_v58  ;;  %v3493_v9 = vmul.f32 0.6931472, %v9240_v46  ;;  %v12324_v58 = vld [vmem:[%s11482_s29 + $0x8] sm:$0xff]  ;;  %v12328_v46 = vld [vmem:[%s11482_s29 + $0x10] sm:$0xff] }
 0x744   : > { %v9244_v34 = vpop.eup %9243  ;;  %v3519_v39 = vmul.f32 %v9523_v4, %v3495_v19  ;;  %v3499_v7 = vmul.f32 0.6931472, %v9242_v21  ;;  %v12332_v19 = vld [vmem:[%s11482_s29 + $0x18] sm:$0xff]  ;;  %v12336_v21 = vld [vmem:[%s11482_s29 + $0x20] sm:$0xff] }
 0x745   : > { %v9246_v43 = vpop.eup %9245  ;;  %v3479_v6 = vadd.f32 1.0, %v9244_v34  ;;  %v3518_v55 = vmul.f32 %v9524_v3, %v3493_v9  ;;  %v12340_v9 = vld [vmem:[%s11482_s29 + $0x28] sm:$0xff]  ;;  %v12344_v34 = vld [vmem:[%s11482_s29 + $0x30] sm:$0xff]  ;;  %v12348_v4 = vld [vmem:[%s11482_s29 + $0x38] sm:$0xff] }
 0x746   : > { %v9248_v42 = vpop.eup %9247  ;;  %v3478_v53 = vadd.f32 1.0, %v9246_v43  ;;  %3558 = vrot.lane.b32.xlu0 %v3519_v39, %s9794_s22  ;;  %v3521_v32 = vmul.f32 %v9525_v60, %v3499_v7  ;;  %v12352_v39 = vld [vmem:[%s11482_s29 + $0x48] sm:$0xff]  ;;  %v12356_v7 = vld [vmem:[%s11482_s29 + $0x50] sm:$0xff]  ;;  %v12360_v43 = vld [vmem:[%s11482_s29 + $0x58] sm:$0xff] }
 0x747   : > { %v9250_v14 = vpop.eup %9249  ;;  %9257 = vlog2.f32 %v3479_v6  ;;  %3556 = vrot.lane.b32.xlu1 %v3518_v55, %s9794_s22  ;;  %v3497_v36 = vmul.f32 0.6931472, %v9248_v42  ;;  %v12364_v6 = vld [vmem:[%s11482_s29 + $0x60] sm:$0xff]  ;;  %v12368_v3 = vld [vmem:[%s11482_s29 + $0x70] sm:$0xff] }
 0x748   : > { %9259 = vlog2.f32 %v3478_v53  ;;  %v3503_v23 = vmul.f32 0.6931472, %v9250_v14  ;;  %v12372_v55 = vld [vmem:[%s11535_s17] sm:$0xff]  ;;  %v12376_v42 = vld [vmem:[%s11535_s17 + $0x10] sm:$0xff] }
 0x749   : > { %v3520_v5 = vmul.f32 %v9526_v15, %v3497_v36  ;;  %v12380_v53 = vld [vmem:[%s11535_s17 + $0x20] sm:$0xff]  ;;  %v12384_v60 = vld [vmem:[%s11535_s17 + $0x30] sm:$0xff] }
 0x74a   : > { %v9252_v50 = vpop.eup %9251  ;;  %3562 = vrot.lane.b32.xlu0 %v3521_v32, %s9794_s22  ;;  %v3523_v16 = vmul.f32 %v9527_v2, %v3503_v23  ;;  %v12388_v32 = vld [vmem:[%s11535_s17 + $0x40] sm:$0xff]  ;;  %v12392_v14 = vld [vmem:[%s11535_s17 + $0x50] sm:$0xff] }
 0x74b   : > { %3560 = vrot.lane.b32.xlu1 %v3520_v5, %s9794_s22  ;;  %v3501_v25 = vmul.f32 0.6931472, %v9252_v50  ;;  %v12396_v36 = vld [vmem:[%s11535_s17 + $0x60] sm:$0xff]  ;;  %v12400_v15 = vld [vmem:[%s11535_s17 + $0x70] sm:$0xff] }
 0x74c   : > { %v9254_v49 = vpop.eup %9253 }
 0x74d   : > { %v9256_v41 = vpop.eup %9255  ;;  %v3522_v62 = vmul.f32 %v9528_v35, %v3501_v25  ;;  %v3507_v40 = vmul.f32 0.6931472, %v9254_v49 }
 0x74e   : > { %3566 = vrot.lane.b32.xlu0 %v3523_v16, %s9794_s22  ;;  %v3505_v13 = vmul.f32 0.6931472, %v9256_v41  ;;  %v15345_v16 = vmov 5  }
 0x74f   : > { %3564 = vrot.lane.b32.xlu1 %v3522_v62, %s9794_s22  ;;  %v3525_v20 = vmul.f32 %v9529_v28, %v3507_v40 }
 0x750   : > { %v3524_v56 = vmul.f32 %v9530_v57, %v3505_v13 }
 0x751   : > { %v9258_v37 = vpop.eup %9257 }
 0x752   : > { %v9260_v12 = vpop.eup %9259  ;;  %3570 = vrot.lane.b32.xlu0 %v3525_v20, %s9794_s22  ;;  %v3511_v48 = vmul.f32 0.6931472, %v9258_v37 }
 0x753   : > { %3568 = vrot.lane.b32.xlu1 %v3524_v56, %s9794_s22  ;;  %v3509_v51 = vmul.f32 0.6931472, %v9260_v12 }
 0x754   : > { %v3527_v45 = vmul.f32 %v9531_v63, %v3511_v48 }
 0x755   : > { %v3526_v10 = vmul.f32 %v9532_v18, %v3509_v51 }
 0x756   : > { %3574 = vrot.lane.b32.xlu0 %v3527_v45, %s9794_s22 }
 0x757   : > { %3572 = vrot.lane.b32.xlu1 %v3526_v10, %s9794_s22 }
 0x75a   : > { %3634 = vperm.xlu0 %9043, %v12320_v11  }
 0x75e   : > { %3637 = vperm.xlu0 %9043, %v12324_v58  }
 0x762   : > { %3640 = vperm.xlu0 %9043, %v12328_v46  }
 0x766   : > { %3643 = vperm.xlu0 %9043, %v12332_v19  }
 0x76a   : > { %3646 = vperm.xlu0 %9043, %v12336_v21  }
 0x76e   : > { %3649 = vperm.xlu0 %9043, %v12340_v9  }
 0x772   : > { %3652 = vperm.xlu0 %9043, %v12344_v34  }
 0x776   : > { %3655 = vperm.xlu0 %9043, %v12348_v4  }
 0x77a   : > { %3661 = vperm.xlu0 %9043, %v12352_v39  }
 0x77e   : > { %3664 = vperm.xlu0 %9043, %v12356_v7  }
 0x782   : > { %3667 = vperm.xlu0 %9043, %v12360_v43  }
 0x786   : > { %3670 = vperm.xlu0 %9043, %v12364_v6  }
 0x78a   : > { %3676 = vperm.xlu0 %9043, %v12368_v3  }
 0x78e   : > { %3698 = vperm.xlu0 %9043, %v12372_v55  }
 0x792   : > { %3706 = vperm.xlu0 %9043, %v12376_v42  }
 0x796   : > { %3714 = vperm.xlu0 %9043, %v12380_v53  }
 0x79a   : > { %3722 = vperm.xlu0 %9043, %v12384_v60  }
 0x79e   : > { %3730 = vperm.xlu0 %9043, %v12388_v32  }
 0x7a2   : > { %3738 = vperm.xlu0 %9043, %v12392_v14  }
 0x7a6   : > { %3746 = vperm.xlu0 %9043, %v12396_v36  }
 0x7aa   : > { %v3547_v23 = vpop.permute.xlu1 %3546  ;;  %3754 = vperm.xlu0 %9043, %v12400_v15  }
 0x7ab   : > { %v3545_v5 = vpop.permute.xlu0 %3544  ;;  %v3593_v50 = vsel %vm2446_vm6, %v3547_v23, 0.0 }
 0x7ac   : > { %v3592_v2 = vsel %vm2446_vm6, %v3545_v5, 0.0 }
 0x7ad   : > { %v3594_v25 = vadd.f32 %v3593_v50, %v3592_v2 }
 0x7ae   : > { %9045 = vset.pattern.permute.xlu0 %v15345_v16 }
 0x7af   : > { %v3549_v49 = vpop.permute.xlu1 %3548  ;;  %v3551_v41 = vpop.permute.xlu0 %3550  ;;  %3778 = vperm.xlu0 %9045, %v12320_v11  }
 0x7b0   : > { %v3595_v35 = vsel %vm2446_vm6, %v3549_v49, 0.0  ;;  %v3597_v40 = vsel %vm2446_vm6, %v3551_v41, 0.0 }
 0x7b1   : > { %v3596_v62 = vadd.f32 %v3595_v35, %v3594_v25 }
 0x7b3   : > { %v3598_v13 = vadd.f32 %v3597_v40, %v3596_v62  ;;  %v3553_v28 = vpop.permute.xlu1 %3552  ;;  %v3555_v20 = vpop.permute.xlu0 %3554  ;;  %3787 = vperm.xlu0 %9045, %v12332_v19  }
 0x7b4   : > { %v3599_v57 = vsel %vm2446_vm6, %v3553_v28, 0.0  ;;  %v3601_v37 = vsel %vm2446_vm6, %v3555_v20, 0.0 }
 0x7b5   : > { %v3600_v56 = vadd.f32 %v3599_v57, %v3598_v13 }
 0x7b7   : > { %v3602_v12 = vadd.f32 %v3601_v37, %v3600_v56  ;;  %3793 = vperm.xlu0 %9045, %v12340_v9  }
 0x7b8   : > { %v3559_v48 = vpop.permute.xlu0 %3558 }
 0x7b9   : > { %v3557_v51 = vpop.permute.xlu1 %3556  ;;  %v3605_v18 = vsel %vm2446_vm6, %v3559_v48, 0.0 }
 0x7ba   : > { %v3603_v63 = vsel %vm2446_vm6, %v3557_v51, 0.0 }
 0x7bb   : > { %v3604_v45 = vadd.f32 %v3603_v63, %v3602_v12  ;;  %3799 = vperm.xlu0 %9045, %v12348_v4   ;;  %v12424_v12 = vld [vmem:[%s11482_s29 + $0x68] sm:$0xff] }
 0x7bc   : > { %v3563_v10 = vpop.permute.xlu0 %3562 }
 0x7bd   : > { %v3606_v23 = vadd.f32 %v3605_v18, %v3604_v45  ;;  %v3561_v5 = vpop.permute.xlu1 %3560  ;;  %v3609_v25 = vsel %vm2446_vm6, %v3563_v10, 0.0 }
 0x7be   : > { %v3607_v50 = vsel %vm2446_vm6, %v3561_v5, 0.0 }
 0x7bf   : > { %v3608_v2 = vadd.f32 %v3607_v50, %v3606_v23  ;;  %3805 = vperm.xlu0 %9045, %v12352_v39   ;;  %v12430_v23 = vld [vmem:[%s11482_s29 + $0x78] sm:$0xff] }
 0x7c0   : > { %v3567_v49 = vpop.permute.xlu0 %3566 }
 0x7c1   : > { %v3610_v41 = vadd.f32 %v3609_v25, %v3608_v2  ;;  %v3565_v35 = vpop.permute.xlu1 %3564  ;;  %v3613_v13 = vsel %vm2446_vm6, %v3567_v49, 0.0  ;;  %v12435_v2 = vld [vmem:[%s11535_s17 + $0x8] sm:$0xff]  ;;  %v12439_v25 = vld [vmem:[%s11535_s17 + $0x18] sm:$0xff] }
 0x7c2   : > { %v3611_v62 = vsel %vm2446_vm6, %v3565_v35, 0.0  ;;  %v12443_v49 = vld [vmem:[%s11535_s17 + $0x28] sm:$0xff]  ;;  %v12449_v35 = vld [vmem:[%s11535_s17 + $0x38] sm:$0xff] }
 0x7c3   : > { %v3612_v40 = vadd.f32 %v3611_v62, %v3610_v41  ;;  %3811 = vperm.xlu0 %9045, %v12360_v43  }
 0x7c4   : > { %v3571_v28 = vpop.permute.xlu0 %3570 }
 0x7c5   : > { %v3614_v20 = vadd.f32 %v3613_v13, %v3612_v40  ;;  %v3569_v57 = vpop.permute.xlu1 %3568  ;;  %v3617_v48 = vsel %vm2446_vm6, %v3571_v28, 0.0  ;;  %v12455_v40 = vld [vmem:[%s11535_s17 + $0x48] sm:$0xff]  ;;  %v12459_v13 = vld [vmem:[%s11482_s29 + $0x40] sm:$0xff] }
 0x7c6   : > { %v3615_v56 = vsel %vm2446_vm6, %v3569_v57, 0.0 }
 0x7c7   : > { %v3616_v37 = vadd.f32 %v3615_v56, %v3614_v20  ;;  %3817 = vperm.xlu0 %9045, %v12424_v12   ;;  %v12465_v20 = vld [vmem:[%s11535_s17 + $0x58] sm:$0xff]  ;;  %v12472_v56 = vld [vmem:[%s11535_s17 + $0x68] sm:$0xff] }
 0x7c8   : > { %v3575_v45 = vpop.permute.xlu0 %3574 }
 0x7c9   : > { %v3618_v51 = vadd.f32 %v3617_v48, %v3616_v37  ;;  %v3573_v63 = vpop.permute.xlu1 %3572  ;;  %v3621_v5 = vsel %vm2446_vm6, %v3575_v45, 0.0  ;;  %v12479_v48 = vld [vmem:[%s11535_s17 + $0x78] sm:$0xff] }
 0x7ca   : > { %v3619_v18 = vsel %vm2446_vm6, %v3573_v63, 0.0  ;;  %v15344_v63 = vmov 6  }
 0x7cb   : > { %v3620_v10 = vadd.f32 %v3619_v18, %v3618_v51  ;;  %3823 = vperm.xlu0 %9045, %v12430_v23  }
 0x7cd   : > { %v3622_v50 = vadd.f32 %v3621_v5, %v3620_v10 }
 0x7cf   : > { %3623 = vadd.xlane.f32.xlu1 %v3622_v50  ;;  %3846 = vperm.xlu0 %9045, %v12435_v2  }
 0x7d3   : > { %3854 = vperm.xlu0 %9045, %v12439_v25  }
 0x7d7   : > { %3862 = vperm.xlu0 %9045, %v12443_v49  }
 0x7d9   : > { %v12446_v41 = vpop.permute.xlu0 %3634 }
 0x7da   : > { %vm3681_vm1 = vcmp.eq.s32.totalorder %v12446_v41, %v10812_v59 }
 0x7db   : > { %3870 = vperm.xlu0 %9045, %v12449_v35  }
 0x7dd   : > { %v12452_v62 = vpop.permute.xlu0 %3637 }
 0x7de   : > { %vm3682_vm5 = vcmp.eq.s32.totalorder %v12452_v62, %v10812_v59 }
 0x7df   : > { %3878 = vperm.xlu0 %9045, %v12455_v40  }
 0x7e0   : > { %3658 = vperm.xlu1 %9044, %v12459_v13  }
 0x7e1   : > { %v12462_v28 = vpop.permute.xlu0 %3640 }
 0x7e2   : > { %vm3683_vm2 = vcmp.eq.s32.totalorder %v12462_v28, %v10812_v59 }
 0x7e3   : > { %3886 = vperm.xlu0 %9045, %v12465_v20  }
 0x7e4   : > { %3673 = vperm.xlu1 %9044, %v12424_v12  }
 0x7e5   : > { %v12469_v57 = vpop.permute.xlu0 %3643 }
 0x7e6   : > { %vm3684_vm7 = vcmp.eq.s32.totalorder %v12469_v57, %v10812_v59 }
 0x7e7   : > { %3894 = vperm.xlu0 %9045, %v12472_v56  }
 0x7e8   : > { %3679 = vperm.xlu1 %9044, %v12430_v23  }
 0x7e9   : > { %v12476_v37 = vpop.permute.xlu0 %3646 }
 0x7ea   : > { %vm3685_vm13 = vcmp.eq.s32.totalorder %v12476_v37, %v10812_v59 }
 0x7eb   : > { %3902 = vperm.xlu0 %9045, %v12479_v48  }
 0x7ec   : > { %3702 = vperm.xlu1 %9044, %v12435_v2  }
 0x7ed   : > { %v12483_v51 = vpop.permute.xlu0 %3649 }
 0x7ee   : > { %vm3686_vm8 = vcmp.eq.s32.totalorder %v12483_v51, %v10812_v59 }
 0x7ef   : > { %9048 = vset.pattern.permute.xlu0 %v15344_v63 }
 0x7f0   : > { %3710 = vperm.xlu1 %9044, %v12439_v25   ;;  %3941 = vperm.xlu0 %9048, %v12324_v58  }
 0x7f1   : > { %v12488_v45 = vpop.permute.xlu0 %3652 }
 0x7f2   : > { %vm3687_vm10 = vcmp.eq.s32.totalorder %v12488_v45, %v10812_v59 }
 0x7f4   : > { %3718 = vperm.xlu1 %9044, %v12443_v49   ;;  %3950 = vperm.xlu0 %9048, %v12336_v21  }
 0x7f5   : > { %v12492_v18 = vpop.permute.xlu0 %3655 }
 0x7f6   : > { %vm3688_vm9 = vcmp.eq.s32.totalorder %v12492_v18, %v10812_v59 }
 0x7f8   : > { %3726 = vperm.xlu1 %9044, %v12449_v35   ;;  %3956 = vperm.xlu0 %9048, %v12344_v34  }
 0x7f9   : > { %v12496_v10 = vpop.permute.xlu0 %3661 }
 0x7fa   : > { %15893 = vst [vmem:[#allocation120_spill] sm:$0xff] %v12496_v10 }
 0x7fc   : > { %3734 = vperm.xlu1 %9044, %v12455_v40   ;;  %3962 = vperm.xlu0 %9048, %v12459_v13  }
 0x7fd   : > { %v12500_v5 = vpop.permute.xlu0 %3664 }
 0x7fe   : > { %vm3691_vm12 = vcmp.eq.s32.totalorder %v12500_v5, %v10812_v59 }
 0x800   : > { %3742 = vperm.xlu1 %9044, %v12465_v20   ;;  %3968 = vperm.xlu0 %9048, %v12356_v7  }
 0x801   : > { %v12504_v50 = vpop.permute.xlu0 %3667 }
 0x802   : > { %15894 = vst [vmem:[#allocation80_spill] sm:$0xff] %v12504_v50 }
 0x804   : > { %3750 = vperm.xlu1 %9044, %v12472_v56   ;;  %3974 = vperm.xlu0 %9048, %v12364_v6  }
 0x805   : > { %v12508_v63 = vpop.permute.xlu0 %3670 }
 0x806   : > { %vm3693_vm0 = vcmp.eq.s32.totalorder %v12508_v63, %v10812_v59 }
 0x808   : > { %3758 = vperm.xlu1 %9044, %v12479_v48   ;;  %3980 = vperm.xlu0 %9048, %v12368_v3  }
 0x809   : > { %v12512_v16 = vpop.permute.xlu0 %3676 }
 0x80a   : > { %vm3695_vm15 = vcmp.eq.s32.totalorder %v12512_v16, %v10812_v59 }
 0x80c   : > { %9046 = vset.pattern.permute.xlu1 %v15895_v47  ;;  %4002 = vperm.xlu0 %9048, %v12372_v55  }
 0x80d   : > { %3781 = vperm.xlu1 %9046, %v12324_v58   ;;  %v12517_v27 = vpop.permute.xlu0 %3698 }
 0x80e   : > { %v3761_v41 = vsel %vm3681_vm1, %v12517_v27, 0.0 }
 0x810   : > { %4010 = vperm.xlu0 %9048, %v12376_v42  }
 0x811   : > { %3784 = vperm.xlu1 %9046, %v12328_v46   ;;  %v12521_v1 = vpop.permute.xlu0 %3706 }
 0x812   : > { %v12809_v28 = vsel %vm3683_vm2, %v12521_v1, 0.0 }
 0x814   : > { %4018 = vperm.xlu0 %9048, %v12380_v53  }
 0x815   : > { %3790 = vperm.xlu1 %9046, %v12336_v21   ;;  %v12527_v47 = vpop.permute.xlu0 %3714 }
 0x816   : > { %v3765_v45 = vsel %vm3685_vm13, %v12527_v47, 0.0 }
 0x818   : > { %4026 = vperm.xlu0 %9048, %v12384_v60  }
 0x819   : > { %3796 = vperm.xlu1 %9046, %v12344_v34   ;;  %v12531_v61 = vpop.permute.xlu0 %3722 }
 0x81a   : > { %v12815_v5 = vsel %vm3687_vm10, %v12531_v61, 0.0 }
 0x81c   : > { %4034 = vperm.xlu0 %9048, %v12388_v32  }
 0x81d   : > { %3802 = vperm.xlu1 %9046, %v12459_v13   ;;  %v12537_v30 = vpop.permute.xlu0 %3730 }
 0x81e   : > { %15896 = vst [vmem:[#allocation95_spill] sm:$0xff] %v12537_v30 }
 0x820   : > { %4042 = vperm.xlu0 %9048, %v12392_v14  }
 0x821   : > { %3808 = vperm.xlu1 %9046, %v12356_v7   ;;  %v12541_v33 = vpop.permute.xlu0 %3738 }
 0x822   : > { %v12824_v27 = vsel %vm3691_vm12, %v12541_v33, 0.0 }
 0x824   : > { %4050 = vperm.xlu0 %9048, %v12396_v36  }
 0x825   : > { %3814 = vperm.xlu1 %9046, %v12364_v6   ;;  %v12547_v22 = vpop.permute.xlu0 %3746 }
 0x826   : > { %v12827_v1 = vsel %vm3693_vm0, %v12547_v22, 0.0 }
 0x828   : > { %4058 = vperm.xlu0 %9048, %v12400_v15  }
 0x829   : > { %3820 = vperm.xlu1 %9046, %v12368_v3   ;;  %v12552_v0 = vpop.permute.xlu0 %3754 }
 0x82a   : > { %v12834_v61 = vsel %vm3695_vm15, %v12552_v0, 0.0  ;;  %v15943_v0 = vld [vmem:[#allocation95_spill] sm:$0xff] }
 0x82c   : > { %9049 = vset.pattern.permute.xlu0 %v15346_v54 }
 0x82d   : > { %3842 = vperm.xlu1 %9046, %v12372_v55   ;;  %4098 = vperm.xlu0 %9049, %v12320_v11  }
 0x82e   : > { %v12556_v54 = vpop.permute.xlu0 %3778 }
 0x82f   : > { %vm3825_vm12 = vcmp.eq.s32.totalorder %v12556_v54, %v10812_v59 }
 0x831   : > { %3850 = vperm.xlu1 %9046, %v12376_v42   ;;  %4107 = vperm.xlu0 %9049, %v12332_v19  }
 0x832   : > { %v12561_v52 = vpop.permute.xlu0 %3787 }
 0x833   : > { %vm3828_vm11 = vcmp.eq.s32.totalorder %v12561_v52, %v10812_v59 }
 0x835   : > { %3858 = vperm.xlu1 %9046, %v12380_v53   ;;  %4113 = vperm.xlu0 %9049, %v12340_v9  }
 0x836   : > { %v12566_v31 = vpop.permute.xlu0 %3793 }
 0x837   : > { %vm3830_vm3 = vcmp.eq.s32.totalorder %v12566_v31, %v10812_v59 }
 0x839   : > { %3866 = vperm.xlu1 %9046, %v12384_v60   ;;  %4119 = vperm.xlu0 %9049, %v12348_v4  }
 0x83a   : > { %v12571_v29 = vpop.permute.xlu0 %3799 }
 0x83b   : > { %vm3832_vm4 = vcmp.eq.s32.totalorder %v12571_v29, %v10812_v59 }
 0x83d   : > { %3874 = vperm.xlu1 %9046, %v12388_v32   ;;  %4125 = vperm.xlu0 %9049, %v12352_v39  }
 0x83e   : > { %v12577_v38 = vpop.permute.xlu0 %3805 }
 0x83f   : > { %vm3834_vm1 = vcmp.eq.s32.totalorder %v12577_v38, %v10812_v59 }
 0x841   : > { %3882 = vperm.xlu1 %9046, %v12392_v14   ;;  %4131 = vperm.xlu0 %9049, %v12360_v43  }
 0x842   : > { %v12581_v24 = vpop.permute.xlu0 %3811 }
 0x843   : > { %vm3836_vm13 = vcmp.eq.s32.totalorder %v12581_v24, %v10812_v59 }
 0x845   : > { %3890 = vperm.xlu1 %9046, %v12396_v36   ;;  %4137 = vperm.xlu0 %9049, %v12424_v12  }
 0x846   : > { %v12587_v8 = vpop.permute.xlu0 %3817 }
 0x847   : > { %vm3838_vm10 = vcmp.eq.s32.totalorder %v12587_v8, %v10812_v59 }
 0x849   : > { %3898 = vperm.xlu1 %9046, %v12400_v15   ;;  %4143 = vperm.xlu0 %9049, %v12430_v23  }
 0x84d   : > { %9047 = vset.pattern.permute.xlu1 %v15897_v26  ;;  %4166 = vperm.xlu0 %9049, %v12435_v2  }
 0x84e   : > { %3938 = vperm.xlu1 %9047, %v12320_v11  }
 0x851   : > { %4174 = vperm.xlu0 %9049, %v12439_v25  }
 0x852   : > { %3944 = vperm.xlu1 %9047, %v12328_v46  }
 0x855   : > { %4182 = vperm.xlu0 %9049, %v12443_v49  }
 0x856   : > { %3947 = vperm.xlu1 %9047, %v12332_v19  }
 0x859   : > { %4190 = vperm.xlu0 %9049, %v12449_v35  }
 0x85a   : > { %3953 = vperm.xlu1 %9047, %v12340_v9   ;;  %v12595_v9 = vpop.permute.xlu0 %3823 }
 0x85b   : > { %15899 = vst [vmem:[#allocation90_spill] sm:$0xff] %v12595_v9 }
 0x85c   : > { %v3624_v26 = vpop.xlane.xlu1 %3623 }
 0x85d   : > { %v3625_v44 = vrot.slane %v3624_v26, 4  ;;  %4198 = vperm.xlu0 %9049, %v12455_v40  }
 0x85e   : > { %3959 = vperm.xlu1 %9047, %v12348_v4  }
 0x85f   : > { %v3626_v11 = vadd.f32 %v3625_v44, %v3624_v26  ;;  %v12603_v26 = vpop.permute.xlu0 %3846 }
 0x860   : > { %v12589_v17 = vpop.permute.xlu1 %3658 }
 0x861   : > { %v3627_v50 = vrot.slane %v3626_v11, 2  ;;  %4206 = vperm.xlu0 %9049, %v12465_v20   ;;  %vm3689_vm2 = vcmp.eq.s32.totalorder %v12589_v17, %v10812_v59 }
 0x862   : > { %3965 = vperm.xlu1 %9047, %v12352_v39   ;;  %v12865_v22 = vsel %vm3689_vm2, %v15943_v0, 0.0  ;;  %v15952_v0 = vld [vmem:[#allocation80_spill] sm:$0xff] }
 0x863   : > { %v3628_v19 = vadd.f32 %v3627_v50, %v3626_v11  ;;  %v12610_v11 = vpop.permute.xlu0 %3854 }
 0x864   : > { %v12593_v10 = vpop.permute.xlu1 %3673  ;;  %v3908_v29 = vsel %vm3828_vm11, %v12610_v11, 0.0 }
 0x865   : > { %15898 = vst [vmem:[#allocation72_spill] sm:$0xff] %v12593_v10  ;;  %v3629_v30 = vrot.slane %v3628_v19, 1  ;;  %4214 = vperm.xlu0 %9049, %v12472_v56  }
 0x866   : > { %3971 = vperm.xlu1 %9047, %v12360_v43  }
 0x867   : > { %v3630_v44 = vadd.f32 %v3629_v30, %v3628_v19  ;;  %v12616_v43 = vpop.permute.xlu0 %3862 }
 0x868   : > { %v12599_v4 = vpop.permute.xlu1 %3679  ;;  %v3910_v31 = vsel %vm3830_vm3, %v12616_v43, 0.0 }
 0x869   : > { %15900 = vst [vmem:[#allocation109_spill] sm:$0xff] %v12599_v4  ;;  %8950 = vpush %v3630_v44  ;;  %4222 = vperm.xlu0 %9049, %v12479_v48  }
 0x86a   : > { %3977 = vperm.xlu1 %9047, %v12424_v12  }
 0x86b   : > { %v12623_v44 = vpop.permute.xlu0 %3870 }
 0x86c   : > { %v12605_v39 = vpop.permute.xlu1 %3702  ;;  %v12857_v8 = vsel %vm3832_vm4, %v12623_v44, 0.0 }
 0x86d   : > { %v3762_v57 = vsel %vm3682_vm5, %v12605_v39, 0.0 }
 0x86e   : > { %3983 = vperm.xlu1 %9047, %v12430_v23  }
 0x870   : > { %v12608_v50 = vpop.permute.xlu1 %3710 }
 0x871   : > { %v3764_v38 = vsel %vm3684_vm7, %v12608_v50, 0.0  ;;  %v15944_v50 = vld [vmem:[#allocation120_spill] sm:$0xff] }
 0x872   : > { %4006 = vperm.xlu1 %9047, %v12435_v2   ;;  %v12629_v2 = vpop.permute.xlu0 %3878  ;;  %v3924_v51 = vadd.f32 %v3908_v29, %v3764_v38  ;;  %vm3690_vm15 = vcmp.eq.s32.totalorder %v15944_v50, %v10812_v59 }
 0x873   : > { %v12860_v24 = vsel %vm3834_vm1, %v12629_v2, 0.0 }
 0x874   : > { %v12613_v30 = vpop.permute.xlu1 %3718 }
 0x875   : > { %v3766_v17 = vsel %vm3686_vm8, %v12613_v30, 0.0 }
 0x876   : > { %4014 = vperm.xlu1 %9047, %v12439_v25   ;;  %v12636_v9 = vpop.permute.xlu0 %3886  ;;  %v3926_v11 = vadd.f32 %v3910_v31, %v3766_v17 }
 0x877   : > { %v12868_v33 = vsel %vm3836_vm13, %v12636_v9, 0.0 }
 0x878   : > { %v12618_v19 = vpop.permute.xlu1 %3726 }
 0x879   : > { %v3768_v54 = vsel %vm3688_vm9, %v12618_v19, 0.0 }
 0x87a   : > { %4022 = vperm.xlu1 %9047, %v12443_v49  }
 0x87c   : > { %v12621_v12 = vpop.permute.xlu1 %3734 }
 0x87d   : > { %15901 = vst [vmem:[#allocation85_spill] sm:$0xff] %v12621_v12 }
 0x87e   : > { %4030 = vperm.xlu1 %9047, %v12449_v35   ;;  %v12642_v35 = vpop.permute.xlu0 %3894 }
 0x87f   : > { %v12871_v16 = vsel %vm3838_vm10, %v12642_v35, 0.0 }
 0x880   : > { %v12626_v23 = vpop.permute.xlu1 %3742 }
 0x881   : > { %15902 = vst [vmem:[#allocation121_spill] sm:$0xff] %v12626_v23 }
 0x882   : > { %4038 = vperm.xlu1 %9047, %v12455_v40   ;;  %v15905_v40 = vmov 7  }
 0x884   : > { %v12631_v4 = vpop.permute.xlu1 %3750 }
 0x885   : > { %15903 = vst [vmem:[#allocation82_spill] sm:$0xff] %v12631_v4 }
 0x886   : > { %4046 = vperm.xlu1 %9047, %v12465_v20   ;;  %v12650_v20 = vpop.permute.xlu0 %3902 }
 0x887   : > { %15906 = vst [vmem:[#allocation92_spill] sm:$0xff] %v12650_v20 }
 0x888   : > { %v12634_v25 = vpop.permute.xlu1 %3758 }
 0x889   : > { %15904 = vst [vmem:[#allocation97_spill] sm:$0xff] %v12634_v25 }
 0x88a   : > { %4054 = vperm.xlu1 %9047, %v12472_v56   ;;  %v12655_v56 = vpop.permute.xlu0 %3941 }
 0x88b   : > { %vm3986_vm0 = vcmp.eq.s32.totalorder %v12655_v56, %v10812_v59 }
 0x88c   : > { %v12639_v49 = vpop.permute.xlu1 %3781 }
 0x88d   : > { %vm3826_vm7 = vcmp.eq.s32.totalorder %v12639_v49, %v10812_v59 }
 0x88e   : > { %4062 = vperm.xlu1 %9047, %v12479_v48   ;;  %v12660_v10 = vpop.permute.xlu0 %3950  ;;  %v3906_v30 = vsel %vm3826_vm7, %v12603_v26, 0.0 }
 0x88f   : > { %vm3989_vm11 = vcmp.eq.s32.totalorder %v12660_v10, %v10812_v59  ;;  %v3922_v43 = vadd.f32 %v3906_v30, %v3762_v57 }
 0x890   : > { %v12644_v23 = vpop.permute.xlu1 %3784 }
 0x891   : > { %vm3827_vm3 = vcmp.eq.s32.totalorder %v12644_v23, %v10812_v59 }
 0x892   : > { %9050 = vset.pattern.permute.xlu1 %v15905_v40  ;;  %v12668_v20 = vpop.permute.xlu0 %3956 }
 0x893   : > { %4101 = vperm.xlu1 %9050, %v12324_v58   ;;  %vm3991_vm5 = vcmp.eq.s32.totalorder %v12668_v20, %v10812_v59 }
 0x894   : > { %v12648_v4 = vpop.permute.xlu1 %3790 }
 0x895   : > { %vm3829_vm1 = vcmp.eq.s32.totalorder %v12648_v4, %v10812_v59 }
 0x896   : > { %v12673_v12 = vpop.permute.xlu0 %3962 }
 0x897   : > { %4104 = vperm.xlu1 %9050, %v12328_v46   ;;  %vm3993_vm9 = vcmp.eq.s32.totalorder %v12673_v12, %v10812_v59 }
 0x898   : > { %v12653_v25 = vpop.permute.xlu1 %3796 }
 0x899   : > { %15907 = vst [vmem:[#allocation128_spill] sm:$0xff] %v12653_v25 }
 0x89b   : > { %4110 = vperm.xlu1 %9050, %v12336_v21  }
 0x89c   : > { %v12658_v48 = vpop.permute.xlu1 %3802 }
 0x89d   : > { %15908 = vst [vmem:[#allocation111_spill] sm:$0xff] %v12658_v48 }
 0x89f   : > { %4116 = vperm.xlu1 %9050, %v12344_v34  }
 0x8a0   : > { %v12663_v40 = vpop.permute.xlu1 %3808 }
 0x8a1   : > { %15909 = vst [vmem:[#allocation123_spill] sm:$0xff] %v12663_v40  ;;  %v12681_v40 = vpop.permute.xlu0 %3968 }
 0x8a2   : > { %15912 = vst [vmem:[#allocation45_spill] sm:$0xff] %v12681_v40 }
 0x8a3   : > { %4122 = vperm.xlu1 %9050, %v12459_v13  }
 0x8a4   : > { %v12666_v58 = vpop.permute.xlu1 %3814 }
 0x8a5   : > { %15910 = vst [vmem:[#allocation41_spill] sm:$0xff] %v12666_v58  ;;  %v12686_v58 = vpop.permute.xlu0 %3974 }
 0x8a6   : > { %15913 = vst [vmem:[#allocation47_spill] sm:$0xff] %v12686_v58 }
 0x8a7   : > { %4128 = vperm.xlu1 %9050, %v12356_v7  }
 0x8a8   : > { %v12671_v46 = vpop.permute.xlu1 %3820 }
 0x8a9   : > { %15911 = vst [vmem:[#allocation43_spill] sm:$0xff] %v12671_v46  ;;  %v12694_v46 = vpop.permute.xlu0 %3980 }
 0x8aa   : > { %15916 = vst [vmem:[#allocation53_spill] sm:$0xff] %v12694_v46 }
 0x8ab   : > { %4134 = vperm.xlu1 %9050, %v12364_v6  }
 0x8ac   : > { %v12676_v21 = vpop.permute.xlu1 %3842 }
 0x8ad   : > { %v12699_v40 = vpop.permute.xlu0 %4002  ;;  %v3905_v47 = vsel %vm3825_vm12, %v12676_v21, 0.0 }
 0x8ae   : > { %v3921_v26 = vadd.f32 %v3905_v47, %v3761_v41 }
 0x8af   : > { %4140 = vperm.xlu1 %9050, %v12368_v3  }
 0x8b0   : > { %v12679_v34 = vpop.permute.xlu1 %3850 }
 0x8b1   : > { %v12707_v58 = vpop.permute.xlu0 %4010  ;;  %v3907_v19 = vsel %vm3827_vm3, %v12679_v34, 0.0 }
 0x8b2   : > { %15920 = vst [vmem:[#allocation63_spill] sm:$0xff] %v12707_v58 }
 0x8b3   : > { %4162 = vperm.xlu1 %9050, %v12372_v55  }
 0x8b4   : > { %v12684_v13 = vpop.permute.xlu1 %3858 }
 0x8b5   : > { %v12712_v46 = vpop.permute.xlu0 %4018  ;;  %v3909_v44 = vsel %vm3829_vm1, %v12684_v13, 0.0 }
 0x8b6   : > { %15921 = vst [vmem:[#allocation65_spill] sm:$0xff] %v12712_v46 }
 0x8b7   : > { %4170 = vperm.xlu1 %9050, %v12376_v42  }
 0x8b8   : > { %v12689_v7 = vpop.permute.xlu1 %3866 }
 0x8b9   : > { %15914 = vst [vmem:[#allocation49_spill] sm:$0xff] %v12689_v7 }
 0x8bb   : > { %4178 = vperm.xlu1 %9050, %v12380_v53  }
 0x8bc   : > { %v12692_v6 = vpop.permute.xlu1 %3874 }
 0x8bd   : > { %15915 = vst [vmem:[#allocation51_spill] sm:$0xff] %v12692_v6 }
 0x8bf   : > { %4186 = vperm.xlu1 %9050, %v12384_v60  }
 0x8c0   : > { %v12697_v3 = vpop.permute.xlu1 %3882  ;;  %v15950_v38 = vld [vmem:[#allocation49_spill] sm:$0xff] }
 0x8c1   : > { %15917 = vst [vmem:[#allocation55_spill] sm:$0xff] %v12697_v3  ;;  %v12717_v3 = vpop.permute.xlu0 %4026 }
 0x8c2   : > { %15922 = vst [vmem:[#allocation67_spill] sm:$0xff] %v12717_v3 }
 0x8c3   : > { %4194 = vperm.xlu1 %9050, %v12388_v32  }
 0x8c4   : > { %v12702_v55 = vpop.permute.xlu1 %3890  ;;  %v15960_v10 = vld [vmem:[#allocation51_spill] sm:$0xff] }
 0x8c5   : > { %15918 = vst [vmem:[#allocation59_spill] sm:$0xff] %v12702_v55 }
 0x8c7   : > { %4202 = vperm.xlu1 %9050, %v12392_v14   ;;  %v12723_v14 = vpop.permute.xlu0 %4034 }
 0x8c8   : > { %v12705_v42 = vpop.permute.xlu1 %3898  ;;  %15924 = vst [vmem:[#allocation71_spill] sm:$0xff] %v12723_v14 }
 0x8c9   : > { %15919 = vst [vmem:[#allocation61_spill] sm:$0xff] %v12705_v42 }
 0x8cb   : > { %4210 = vperm.xlu1 %9050, %v12396_v36   ;;  %v12727_v6 = vpop.permute.xlu0 %4042 }
 0x8cc   : > { %15926 = vst [vmem:[#allocation98_spill] sm:$0xff] %v12727_v6 }
 0x8cd   : > { %v12710_v53 = vpop.permute.xlu1 %3938 }
 0x8ce   : > { %vm3985_vm8 = vcmp.eq.s32.totalorder %v12710_v53, %v10812_v59  ;;  %v15949_v53 = vld [vmem:[#allocation128_spill] sm:$0xff] }
 0x8cf   : > { %4218 = vperm.xlu1 %9050, %v12400_v15   ;;  %v12733_v46 = vpop.permute.xlu0 %4050  ;;  %v4065_v39 = vsel %vm3985_vm8, %v12699_v40, 0.0  ;;  %v15947_v40 = vld [vmem:[#allocation63_spill] sm:$0xff]  ;;  %vm3831_vm7 = vcmp.eq.s32.totalorder %v15949_v53, %v10812_v59  ;;  %v15964_v53 = vld [vmem:[#allocation72_spill] sm:$0xff] }
 0x8d0   : > { %15929 = vst [vmem:[#allocation100_spill] sm:$0xff] %v12733_v46  ;;  %v4081_v4 = vadd.f32 %v4065_v39, %v3921_v26  ;;  %v3911_v29 = vsel %vm3831_vm7, %v15950_v38, 0.0  ;;  %v15955_v26 = vld [vmem:[#allocation65_spill] sm:$0xff]  ;;  %v15967_v38 = vld [vmem:[#allocation71_spill] sm:$0xff] }
 0x8d1   : > { %v12715_v60 = vpop.permute.xlu1 %3944 }
 0x8d2   : > { %vm3987_vm2 = vcmp.eq.s32.totalorder %v12715_v60, %v10812_v59  ;;  %v3923_v60 = vadd.f32 %v3907_v19, %v12809_v28  ;;  %v3927_v19 = vadd.f32 %v3911_v29, %v12815_v5  ;;  %v4073_v29 = vsel %vm3993_vm9, %v15967_v38, 0.0 }
 0x8d3   : > { %v12737_v7 = vpop.permute.xlu0 %4058  ;;  %v4067_v21 = vsel %vm3987_vm2, %v15947_v40, 0.0 }
 0x8d4   : > { %15931 = vst [vmem:[#allocation110_spill] sm:$0xff] %v12737_v7  ;;  %v4083_v57 = vadd.f32 %v4067_v21, %v3923_v60  ;;  %v15962_v21 = vld [vmem:[#allocation13_spill] sm:$0xff]  ;;  %v3928_v60 = vadd.f32 %v12857_v8, %v3768_v54  ;;  %v15968_v8 = vld [vmem:[#allocation90_spill] sm:$0xff] }
 0x8d5   : > { %v12719_v32 = vpop.permute.xlu1 %3947 }
 0x8d6   : > { %vm3988_vm13 = vcmp.eq.s32.totalorder %v12719_v32, %v10812_v59  ;;  %v3925_v32 = vadd.f32 %v3909_v44, %v3765_v45  ;;  %v15954_v45 = vld [vmem:[#allocation85_spill] sm:$0xff]  ;;  %v15958_v44 = vld [vmem:[#allocation67_spill] sm:$0xff] }
 0x8d7   : > { %v12741_v25 = vpop.permute.xlu0 %4098  ;;  %v4071_v50 = vsel %vm3991_vm5, %v15958_v44, 0.0  ;;  %vm3694_vm5 = vcmp.eq.s32.totalorder %v15964_v53, %v10812_v59 }
 0x8d8   : > { %15933 = vst [vmem:[#allocation126_spill] sm:$0xff] %v12741_v25 }
 0x8d9   : > { %v12721_v55 = vpop.permute.xlu1 %3953 }
 0x8da   : > { %15923 = vst [vmem:[#allocation69_spill] sm:$0xff] %v12721_v55 }
 0x8dd   : > { %v12725_v42 = vpop.permute.xlu1 %3959 }
 0x8de   : > { %15925 = vst [vmem:[#allocation96_spill] sm:$0xff] %v12725_v42  ;;  %v12747_v42 = vpop.permute.xlu0 %4107 }
 0x8df   : > { %15935 = vst [vmem:[#allocation124_spill] sm:$0xff] %v12747_v42  ;;  %v15945_v23 = vld [vmem:[#allocation126_spill] sm:$0xff] }
 0x8e0   : > { %vm4145_vm10 = vcmp.eq.s32.totalorder %v15945_v23, %v10812_v59  ;;  %v15959_v23 = vld [vmem:[#allocation157_spill] sm:$0xff] }
 0x8e1   : > { %v12729_v36 = vpop.permute.xlu1 %3965 }
 0x8e2   : > { %15927 = vst [vmem:[#allocation94_spill] sm:$0xff] %v12729_v36  ;;  %v12751_v36 = vpop.permute.xlu0 %4113 }
 0x8e3   : > { %15937 = vst [vmem:[#allocation131_spill] sm:$0xff] %v12751_v36 }
 0x8e5   : > { %v12731_v48 = vpop.permute.xlu1 %3971 }
 0x8e6   : > { %15928 = vst [vmem:[#allocation99_spill] sm:$0xff] %v12731_v48 }
 0x8e9   : > { %v12735_v15 = vpop.permute.xlu1 %3977  ;;  %v15969_v54 = vld [vmem:[#allocation94_spill] sm:$0xff] }
 0x8ea   : > { %15930 = vst [vmem:[#allocation102_spill] sm:$0xff] %v12735_v15  ;;  %v12757_v15 = vpop.permute.xlu0 %4119 }
 0x8eb   : > { %15940 = vst [vmem:[#allocation133_spill] sm:$0xff] %v12757_v15 }
 0x8ed   : > { %v12739_v3 = vpop.permute.xlu1 %3983  ;;  %v15978_v44 = vld [vmem:[#allocation99_spill] sm:$0xff] }
 0x8ee   : > { %15932 = vst [vmem:[#allocation112_spill] sm:$0xff] %v12739_v3  ;;  %v12761_v3 = vpop.permute.xlu0 %4125 }
 0x8ef   : > { %15942 = vst [vmem:[#allocation114_spill] sm:$0xff] %v12761_v3 }
 0x8f1   : > { %v12743_v55 = vpop.permute.xlu1 %4006 }
 0x8f2   : > { %v4066_v18 = vsel %vm3986_vm0, %v12743_v55, 0.0  ;;  %v15948_v55 = vld [vmem:[#allocation124_spill] sm:$0xff]  ;;  %vm3692_vm0 = vcmp.eq.s32.totalorder %v15952_v0, %v10812_v59 }
 0x8f3   : > { %vm4148_vm12 = vcmp.eq.s32.totalorder %v15948_v55, %v10812_v59  ;;  %v4082_v34 = vadd.f32 %v4066_v18, %v3922_v43  ;;  %v4069_v18 = vsel %vm3989_vm11, %v15955_v26, 0.0  ;;  %v15974_v26 = vld [vmem:[#allocation45_spill] sm:$0xff] }
 0x8f4   : > { %v4085_v55 = vadd.f32 %v4069_v18, %v3925_v32 }
 0x8f5   : > { %v12745_v14 = vpop.permute.xlu1 %4014 }
 0x8f6   : > { %15934 = vst [vmem:[#allocation127_spill] sm:$0xff] %v12745_v14  ;;  %v12767_v14 = vpop.permute.xlu0 %4131 }
 0x8f9   : > { %v12749_v6 = vpop.permute.xlu1 %4022 }
 0x8fa   : > { %15936 = vst [vmem:[#allocation129_spill] sm:$0xff] %v12749_v6  ;;  %v12771_v6 = vpop.permute.xlu0 %4137 }
 0x8fd   : > { %v12753_v48 = vpop.permute.xlu1 %4030  ;;  %v15946_v2 = vld [vmem:[#allocation127_spill] sm:$0xff] }
 0x8fe   : > { %15938 = vst [vmem:[#allocation132_spill] sm:$0xff] %v12753_v48  ;;  %v4068_v49 = vsel %vm3988_vm13, %v15946_v2, 0.0 }
 0x8ff   : > { %v4084_v31 = vadd.f32 %v4068_v49, %v3924_v51  ;;  %v3770_v51 = vsel %vm3690_vm15, %v15954_v45, 0.0  ;;  %v15961_v49 = vld [vmem:[#allocation96_spill] sm:$0xff]  ;;  %v15973_v45 = vld [vmem:[#allocation121_spill] sm:$0xff] }
 0x900   : > { %vm3992_vm15 = vcmp.eq.s32.totalorder %v15961_v49, %v10812_v59 }
 0x901   : > { %v12755_v46 = vpop.permute.xlu1 %4038  ;;  %v15953_v30 = vld [vmem:[#allocation129_spill] sm:$0xff] }
 0x902   : > { %15939 = vst [vmem:[#allocation113_spill] sm:$0xff] %v12755_v46  ;;  %v12777_v46 = vpop.permute.xlu0 %4143 }
 0x905   : > { %v12759_v7 = vpop.permute.xlu1 %4046 }
 0x906   : > { %15941 = vst [vmem:[#allocation143_spill] sm:$0xff] %v12759_v7  ;;  %v12781_v7 = vpop.permute.xlu0 %4166 }
 0x909   : > { %v12763_v58 = vpop.permute.xlu1 %4054 }
 0x90a   : > { %v12821_v63 = vpop.permute.xlu0 %4174 }
 0x90b   : > { %v4228_v47 = vsel %vm4148_vm12, %v12821_v63, 0.0  ;;  %v15956_v63 = vld [vmem:[#allocation131_spill] sm:$0xff]  ;;  %vm3994_vm12 = vcmp.eq.s32.totalorder %v15969_v54, %v10812_v59  ;;  %v15986_v54 = vld [vmem:[#allocation61_spill] sm:$0xff] }
 0x90d   : > { %v12765_v25 = vpop.permute.xlu1 %4062 }
 0x90e   : > { %v4183_v9 = vpop.permute.xlu0 %4182 }
 0x912   : > { %v12769_v42 = vpop.permute.xlu1 %4101 }
 0x913   : > { %vm4146_vm4 = vcmp.eq.s32.totalorder %v12769_v42, %v10812_v59  ;;  %v4191_v42 = vpop.permute.xlu0 %4190 }
 0x914   : > { %v4226_v35 = vsel %vm4146_vm4, %v12781_v7, 0.0  ;;  %v15951_v7 = vld [vmem:[#allocation69_spill] sm:$0xff]  ;;  %vm4150_vm4 = vcmp.eq.s32.totalorder %v15956_v63, %v10812_v59 }
 0x915   : > { %vm3990_vm8 = vcmp.eq.s32.totalorder %v15951_v7, %v10812_v59  ;;  %v4242_v17 = vadd.f32 %v4226_v35, %v4082_v34  ;;  %v4244_v35 = vadd.f32 %v4228_v47, %v4084_v31  ;;  %v4230_v5 = vsel %vm4150_vm4, %v4183_v9, 0.0  ;;  %v15963_v34 = vld [vmem:[#allocation132_spill] sm:$0xff]  ;;  %v15966_v9 = vld [vmem:[#allocation123_spill] sm:$0xff] }
 0x916   : > { %v12773_v36 = vpop.permute.xlu1 %4104  ;;  %v4070_v39 = vsel %vm3990_vm8, %v15953_v30, 0.0  ;;  %vm3835_vm13 = vcmp.eq.s32.totalorder %v15966_v9, %v10812_v59  ;;  %v15971_v30 = vld [vmem:[#allocation113_spill] sm:$0xff]  ;;  %vm3995_vm8 = vcmp.eq.s32.totalorder %v15974_v26, %v10812_v59  ;;  %v15991_v26 = vld [vmem:[#allocation110_spill] sm:$0xff] }
 0x917   : > { %vm4147_vm3 = vcmp.eq.s32.totalorder %v12773_v36, %v10812_v59  ;;  %v15957_v36 = vld [vmem:[#allocation111_spill] sm:$0xff]  ;;  %v4199_v40 = vpop.permute.xlu0 %4198 }
 0x918   : > { %vm3833_vm1 = vcmp.eq.s32.totalorder %v15957_v36, %v10812_v59 }
 0x919   : > { %v3913_v2 = vsel %vm3833_vm1, %v15960_v10, 0.0  ;;  %v15979_v10 = vld [vmem:[#allocation59_spill] sm:$0xff] }
 0x91a   : > { %v12775_v48 = vpop.permute.xlu1 %4110 }
 0x91b   : > { %vm4149_vm11 = vcmp.eq.s32.totalorder %v12775_v48, %v10812_v59  ;;  %v3929_v48 = vadd.f32 %v3913_v2, %v12865_v22  ;;  %v4207_v18 = vpop.permute.xlu0 %4206 }
 0x91d   : > { %v4089_v36 = vadd.f32 %v4073_v29, %v3929_v48 }
 0x91e   : > { %v12779_v15 = vpop.permute.xlu1 %4116 }
 0x91f   : > { %vm4151_vm9 = vcmp.eq.s32.totalorder %v12779_v15, %v10812_v59  ;;  %v15976_v15 = vld [vmem:[#allocation41_spill] sm:$0xff]  ;;  %v4215_v48 = vpop.permute.xlu0 %4214 }
 0x920   : > { %vm3837_vm4 = vcmp.eq.s32.totalorder %v15976_v15, %v10812_v59 }
 0x921   : > { %v3917_v2 = vsel %vm3837_vm4, %v15979_v10, 0.0 }
 0x922   : > { %v12783_v3 = vpop.permute.xlu1 %4122 }
 0x926   : > { %v12811_v37 = vpop.permute.xlu1 %4128 }
 0x92a   : > { %v12850_v52 = vpop.permute.xlu1 %4134 }
 0x92e   : > { %v12892_v62 = vpop.permute.xlu1 %4140 }
 0x932   : > { %v4163_v56 = vpop.permute.xlu1 %4162 }
 0x933   : > { %v4225_v13 = vsel %vm4145_vm10, %v4163_v56, 0.0  ;;  %v4086_v56 = vadd.f32 %v4070_v39, %v3926_v11  ;;  %v3930_v11 = vadd.f32 %v12860_v24, %v3770_v51  ;;  %vm3840_vm10 = vcmp.eq.s32.totalorder %v15968_v8, %v10812_v59 }
 0x934   : > { %v4241_v41 = vadd.f32 %v4225_v13, %v4081_v4  ;;  %v4072_v13 = vsel %vm3992_vm15, %v15963_v34, 0.0  ;;  %v4087_v24 = vadd.f32 %v4071_v50, %v3927_v19  ;;  %v4074_v39 = vsel %vm3994_vm12, %v15971_v30, 0.0  ;;  %v15981_v34 = vld [vmem:[#allocation98_spill] sm:$0xff] }
 0x935   : > { %v4246_v31 = vadd.f32 %v4230_v5, %v4086_v56  ;;  %v3772_v51 = vsel %vm3692_vm0, %v15973_v45, 0.0  ;;  %vm3996_vm0 = vcmp.eq.s32.totalorder %v15978_v44, %v10812_v59  ;;  %vm4153_vm15 = vcmp.eq.s32.totalorder %v12783_v3, %v10812_v59 }
 0x936   : > { %v4171_v28 = vpop.permute.xlu1 %4170  ;;  %8772 = vmatprep.mubr.msk.f32.mxu1 %vm2060_vm14, %v4241_v41  ;;  %v15965_v41 = vld [vmem:[#allocation133_spill] sm:$0xff]  ;;  %v3932_v5 = vadd.f32 %v12868_v33, %v3772_v51  ;;  %v15984_v33 = vld [vmem:[#allocation100_spill] sm:$0xff]  ;;  %vm4158_vm12 = vcmp.eq.s32.totalorder %v12771_v6, %v10812_v59 }
 0x937   : > { %v4227_v43 = vsel %vm4147_vm3, %v4171_v28, 0.0  ;;  %8773 = vmatmul.mubr.msk.f32.vlgmr.msra.gmra.mrb[24].mxu1 %vm2060_vm14, %v4242_v17  ;;  %vm4152_vm2 = vcmp.eq.s32.totalorder %v15965_v41, %v10812_v59  ;;  %v4088_v17 = vadd.f32 %v4072_v13, %v3928_v60  ;;  %v15972_v28 = vld [vmem:[#allocation109_spill] sm:$0xff]  ;;  %v3933_v41 = vadd.f32 %v3917_v2, %v12827_v1  ;;  %v15990_v6 = vld [vmem:[#allocation112_spill] sm:$0xff] }
 0x938   : > { %v4243_v4 = vadd.f32 %v4227_v43, %v4083_v57  ;;  %8931 = vmatpush3.bf16.msra.mxu1 %v15959_v23  ;;  %v15970_v57 = vld [vmem:[#allocation55_spill] sm:$0xff]  ;;  %v4232_v22 = vsel %vm4152_vm2, %v4191_v42, 0.0  ;;  %vm3696_vm7 = vcmp.eq.s32.totalorder %v15972_v28, %v10812_v59  ;;  %v15975_v42 = vld [vmem:[#allocation114_spill] sm:$0xff]  ;;  %v4238_v45 = vsel %vm4158_vm12, %v4215_v48, 0.0  ;;  %v15993_v2 = vld [vmem:[#allocation17_spill] sm:$0xff] }
 0x939   : > { %8933 = vmatprep.subr.bf16.mxu1 %v15962_v21  ;;  %v3915_v47 = vsel %vm3835_vm13, %v15970_v57, 0.0  ;;  %vm4154_vm3 = vcmp.eq.s32.totalorder %v15975_v42, %v10812_v59  ;;  %v15977_v43 = vld [vmem:[#allocation47_spill] sm:$0xff]  ;;  %v4248_v50 = vadd.f32 %v4232_v22, %v4088_v17  ;;  %v15987_v17 = vld [vmem:[#allocation97_spill] sm:$0xff]  ;;  %v15988_v57 = vld [vmem:[#allocation92_spill] sm:$0xff] }
 0x93a   : > { %v4179_v20 = vpop.permute.xlu1 %4178  ;;  %8775 = vmatprep.mubr.msk.f32.mxu1 %vm2060_vm14, %v4243_v4  ;;  %vm3997_vm1 = vcmp.eq.s32.totalorder %v15977_v43, %v10812_v59  ;;  %v3931_v0 = vadd.f32 %v3915_v47, %v12824_v27  ;;  %v4090_v4 = vadd.f32 %v4074_v39, %v3930_v11  ;;  %v4234_v49 = vsel %vm4154_vm3, %v4199_v40, 0.0  ;;  %v15982_v40 = vld [vmem:[#allocation82_spill] sm:$0xff] }
 0x93b   : > { %v4229_v32 = vsel %vm4149_vm11, %v4179_v20, 0.0  ;;  %8776 = vmatmul.mubr.msk.f32.gmra.mrb[26].mxu1 %vm2060_vm14, %v4244_v35  ;;  %v15980_v35 = vld [vmem:[#allocation143_spill] sm:$0xff]  ;;  %v4075_v27 = vsel %vm3995_vm8, %v15981_v34, 0.0  ;;  %vm4156_vm11 = vcmp.eq.s32.totalorder %v12767_v14, %v10812_v59  ;;  %v3774_v3 = vsel %vm3694_vm5, %v15982_v40, 0.0  ;;  %v15985_v14 = vld [vmem:[#allocation102_spill] sm:$0xff] }
 0x93c   : > { %v4245_v7 = vadd.f32 %v4229_v32, %v4085_v55  ;;  %8935 = vmatpush3.bf16.msra.mxu1 %v15962_v21  ;;  %v4076_v56 = vsel %vm3996_vm0, %v15980_v35, 0.0  ;;  %v15983_v20 = vld [vmem:[#allocation43_spill] sm:$0xff]  ;;  %v4077_v60 = vsel %vm3997_vm1, %v15984_v33, 0.0  ;;  %vm3998_vm13 = vcmp.eq.s32.totalorder %v15985_v14, %v10812_v59  ;;  %v15994_v35 = vld [vmem:[#allocation18_spill] sm:$0xff] }
 0x93d   : > { %vm3839_vm2 = vcmp.eq.s32.totalorder %v15983_v20, %v10812_v59  ;;  %v4250_v32 = vadd.f32 %v4234_v49, %v4090_v4  ;;  %v4092_v9 = vadd.f32 %v4076_v56, %v3932_v5  ;;  %v4091_v38 = vadd.f32 %v4075_v27, %v3931_v0  ;;  %v15995_v5 = vld [vmem:[#allocation19_spill] sm:$0xff]  ;;  %v15997_v20 = vld [vmem:[#allocation21_spill] sm:$0xff] }
 0x93e   : > { %v4187_v12 = vpop.permute.xlu1 %4186  ;;  %8778 = vmatprep.mubr.msk.f32.mxu1 %vm2060_vm14, %v4245_v7  ;;  %v4236_v53 = vsel %vm4156_vm11, %v4207_v18, 0.0  ;;  %v4078_v29 = vsel %vm3998_vm13, %v12763_v58, 0.0  ;;  %vm4155_vm5 = vcmp.eq.s32.totalorder %v12811_v37, %v10812_v59  ;;  %v3919_v1 = vsel %vm3839_vm2, %v15986_v54, 0.0  ;;  %v4223_v18 = vpop.permute.xlu0 %4222 }
 0x93f   : > { %v4231_v63 = vsel %vm4151_vm9, %v4187_v12, 0.0  ;;  %8779 = vmatmul.mubr.msk.f32.gmra.mrb[28].mxu1 %vm2060_vm14, %v4246_v31  ;;  %v3776_v58 = vsel %vm3696_vm7, %v15987_v17, 0.0  ;;  %v3920_v37 = vsel %vm3840_vm10, %v15988_v57, 0.0  ;;  %v4093_v22 = vadd.f32 %v4077_v60, %v3933_v41 }
 0x940   : > { %v4247_v19 = vadd.f32 %v4231_v63, %v4087_v24  ;;  %v3934_v24 = vadd.f32 %v12871_v16, %v3774_v3  ;;  %v15989_v16 = vld [vmem:[#allocation53_spill] sm:$0xff]  ;;  %vm4000_vm8 = vcmp.eq.s32.totalorder %v15990_v6, %v10812_v59  ;;  %v4252_v30 = vadd.f32 %v4236_v53, %v4092_v9 }
 0x941   : > { %vm3999_vm9 = vcmp.eq.s32.totalorder %v15989_v16, %v10812_v59  ;;  %v3935_v12 = vadd.f32 %v3919_v1, %v12834_v61  ;;  %v4080_v28 = vsel %vm4000_vm8, %v12765_v25, 0.0  ;;  %vm4157_vm7 = vcmp.eq.s32.totalorder %v12850_v52, %v10812_v59  ;;  %v16002_v1 = vld [vmem:[#allocation30_spill] sm:$0xff]  ;;  %v16004_v16 = vld [vmem:[#allocation32_spill] sm:$0xff]  ;;  %v16005_v6 = vld [vmem:[#allocation33_spill] sm:$0xff] }
 0x942   : > { %v4195_v55 = vpop.permute.xlu1 %4194  ;;  %8781 = vmatprep.mubr.msk.f32.mxu1 %vm2060_vm14, %v4247_v19  ;;  %v4094_v39 = vadd.f32 %v4078_v29, %v3934_v24  ;;  %v3936_v51 = vadd.f32 %v3920_v37, %v3776_v58  ;;  %v4079_v42 = vsel %vm3999_vm9, %v15991_v26, 0.0  ;;  %vm4160_vm10 = vcmp.eq.s32.totalorder %v12777_v46, %v10812_v59  ;;  %v16003_v58 = vld [vmem:[#allocation31_spill] sm:$0xff] }
 0x943   : > { %v4233_v13 = vsel %vm4153_vm15, %v4195_v55, 0.0  ;;  %8782 = vmatmul.mubr.msk.f32.gmra.mrb[30].mxu1 %vm2060_vm14, %v4248_v50  ;;  %v4095_v25 = vadd.f32 %v4079_v42, %v3935_v12  ;;  %vm4159_vm3 = vcmp.eq.s32.totalorder %v12892_v62, %v10812_v59  ;;  %v15992_v50 = vld [vmem:[#allocation16_spill] sm:$0xff]  ;;  %v16006_v12 = vld [vmem:[#allocation34_spill] sm:$0xff]  ;;  %v9798_v26 = vmov 8  }
 0x944   : > { %v4249_v11 = vadd.f32 %v4233_v13, %v4089_v36  ;;  %v4254_v15 = vadd.f32 %v4238_v45, %v4094_v39  ;;  %v4096_v43 = vadd.f32 %v4080_v28, %v3936_v51  ;;  %v4240_v36 = vsel %vm4160_vm10, %v4223_v18, 0.0  ;;  %v15996_v13 = vld [vmem:[#allocation20_spill] sm:$0xff]  ;;  %9051 = vset.pattern.permute.xlu0 %v9798_v26  ;;  %9052 = vset.pattern.permute.xlu1 %v9798_v26 }
 0x946   : > { %v4203_v7 = vpop.permute.xlu1 %4202  ;;  %8784 = vmatprep.mubr.msk.f32.mxu1 %vm2060_vm14, %v4249_v11  ;;  %v4256_v46 = vadd.f32 %v4240_v36, %v4096_v43  ;;  %v15998_v11 = vld [vmem:[#allocation22_spill] sm:$0xff] }
 0x947   : > { %v4235_v31 = vsel %vm4155_vm5, %v4203_v7, 0.0  ;;  %8785 = vmatmul.mubr.msk.f32.gmra.mrb[32].mxu1 %vm2060_vm14, %v4250_v32  ;;  %v15999_v32 = vld [vmem:[#allocation27_spill] sm:$0xff]  ;;  %v16001_v7 = vld [vmem:[#allocation29_spill] sm:$0xff] }
 0x948   : > { %v4251_v47 = vadd.f32 %v4235_v31, %v4091_v38  ;;  %v16000_v38 = vld [vmem:[#allocation28_spill] sm:$0xff] }
 0x94a   : > { %v4211_v8 = vpop.permute.xlu1 %4210  ;;  %8787 = vmatprep.mubr.msk.f32.mxu1 %vm2060_vm14, %v4251_v47 }
 0x94b   : > { %v4237_v63 = vsel %vm4157_vm7, %v4211_v8, 0.0  ;;  %8788 = vmatmul.mubr.msk.f32.gmra.mrb[34].mxu1 %vm2060_vm14, %v4252_v30  ;;  %v16007_v8 = vld [vmem:[#allocation35_spill] sm:$0xff] }
 0x94c   : > { %v4253_v61 = vadd.f32 %v4237_v63, %v4093_v22 }
 0x94e   : > { %v4219_v52 = vpop.permute.xlu1 %4218  ;;  %8790 = vmatprep.mubr.msk.f32.mxu1 %vm2060_vm14, %v4253_v61 }
 0x94f   : > { %v4239_v19 = vsel %vm4159_vm3, %v4219_v52, 0.0  ;;  %8791 = vmatmul.mubr.msk.f32.gmra.mrb[36].mxu1 %vm2060_vm14, %v4254_v15 }
 0x950   : > { %v4255_v0 = vadd.f32 %v4239_v19, %v4095_v25 }
 0x952   : > { %8793 = vmatprep.mubr.msk.f32.mxu1 %vm2060_vm14, %v4255_v0 }
 0x953   : > { %8794 = vmatmul.mubr.msk.f32.gmra.mrb[38].mxu1 %vm2060_vm14, %v4256_v46 }
 0xa0a   : > { %v8774_v44 = vpop.f32.mrb[24].mxu1 }
 0xa0b   : > { %v4451_v4 = vmul.f32 %v8774_v44, %v15992_v50  ;;  %v4371_v10 = vpop.f32.mrb[25].mxu1 }
 0xa0c   : > { %v4450_v49 = vmul.f32 %v4371_v10, %v15993_v2  ;;  %v16012_v2 = vmov 10  }
 0xa0d   : > { %4468 = vadd.xlane.f32.xlu0 %v4451_v4 }
 0xa0e   : > { %4466 = vadd.xlane.f32.xlu1 %v4450_v49  ;;  %v8777_v62 = vpop.f32.mrb[26].mxu1 }
 0xa0f   : > { %v4453_v56 = vmul.f32 %v8777_v62, %v15994_v35  ;;  %v4381_v55 = vpop.f32.mrb[27].mxu1 }
 0xa10   : > { %v4452_v34 = vmul.f32 %v4381_v55, %v15995_v5 }
 0xa12   : > { %4470 = vadd.xlane.f32.xlu0 %v4452_v34  ;;  %v8780_v27 = vpop.f32.mrb[28].mxu1 }
 0xa13   : > { %v4455_v40 = vmul.f32 %v8780_v27, %v15996_v13  ;;  %v4391_v3 = vpop.f32.mrb[29].mxu1 }
 0xa14   : > { %v4454_v33 = vmul.f32 %v4391_v3, %v15997_v20 }
 0xa16   : > { %4472 = vadd.xlane.f32.xlu0 %v4453_v56  ;;  %4474 = vadd.xlane.f32.xlu1 %v4454_v33  ;;  %v8783_v60 = vpop.f32.mrb[30].mxu1 }
 0xa17   : > { %v4457_v41 = vmul.f32 %v8783_v60, %v15998_v11  ;;  %v4401_v14 = vpop.f32.mrb[31].mxu1  ;;  %v15357_v11 = vmov 11  }
 0xa18   : > { %v4456_v9 = vmul.f32 %v4401_v14, %v15999_v32 }
 0xa1a   : > { %4476 = vadd.xlane.f32.xlu0 %v4455_v40  ;;  %4478 = vadd.xlane.f32.xlu1 %v4456_v9  ;;  %v8786_v48 = vpop.f32.mrb[32].mxu1 }
 0xa1b   : > { %v4459_v53 = vmul.f32 %v8786_v48, %v16000_v38  ;;  %v4411_v29 = vpop.f32.mrb[33].mxu1 }
 0xa1c   : > { %v4458_v24 = vmul.f32 %v4411_v29, %v16001_v7 }
 0xa1e   : > { %4480 = vadd.xlane.f32.xlu0 %v4457_v41  ;;  %4482 = vadd.xlane.f32.xlu1 %v4458_v24  ;;  %v8789_v54 = vpop.f32.mrb[34].mxu1 }
 0xa1f   : > { %v4461_v31 = vmul.f32 %v8789_v54, %v16002_v1  ;;  %v4421_v17 = vpop.f32.mrb[35].mxu1 }
 0xa20   : > { %v4460_v57 = vmul.f32 %v4421_v17, %v16003_v58 }
 0xa22   : > { %4484 = vadd.xlane.f32.xlu0 %v4459_v53  ;;  %4486 = vadd.xlane.f32.xlu1 %v4460_v57  ;;  %v8792_v37 = vpop.f32.mrb[36].mxu1 }
 0xa23   : > { %v4463_v47 = vmul.f32 %v8792_v37, %v16004_v16  ;;  %v4431_v22 = vpop.f32.mrb[37].mxu1 }
 0xa24   : > { %v4462_v30 = vmul.f32 %v4431_v22, %v16005_v6 }
 0xa26   : > { %4488 = vadd.xlane.f32.xlu0 %v4461_v31  ;;  %4490 = vadd.xlane.f32.xlu1 %v4462_v30  ;;  %v8795_v39 = vpop.f32.mrb[38].mxu1 }
 0xa27   : > { %v4465_v45 = vmul.f32 %v8795_v39, %v16006_v12  ;;  %v4441_v28 = vpop.f32.mrb[39].mxu1 }
 0xa28   : > { %v4464_v51 = vmul.f32 %v4441_v28, %v16007_v8 }
 0xa2a   : > { %4492 = vadd.xlane.f32.xlu0 %v4463_v47  ;;  %4494 = vadd.xlane.f32.xlu1 %v4464_v51 }
 0xa2e   : > { %4496 = vadd.xlane.f32.xlu0 %v4465_v45 }
 0xa9a   : > { %v4469_v42 = vpop.xlane.xlu0 %4468 }
 0xa9b   : > { %v4499_v18 = vsub.f32 0.0, %v4469_v42  ;;  %v4467_v63 = vpop.xlane.xlu1 %4466 }
 0xa9c   : > { %v4498_v61 = vsub.f32 0.0, %v4467_v63 }
 0xa9d   : > { %v8416_v15 = vclamps-f32 %v4499_v18, 10.0 }
 0xa9e   : > { %v8415_v43 = vclamps-f32 %v4498_v61, 10.0 }
 0xa9f   : > { %v4547_v25 = vsub.f32 0.0, %v8416_v15  ;;  %v4471_v36 = vpop.xlane.xlu0 %4470 }
 0xaa0   : > { %v4546_v52 = vsub.f32 0.0, %v8415_v43  ;;  %v4500_v19 = vsub.f32 0.0, %v4471_v36 }
 0xaa1   : > { %v4564_v0 = vmul.f32 1.442695, %v4547_v25 }
 0xaa2   : > { %v4562_v46 = vmul.f32 1.442695, %v4546_v52  ;;  %v8417_v44 = vclamps-f32 %v4500_v19, 10.0 }
 0xaa3   : > { %9261 = vpow2.f32 %v4564_v0  ;;  %v4475_v4 = vpop.xlane.xlu1 %4474  ;;  %v4473_v10 = vpop.xlane.xlu0 %4472 }
 0xaa4   : > { %9263 = vpow2.f32 %v4562_v46  ;;  %v4548_v49 = vsub.f32 0.0, %v8417_v44  ;;  %v4502_v62 = vsub.f32 0.0, %v4475_v4  ;;  %v4501_v56 = vsub.f32 0.0, %v4473_v10 }
 0xaa6   : > { %v4566_v55 = vmul.f32 1.442695, %v4548_v49  ;;  %v8419_v34 = vclamps-f32 %v4502_v62, 10.0  ;;  %v8418_v27 = vclamps-f32 %v4501_v56, 10.0 }
 0xaa7   : > { %v4479_v40 = vpop.xlane.xlu1 %4478  ;;  %v4477_v3 = vpop.xlane.xlu0 %4476 }
 0xaa8   : > { %9265 = vpow2.f32 %v4566_v55  ;;  %v4550_v33 = vsub.f32 0.0, %v8419_v34  ;;  %v4549_v60 = vsub.f32 0.0, %v8418_v27  ;;  %v4504_v41 = vsub.f32 0.0, %v4479_v40 }
 0xaa9   : > { %v4503_v14 = vsub.f32 0.0, %v4477_v3 }
 0xaaa   : > { %v4570_v9 = vmul.f32 1.442695, %v4550_v33  ;;  %v4568_v48 = vmul.f32 1.442695, %v4549_v60  ;;  %v8421_v53 = vclamps-f32 %v4504_v41, 10.0 }
 0xaab   : > { %v8420_v29 = vclamps-f32 %v4503_v14, 10.0  ;;  %v4483_v24 = vpop.xlane.xlu1 %4482  ;;  %v4481_v54 = vpop.xlane.xlu0 %4480 }
 0xaac   : > { %9267 = vpow2.f32 %v4570_v9  ;;  %v4552_v31 = vsub.f32 0.0, %v8421_v53  ;;  %v4506_v17 = vsub.f32 0.0, %v4483_v24  ;;  %v4505_v57 = vsub.f32 0.0, %v4481_v54 }
 0xaad   : > { %v9262_v37 = vpop.eup %9261  ;;  %9269 = vpow2.f32 %v4568_v48  ;;  %v4551_v47 = vsub.f32 0.0, %v8420_v29 }
 0xaae   : > { %v9264_v22 = vpop.eup %9263  ;;  %v4595_v30 = vadd.f32 1.0, %v9262_v37  ;;  %v4574_v39 = vmul.f32 1.442695, %v4552_v31  ;;  %v8423_v45 = vclamps-f32 %v4506_v17, 10.0  ;;  %v8422_v28 = vclamps-f32 %v4505_v57, 10.0 }
 0xaaf   : > { %v4594_v51 = vadd.f32 1.0, %v9264_v22  ;;  %v4572_v26 = vmul.f32 1.442695, %v4551_v47  ;;  %v4487_v42 = vpop.xlane.xlu1 %4486  ;;  %v4485_v18 = vpop.xlane.xlu0 %4484 }
 0xab0   : > { %9271 = vlog2.f32 %v4595_v30  ;;  %v4554_v63 = vsub.f32 0.0, %v8423_v45  ;;  %v4553_v61 = vsub.f32 0.0, %v8422_v28  ;;  %v4508_v15 = vsub.f32 0.0, %v4487_v42 }
 0xab1   : > { %9273 = vlog2.f32 %v4594_v51  ;;  %v4507_v43 = vsub.f32 0.0, %v4485_v18 }
 0xab2   : > { %v9266_v25 = vpop.eup %9265  ;;  %9275 = vpow2.f32 %v4574_v39  ;;  %v4578_v36 = vmul.f32 1.442695, %v4554_v63  ;;  %v4576_v52 = vmul.f32 1.442695, %v4553_v61  ;;  %v8425_v19 = vclamps-f32 %v4508_v15, 10.0 }
 0xab3   : > { %v4596_v0 = vadd.f32 1.0, %v9266_v25  ;;  %9277 = vpow2.f32 %v4572_v26  ;;  %v8424_v46 = vclamps-f32 %v4507_v43, 10.0  ;;  %v4491_v44 = vpop.xlane.xlu1 %4490  ;;  %v4489_v4 = vpop.xlane.xlu0 %4488  ;;  %v9565_v43 = vld [vmem:[%s11607_s24 + $0x8] sm:$0xff] }
 0xab4   : > { %9279 = vpow2.f32 %v4578_v36  ;;  %v4556_v10 = vsub.f32 0.0, %v8425_v19  ;;  %v4510_v49 = vsub.f32 0.0, %v4491_v44  ;;  %v4509_v62 = vsub.f32 0.0, %v4489_v4  ;;  %v9566_v36 = vld [vmem:[%s11607_s24] sm:$0xff] }
 0xab5   : > { %9281 = vlog2.f32 %v4596_v0  ;;  %v4555_v56 = vsub.f32 0.0, %v8424_v46 }
 0xab6   : > { %v9268_v55 = vpop.eup %9267  ;;  %9283 = vpow2.f32 %v4576_v52  ;;  %v4582_v34 = vmul.f32 1.442695, %v4556_v10  ;;  %v8427_v27 = vclamps-f32 %v4510_v49, 10.0  ;;  %v8426_v40 = vclamps-f32 %v4509_v62, 10.0 }
 0xab7   : > { %v9270_v3 = vpop.eup %9269  ;;  %v4598_v33 = vadd.f32 1.0, %v9268_v55  ;;  %v4580_v60 = vmul.f32 1.442695, %v4555_v56  ;;  %v4495_v41 = vpop.xlane.xlu1 %4494 }
 0xab8   : > { %v4493_v14 = vpop.xlane.xlu0 %4492  ;;  %v4597_v9 = vadd.f32 1.0, %v9270_v3  ;;  %9285 = vpow2.f32 %v4582_v34  ;;  %v4558_v48 = vsub.f32 0.0, %v8427_v27  ;;  %v4557_v53 = vsub.f32 0.0, %v8426_v40  ;;  %v9567_v34 = vld [vmem:[%s11607_s24 + $0x10] sm:$0xff] }
 0xab9   : > { %9287 = vlog2.f32 %v4598_v33  ;;  %v4512_v29 = vsub.f32 0.0, %v4495_v41  ;;  %v4511_v24 = vsub.f32 0.0, %v4493_v14 }
 0xaba   : > { %v9272_v54 = vpop.eup %9271  ;;  %9289 = vlog2.f32 %v4597_v9  ;;  %v4586_v31 = vmul.f32 1.442695, %v4558_v48  ;;  %v4584_v17 = vmul.f32 1.442695, %v4557_v53 }
 0xabb   : > { %v9274_v57 = vpop.eup %9273  ;;  %9291 = vpow2.f32 %v4580_v60  ;;  %v8429_v37 = vclamps-f32 %v4512_v29, 10.0  ;;  %v8428_v47 = vclamps-f32 %v4511_v24, 10.0  ;;  %v4613_v30 = vmul.f32 0.6931472, %v9272_v54  ;;  %v9568_v29 = vld [vmem:[%s11607_s24 + $0x18] sm:$0xff] }
 0xabc   : > { %v4497_v22 = vpop.xlane.xlu0 %4496  ;;  %v9276_v39 = vpop.eup %9275  ;;  %9293 = vpow2.f32 %v4586_v31  ;;  %v4611_v28 = vmul.f32 0.6931472, %v9274_v57 }
 0xabd   : > { %v4513_v45 = vsub.f32 0.0, %v4497_v22  ;;  %v9278_v51 = vpop.eup %9277  ;;  %v4600_v26 = vadd.f32 1.0, %v9276_v39  ;;  %9295 = vpow2.f32 %v4584_v17  ;;  %v4560_v42 = vsub.f32 0.0, %v8429_v37 }
 0xabe   : > { %v4559_v18 = vsub.f32 0.0, %v8428_v47  ;;  %v9280_v63 = vpop.eup %9279  ;;  %v4599_v61 = vadd.f32 1.0, %v9278_v51  ;;  %v4643_v25 = vmul.f32 %v9565_v43, %v4613_v30  ;;  %v4642_v52 = vmul.f32 %v9566_v36, %v4611_v28  ;;  %v9569_v47 = vld [vmem:[%s11607_s24 + $0x20] sm:$0xff]  ;;  %v9571_v43 = vld [vmem:[%s11607_s24 + $0x30] sm:$0xff] }
 0xabf   : > { %v8430_v15 = vclamps-f32 %v4513_v45, 10.0  ;;  %v9282_v19 = vpop.eup %9281  ;;  %9297 = vlog2.f32 %v4600_v26  ;;  %v4602_v0 = vadd.f32 1.0, %v9280_v63  ;;  %v4590_v46 = vmul.f32 1.442695, %v4560_v42  ;;  %v9570_v26 = vld [vmem:[%s11607_s24 + $0x28] sm:$0xff] }
 0xac0   : > { %v9284_v44 = vpop.eup %9283  ;;  %9299 = vlog2.f32 %v4599_v61  ;;  %v4588_v4 = vmul.f32 1.442695, %v4559_v18  ;;  %4676 = vrot.lane.b32.xlu0 %v4643_v25, %s9799_s25  ;;  %4674 = vrot.lane.b32.xlu1 %v4642_v52, %s9799_s25  ;;  %v4615_v49 = vmul.f32 0.6931472, %v9282_v19  ;;  %v9572_v19 = vld [vmem:[%s11607_s24 + $0x38] sm:$0xff] }
 0xac1   : > { %v4561_v10 = vsub.f32 0.0, %v8430_v15  ;;  %9301 = vlog2.f32 %v4602_v0  ;;  %v4601_v62 = vadd.f32 1.0, %v9284_v44 }
 0xac2   : > { %v9286_v56 = vpop.eup %9285  ;;  %9303 = vpow2.f32 %v4590_v46  ;;  %v4644_v27 = vmul.f32 %v9567_v34, %v4615_v49  ;;  %v9574_v34 = vld [vmem:[%s11607_s24 + $0x48] sm:$0xff] }
 0xac3   : > { %v4592_v55 = vmul.f32 1.442695, %v4561_v10  ;;  %v9288_v40 = vpop.eup %9287  ;;  %9305 = vlog2.f32 %v4601_v62  ;;  %v4604_v3 = vadd.f32 1.0, %v9286_v56  ;;  %v9573_v10 = vld [vmem:[%s11607_s24 + $0x40] sm:$0xff] }
 0xac4   : > { %v9290_v33 = vpop.eup %9289  ;;  %9307 = vpow2.f32 %v4588_v4  ;;  %4678 = vrot.lane.b32.xlu1 %v4644_v27, %s9799_s25  ;;  %v4619_v54 = vmul.f32 0.6931472, %v9288_v40 }
 0xac5   : > { %v9292_v60 = vpop.eup %9291  ;;  %9309 = vlog2.f32 %v4604_v3  ;;  %v4617_v41 = vmul.f32 0.6931472, %v9290_v33  ;;  %v9575_v3 = vld [vmem:[%s11607_s24 + $0x50] sm:$0xff] }
 0xac6   : > { %v9294_v14 = vpop.eup %9293  ;;  %v4603_v9 = vadd.f32 1.0, %v9292_v60  ;;  %9311 = vpow2.f32 %v4592_v55  ;;  %v4646_v22 = vmul.f32 %v9569_v47, %v4619_v54  ;;  %v9576_v60 = vld [vmem:[%s11607_s24 + $0x58] sm:$0xff]  ;;  %v9579_v47 = vld [vmem:[%s11607_s24 + $0x70] sm:$0xff] }
 0xac7   : > { %v9296_v48 = vpop.eup %9295  ;;  %v4606_v53 = vadd.f32 1.0, %v9294_v14  ;;  %v4645_v24 = vmul.f32 %v9568_v29, %v4617_v41 }
 0xac8   : > { %9313 = vlog2.f32 %v4603_v9  ;;  %v4605_v31 = vadd.f32 1.0, %v9296_v48 }
 0xac9   : > { %v9298_v17 = vpop.eup %9297  ;;  %9315 = vlog2.f32 %v4606_v53  ;;  %4680 = vrot.lane.b32.xlu1 %v4645_v24, %s9799_s25  ;;  %v9577_v53 = vld [vmem:[%s11607_s24 + $0x60] sm:$0xff] }
 0xaca   : > { %v9300_v57 = vpop.eup %9299  ;;  %9317 = vlog2.f32 %v4605_v31  ;;  %v4623_v39 = vmul.f32 0.6931472, %v9298_v17  ;;  %v9578_v17 = vld [vmem:[%s11607_s24 + $0x68] sm:$0xff] }
 0xacb   : > { %v9302_v37 = vpop.eup %9301  ;;  %v4621_v30 = vmul.f32 0.6931472, %v9300_v57 }
 0xacc   : > { %v9304_v45 = vpop.eup %9303  ;;  %v4648_v25 = vmul.f32 %v9571_v43, %v4623_v39  ;;  %v4627_v36 = vmul.f32 0.6931472, %v9302_v37  ;;  %v13153_v43 = vld [vmem:[%s11482_s29 + $0x50] sm:$0xff] }
 0xacd   : > { %v9306_v28 = vpop.eup %9305  ;;  %v4608_v51 = vadd.f32 1.0, %v9304_v45  ;;  %4682 = vrot.lane.b32.xlu1 %v4646_v22, %s9799_s25  ;;  %v4647_v42 = vmul.f32 %v9570_v26, %v4621_v30  ;;  %v9580_v30 = vld [vmem:[%s11607_s24 + $0x78] sm:$0xff]  ;;  %v13117_v45 = vld [vmem:[%s11482_s29] sm:$0xff] }
 0xace   : > { %v9308_v18 = vpop.eup %9307  ;;  %v4625_v63 = vmul.f32 0.6931472, %v9306_v28  ;;  %v4650_v49 = vmul.f32 %v9573_v10, %v4627_v36  ;;  %v13121_v28 = vld [vmem:[%s11482_s29 + $0x8] sm:$0xff]  ;;  %v13129_v26 = vld [vmem:[%s11482_s29 + $0x18] sm:$0xff]  ;;  %v13161_v36 = vld [vmem:[%s11482_s29 + $0x60] sm:$0xff] }
 0xacf   : > { %v9310_v61 = vpop.eup %9309  ;;  %9319 = vlog2.f32 %v4608_v51  ;;  %v4607_v15 = vadd.f32 1.0, %v9308_v18  ;;  %4684 = vrot.lane.b32.xlu0 %v4647_v42, %s9799_s25  ;;  %v13125_v51 = vld [vmem:[%s11482_s29 + $0x10] sm:$0xff]  ;;  %v13133_v42 = vld [vmem:[%s11482_s29 + $0x20] sm:$0xff]  ;;  %v13137_v18 = vld [vmem:[%s11482_s29 + $0x28] sm:$0xff] }
 0xad0   : > { %v9312_v52 = vpop.eup %9311  ;;  %v4649_v0 = vmul.f32 %v9572_v19, %v4625_v63  ;;  %v4631_v56 = vmul.f32 0.6931472, %v9310_v61  ;;  %v13141_v63 = vld [vmem:[%s11482_s29 + $0x30] sm:$0xff]  ;;  %v13145_v61 = vld [vmem:[%s11482_s29 + $0x38] sm:$0xff]  ;;  %v13189_v10 = vld [vmem:[%s11535_s17 + $0x48] sm:$0xff] }
 0xad1   : > { %9321 = vlog2.f32 %v4607_v15  ;;  %v4609_v46 = vadd.f32 1.0, %v9312_v52  ;;  %4686 = vrot.lane.b32.xlu1 %v4648_v25, %s9799_s25  ;;  %v13149_v15 = vld [vmem:[%s11482_s29 + $0x48] sm:$0xff]  ;;  %v13157_v25 = vld [vmem:[%s11482_s29 + $0x58] sm:$0xff] }
 0xad2   : > { %v9314_v44 = vpop.eup %9313  ;;  %v4652_v33 = vmul.f32 %v9575_v3, %v4631_v56  ;;  %v13165_v52 = vld [vmem:[%s11482_s29 + $0x68] sm:$0xff]  ;;  %v13169_v19 = vld [vmem:[%s11482_s29 + $0x78] sm:$0xff] }
 0xad3   : > { %v9316_v4 = vpop.eup %9315  ;;  %9323 = vlog2.f32 %v4609_v46  ;;  %4688 = vrot.lane.b32.xlu0 %v4649_v0, %s9799_s25  ;;  %v4629_v62 = vmul.f32 0.6931472, %v9314_v44  ;;  %v13173_v0 = vld [vmem:[%s11535_s17 + $0x8] sm:$0xff]  ;;  %v13177_v46 = vld [vmem:[%s11535_s17 + $0x18] sm:$0xff] }
 0xad4   : > { %v9318_v55 = vpop.eup %9317  ;;  %v4635_v14 = vmul.f32 0.6931472, %v9316_v4  ;;  %v13181_v44 = vld [vmem:[%s11535_s17 + $0x28] sm:$0xff]  ;;  %v13185_v4 = vld [vmem:[%s11535_s17 + $0x38] sm:$0xff] }
 0xad5   : > { %4690 = vrot.lane.b32.xlu1 %v4650_v49, %s9799_s25  ;;  %v4651_v27 = vmul.f32 %v9574_v34, %v4629_v62  ;;  %v4633_v40 = vmul.f32 0.6931472, %v9318_v55  ;;  %v13193_v62 = vld [vmem:[%s11535_s17 + $0x58] sm:$0xff] }
 0xad6   : > { %v4654_v29 = vmul.f32 %v9577_v53, %v4635_v14  ;;  %v13205_v14 = vld [vmem:[%s11535_s17 + $0x78] sm:$0xff] }
 0xad7   : > { %4692 = vrot.lane.b32.xlu0 %v4651_v27, %s9799_s25  ;;  %v4653_v41 = vmul.f32 %v9576_v60, %v4633_v40  ;;  %v13199_v40 = vld [vmem:[%s11535_s17 + $0x68] sm:$0xff] }
 0xad9   : > { %v9320_v9 = vpop.eup %9319  ;;  %4694 = vrot.lane.b32.xlu1 %v4652_v33, %s9799_s25 }
 0xada   : > { %v4639_v24 = vmul.f32 0.6931472, %v9320_v9 }
 0xadb   : > { %v9322_v48 = vpop.eup %9321  ;;  %4696 = vrot.lane.b32.xlu0 %v4653_v41, %s9799_s25 }
 0xadc   : > { %v4637_v54 = vmul.f32 0.6931472, %v9322_v48  ;;  %v4656_v22 = vmul.f32 %v9579_v47, %v4639_v24  ;;  %v9800_v24 = vmov 9  }
 0xadd   : > { %v9324_v31 = vpop.eup %9323  ;;  %4698 = vrot.lane.b32.xlu1 %v4654_v29, %s9799_s25 }
 0xade   : > { %v4655_v57 = vmul.f32 %v9578_v17, %v4637_v54  ;;  %v4641_v37 = vmul.f32 0.6931472, %v9324_v31 }
 0xae0   : > { %4700 = vrot.lane.b32.xlu0 %v4655_v57, %s9799_s25  ;;  %v4657_v39 = vmul.f32 %v9580_v30, %v4641_v37 }
 0xae1   : > { %4702 = vrot.lane.b32.xlu1 %v4656_v22, %s9799_s25 }
 0xae4   : > { %4704 = vrot.lane.b32.xlu0 %v4657_v39, %s9799_s25 }
 0xae8   : > { %4764 = vperm.xlu0 %9051, %v13117_v45  }
 0xaec   : > { %4767 = vperm.xlu0 %9051, %v13121_v28  }
 0xaf0   : > { %4770 = vperm.xlu0 %9051, %v13125_v51  }
 0xaf4   : > { %4773 = vperm.xlu0 %9051, %v13129_v26  }
 0xaf8   : > { %4776 = vperm.xlu0 %9051, %v13133_v42  }
 0xafc   : > { %4779 = vperm.xlu0 %9051, %v13137_v18  }
 0xb00   : > { %4782 = vperm.xlu0 %9051, %v13141_v63  }
 0xb04   : > { %4785 = vperm.xlu0 %9051, %v13145_v61  }
 0xb08   : > { %4791 = vperm.xlu0 %9051, %v13149_v15  }
 0xb0c   : > { %4794 = vperm.xlu0 %9051, %v13153_v43  }
 0xb10   : > { %4797 = vperm.xlu0 %9051, %v13157_v25  }
 0xb14   : > { %4800 = vperm.xlu0 %9051, %v13161_v36  }
 0xb18   : > { %4803 = vperm.xlu0 %9051, %v13165_v52  }
 0xb1c   : > { %4809 = vperm.xlu0 %9051, %v13169_v19  }
 0xb20   : > { %4832 = vperm.xlu0 %9051, %v13173_v0  }
 0xb24   : > { %4840 = vperm.xlu0 %9051, %v13177_v46  }
 0xb28   : > { %4848 = vperm.xlu0 %9051, %v13181_v44  }
 0xb2c   : > { %4856 = vperm.xlu0 %9051, %v13185_v4  }
 0xb30   : > { %4864 = vperm.xlu0 %9051, %v13189_v10  }
 0xb32   : > { %v4675_v49 = vpop.permute.xlu1 %4674  ;;  %v4677_v56 = vpop.permute.xlu0 %4676 }
 0xb33   : > { %v4723_v34 = vsel %vm2446_vm6, %v4677_v56, 0.0  ;;  %v4722_v27 = vsel %vm2446_vm6, %v4675_v49, 0.0 }
 0xb34   : > { %4872 = vperm.xlu0 %9051, %v13193_v62   ;;  %v4724_v33 = vadd.f32 %v4723_v34, %v4722_v27 }
 0xb36   : > { %v4679_v55 = vpop.permute.xlu1 %4678 }
 0xb37   : > { %v4725_v3 = vsel %vm2446_vm6, %v4679_v55, 0.0 }
 0xb38   : > { %4880 = vperm.xlu0 %9051, %v13199_v40   ;;  %v4726_v9 = vadd.f32 %v4725_v3, %v4724_v33 }
 0xb3b   : > { %v4681_v60 = vpop.permute.xlu1 %4680 }
 0xb3c   : > { %v4727_v41 = vsel %vm2446_vm6, %v4681_v60, 0.0  ;;  %4888 = vperm.xlu0 %9051, %v13205_v14  }
 0xb3d   : > { %v4728_v48 = vadd.f32 %v4727_v41, %v4726_v9 }
 0xb3f   : > { %v4683_v53 = vpop.permute.xlu1 %4682 }
 0xb40   : > { %v4729_v29 = vsel %vm2446_vm6, %v4683_v53, 0.0  ;;  %9054 = vset.pattern.permute.xlu0 %v9800_v24  ;;  %v13220_v53 = vld [vmem:[%s11482_s29 + $0x40] sm:$0xff] }
 0xb41   : > { %v4730_v54 = vadd.f32 %v4729_v29, %v4728_v48  ;;  %v4685_v31 = vpop.permute.xlu0 %4684  ;;  %4911 = vperm.xlu0 %9054, %v13121_v28  }
 0xb42   : > { %v4731_v17 = vsel %vm2446_vm6, %v4685_v31, 0.0 }
 0xb43   : > { %v4732_v57 = vadd.f32 %v4731_v17, %v4730_v54  ;;  %v4687_v37 = vpop.permute.xlu1 %4686 }
 0xb44   : > { %v4733_v47 = vsel %vm2446_vm6, %v4687_v37, 0.0 }
 0xb45   : > { %v4734_v22 = vadd.f32 %v4733_v47, %v4732_v57  ;;  %v4689_v30 = vpop.permute.xlu0 %4688  ;;  %4920 = vperm.xlu0 %9054, %v13133_v42  }
 0xb46   : > { %v4735_v39 = vsel %vm2446_vm6, %v4689_v30, 0.0 }
 0xb47   : > { %v4736_v49 = vadd.f32 %v4735_v39, %v4734_v22  ;;  %v4691_v56 = vpop.permute.xlu1 %4690 }
 0xb48   : > { %v4737_v55 = vsel %vm2446_vm6, %v4691_v56, 0.0 }
 0xb49   : > { %v4738_v34 = vadd.f32 %v4737_v55, %v4736_v49  ;;  %v4693_v27 = vpop.permute.xlu0 %4692  ;;  %4926 = vperm.xlu0 %9054, %v13141_v63  }
 0xb4a   : > { %v4739_v3 = vsel %vm2446_vm6, %v4693_v27, 0.0  ;;  %v13231_v27 = vld [vmem:[%s11482_s29 + $0x70] sm:$0xff] }
 0xb4b   : > { %v4740_v33 = vadd.f32 %v4739_v3, %v4738_v34  ;;  %v4695_v60 = vpop.permute.xlu1 %4694  ;;  %v13235_v3 = vld [vmem:[%s11535_s17] sm:$0xff] }
 0xb4c   : > { %v4741_v41 = vsel %vm2446_vm6, %v4695_v60, 0.0  ;;  %v13243_v60 = vld [vmem:[%s11535_s17 + $0x20] sm:$0xff] }
 0xb4d   : > { %v4742_v9 = vadd.f32 %v4741_v41, %v4740_v33  ;;  %v4697_v48 = vpop.permute.xlu0 %4696  ;;  %4932 = vperm.xlu0 %9054, %v13220_v53   ;;  %v13239_v33 = vld [vmem:[%s11535_s17 + $0x10] sm:$0xff] }
 0xb4e   : > { %v4743_v29 = vsel %vm2446_vm6, %v4697_v48, 0.0 }
 0xb4f   : > { %v4744_v54 = vadd.f32 %v4743_v29, %v4742_v9  ;;  %v4699_v31 = vpop.permute.xlu1 %4698  ;;  %v13249_v9 = vld [vmem:[%s11535_s17 + $0x30] sm:$0xff]  ;;  %v13256_v29 = vld [vmem:[%s11535_s17 + $0x40] sm:$0xff] }
 0xb50   : > { %v4745_v17 = vsel %vm2446_vm6, %v4699_v31, 0.0  ;;  %v13263_v31 = vld [vmem:[%s11535_s17 + $0x50] sm:$0xff] }
 0xb51   : > { %v4746_v57 = vadd.f32 %v4745_v17, %v4744_v54  ;;  %4938 = vperm.xlu0 %9054, %v13153_v43  }
 0xb52   : > { %v4701_v37 = vpop.permute.xlu0 %4700 }
 0xb53   : > { %v4747_v47 = vsel %vm2446_vm6, %v4701_v37, 0.0  ;;  %v4703_v22 = vpop.permute.xlu1 %4702 }
 0xb54   : > { %v4748_v30 = vadd.f32 %v4747_v47, %v4746_v57  ;;  %v4749_v39 = vsel %vm2446_vm6, %v4703_v22, 0.0  ;;  %v13270_v57 = vld [vmem:[%s11535_s17 + $0x60] sm:$0xff]  ;;  %v13277_v47 = vld [vmem:[%s11535_s17 + $0x70] sm:$0xff] }
 0xb55   : > { %4944 = vperm.xlu0 %9054, %v13161_v36  }
 0xb56   : > { %v4750_v49 = vadd.f32 %v4749_v39, %v4748_v30  ;;  %v4705_v56 = vpop.permute.xlu0 %4704  ;;  %v15356_v30 = vmov 10  }
 0xb57   : > { %v4751_v55 = vsel %vm2446_vm6, %v4705_v56, 0.0 }
 0xb58   : > { %v4752_v34 = vadd.f32 %v4751_v55, %v4750_v49 }
 0xb59   : > { %4950 = vperm.xlu0 %9054, %v13231_v27  }
 0xb5a   : > { %4753 = vadd.xlane.f32.xlu1 %v4752_v34 }
 0xb5d   : > { %4972 = vperm.xlu0 %9054, %v13235_v3  }
 0xb61   : > { %4980 = vperm.xlu0 %9054, %v13239_v33  }
 0xb65   : > { %4988 = vperm.xlu0 %9054, %v13243_v60  }
 0xb67   : > { %v13246_v41 = vpop.permute.xlu0 %4764 }
 0xb68   : > { %vm4811_vm1 = vcmp.eq.s32.totalorder %v13246_v41, %v10812_v59 }
 0xb69   : > { %4996 = vperm.xlu0 %9054, %v13249_v9  }
 0xb6b   : > { %4788 = vperm.xlu1 %9052, %v13220_v53   ;;  %v13253_v48 = vpop.permute.xlu0 %4767 }
 0xb6c   : > { %vm4812_vm11 = vcmp.eq.s32.totalorder %v13253_v48, %v10812_v59 }
 0xb6d   : > { %5004 = vperm.xlu0 %9054, %v13256_v29  }
 0xb6f   : > { %4806 = vperm.xlu1 %9052, %v13231_v27   ;;  %v13260_v54 = vpop.permute.xlu0 %4770 }
 0xb70   : > { %vm4813_vm12 = vcmp.eq.s32.totalorder %v13260_v54, %v10812_v59 }
 0xb71   : > { %5012 = vperm.xlu0 %9054, %v13263_v31  }
 0xb73   : > { %4828 = vperm.xlu1 %9052, %v13235_v3   ;;  %v13267_v17 = vpop.permute.xlu0 %4773 }
 0xb74   : > { %vm4814_vm2 = vcmp.eq.s32.totalorder %v13267_v17, %v10812_v59 }
 0xb75   : > { %5020 = vperm.xlu0 %9054, %v13270_v57  }
 0xb77   : > { %4836 = vperm.xlu1 %9052, %v13239_v33   ;;  %v13274_v37 = vpop.permute.xlu0 %4776 }
 0xb78   : > { %vm4815_vm9 = vcmp.eq.s32.totalorder %v13274_v37, %v10812_v59 }
 0xb79   : > { %5028 = vperm.xlu0 %9054, %v13277_v47  }
 0xb7b   : > { %4844 = vperm.xlu1 %9052, %v13243_v60   ;;  %v13281_v22 = vpop.permute.xlu0 %4779 }
 0xb7c   : > { %vm4816_vm13 = vcmp.eq.s32.totalorder %v13281_v22, %v10812_v59 }
 0xb7d   : > { %9055 = vset.pattern.permute.xlu0 %v15356_v30 }
 0xb7e   : > { %5068 = vperm.xlu0 %9055, %v13117_v45  }
 0xb7f   : > { %4852 = vperm.xlu1 %9052, %v13249_v9   ;;  %v13286_v39 = vpop.permute.xlu0 %4782 }
 0xb80   : > { %vm4817_vm10 = vcmp.eq.s32.totalorder %v13286_v39, %v10812_v59 }
 0xb82   : > { %5077 = vperm.xlu0 %9055, %v13129_v26  }
 0xb83   : > { %4860 = vperm.xlu1 %9052, %v13256_v29   ;;  %v13290_v49 = vpop.permute.xlu0 %4785 }
 0xb84   : > { %vm4818_vm5 = vcmp.eq.s32.totalorder %v13290_v49, %v10812_v59 }
 0xb86   : > { %5083 = vperm.xlu0 %9055, %v13137_v18  }
 0xb87   : > { %4868 = vperm.xlu1 %9052, %v13263_v31   ;;  %v13294_v56 = vpop.permute.xlu0 %4791 }
 0xb88   : > { %vm4820_vm8 = vcmp.eq.s32.totalorder %v13294_v56, %v10812_v59 }
 0xb8a   : > { %5089 = vperm.xlu0 %9055, %v13145_v61  }
 0xb8b   : > { %4876 = vperm.xlu1 %9052, %v13270_v57   ;;  %v13298_v55 = vpop.permute.xlu0 %4794 }
 0xb8c   : > { %16008 = vst [vmem:[#allocation116_spill] sm:$0xff] %v13298_v55 }
 0xb8e   : > { %5095 = vperm.xlu0 %9055, %v13149_v15  }
 0xb8f   : > { %4884 = vperm.xlu1 %9052, %v13277_v47   ;;  %v13302_v34 = vpop.permute.xlu0 %4797 }
 0xb90   : > { %vm4822_vm7 = vcmp.eq.s32.totalorder %v13302_v34, %v10812_v59 }
 0xb92   : > { %5101 = vperm.xlu0 %9055, %v13157_v25  }
 0xb93   : > { %9053 = vset.pattern.permute.xlu1 %v9800_v24  ;;  %v13306_v30 = vpop.permute.xlu0 %4800 }
 0xb94   : > { %16009 = vst [vmem:[#allocation125_spill] sm:$0xff] %v13306_v30  ;;  %4908 = vperm.xlu1 %9053, %v13117_v45  }
 0xb96   : > { %5107 = vperm.xlu0 %9055, %v13165_v52  }
 0xb97   : > { %v13310_v8 = vpop.permute.xlu0 %4803 }
 0xb98   : > { %4914 = vperm.xlu1 %9053, %v13125_v51   ;;  %vm4824_vm3 = vcmp.eq.s32.totalorder %v13310_v8, %v10812_v59 }
 0xb9a   : > { %5113 = vperm.xlu0 %9055, %v13169_v19  }
 0xb9b   : > { %v13314_v12 = vpop.permute.xlu0 %4809 }
 0xb9c   : > { %16010 = vst [vmem:[#allocation130_spill] sm:$0xff] %v13314_v12  ;;  %4917 = vperm.xlu1 %9053, %v13129_v26  }
 0xb9e   : > { %5136 = vperm.xlu0 %9055, %v13173_v0  }
 0xb9f   : > { %v13318_v6 = vpop.permute.xlu0 %4832 }
 0xba0   : > { %4923 = vperm.xlu1 %9053, %v13137_v18   ;;  %v4892_v48 = vsel %vm4812_vm11, %v13318_v6, 0.0 }
 0xba2   : > { %5144 = vperm.xlu0 %9055, %v13177_v46  }
 0xba3   : > { %v13322_v24 = vpop.permute.xlu0 %4840 }
 0xba4   : > { %4929 = vperm.xlu1 %9053, %v13145_v61   ;;  %v4894_v17 = vsel %vm4814_vm2, %v13322_v24, 0.0 }
 0xba6   : > { %5152 = vperm.xlu0 %9055, %v13181_v44  }
 0xba7   : > { %v13326_v16 = vpop.permute.xlu0 %4848 }
 0xba8   : > { %4935 = vperm.xlu1 %9053, %v13149_v15   ;;  %v4896_v49 = vsel %vm4816_vm13, %v13326_v16, 0.0 }
 0xbaa   : > { %5160 = vperm.xlu0 %9055, %v13185_v4  }
 0xbab   : > { %v13330_v58 = vpop.permute.xlu0 %4856 }
 0xbac   : > { %4941 = vperm.xlu1 %9053, %v13157_v25  }
 0xbae   : > { %5168 = vperm.xlu0 %9055, %v13189_v10  }
 0xbaf   : > { %v13334_v1 = vpop.permute.xlu0 %4864 }
 0xbb0   : > { %4947 = vperm.xlu1 %9053, %v13165_v52   ;;  %v13621_v56 = vsel %vm4820_vm8, %v13334_v1, 0.0 }
 0xbb2   : > { %5176 = vperm.xlu0 %9055, %v13193_v62  }
 0xbb3   : > { %v13338_v7 = vpop.permute.xlu0 %4872 }
 0xbb4   : > { %4953 = vperm.xlu1 %9053, %v13169_v19   ;;  %v13624_v6 = vsel %vm4822_vm7, %v13338_v7, 0.0 }
 0xbb6   : > { %5184 = vperm.xlu0 %9055, %v13199_v40  }
 0xbb7   : > { %v13342_v38 = vpop.permute.xlu0 %4880 }
 0xbb8   : > { %4976 = vperm.xlu1 %9053, %v13173_v0  }
 0xbba   : > { %5192 = vperm.xlu0 %9055, %v13205_v14  }
 0xbbb   : > { %v13347_v32 = vpop.permute.xlu0 %4888 }
 0xbbc   : > { %4984 = vperm.xlu1 %9053, %v13177_v46   ;;  %16011 = vst [vmem:[#allocation5_spill] sm:$0xff] %v13347_v32 }
 0xbbe   : > { %9058 = vset.pattern.permute.xlu0 %v15357_v11 }
 0xbbf   : > { %5231 = vperm.xlu0 %9058, %v13121_v28  }
 0xbc0   : > { %4992 = vperm.xlu1 %9053, %v13181_v44   ;;  %v13352_v20 = vpop.permute.xlu0 %4911 }
 0xbc1   : > { %vm4956_vm11 = vcmp.eq.s32.totalorder %v13352_v20, %v10812_v59 }
 0xbc3   : > { %5240 = vperm.xlu0 %9058, %v13133_v42  }
 0xbc4   : > { %5000 = vperm.xlu1 %9053, %v13185_v4   ;;  %v13356_v13 = vpop.permute.xlu0 %4920 }
 0xbc7   : > { %5246 = vperm.xlu0 %9058, %v13141_v63  }
 0xbc8   : > { %5008 = vperm.xlu1 %9053, %v13189_v10   ;;  %v13360_v5 = vpop.permute.xlu0 %4926 }
 0xbcb   : > { %5252 = vperm.xlu0 %9058, %v13220_v53  }
 0xbcc   : > { %5016 = vperm.xlu1 %9053, %v13193_v62   ;;  %v13364_v11 = vpop.permute.xlu0 %4932 }
 0xbcf   : > { %5258 = vperm.xlu0 %9058, %v13153_v43  }
 0xbd0   : > { %5024 = vperm.xlu1 %9053, %v13199_v40   ;;  %v13368_v35 = vpop.permute.xlu0 %4938 }
 0xbd3   : > { %5264 = vperm.xlu0 %9058, %v13161_v36  }
 0xbd4   : > { %5032 = vperm.xlu1 %9053, %v13205_v14   ;;  %v13374_v50 = vpop.permute.xlu0 %4944 }
 0xbd5   : > { %16013 = vst [vmem:[#allocation160_spill] sm:$0xff] %v13374_v50 }
 0xbd7   : > { %5270 = vperm.xlu0 %9058, %v13231_v27  }
 0xbd8   : > { %9056 = vset.pattern.permute.xlu1 %v16012_v2  ;;  %v13379_v32 = vpop.permute.xlu0 %4950 }
 0xbd9   : > { %5071 = vperm.xlu1 %9056, %v13121_v28   ;;  %16014 = vst [vmem:[#allocation57_spill] sm:$0xff] %v13379_v32 }
 0xbdb   : > { %5292 = vperm.xlu0 %9058, %v13235_v3  }
 0xbdc   : > { %v13384_v12 = vpop.permute.xlu0 %4972 }
 0xbdd   : > { %5074 = vperm.xlu1 %9056, %v13125_v51  }
 0xbdf   : > { %5300 = vperm.xlu0 %9058, %v13239_v33  }
 0xbe0   : > { %v13389_v23 = vpop.permute.xlu0 %4980 }
 0xbe1   : > { %5080 = vperm.xlu1 %9056, %v13133_v42   ;;  %16015 = vst [vmem:[#allocation171_spill] sm:$0xff] %v13389_v23 }
 0xbe3   : > { %5308 = vperm.xlu0 %9058, %v13243_v60  }
 0xbe4   : > { %v13398_v50 = vpop.permute.xlu0 %4988 }
 0xbe5   : > { %5086 = vperm.xlu1 %9056, %v13141_v63  }
 0xbe7   : > { %v4754_v2 = vpop.xlane.xlu1 %4753  ;;  %5316 = vperm.xlu0 %9058, %v13249_v9  }
 0xbe8   : > { %v4755_v28 = vrot.slane %v4754_v2, 4 }
 0xbe9   : > { %5092 = vperm.xlu1 %9056, %v13220_v53  }
 0xbea   : > { %v4756_v21 = vadd.f32 %v4755_v28, %v4754_v2  ;;  %v13405_v28 = vpop.permute.xlu0 %4996 }
 0xbeb   : > { %v13391_v30 = vpop.permute.xlu1 %4788  ;;  %5324 = vperm.xlu0 %9058, %v13256_v29  }
 0xbec   : > { %v4757_v42 = vrot.slane %v4756_v21, 2 }
 0xbed   : > { %5098 = vperm.xlu1 %9056, %v13153_v43  }
 0xbee   : > { %v4758_v55 = vadd.f32 %v4757_v42, %v4756_v21  ;;  %v13413_v42 = vpop.permute.xlu0 %5004 }
 0xbef   : > { %v13395_v32 = vpop.permute.xlu1 %4806  ;;  %5332 = vperm.xlu0 %9058, %v13263_v31  }
 0xbf0   : > { %16016 = vst [vmem:[#allocation145_spill] sm:$0xff] %v13395_v32  ;;  %v4759_v63 = vrot.slane %v4758_v55, 1 }
 0xbf1   : > { %5104 = vperm.xlu1 %9056, %v13161_v36  }
 0xbf2   : > { %v4760_v53 = vadd.f32 %v4759_v63, %v4758_v55  ;;  %v13419_v55 = vpop.permute.xlu0 %5012 }
 0xbf3   : > { %v13401_v2 = vpop.permute.xlu1 %4828  ;;  %5340 = vperm.xlu0 %9058, %v13270_v57  }
 0xbf4   : > { %8952 = vpush %v4760_v53 }
 0xbf5   : > { %5110 = vperm.xlu1 %9056, %v13231_v27  }
 0xbf6   : > { %v13426_v53 = vpop.permute.xlu0 %5020 }
 0xbf7   : > { %v13407_v21 = vpop.permute.xlu1 %4836  ;;  %5348 = vperm.xlu0 %9058, %v13277_v47  }
 0xbf9   : > { %5132 = vperm.xlu1 %9056, %v13235_v3  }
 0xbfb   : > { %v13411_v43 = vpop.permute.xlu1 %4844 }
 0xbfd   : > { %5140 = vperm.xlu1 %9056, %v13239_v33   ;;  %v13432_v33 = vpop.permute.xlu0 %5028 }
 0xbff   : > { %v13416_v36 = vpop.permute.xlu1 %4852 }
 0xc01   : > { %5148 = vperm.xlu1 %9056, %v13243_v60   ;;  %v13437_v60 = vpop.permute.xlu0 %5068 }
 0xc02   : > { %vm5115_vm0 = vcmp.eq.s32.totalorder %v13437_v60, %v10812_v59 }
 0xc03   : > { %v13421_v27 = vpop.permute.xlu1 %4860 }
 0xc05   : > { %5156 = vperm.xlu1 %9056, %v13249_v9  }
 0xc07   : > { %v13424_v63 = vpop.permute.xlu1 %4868 }
 0xc08   : > { %16017 = vst [vmem:[#allocation134_spill] sm:$0xff] %v13424_v63  ;;  %v13444_v63 = vpop.permute.xlu0 %5077 }
 0xc09   : > { %5164 = vperm.xlu1 %9056, %v13256_v29   ;;  %16020 = vst [vmem:[#allocation12_spill] sm:$0xff] %v13444_v63  ;;  %v16021_v29 = vmov 11  }
 0xc0b   : > { %v13429_v3 = vpop.permute.xlu1 %4876 }
 0xc0c   : > { %16018 = vst [vmem:[#allocation147_spill] sm:$0xff] %v13429_v3 }
 0xc0d   : > { %5172 = vperm.xlu1 %9056, %v13263_v31  }
 0xc0f   : > { %v13434_v32 = vpop.permute.xlu1 %4884 }
 0xc10   : > { %16019 = vst [vmem:[#allocation162_spill] sm:$0xff] %v13434_v32  ;;  %v13451_v32 = vpop.permute.xlu0 %5083 }
 0xc11   : > { %5180 = vperm.xlu1 %9056, %v13270_v57  }
 0xc13   : > { %v13439_v23 = vpop.permute.xlu1 %4908 }
 0xc14   : > { %vm4955_vm4 = vcmp.eq.s32.totalorder %v13439_v23, %v10812_v59 }
 0xc15   : > { %5188 = vperm.xlu1 %9056, %v13277_v47   ;;  %v13458_v47 = vpop.permute.xlu0 %5089 }
 0xc17   : > { %v13442_v9 = vpop.permute.xlu1 %4914 }
 0xc19   : > { %9057 = vset.pattern.permute.xlu1 %v16021_v29  ;;  %v13463_v29 = vpop.permute.xlu0 %5095 }
 0xc1a   : > { %5228 = vperm.xlu1 %9057, %v13117_v45   ;;  %16025 = vst [vmem:[#allocation150_spill] sm:$0xff] %v13463_v29 }
 0xc1b   : > { %v13448_v31 = vpop.permute.xlu1 %4917 }
 0xc1c   : > { %vm4958_vm7 = vcmp.eq.s32.totalorder %v13448_v31, %v10812_v59 }
 0xc1e   : > { %5234 = vperm.xlu1 %9057, %v13125_v51  }
 0xc1f   : > { %v13453_v57 = vpop.permute.xlu1 %4923 }
 0xc20   : > { %16022 = vst [vmem:[#allocation106_spill] sm:$0xff] %v13453_v57  ;;  %v13471_v57 = vpop.permute.xlu0 %5101 }
 0xc21   : > { %16028 = vst [vmem:[#allocation108_spill] sm:$0xff] %v13471_v57 }
 0xc22   : > { %5237 = vperm.xlu1 %9057, %v13129_v26  }
 0xc23   : > { %v13456_v3 = vpop.permute.xlu1 %4929 }
 0xc24   : > { %16023 = vst [vmem:[#allocation11_spill] sm:$0xff] %v13456_v3  ;;  %v13476_v3 = vpop.permute.xlu0 %5107 }
 0xc25   : > { %16030 = vst [vmem:[#allocation149_spill] sm:$0xff] %v13476_v3 }
 0xc26   : > { %5243 = vperm.xlu1 %9057, %v13137_v18  }
 0xc27   : > { %v13461_v63 = vpop.permute.xlu1 %4935 }
 0xc28   : > { %16024 = vst [vmem:[#allocation6_spill] sm:$0xff] %v13461_v63 }
 0xc2a   : > { %5249 = vperm.xlu1 %9057, %v13145_v61  }
 0xc2b   : > { %v13466_v45 = vpop.permute.xlu1 %4941 }
 0xc2c   : > { %16026 = vst [vmem:[#allocation135_spill] sm:$0xff] %v13466_v45  ;;  %v13484_v45 = vpop.permute.xlu0 %5113 }
 0xc2d   : > { %16031 = vst [vmem:[#allocation152_spill] sm:$0xff] %v13484_v45 }
 0xc2e   : > { %5255 = vperm.xlu1 %9057, %v13149_v15  }
 0xc2f   : > { %v13469_v51 = vpop.permute.xlu1 %4947 }
 0xc30   : > { %16027 = vst [vmem:[#allocation164_spill] sm:$0xff] %v13469_v51  ;;  %v13489_v51 = vpop.permute.xlu0 %5136 }
 0xc32   : > { %5261 = vperm.xlu1 %9057, %v13157_v25  }
 0xc33   : > { %v13474_v26 = vpop.permute.xlu1 %4953 }
 0xc34   : > { %16029 = vst [vmem:[#allocation136_spill] sm:$0xff] %v13474_v26  ;;  %v13497_v26 = vpop.permute.xlu0 %5144 }
 0xc36   : > { %5267 = vperm.xlu1 %9057, %v13165_v52  }
 0xc37   : > { %v13479_v18 = vpop.permute.xlu1 %4976 }
 0xc38   : > { %v13502_v45 = vpop.permute.xlu0 %5152  ;;  %v5036_v54 = vsel %vm4956_vm11, %v13479_v18, 0.0 }
 0xc39   : > { %16035 = vst [vmem:[#allocation138_spill] sm:$0xff] %v13502_v45 }
 0xc3a   : > { %5273 = vperm.xlu1 %9057, %v13169_v19  }
 0xc3b   : > { %v13482_v61 = vpop.permute.xlu1 %4984 }
 0xc3c   : > { %v13510_v3 = vpop.permute.xlu0 %5160 }
 0xc3d   : > { %16038 = vst [vmem:[#allocation167_spill] sm:$0xff] %v13510_v3 }
 0xc3e   : > { %5296 = vperm.xlu1 %9057, %v13173_v0  }
 0xc3f   : > { %v13487_v15 = vpop.permute.xlu1 %4992 }
 0xc40   : > { %v13515_v57 = vpop.permute.xlu0 %5168 }
 0xc41   : > { %16039 = vst [vmem:[#allocation8_spill] sm:$0xff] %v13515_v57 }
 0xc42   : > { %5304 = vperm.xlu1 %9057, %v13177_v46  }
 0xc43   : > { %v13492_v25 = vpop.permute.xlu1 %5000 }
 0xc44   : > { %16032 = vst [vmem:[#allocation166_spill] sm:$0xff] %v13492_v25 }
 0xc46   : > { %5312 = vperm.xlu1 %9057, %v13181_v44  }
 0xc47   : > { %v13495_v52 = vpop.permute.xlu1 %5008 }
 0xc48   : > { %16033 = vst [vmem:[#allocation7_spill] sm:$0xff] %v13495_v52 }
 0xc4a   : > { %5320 = vperm.xlu1 %9057, %v13185_v4  }
 0xc4b   : > { %v13500_v19 = vpop.permute.xlu1 %5016 }
 0xc4c   : > { %16034 = vst [vmem:[#allocation137_spill] sm:$0xff] %v13500_v19  ;;  %v13520_v19 = vpop.permute.xlu0 %5176 }
 0xc4d   : > { %16040 = vst [vmem:[#allocation140_spill] sm:$0xff] %v13520_v19 }
 0xc4e   : > { %5328 = vperm.xlu1 %9057, %v13189_v10  }
 0xc4f   : > { %v13505_v0 = vpop.permute.xlu1 %5024 }
 0xc50   : > { %16036 = vst [vmem:[#allocation151_spill] sm:$0xff] %v13505_v0 }
 0xc52   : > { %5336 = vperm.xlu1 %9057, %v13193_v62   ;;  %v13526_v62 = vpop.permute.xlu0 %5184 }
 0xc53   : > { %v13508_v46 = vpop.permute.xlu1 %5032  ;;  %16042 = vst [vmem:[#allocation156_spill] sm:$0xff] %v13526_v62 }
 0xc54   : > { %16037 = vst [vmem:[#allocation154_spill] sm:$0xff] %v13508_v46 }
 0xc56   : > { %5344 = vperm.xlu1 %9057, %v13199_v40   ;;  %v13530_v29 = vpop.permute.xlu0 %5192 }
 0xc57   : > { %16044 = vst [vmem:[#allocation139_spill] sm:$0xff] %v13530_v29 }
 0xc58   : > { %v13513_v44 = vpop.permute.xlu1 %5071 }
 0xc59   : > { %vm5116_vm8 = vcmp.eq.s32.totalorder %v13513_v44, %v10812_v59  ;;  %v16066_v44 = vld [vmem:[#allocation11_spill] sm:$0xff] }
 0xc5a   : > { %5352 = vperm.xlu1 %9057, %v13205_v14   ;;  %v13534_v52 = vpop.permute.xlu0 %5231  ;;  %v5196_v20 = vsel %vm5116_vm8, %v13489_v51, 0.0 }
 0xc5c   : > { %v13518_v4 = vpop.permute.xlu1 %5074 }
 0xc5e   : > { %v13540_v3 = vpop.permute.xlu0 %5240 }
 0xc5f   : > { %16048 = vst [vmem:[#allocation169_spill] sm:$0xff] %v13540_v3 }
 0xc60   : > { %v13522_v10 = vpop.permute.xlu1 %5080 }
 0xc61   : > { %vm5119_vm11 = vcmp.eq.s32.totalorder %v13522_v10, %v10812_v59 }
 0xc62   : > { %v13542_v63 = vpop.permute.xlu0 %5246 }
 0xc63   : > { %16049 = vst [vmem:[#allocation144_spill] sm:$0xff] %v13542_v63 }
 0xc64   : > { %v13524_v0 = vpop.permute.xlu1 %5086 }
 0xc65   : > { %16041 = vst [vmem:[#allocation153_spill] sm:$0xff] %v13524_v0 }
 0xc68   : > { %v13528_v46 = vpop.permute.xlu1 %5092 }
 0xc69   : > { %16043 = vst [vmem:[#allocation168_spill] sm:$0xff] %v13528_v46  ;;  %v13548_v46 = vpop.permute.xlu0 %5252 }
 0xc6a   : > { %16050 = vst [vmem:[#allocation141_spill] sm:$0xff] %v13548_v46  ;;  %v5035_v46 = vsel %vm4955_vm4, %v13384_v12, 0.0  ;;  %vm4959_vm4 = vcmp.eq.s32.totalorder %v13356_v13, %v10812_v59  ;;  %v16060_v13 = vld [vmem:[#allocation57_spill] sm:$0xff] }
 0xc6b   : > { %vm4969_vm13 = vcmp.eq.s32.totalorder %v16060_v13, %v10812_v59 }
 0xc6c   : > { %v13532_v40 = vpop.permute.xlu1 %5098  ;;  %v13667_v39 = vsel %vm4969_vm13, %v13432_v33, 0.0 }
 0xc6d   : > { %16045 = vst [vmem:[#allocation142_spill] sm:$0xff] %v13532_v40  ;;  %v13552_v40 = vpop.permute.xlu0 %5258 }
 0xc6e   : > { %16052 = vst [vmem:[#allocation161_spill] sm:$0xff] %v13552_v40  ;;  %v4891_v40 = vsel %vm4811_vm1, %v13401_v2, 0.0  ;;  %vm4961_vm1 = vcmp.eq.s32.totalorder %v13360_v5, %v10812_v59  ;;  %v16059_v5 = vld [vmem:[#allocation160_spill] sm:$0xff] }
 0xc6f   : > { %vm4967_vm2 = vcmp.eq.s32.totalorder %v16059_v5, %v10812_v59  ;;  %v5041_v1 = vsel %vm4961_vm1, %v13405_v28, 0.0  ;;  %v16061_v28 = vld [vmem:[#allocation116_spill] sm:$0xff] }
 0xc70   : > { %v13536_v57 = vpop.permute.xlu1 %5104  ;;  %v13664_v37 = vsel %vm4967_vm2, %v13426_v53, 0.0  ;;  %vm5276_vm2 = vcmp.eq.s32.totalorder %v13534_v52, %v10812_v59  ;;  %v16067_v52 = vld [vmem:[#allocation138_spill] sm:$0xff] }
 0xc71   : > { %16046 = vst [vmem:[#allocation155_spill] sm:$0xff] %v13536_v57 }
 0xc74   : > { %v13538_v14 = vpop.permute.xlu1 %5110 }
 0xc75   : > { %16047 = vst [vmem:[#allocation159_spill] sm:$0xff] %v13538_v14  ;;  %v13558_v14 = vpop.permute.xlu0 %5264 }
 0xc76   : > { %16055 = vst [vmem:[#allocation146_spill] sm:$0xff] %v13558_v14 }
 0xc78   : > { %v5133_v19 = vpop.permute.xlu1 %5132 }
 0xc79   : > { %v13564_v63 = vpop.permute.xlu0 %5270  ;;  %v5195_v14 = vsel %vm5115_vm0, %v5133_v19, 0.0  ;;  %vm4963_vm0 = vcmp.eq.s32.totalorder %v13364_v11, %v10812_v59  ;;  %v4895_v11 = vsel %vm4815_vm9, %v13411_v43, 0.0  ;;  %vm4957_vm9 = vcmp.eq.s32.totalorder %v13442_v9, %v10812_v59  ;;  %v16062_v43 = vld [vmem:[#allocation171_spill] sm:$0xff] }
 0xc7a   : > { %16057 = vst [vmem:[#allocation163_spill] sm:$0xff] %v13564_v63  ;;  %v5043_v8 = vsel %vm4963_vm0, %v13413_v42, 0.0  ;;  %v5037_v42 = vsel %vm4957_vm9, %v16062_v43, 0.0  ;;  %v5052_v9 = vadd.f32 %v5036_v54, %v4892_v48  ;;  %v16075_v54 = vld [vmem:[#allocation157_spill] sm:$0xff] }
 0xc7c   : > { %v13544_v0 = vpop.permute.xlu1 %5140  ;;  %v5212_v18 = vadd.f32 %v5196_v20, %v5052_v9  ;;  %v16080_v9 = vld [vmem:[#allocation7_spill] sm:$0xff] }
 0xc80   : > { %v13546_v62 = vpop.permute.xlu1 %5148 }
 0xc84   : > { %v13550_v29 = vpop.permute.xlu1 %5156 }
 0xc85   : > { %16051 = vst [vmem:[#allocation158_spill] sm:$0xff] %v13550_v29  ;;  %v5293_v29 = vpop.permute.xlu0 %5292 }
 0xc88   : > { %v13554_v25 = vpop.permute.xlu1 %5164 }
 0xc89   : > { %16053 = vst [vmem:[#allocation170_spill] sm:$0xff] %v13554_v25 }
 0xc8c   : > { %v13556_v57 = vpop.permute.xlu1 %5172 }
 0xc8d   : > { %16054 = vst [vmem:[#allocation14_spill] sm:$0xff] %v13556_v57  ;;  %v5051_v57 = vadd.f32 %v5035_v46, %v4891_v40  ;;  %v16068_v40 = vld [vmem:[#allocation166_spill] sm:$0xff] }
 0xc8f   : > { %v5211_v25 = vadd.f32 %v5195_v14, %v5051_v57  ;;  %v13590_v57 = vpop.permute.xlu0 %5300 }
 0xc90   : > { %v13560_v45 = vpop.permute.xlu1 %5180 }
 0xc91   : > { %16056 = vst [vmem:[#allocation104_spill] sm:$0xff] %v13560_v45 }
 0xc93   : > { %v5309_v7 = vpop.permute.xlu0 %5308 }
 0xc94   : > { %v13566_v3 = vpop.permute.xlu1 %5188 }
 0xc95   : > { %16058 = vst [vmem:[#allocation118_spill] sm:$0xff] %v13566_v3 }
 0xc97   : > { %v5317_v33 = vpop.permute.xlu0 %5316 }
 0xc99   : > { %v5229_v45 = vpop.permute.xlu1 %5228 }
 0xc9a   : > { %vm5275_vm15 = vcmp.eq.s32.totalorder %v5229_v45, %v10812_v59 }
 0xc9b   : > { %v5355_v23 = vsel %vm5275_vm15, %v5293_v29, 0.0  ;;  %vm4965_vm15 = vcmp.eq.s32.totalorder %v13368_v35, %v10812_v59  ;;  %v5039_v35 = vsel %vm4959_vm4, %v13398_v50, 0.0  ;;  %v4893_v50 = vsel %vm4813_vm12, %v13407_v21, 0.0 }
 0xc9c   : > { %v5371_v63 = vadd.f32 %v5355_v23, %v5211_v25  ;;  %v13655_v34 = vsel %vm4965_vm15, %v13419_v55, 0.0  ;;  %vm4821_vm12 = vcmp.eq.s32.totalorder %v16061_v28, %v10812_v59  ;;  %v5038_v55 = vsel %vm4958_vm7, %v13482_v61, 0.0  ;;  %v16069_v23 = vld [vmem:[#allocation153_spill] sm:$0xff] }
 0xc9d   : > { %v13575_v3 = vpop.permute.xlu1 %5234  ;;  %vm5117_vm4 = vcmp.eq.s32.totalorder %v13518_v4, %v10812_v59  ;;  %vm5122_vm15 = vcmp.eq.s32.totalorder %v13458_v47, %v10812_v59  ;;  %v5053_v29 = vadd.f32 %v5037_v42, %v4893_v50  ;;  %v5054_v45 = vadd.f32 %v5038_v55, %v4894_v17  ;;  %v16070_v17 = vld [vmem:[#allocation125_spill] sm:$0xff]  ;;  %v16077_v42 = vld [vmem:[#allocation167_spill] sm:$0xff]  ;;  %v16079_v55 = vld [vmem:[#allocation168_spill] sm:$0xff] }
 0xc9e   : > { %8804 = vmatprep.mubr.msk.f32.mxu0 %vm2060_vm14, %v5371_v63  ;;  %v13614_v63 = vsel %vm4818_vm5, %v13330_v58, 0.0  ;;  %v13631_v58 = vsel %vm4824_vm3, %v13342_v38, 0.0  ;;  %v4897_v38 = vsel %vm4817_vm10, %v13416_v36, 0.0  ;;  %vm4819_vm5 = vcmp.eq.s32.totalorder %v13391_v30, %v10812_v59  ;;  %v16063_v36 = vld [vmem:[#allocation12_spill] sm:$0xff] }
 0xc9f   : > { %v5055_v30 = vadd.f32 %v5039_v35, %v4895_v11  ;;  %v5057_v24 = vadd.f32 %v5041_v1, %v4897_v38  ;;  %v4899_v21 = vsel %vm4819_vm5, %v13421_v27, 0.0  ;;  %vm5118_vm10 = vcmp.eq.s32.totalorder %v16063_v36, %v10812_v59  ;;  %v16064_v27 = vld [vmem:[#allocation106_spill] sm:$0xff]  ;;  %v16072_v35 = vld [vmem:[#allocation145_spill] sm:$0xff] }
 0xca0   : > { %vm5120_vm3 = vcmp.eq.s32.totalorder %v13451_v32, %v10812_v59  ;;  %vm5277_vm1 = vcmp.eq.s32.totalorder %v13575_v3, %v10812_v59  ;;  %vm4960_vm0 = vcmp.eq.s32.totalorder %v16064_v27, %v10812_v59  ;;  %v5197_v31 = vsel %vm5117_vm4, %v13544_v0, 0.0  ;;  %v16065_v0 = vld [vmem:[#allocation169_spill] sm:$0xff]  ;;  %v16073_v1 = vld [vmem:[#allocation134_spill] sm:$0xff] }
 0xca1   : > { %v13578_v12 = vpop.permute.xlu1 %5237  ;;  %v5040_v51 = vsel %vm4960_vm0, %v13487_v15, 0.0  ;;  %v5199_v3 = vsel %vm5119_vm11, %v13546_v62, 0.0  ;;  %v5357_v61 = vsel %vm5277_vm1, %v13590_v57, 0.0  ;;  %v5198_v19 = vsel %vm5118_vm10, %v13497_v26, 0.0  ;;  %v5325_v57 = vpop.permute.xlu0 %5324 }
 0xca2   : > { %vm5279_vm13 = vcmp.eq.s32.totalorder %v16065_v0, %v10812_v59  ;;  %v5213_v15 = vadd.f32 %v5197_v31, %v5053_v29  ;;  %vm4962_vm5 = vcmp.eq.s32.totalorder %v16066_v44, %v10812_v59  ;;  %v5056_v4 = vadd.f32 %v5040_v51, %v4896_v49  ;;  %v16071_v49 = vld [vmem:[#allocation158_spill] sm:$0xff] }
 0xca3   : > { %v5200_v10 = vsel %vm5120_vm3, %v16067_v52, 0.0  ;;  %v5042_v14 = vsel %vm4962_vm5, %v16068_v40, 0.0  ;;  %vm5121_vm9 = vcmp.eq.s32.totalorder %v16069_v23, %v10812_v59  ;;  %v5215_v26 = vadd.f32 %v5199_v3, %v5055_v30  ;;  %v16074_v30 = vld [vmem:[#allocation144_spill] sm:$0xff]  ;;  %v16083_v3 = vld [vmem:[#allocation141_spill] sm:$0xff]  ;;  %v16086_v0 = vld [vmem:[#allocation142_spill] sm:$0xff] }
 0xca4   : > { %v5373_v48 = vadd.f32 %v5357_v61, %v5213_v15  ;;  %vm4823_vm8 = vcmp.eq.s32.totalorder %v16070_v17, %v10812_v59  ;;  %v5214_v5 = vadd.f32 %v5198_v19, %v5054_v45  ;;  %v5359_v13 = vsel %vm5279_vm13, %v5309_v7, 0.0  ;;  %v16081_v45 = vld [vmem:[#allocation170_spill] sm:$0xff]  ;;  %v16095_v17 = vld [vmem:[#allocation140_spill] sm:$0xff] }
 0xca5   : > { %v13580_v41 = vpop.permute.xlu1 %5243  ;;  %v5201_v11 = vsel %vm5121_vm9, %v16071_v49, 0.0  ;;  %vm5278_vm7 = vcmp.eq.s32.totalorder %v13578_v12, %v10812_v59  ;;  %vm4825_vm10 = vcmp.eq.s32.totalorder %v16072_v35, %v10812_v59  ;;  %v5059_v38 = vadd.f32 %v5043_v8, %v4899_v21  ;;  %v16076_v12 = vld [vmem:[#allocation6_spill] sm:$0xff]  ;;  %v16078_v21 = vld [vmem:[#allocation13_spill] sm:$0xff]  ;;  %v16094_v49 = vld [vmem:[#allocation164_spill] sm:$0xff] }
 0xca6   : > { %v4901_v50 = vsel %vm4821_vm12, %v16073_v1, 0.0  ;;  %vm5281_vm3 = vcmp.eq.s32.totalorder %v16074_v30, %v10812_v59  ;;  %vm4964_vm4 = vcmp.eq.s32.totalorder %v16076_v12, %v10812_v59  ;;  %v5058_v43 = vadd.f32 %v5042_v14, %v13614_v63  ;;  %v16087_v44 = vld [vmem:[#allocation130_spill] sm:$0xff]  ;;  %v16096_v1 = vld [vmem:[#allocation155_spill] sm:$0xff]  ;;  %v16097_v12 = vld [vmem:[#allocation104_spill] sm:$0xff] }
 0xca7   : > { %v5202_v8 = vsel %vm5122_vm15, %v16077_v42, 0.0  ;;  %v5216_v36 = vadd.f32 %v5200_v10, %v5056_v4  ;;  %vm5123_vm12 = vcmp.eq.s32.totalorder %v16079_v55, %v10812_v59  ;;  %v5375_v20 = vadd.f32 %v5359_v13, %v5215_v26  ;;  %v16088_v4 = vld [vmem:[#allocation137_spill] sm:$0xff]  ;;  %v16091_v26 = vld [vmem:[#allocation8_spill] sm:$0xff] }
 0xca8   : > { %v5217_v27 = vadd.f32 %v5201_v11, %v5057_v24  ;;  %v5044_v31 = vsel %vm4964_vm4, %v16080_v9, 0.0  ;;  %v5361_v29 = vsel %vm5281_vm3, %v5317_v33, 0.0  ;;  %v5203_v51 = vsel %vm5123_vm12, %v16081_v45, 0.0  ;;  %v5333_v24 = vpop.permute.xlu0 %5332  ;;  %v16084_v33 = vld [vmem:[#allocation135_spill] sm:$0xff] }
 0xca9   : > { %v13582_v60 = vpop.permute.xlu1 %5249  ;;  %vm5280_vm1 = vcmp.eq.s32.totalorder %v13580_v41, %v10812_v59  ;;  %v5061_v47 = vadd.f32 %v13655_v34, %v4901_v50  ;;  %vm5283_vm15 = vcmp.eq.s32.totalorder %v16083_v3, %v10812_v59  ;;  %vm4966_vm11 = vcmp.eq.s32.totalorder %v16084_v33, %v10812_v59  ;;  %v16085_v41 = vld [vmem:[#allocation108_spill] sm:$0xff]  ;;  %v16106_v33 = vld [vmem:[#allocation163_spill] sm:$0xff] }
 0xcaa   : > { %v5060_v19 = vadd.f32 %v5044_v31, %v13621_v56  ;;  %vm5125_vm13 = vcmp.eq.s32.totalorder %v16086_v0, %v10812_v59  ;;  %v5377_v15 = vadd.f32 %v5361_v29, %v5217_v27  ;;  %vm4826_vm5 = vcmp.eq.s32.totalorder %v16087_v44, %v10812_v59  ;;  %v16090_v56 = vld [vmem:[#allocation147_spill] sm:$0xff] }
 0xcab   : > { %v5046_v52 = vsel %vm4966_vm11, %v16088_v4, 0.0  ;;  %v5363_v10 = vsel %vm5283_vm15, %v5325_v57, 0.0  ;;  %vm5282_vm9 = vcmp.eq.s32.totalorder %v13582_v60, %v10812_v59  ;;  %v4903_v23 = vsel %vm4823_vm8, %v16090_v56, 0.0  ;;  %v16092_v57 = vld [vmem:[#allocation161_spill] sm:$0xff]  ;;  %v16093_v60 = vld [vmem:[#allocation162_spill] sm:$0xff] }
 0xcac   : > { %v4905_v13 = vsel %vm4825_vm10, %v16093_v60, 0.0  ;;  %vm4968_vm3 = vcmp.eq.s32.totalorder %v16094_v49, %v10812_v59  ;;  %vm5127_vm8 = vcmp.eq.s32.totalorder %v16096_v1, %v10812_v59  ;;  %vm5289_vm11 = vcmp.eq.s32.totalorder %v16106_v33, %v10812_v59  ;;  %v16111_v49 = vld [vmem:[#allocation17_spill] sm:$0xff]  ;;  %v16113_v1 = vld [vmem:[#allocation19_spill] sm:$0xff] }
 0xcad   : > { %v13584_v2 = vpop.permute.xlu1 %5255  ;;  %v5065_v55 = vadd.f32 %v13667_v39, %v4905_v13 }
 0xcae   : > { %vm5284_vm10 = vcmp.eq.s32.totalorder %v13584_v2, %v10812_v59  ;;  %v16101_v2 = vld [vmem:[#allocation136_spill] sm:$0xff] }
 0xcb1   : > { %v13610_v22 = vpop.permute.xlu1 %5261 }
 0xcb2   : > { %vm5286_vm15 = vcmp.eq.s32.totalorder %v13610_v22, %v10812_v59 }
 0xcb5   : > { %v13649_v16 = vpop.permute.xlu1 %5267 }
 0xcb9   : > { %v13684_v53 = vpop.permute.xlu1 %5273 }
 0xcbd   : > { %v5297_v25 = vpop.permute.xlu1 %5296 }
 0xcbe   : > { %v5356_v46 = vsel %vm5276_vm2, %v5297_v25, 0.0  ;;  %vm5126_vm2 = vcmp.eq.s32.totalorder %v16085_v41, %v10812_v59  ;;  %v5218_v25 = vadd.f32 %v5202_v8, %v5058_v43  ;;  %v5207_v43 = vsel %vm5127_vm8, %v16097_v12, 0.0  ;;  %v16115_v12 = vld [vmem:[#allocation21_spill] sm:$0xff] }
 0xcbf   : > { %v5372_v62 = vadd.f32 %v5356_v46, %v5212_v18  ;;  %v16082_v18 = vld [vmem:[#allocation150_spill] sm:$0xff]  ;;  %v5219_v46 = vadd.f32 %v5203_v51, %v5059_v38  ;;  %v5206_v11 = vsel %vm5126_vm2, %v16095_v17, 0.0  ;;  %v5062_v38 = vadd.f32 %v5046_v52, %v13624_v6 }
 0xcc0   : > { %vm5124_vm0 = vcmp.eq.s32.totalorder %v16082_v18, %v10812_v59  ;;  %v5063_v8 = vadd.f32 %v13664_v37, %v4903_v23  ;;  %v16102_v37 = vld [vmem:[#allocation159_spill] sm:$0xff]  ;;  %v16104_v18 = vld [vmem:[#allocation156_spill] sm:$0xff] }
 0xcc1   : > { %v5305_v32 = vpop.permute.xlu1 %5304  ;;  %8805 = vmatmul.mubr.msk.f32.vlgmr.msra.gmra.mrb[24].mxu0 %vm2060_vm14, %v5372_v62  ;;  %v16089_v62 = vld [vmem:[#allocation14_spill] sm:$0xff]  ;;  %v5379_v50 = vadd.f32 %v5363_v10, %v5219_v46  ;;  %v5222_v9 = vadd.f32 %v5206_v11, %v5062_v38 }
 0xcc2   : > { %v5358_v7 = vsel %vm5278_vm7, %v5305_v32, 0.0  ;;  %8807 = vmatprep.mubr.msk.f32.mxu0 %vm2060_vm14, %v5373_v48  ;;  %8939 = vmatpush3.bf16.msra.mxu0 %v16075_v54  ;;  %v5205_v40 = vsel %vm5125_vm13, %v16089_v62, 0.0  ;;  %v5204_v48 = vsel %vm5124_vm0, %v16091_v26, 0.0  ;;  %vm5285_vm7 = vcmp.eq.s32.totalorder %v16092_v57, %v10812_v59  ;;  %v16109_v62 = vld [vmem:[#allocation139_spill] sm:$0xff] }
 0xcc3   : > { %v5374_v28 = vadd.f32 %v5358_v7, %v5214_v5  ;;  %8941 = vmatprep.subr.bf16.mxu0 %v16078_v21  ;;  %v5221_v30 = vadd.f32 %v5205_v40, %v5061_v47  ;;  %v5341_v7 = vpop.permute.xlu0 %5340  ;;  %v5220_v54 = vadd.f32 %v5204_v48, %v5060_v19  ;;  %v5365_v35 = vsel %vm5285_vm7, %v5333_v24, 0.0  ;;  %v16105_v24 = vld [vmem:[#allocation154_spill] sm:$0xff]  ;;  %v16108_v19 = vld [vmem:[#allocation5_spill] sm:$0xff] }
 0xcc4   : > { %vm5129_vm0 = vcmp.eq.s32.totalorder %v16102_v37, %v10812_v59  ;;  %v5223_v29 = vadd.f32 %v5207_v43, %v5063_v8  ;;  %v4906_v22 = vsel %vm4826_vm5, %v16108_v19, 0.0  ;;  %vm5288_vm13 = vcmp.eq.s32.totalorder %v13649_v16, %v10812_v59  ;;  %v16116_v8 = vld [vmem:[#allocation22_spill] sm:$0xff]  ;;  %v16125_v19 = vld [vmem:[#allocation35_spill] sm:$0xff] }
 0xcc5   : > { %v5313_v63 = vpop.permute.xlu1 %5312  ;;  %8808 = vmatmul.mubr.msk.f32.gmra.mrb[26].mxu0 %vm2060_vm14, %v5374_v28  ;;  %v16098_v28 = vld [vmem:[#allocation151_spill] sm:$0xff]  ;;  %v5381_v31 = vadd.f32 %v5365_v35, %v5221_v30  ;;  %vm5290_vm5 = vcmp.eq.s32.totalorder %v13684_v53, %v10812_v59 }
 0xcc6   : > { %v5360_v61 = vsel %vm5280_vm1, %v5313_v63, 0.0  ;;  %8810 = vmatprep.mubr.msk.f32.mxu0 %vm2060_vm14, %v5375_v20  ;;  %8943 = vmatpush3.bf16.msra.mxu0 %v16078_v21  ;;  %v5048_v6 = vsel %vm4968_vm3, %v16098_v28, 0.0  ;;  %v16099_v21 = vld [vmem:[#allocation146_spill] sm:$0xff]  ;;  %v16100_v20 = vld [vmem:[#allocation149_spill] sm:$0xff]  ;;  %vm4970_vm1 = vcmp.eq.s32.totalorder %v16101_v2, %v10812_v59 }
 0xcc7   : > { %v5376_v34 = vadd.f32 %v5360_v61, %v5216_v36  ;;  %vm5287_vm4 = vcmp.eq.s32.totalorder %v16099_v21, %v10812_v59  ;;  %vm5128_vm12 = vcmp.eq.s32.totalorder %v16100_v20, %v10812_v59  ;;  %v5064_v45 = vadd.f32 %v5048_v6, %v13631_v58  ;;  %v16103_v63 = vld [vmem:[#allocation118_spill] sm:$0xff]  ;;  %v5349_v41 = vpop.permute.xlu0 %5348  ;;  %v16107_v58 = vld [vmem:[#allocation152_spill] sm:$0xff]  ;;  %v16117_v21 = vld [vmem:[#allocation27_spill] sm:$0xff] }
 0xcc8   : > { %v5367_v51 = vsel %vm5287_vm4, %v5341_v7, 0.0  ;;  %v5209_v47 = vsel %vm5129_vm0, %v16103_v63, 0.0  ;;  %v5208_v3 = vsel %vm5128_vm12, %v16104_v18, 0.0  ;;  %v5050_v61 = vsel %vm4970_vm1, %v16105_v24, 0.0  ;;  %v16114_v7 = vld [vmem:[#allocation20_spill] sm:$0xff]  ;;  %v16121_v63 = vld [vmem:[#allocation31_spill] sm:$0xff] }
 0xcc9   : > { %v5321_v14 = vpop.permute.xlu1 %5320  ;;  %8811 = vmatmul.mubr.msk.f32.gmra.mrb[28].mxu0 %vm2060_vm14, %v5376_v34  ;;  %vm5130_vm2 = vcmp.eq.s32.totalorder %v16107_v58, %v10812_v59  ;;  %v5383_v0 = vadd.f32 %v5367_v51, %v5223_v29  ;;  %v5224_v46 = vadd.f32 %v5208_v3, %v5064_v45  ;;  %v5066_v4 = vadd.f32 %v5050_v61, %v4906_v22  ;;  %v16118_v20 = vld [vmem:[#allocation28_spill] sm:$0xff]  ;;  %v16120_v29 = vld [vmem:[#allocation30_spill] sm:$0xff]  ;;  %v16123_v61 = vld [vmem:[#allocation33_spill] sm:$0xff] }
 0xcca   : > { %v5362_v5 = vsel %vm5282_vm9, %v5321_v14, 0.0  ;;  %8813 = vmatprep.mubr.msk.f32.mxu0 %vm2060_vm14, %v5377_v15  ;;  %v5225_v15 = vadd.f32 %v5209_v47, %v5065_v55  ;;  %v5369_v52 = vsel %vm5289_vm11, %v5349_v41, 0.0  ;;  %v5210_v40 = vsel %vm5130_vm2, %v16109_v62, 0.0  ;;  %v16122_v18 = vld [vmem:[#allocation32_spill] sm:$0xff] }
 0xccb   : > { %v5378_v32 = vadd.f32 %v5362_v5, %v5218_v25  ;;  %v5226_v44 = vadd.f32 %v5210_v40, %v5066_v4  ;;  %v16110_v5 = vld [vmem:[#allocation16_spill] sm:$0xff] }
 0xccc   : > { %v5385_v23 = vadd.f32 %v5369_v52, %v5225_v15 }
 0xccd   : > { %v5329_v42 = vpop.permute.xlu1 %5328  ;;  %8814 = vmatmul.mubr.msk.f32.gmra.mrb[30].mxu0 %vm2060_vm14, %v5378_v32  ;;  %v16112_v32 = vld [vmem:[#allocation18_spill] sm:$0xff] }
 0xcce   : > { %v5364_v36 = vsel %vm5284_vm10, %v5329_v42, 0.0  ;;  %8816 = vmatprep.mubr.msk.f32.mxu0 %vm2060_vm14, %v5379_v50 }
 0xccf   : > { %v5380_v27 = vadd.f32 %v5364_v36, %v5220_v54 }
 0xcd1   : > { %v5337_v39 = vpop.permute.xlu1 %5336  ;;  %8817 = vmatmul.mubr.msk.f32.gmra.mrb[32].mxu0 %vm2060_vm14, %v5380_v27 }
 0xcd2   : > { %v5366_v25 = vsel %vm5286_vm15, %v5337_v39, 0.0  ;;  %8819 = vmatprep.mubr.msk.f32.mxu0 %vm2060_vm14, %v5381_v31 }
 0xcd3   : > { %v5382_v34 = vadd.f32 %v5366_v25, %v5222_v9  ;;  %v16119_v9 = vld [vmem:[#allocation29_spill] sm:$0xff]  ;;  %v16124_v25 = vld [vmem:[#allocation34_spill] sm:$0xff] }
 0xcd5   : > { %v5345_v10 = vpop.permute.xlu1 %5344  ;;  %8820 = vmatmul.mubr.msk.f32.gmra.mrb[34].mxu0 %vm2060_vm14, %v5382_v34 }
 0xcd6   : > { %v5368_v14 = vsel %vm5288_vm13, %v5345_v10, 0.0  ;;  %8822 = vmatprep.mubr.msk.f32.mxu0 %vm2060_vm14, %v5383_v0  ;;  %v9803_v0 = vmov 12  }
 0xcd7   : > { %v5384_v56 = vadd.f32 %v5368_v14, %v5224_v46  ;;  %9059 = vset.pattern.permute.xlu1 %v9803_v0  ;;  %9060 = vset.pattern.permute.xlu0 %v9803_v0 }
 0xcd9   : > { %v5353_v26 = vpop.permute.xlu1 %5352  ;;  %8823 = vmatmul.mubr.msk.f32.gmra.mrb[36].mxu0 %vm2060_vm14, %v5384_v56 }
 0xcda   : > { %v5370_v48 = vsel %vm5290_vm5, %v5353_v26, 0.0  ;;  %8825 = vmatprep.mubr.msk.f32.mxu0 %vm2060_vm14, %v5385_v23 }
 0xcdb   : > { %v5386_v16 = vadd.f32 %v5370_v48, %v5226_v44 }
 0xcdd   : > { %8826 = vmatmul.mubr.msk.f32.gmra.mrb[38].mxu0 %vm2060_vm14, %v5386_v16 }
 0xd94   : > { %v8806_v57 = vpop.f32.mrb[24].mxu0 }
 0xd95   : > { %v5581_v60 = vmul.f32 %v8806_v57, %v16110_v5  ;;  %v5501_v13 = vpop.f32.mrb[25].mxu0 }
 0xd96   : > { %v5580_v17 = vmul.f32 %v5501_v13, %v16111_v49 }
 0xd97   : > { %5598 = vadd.xlane.f32.xlu1 %v5581_v60 }
 0xd98   : > { %5596 = vadd.xlane.f32.xlu0 %v5580_v17  ;;  %v8809_v11 = vpop.f32.mrb[26].mxu0 }
 0xd99   : > { %v5583_v53 = vmul.f32 %v8809_v11, %v16112_v32  ;;  %v5511_v38 = vpop.f32.mrb[27].mxu0  ;;  %v9807_v32 = vmov 15  }
 0xd9a   : > { %v5582_v50 = vmul.f32 %v5511_v38, %v16113_v1 }
 0xd9c   : > { %5600 = vadd.xlane.f32.xlu0 %v5582_v50  ;;  %v8812_v30 = vpop.f32.mrb[28].mxu0 }
 0xd9d   : > { %v5585_v54 = vmul.f32 %v8812_v30, %v16114_v7  ;;  %v5521_v35 = vpop.f32.mrb[29].mxu0 }
 0xd9e   : > { %v5584_v43 = vmul.f32 %v5521_v35, %v16115_v12 }
 0xda0   : > { %5602 = vadd.xlane.f32.xlu0 %v5583_v53  ;;  %5604 = vadd.xlane.f32.xlu1 %v5584_v43  ;;  %v8815_v42 = vpop.f32.mrb[30].mxu0 }
 0xda1   : > { %v5587_v28 = vmul.f32 %v8815_v42, %v16116_v8  ;;  %v5531_v6 = vpop.f32.mrb[31].mxu0 }
 0xda2   : > { %v5586_v36 = vmul.f32 %v5531_v6, %v16117_v21 }
 0xda4   : > { %5606 = vadd.xlane.f32.xlu0 %v5585_v54  ;;  %5608 = vadd.xlane.f32.xlu1 %v5586_v36  ;;  %v8818_v55 = vpop.f32.mrb[32].mxu0 }
 0xda5   : > { %v5589_v2 = vmul.f32 %v8818_v55, %v16118_v20  ;;  %v5541_v27 = vpop.f32.mrb[33].mxu0 }
 0xda6   : > { %v5588_v37 = vmul.f32 %v5541_v27, %v16119_v9 }
 0xda8   : > { %5610 = vadd.xlane.f32.xlu0 %v5587_v28  ;;  %5612 = vadd.xlane.f32.xlu1 %v5588_v37  ;;  %v8821_v31 = vpop.f32.mrb[34].mxu0 }
 0xda9   : > { %v5591_v45 = vmul.f32 %v8821_v31, %v16120_v29  ;;  %v5551_v51 = vpop.f32.mrb[35].mxu0 }
 0xdaa   : > { %v5590_v47 = vmul.f32 %v5551_v51, %v16121_v63 }
 0xdac   : > { %5614 = vadd.xlane.f32.xlu0 %v5589_v2  ;;  %5616 = vadd.xlane.f32.xlu1 %v5590_v47  ;;  %v8824_v39 = vpop.f32.mrb[36].mxu0 }
 0xdad   : > { %v5593_v3 = vmul.f32 %v8824_v39, %v16122_v18  ;;  %v5561_v24 = vpop.f32.mrb[37].mxu0 }
 0xdae   : > { %v5592_v33 = vmul.f32 %v5561_v24, %v16123_v61 }
 0xdb0   : > { %5618 = vadd.xlane.f32.xlu0 %v5591_v45  ;;  %5620 = vadd.xlane.f32.xlu1 %v5592_v33  ;;  %v8827_v41 = vpop.f32.mrb[38].mxu0 }
 0xdb1   : > { %v5595_v58 = vmul.f32 %v8827_v41, %v16124_v25  ;;  %v5571_v34 = vpop.f32.mrb[39].mxu0 }
 0xdb2   : > { %v5594_v22 = vmul.f32 %v5571_v34, %v16125_v19 }
 0xdb4   : > { %5622 = vadd.xlane.f32.xlu0 %v5593_v3  ;;  %5624 = vadd.xlane.f32.xlu1 %v5594_v22 }
 0xdb8   : > { %5626 = vadd.xlane.f32.xlu0 %v5595_v58 }
 0xe24   : > { %v5599_v15 = vpop.xlane.xlu1 %5598 }
 0xe25   : > { %v5629_v46 = vsub.f32 0.0, %v5599_v15  ;;  %v5597_v4 = vpop.xlane.xlu0 %5596 }
 0xe26   : > { %v5628_v52 = vsub.f32 0.0, %v5597_v4 }
 0xe27   : > { %v8448_v10 = vclamps-f32 %v5629_v46, 10.0 }
 0xe28   : > { %v8447_v62 = vclamps-f32 %v5628_v52, 10.0 }
 0xe29   : > { %v5677_v40 = vsub.f32 0.0, %v8448_v10  ;;  %v5601_v14 = vpop.xlane.xlu0 %5600 }
 0xe2a   : > { %v5676_v56 = vsub.f32 0.0, %v8447_v62  ;;  %v5630_v23 = vsub.f32 0.0, %v5601_v14 }
 0xe2b   : > { %v5694_v44 = vmul.f32 1.442695, %v5677_v40 }
 0xe2c   : > { %v5692_v26 = vmul.f32 1.442695, %v5676_v56  ;;  %v8449_v48 = vclamps-f32 %v5630_v23, 10.0 }
 0xe2d   : > { %9325 = vpow2.f32 %v5694_v44  ;;  %v5605_v16 = vpop.xlane.xlu1 %5604  ;;  %v5603_v57 = vpop.xlane.xlu0 %5602 }
 0xe2e   : > { %9327 = vpow2.f32 %v5692_v26  ;;  %v5678_v60 = vsub.f32 0.0, %v8449_v48  ;;  %v5632_v13 = vsub.f32 0.0, %v5605_v16  ;;  %v5631_v17 = vsub.f32 0.0, %v5603_v57 }
 0xe30   : > { %v5696_v11 = vmul.f32 1.442695, %v5678_v60  ;;  %v8451_v53 = vclamps-f32 %v5632_v13, 10.0  ;;  %v8450_v38 = vclamps-f32 %v5631_v17, 10.0 }
 0xe31   : > { %v5609_v50 = vpop.xlane.xlu1 %5608  ;;  %v5607_v30 = vpop.xlane.xlu0 %5606 }
 0xe32   : > { %9329 = vpow2.f32 %v5696_v11  ;;  %v5680_v54 = vsub.f32 0.0, %v8451_v53  ;;  %v5679_v35 = vsub.f32 0.0, %v8450_v38  ;;  %v5634_v43 = vsub.f32 0.0, %v5609_v50 }
 0xe33   : > { %v5633_v42 = vsub.f32 0.0, %v5607_v30 }
 0xe34   : > { %v5700_v28 = vmul.f32 1.442695, %v5680_v54  ;;  %v5698_v6 = vmul.f32 1.442695, %v5679_v35  ;;  %v8453_v36 = vclamps-f32 %v5634_v43, 10.0 }
 0xe35   : > { %v8452_v55 = vclamps-f32 %v5633_v42, 10.0  ;;  %v5613_v2 = vpop.xlane.xlu1 %5612  ;;  %v5611_v27 = vpop.xlane.xlu0 %5610 }
 0xe36   : > { %9331 = vpow2.f32 %v5700_v28  ;;  %v5682_v37 = vsub.f32 0.0, %v8453_v36  ;;  %v5636_v31 = vsub.f32 0.0, %v5613_v2  ;;  %v5635_v45 = vsub.f32 0.0, %v5611_v27 }
 0xe37   : > { %v9326_v51 = vpop.eup %9325  ;;  %9333 = vpow2.f32 %v5698_v6  ;;  %v5681_v47 = vsub.f32 0.0, %v8452_v55 }
 0xe38   : > { %v9328_v39 = vpop.eup %9327  ;;  %v5725_v3 = vadd.f32 1.0, %v9326_v51  ;;  %v5704_v24 = vmul.f32 1.442695, %v5682_v37  ;;  %v8455_v33 = vclamps-f32 %v5636_v31, 10.0  ;;  %v8454_v41 = vclamps-f32 %v5635_v45, 10.0 }
 0xe39   : > { %v5724_v58 = vadd.f32 1.0, %v9328_v39  ;;  %v5702_v34 = vmul.f32 1.442695, %v5681_v47  ;;  %v5617_v22 = vpop.xlane.xlu1 %5616  ;;  %v5615_v0 = vpop.xlane.xlu0 %5614 }
 0xe3a   : > { %9335 = vlog2.f32 %v5725_v3  ;;  %v5684_v15 = vsub.f32 0.0, %v8455_v33  ;;  %v5683_v46 = vsub.f32 0.0, %v8454_v41  ;;  %v5638_v4 = vsub.f32 0.0, %v5617_v22 }
 0xe3b   : > { %9337 = vlog2.f32 %v5724_v58  ;;  %v5637_v52 = vsub.f32 0.0, %v5615_v0 }
 0xe3c   : > { %v9330_v10 = vpop.eup %9329  ;;  %9339 = vpow2.f32 %v5704_v24  ;;  %v5708_v62 = vmul.f32 1.442695, %v5684_v15  ;;  %v5706_v40 = vmul.f32 1.442695, %v5683_v46  ;;  %v8457_v14 = vclamps-f32 %v5638_v4, 10.0  ;;  %v9613_v46 = vld [vmem:[%s11607_s24 + $0x8] sm:$0xff] }
 0xe3d   : > { %v5726_v56 = vadd.f32 1.0, %v9330_v10  ;;  %9341 = vpow2.f32 %v5702_v34  ;;  %v8456_v23 = vclamps-f32 %v5637_v52, 10.0  ;;  %v5621_v44 = vpop.xlane.xlu1 %5620  ;;  %v5619_v26 = vpop.xlane.xlu0 %5618  ;;  %v9614_v52 = vld [vmem:[%s11607_s24] sm:$0xff] }
 0xe3e   : > { %9343 = vpow2.f32 %v5708_v62  ;;  %v5686_v48 = vsub.f32 0.0, %v8457_v14  ;;  %v5640_v16 = vsub.f32 0.0, %v5621_v44  ;;  %v5639_v57 = vsub.f32 0.0, %v5619_v26 }
 0xe3f   : > { %9345 = vlog2.f32 %v5726_v56  ;;  %v5685_v60 = vsub.f32 0.0, %v8456_v23 }
 0xe40   : > { %v9332_v13 = vpop.eup %9331  ;;  %9347 = vpow2.f32 %v5706_v40  ;;  %v5712_v17 = vmul.f32 1.442695, %v5686_v48  ;;  %v8459_v11 = vclamps-f32 %v5640_v16, 10.0  ;;  %v8458_v53 = vclamps-f32 %v5639_v57, 10.0 }
 0xe41   : > { %v9334_v38 = vpop.eup %9333  ;;  %v5728_v50 = vadd.f32 1.0, %v9332_v13  ;;  %v5710_v30 = vmul.f32 1.442695, %v5685_v60  ;;  %v5625_v54 = vpop.xlane.xlu1 %5624  ;;  %v9615_v60 = vld [vmem:[%s11607_s24 + $0x10] sm:$0xff] }
 0xe42   : > { %v5623_v35 = vpop.xlane.xlu0 %5622  ;;  %v5727_v43 = vadd.f32 1.0, %v9334_v38  ;;  %9349 = vpow2.f32 %v5712_v17  ;;  %v5688_v42 = vsub.f32 0.0, %v8459_v11  ;;  %v5687_v28 = vsub.f32 0.0, %v8458_v53 }
 0xe43   : > { %9351 = vlog2.f32 %v5728_v50  ;;  %v5642_v6 = vsub.f32 0.0, %v5625_v54  ;;  %v5641_v36 = vsub.f32 0.0, %v5623_v35 }
 0xe44   : > { %v9336_v55 = vpop.eup %9335  ;;  %9353 = vlog2.f32 %v5727_v43  ;;  %v5716_v2 = vmul.f32 1.442695, %v5688_v42  ;;  %v5714_v27 = vmul.f32 1.442695, %v5687_v28  ;;  %v9616_v43 = vld [vmem:[%s11607_s24 + $0x20] sm:$0xff] }
 0xe45   : > { %v9338_v37 = vpop.eup %9337  ;;  %9355 = vpow2.f32 %v5710_v30  ;;  %v8461_v31 = vclamps-f32 %v5642_v6, 10.0  ;;  %v8460_v45 = vclamps-f32 %v5641_v36, 10.0  ;;  %v5743_v47 = vmul.f32 0.6931472, %v9336_v55  ;;  %v9617_v36 = vld [vmem:[%s11607_s24 + $0x18] sm:$0xff] }
 0xe46   : > { %v5627_v51 = vpop.xlane.xlu0 %5626  ;;  %v9340_v39 = vpop.eup %9339  ;;  %9357 = vpow2.f32 %v5716_v2  ;;  %v5741_v24 = vmul.f32 0.6931472, %v9338_v37 }
 0xe47   : > { %v5643_v3 = vsub.f32 0.0, %v5627_v51  ;;  %v9342_v33 = vpop.eup %9341  ;;  %v5730_v41 = vadd.f32 1.0, %v9340_v39  ;;  %9359 = vpow2.f32 %v5714_v27  ;;  %v5690_v58 = vsub.f32 0.0, %v8461_v31  ;;  %v9618_v39 = vld [vmem:[%s11607_s24 + $0x30] sm:$0xff] }
 0xe48   : > { %v5689_v34 = vsub.f32 0.0, %v8460_v45  ;;  %v9344_v22 = vpop.eup %9343  ;;  %v5729_v0 = vadd.f32 1.0, %v9342_v33  ;;  %v5773_v4 = vmul.f32 %v9613_v46, %v5743_v47  ;;  %v5772_v10 = vmul.f32 %v9614_v52, %v5741_v24 }
 0xe49   : > { %v8462_v15 = vclamps-f32 %v5643_v3, 10.0  ;;  %v9346_v62 = vpop.eup %9345  ;;  %9361 = vlog2.f32 %v5730_v41  ;;  %v5732_v40 = vadd.f32 1.0, %v9344_v22  ;;  %v5720_v14 = vmul.f32 1.442695, %v5690_v58  ;;  %v9619_v58 = vld [vmem:[%s11607_s24 + $0x28] sm:$0xff] }
 0xe4a   : > { %v9348_v56 = vpop.eup %9347  ;;  %9363 = vlog2.f32 %v5729_v0  ;;  %v5718_v23 = vmul.f32 1.442695, %v5689_v34  ;;  %5806 = vrot.lane.b32.xlu0 %v5773_v4, %s9804_s26  ;;  %5804 = vrot.lane.b32.xlu1 %v5772_v10, %s9804_s26  ;;  %v5745_v26 = vmul.f32 0.6931472, %v9346_v62  ;;  %v9620_v0 = vld [vmem:[%s11607_s24 + $0x40] sm:$0xff]  ;;  %v9621_v62 = vld [vmem:[%s11607_s24 + $0x38] sm:$0xff] }
 0xe4b   : > { %v5691_v44 = vsub.f32 0.0, %v8462_v15  ;;  %9365 = vlog2.f32 %v5732_v40  ;;  %v5731_v48 = vadd.f32 1.0, %v9348_v56 }
 0xe4c   : > { %v9350_v16 = vpop.eup %9349  ;;  %9367 = vpow2.f32 %v5720_v14  ;;  %v5774_v13 = vmul.f32 %v9615_v60, %v5745_v26 }
 0xe4d   : > { %v5722_v57 = vmul.f32 1.442695, %v5691_v44  ;;  %v9352_v17 = vpop.eup %9351  ;;  %9369 = vlog2.f32 %v5731_v48  ;;  %v5734_v11 = vadd.f32 1.0, %v9350_v16  ;;  %v9622_v44 = vld [vmem:[%s11607_s24 + $0x50] sm:$0xff] }
 0xe4e   : > { %v9354_v53 = vpop.eup %9353  ;;  %9371 = vpow2.f32 %v5718_v23  ;;  %5808 = vrot.lane.b32.xlu1 %v5774_v13, %s9804_s26  ;;  %v5749_v38 = vmul.f32 0.6931472, %v9352_v17  ;;  %v9623_v13 = vld [vmem:[%s11607_s24 + $0x48] sm:$0xff] }
 0xe4f   : > { %v9356_v50 = vpop.eup %9355  ;;  %9373 = vlog2.f32 %v5734_v11  ;;  %v5747_v30 = vmul.f32 0.6931472, %v9354_v53  ;;  %v9624_v53 = vld [vmem:[%s11607_s24 + $0x60] sm:$0xff] }
 0xe50   : > { %v9358_v54 = vpop.eup %9357  ;;  %v5733_v35 = vadd.f32 1.0, %v9356_v50  ;;  %9375 = vpow2.f32 %v5722_v57  ;;  %v5776_v42 = vmul.f32 %v9616_v43, %v5749_v38  ;;  %v9625_v50 = vld [vmem:[%s11607_s24 + $0x58] sm:$0xff] }
 0xe51   : > { %v9360_v28 = vpop.eup %9359  ;;  %v5736_v6 = vadd.f32 1.0, %v9358_v54  ;;  %v5775_v55 = vmul.f32 %v9617_v36, %v5747_v30 }
 0xe52   : > { %9377 = vlog2.f32 %v5733_v35  ;;  %v5735_v2 = vadd.f32 1.0, %v9360_v28  ;;  %5812 = vrot.lane.b32.xlu0 %v5776_v42, %s9804_s26  ;;  %v9626_v42 = vld [vmem:[%s11607_s24 + $0x70] sm:$0xff] }
 0xe53   : > { %v9362_v27 = vpop.eup %9361  ;;  %9379 = vlog2.f32 %v5736_v6  ;;  %5810 = vrot.lane.b32.xlu1 %v5775_v55, %s9804_s26  ;;  %v9627_v55 = vld [vmem:[%s11607_s24 + $0x68] sm:$0xff] }
 0xe54   : > { %v9364_v37 = vpop.eup %9363  ;;  %9381 = vlog2.f32 %v5735_v2  ;;  %v5753_v31 = vmul.f32 0.6931472, %v9362_v27 }
 0xe55   : > { %v9366_v45 = vpop.eup %9365  ;;  %v5751_v51 = vmul.f32 0.6931472, %v9364_v37  ;;  %v9628_v37 = vld [vmem:[%s11607_s24 + $0x78] sm:$0xff] }
 0xe56   : > { %v9368_v47 = vpop.eup %9367  ;;  %v5778_v3 = vmul.f32 %v9618_v39, %v5753_v31  ;;  %v5757_v24 = vmul.f32 0.6931472, %v9366_v45  ;;  %v13887_v45 = vld [vmem:[%s11482_s29] sm:$0xff]  ;;  %v13899_v39 = vld [vmem:[%s11482_s29 + $0x18] sm:$0xff] }
 0xe57   : > { %v9370_v33 = vpop.eup %9369  ;;  %v5738_v41 = vadd.f32 1.0, %v9368_v47  ;;  %v5777_v34 = vmul.f32 %v9619_v58, %v5751_v51  ;;  %v13891_v51 = vld [vmem:[%s11482_s29 + $0x8] sm:$0xff]  ;;  %v13895_v47 = vld [vmem:[%s11482_s29 + $0x10] sm:$0xff] }
 0xe58   : > { %v9372_v22 = vpop.eup %9371  ;;  %5816 = vrot.lane.b32.xlu0 %v5778_v3, %s9804_s26  ;;  %v5780_v15 = vmul.f32 %v9620_v0, %v5757_v24  ;;  %v5755_v46 = vmul.f32 0.6931472, %v9370_v33  ;;  %v13903_v3 = vld [vmem:[%s11482_s29 + $0x20] sm:$0xff]  ;;  %v13907_v24 = vld [vmem:[%s11482_s29 + $0x28] sm:$0xff]  ;;  %v13911_v33 = vld [vmem:[%s11482_s29 + $0x30] sm:$0xff] }
 0xe59   : > { %v9374_v4 = vpop.eup %9373  ;;  %9383 = vlog2.f32 %v5738_v41  ;;  %v5737_v52 = vadd.f32 1.0, %v9372_v22  ;;  %5814 = vrot.lane.b32.xlu1 %v5777_v34, %s9804_s26  ;;  %v13915_v41 = vld [vmem:[%s11482_s29 + $0x38] sm:$0xff]  ;;  %v13919_v58 = vld [vmem:[%s11482_s29 + $0x48] sm:$0xff]  ;;  %v13923_v34 = vld [vmem:[%s11482_s29 + $0x50] sm:$0xff] }
 0xe5a   : > { %v9376_v10 = vpop.eup %9375  ;;  %v5779_v40 = vmul.f32 %v9621_v62, %v5755_v46  ;;  %v5761_v14 = vmul.f32 0.6931472, %v9374_v4  ;;  %v13927_v22 = vld [vmem:[%s11482_s29 + $0x58] sm:$0xff]  ;;  %v13931_v0 = vld [vmem:[%s11482_s29 + $0x60] sm:$0xff]  ;;  %v13939_v46 = vld [vmem:[%s11482_s29 + $0x70] sm:$0xff] }
 0xe5b   : > { %9385 = vlog2.f32 %v5737_v52  ;;  %v5739_v56 = vadd.f32 1.0, %v9376_v10  ;;  %v13943_v4 = vld [vmem:[%s11482_s29 + $0x78] sm:$0xff]  ;;  %v13947_v52 = vld [vmem:[%s11535_s17] sm:$0xff]  ;;  %v13951_v10 = vld [vmem:[%s11535_s17 + $0x8] sm:$0xff] }
 0xe5c   : > { %v9378_v23 = vpop.eup %9377  ;;  %5820 = vrot.lane.b32.xlu0 %v5780_v15, %s9804_s26  ;;  %v5782_v26 = vmul.f32 %v9622_v44, %v5761_v14  ;;  %v13935_v15 = vld [vmem:[%s11482_s29 + $0x68] sm:$0xff]  ;;  %v13955_v62 = vld [vmem:[%s11535_s17 + $0x10] sm:$0xff] }
 0xe5d   : > { %v9380_v48 = vpop.eup %9379  ;;  %9387 = vlog2.f32 %v5739_v56  ;;  %5818 = vrot.lane.b32.xlu1 %v5779_v40, %s9804_s26  ;;  %v5759_v16 = vmul.f32 0.6931472, %v9378_v23  ;;  %v13959_v40 = vld [vmem:[%s11535_s17 + $0x18] sm:$0xff]  ;;  %v13963_v23 = vld [vmem:[%s11535_s17 + $0x28] sm:$0xff] }
 0xe5e   : > { %v9382_v57 = vpop.eup %9381  ;;  %v5765_v60 = vmul.f32 0.6931472, %v9380_v48 }
 0xe5f   : > { %v5781_v17 = vmul.f32 %v9623_v13, %v5759_v16  ;;  %v5763_v11 = vmul.f32 0.6931472, %v9382_v57  ;;  %v13969_v16 = vld [vmem:[%s11535_s17 + $0x38] sm:$0xff] }
 0xe60   : > { %5824 = vrot.lane.b32.xlu0 %v5782_v26, %s9804_s26  ;;  %v5784_v38 = vmul.f32 %v9624_v53, %v5765_v60  ;;  %v13974_v53 = vld [vmem:[%s11535_s17 + $0x48] sm:$0xff] }
 0xe61   : > { %5822 = vrot.lane.b32.xlu1 %v5781_v17, %s9804_s26  ;;  %v5783_v30 = vmul.f32 %v9625_v50, %v5763_v11 }
 0xe63   : > { %v9384_v54 = vpop.eup %9383 }
 0xe64   : > { %5828 = vrot.lane.b32.xlu0 %v5784_v38, %s9804_s26  ;;  %v5769_v35 = vmul.f32 0.6931472, %v9384_v54 }
 0xe65   : > { %v9386_v43 = vpop.eup %9385  ;;  %5826 = vrot.lane.b32.xlu1 %v5783_v30, %s9804_s26 }
 0xe66   : > { %v5786_v28 = vmul.f32 %v9626_v42, %v5769_v35  ;;  %v5767_v6 = vmul.f32 0.6931472, %v9386_v43  ;;  %v13980_v35 = vld [vmem:[%s11535_s17 + $0x58] sm:$0xff] }
 0xe67   : > { %v9388_v36 = vpop.eup %9387 }
 0xe68   : > { %5832 = vrot.lane.b32.xlu0 %v5786_v28, %s9804_s26  ;;  %v5785_v2 = vmul.f32 %v9627_v55, %v5767_v6  ;;  %v5771_v27 = vmul.f32 0.6931472, %v9388_v36  ;;  %v13986_v55 = vld [vmem:[%s11535_s17 + $0x68] sm:$0xff] }
 0xe6a   : > { %5830 = vrot.lane.b32.xlu1 %v5785_v2, %s9804_s26  ;;  %v5787_v31 = vmul.f32 %v9628_v37, %v5771_v27 }
 0xe6e   : > { %5834 = vrot.lane.b32.xlu1 %v5787_v31, %s9804_s26 }
 0xe72   : > { %5894 = vperm.xlu1 %9059, %v13887_v45  }
 0xe76   : > { %5897 = vperm.xlu1 %9059, %v13891_v51  }
 0xe7a   : > { %5900 = vperm.xlu1 %9059, %v13895_v47  }
 0xe7e   : > { %5903 = vperm.xlu1 %9059, %v13899_v39  }
 0xe82   : > { %5906 = vperm.xlu1 %9059, %v13903_v3  }
 0xe86   : > { %5909 = vperm.xlu1 %9059, %v13907_v24  }
 0xe8a   : > { %5912 = vperm.xlu1 %9059, %v13911_v33  }
 0xe8e   : > { %5915 = vperm.xlu1 %9059, %v13915_v41  }
 0xe92   : > { %5921 = vperm.xlu1 %9059, %v13919_v58  }
 0xe96   : > { %5924 = vperm.xlu1 %9059, %v13923_v34  }
 0xe9a   : > { %5927 = vperm.xlu1 %9059, %v13927_v22  }
 0xe9e   : > { %5930 = vperm.xlu1 %9059, %v13931_v0  }
 0xea2   : > { %5933 = vperm.xlu1 %9059, %v13935_v15  }
 0xea6   : > { %5936 = vperm.xlu1 %9059, %v13939_v46  }
 0xeaa   : > { %5939 = vperm.xlu1 %9059, %v13943_v4  }
 0xeae   : > { %5958 = vperm.xlu1 %9059, %v13947_v52  }
 0xeb2   : > { %5962 = vperm.xlu1 %9059, %v13951_v10  }
 0xeb6   : > { %5966 = vperm.xlu1 %9059, %v13955_v62  }
 0xeba   : > { %5970 = vperm.xlu1 %9059, %v13959_v40  }
 0xebc   : > { %v5805_v14 = vpop.permute.xlu1 %5804  ;;  %v5807_v56 = vpop.permute.xlu0 %5806 }
 0xebd   : > { %v5853_v44 = vsel %vm2446_vm6, %v5807_v56, 0.0  ;;  %v5852_v26 = vsel %vm2446_vm6, %v5805_v14, 0.0 }
 0xebe   : > { %5978 = vperm.xlu1 %9059, %v13963_v23   ;;  %v5854_v60 = vadd.f32 %v5853_v44, %v5852_v26  ;;  %v13992_v44 = vld [vmem:[%s11535_s17 + $0x78] sm:$0xff] }
 0xec0   : > { %v5809_v48 = vpop.permute.xlu1 %5808 }
 0xec1   : > { %v5855_v57 = vsel %vm2446_vm6, %v5809_v48, 0.0 }
 0xec2   : > { %5986 = vperm.xlu1 %9059, %v13969_v16   ;;  %v5856_v17 = vadd.f32 %v5855_v57, %v5854_v60 }
 0xec4   : > { %v5813_v13 = vpop.permute.xlu0 %5812 }
 0xec5   : > { %v5811_v11 = vpop.permute.xlu1 %5810  ;;  %v5859_v30 = vsel %vm2446_vm6, %v5813_v13, 0.0 }
 0xec6   : > { %5994 = vperm.xlu1 %9059, %v13974_v53   ;;  %v5857_v38 = vsel %vm2446_vm6, %v5811_v11, 0.0  ;;  %v9805_v11 = vmov 13  }
 0xec7   : > { %v5858_v50 = vadd.f32 %v5857_v38, %v5856_v17 }
 0xec9   : > { %v5860_v54 = vadd.f32 %v5859_v30, %v5858_v50 }
 0xeca   : > { %6002 = vperm.xlu1 %9059, %v13980_v35   ;;  %v5817_v43 = vpop.permute.xlu0 %5816 }
 0xecb   : > { %v5815_v42 = vpop.permute.xlu1 %5814  ;;  %v5863_v36 = vsel %vm2446_vm6, %v5817_v43, 0.0 }
 0xecc   : > { %v5861_v28 = vsel %vm2446_vm6, %v5815_v42, 0.0 }
 0xecd   : > { %v5862_v6 = vadd.f32 %v5861_v28, %v5860_v54 }
 0xece   : > { %6010 = vperm.xlu1 %9059, %v13986_v55   ;;  %v5821_v2 = vpop.permute.xlu0 %5820 }
 0xecf   : > { %v5864_v27 = vadd.f32 %v5863_v36, %v5862_v6  ;;  %v5819_v37 = vpop.permute.xlu1 %5818  ;;  %v5867_v56 = vsel %vm2446_vm6, %v5821_v2, 0.0 }
 0xed0   : > { %v5865_v31 = vsel %vm2446_vm6, %v5819_v37, 0.0 }
 0xed1   : > { %v5866_v14 = vadd.f32 %v5865_v31, %v5864_v27 }
 0xed2   : > { %6018 = vperm.xlu1 %9059, %v13992_v44   ;;  %v5825_v26 = vpop.permute.xlu0 %5824 }
 0xed3   : > { %v5868_v48 = vadd.f32 %v5867_v56, %v5866_v14  ;;  %v5823_v57 = vpop.permute.xlu1 %5822  ;;  %v5871_v17 = vsel %vm2446_vm6, %v5825_v26, 0.0 }
 0xed4   : > { %v5869_v60 = vsel %vm2446_vm6, %v5823_v57, 0.0 }
 0xed5   : > { %v5870_v13 = vadd.f32 %v5869_v60, %v5868_v48  ;;  %v14007_v48 = vld [vmem:[%s11482_s29 + $0x40] sm:$0xff] }
 0xed6   : > { %9062 = vset.pattern.permute.xlu1 %v9805_v11  ;;  %v5829_v38 = vpop.permute.xlu0 %5828 }
 0xed7   : > { %v5872_v50 = vadd.f32 %v5871_v17, %v5870_v13  ;;  %6041 = vperm.xlu1 %9062, %v13891_v51   ;;  %v5827_v30 = vpop.permute.xlu1 %5826  ;;  %v5875_v42 = vsel %vm2446_vm6, %v5829_v38, 0.0  ;;  %v14025_v38 = vld [vmem:[%s11535_s17 + $0x20] sm:$0xff] }
 0xed8   : > { %v5873_v54 = vsel %vm2446_vm6, %v5827_v30, 0.0  ;;  %v14032_v30 = vld [vmem:[%s11535_s17 + $0x30] sm:$0xff] }
 0xed9   : > { %v5874_v43 = vadd.f32 %v5873_v54, %v5872_v50 }
 0xeda   : > { %v5833_v36 = vpop.permute.xlu0 %5832 }
 0xedb   : > { %v5876_v28 = vadd.f32 %v5875_v42, %v5874_v43  ;;  %6044 = vperm.xlu1 %9062, %v13895_v47   ;;  %v5879_v37 = vsel %vm2446_vm6, %v5833_v36, 0.0  ;;  %v14039_v43 = vld [vmem:[%s11535_s17 + $0x40] sm:$0xff] }
 0xedc   : > { %v5831_v6 = vpop.permute.xlu1 %5830  ;;  %v14053_v36 = vld [vmem:[%s11535_s17 + $0x60] sm:$0xff] }
 0xedd   : > { %v5877_v2 = vsel %vm2446_vm6, %v5831_v6, 0.0 }
 0xede   : > { %v5878_v27 = vadd.f32 %v5877_v2, %v5876_v28  ;;  %v14046_v28 = vld [vmem:[%s11535_s17 + $0x50] sm:$0xff] }
 0xedf   : > { %6050 = vperm.xlu1 %9062, %v13903_v3  }
 0xee0   : > { %v5880_v31 = vadd.f32 %v5879_v37, %v5878_v27  ;;  %v5835_v14 = vpop.permute.xlu1 %5834  ;;  %v14060_v27 = vld [vmem:[%s11535_s17 + $0x70] sm:$0xff] }
 0xee1   : > { %v5881_v56 = vsel %vm2446_vm6, %v5835_v14, 0.0 }
 0xee2   : > { %v5882_v26 = vadd.f32 %v5881_v56, %v5880_v31  ;;  %v9806_v31 = vmov 14  }
 0xee3   : > { %6056 = vperm.xlu1 %9062, %v13911_v33  }
 0xee4   : > { %5883 = vadd.xlane.f32.xlu0 %v5882_v26 }
 0xee7   : > { %6062 = vperm.xlu1 %9062, %v14007_v48  }
 0xeeb   : > { %6068 = vperm.xlu1 %9062, %v13923_v34  }
 0xeef   : > { %6074 = vperm.xlu1 %9062, %v13931_v0  }
 0xef1   : > { %v14012_v57 = vpop.permute.xlu1 %5894 }
 0xef2   : > { %vm5941_vm7 = vcmp.eq.s32.totalorder %v14012_v57, %v10812_v59 }
 0xef3   : > { %6080 = vperm.xlu1 %9062, %v13939_v46  }
 0xef5   : > { %v14015_v60 = vpop.permute.xlu1 %5897 }
 0xef6   : > { %vm5942_vm10 = vcmp.eq.s32.totalorder %v14015_v60, %v10812_v59 }
 0xef7   : > { %6102 = vperm.xlu1 %9062, %v13947_v52  }
 0xef9   : > { %v14018_v13 = vpop.permute.xlu1 %5900 }
 0xefa   : > { %5918 = vperm.xlu0 %9060, %v14007_v48   ;;  %vm5943_vm4 = vcmp.eq.s32.totalorder %v14018_v13, %v10812_v59 }
 0xefb   : > { %6110 = vperm.xlu1 %9062, %v13955_v62  }
 0xefd   : > { %v14022_v17 = vpop.permute.xlu1 %5903 }
 0xefe   : > { %5974 = vperm.xlu0 %9060, %v14025_v38   ;;  %vm5944_vm12 = vcmp.eq.s32.totalorder %v14022_v17, %v10812_v59 }
 0xeff   : > { %6118 = vperm.xlu1 %9062, %v14025_v38  }
 0xf01   : > { %v14029_v50 = vpop.permute.xlu1 %5906 }
 0xf02   : > { %5982 = vperm.xlu0 %9060, %v14032_v30   ;;  %vm5945_vm1 = vcmp.eq.s32.totalorder %v14029_v50, %v10812_v59 }
 0xf03   : > { %6126 = vperm.xlu1 %9062, %v14032_v30  }
 0xf05   : > { %v14036_v54 = vpop.permute.xlu1 %5909 }
 0xf06   : > { %5990 = vperm.xlu0 %9060, %v14039_v43   ;;  %vm5946_vm0 = vcmp.eq.s32.totalorder %v14036_v54, %v10812_v59 }
 0xf07   : > { %6134 = vperm.xlu1 %9062, %v14039_v43  }
 0xf09   : > { %v14043_v42 = vpop.permute.xlu1 %5912 }
 0xf0a   : > { %5998 = vperm.xlu0 %9060, %v14046_v28   ;;  %vm5947_vm15 = vcmp.eq.s32.totalorder %v14043_v42, %v10812_v59 }
 0xf0b   : > { %6142 = vperm.xlu1 %9062, %v14046_v28  }
 0xf0d   : > { %v14050_v6 = vpop.permute.xlu1 %5915 }
 0xf0e   : > { %6006 = vperm.xlu0 %9060, %v14053_v36   ;;  %vm5948_vm11 = vcmp.eq.s32.totalorder %v14050_v6, %v10812_v59 }
 0xf0f   : > { %6150 = vperm.xlu1 %9062, %v14053_v36  }
 0xf11   : > { %v14057_v2 = vpop.permute.xlu1 %5921 }
 0xf12   : > { %6014 = vperm.xlu0 %9060, %v14060_v27   ;;  %vm5950_vm2 = vcmp.eq.s32.totalorder %v14057_v2, %v10812_v59 }
 0xf13   : > { %6158 = vperm.xlu1 %9062, %v14060_v27  }
 0xf15   : > { %v14064_v37 = vpop.permute.xlu1 %5924 }
 0xf16   : > { %9061 = vset.pattern.permute.xlu0 %v9805_v11  ;;  %vm5951_vm13 = vcmp.eq.s32.totalorder %v14064_v37, %v10812_v59 }
 0xf17   : > { %9063 = vset.pattern.permute.xlu1 %v9806_v31  ;;  %6038 = vperm.xlu0 %9061, %v13887_v45  }
 0xf18   : > { %6198 = vperm.xlu1 %9063, %v13887_v45  }
 0xf19   : > { %v14068_v14 = vpop.permute.xlu1 %5927 }
 0xf1a   : > { %vm5952_vm5 = vcmp.eq.s32.totalorder %v14068_v14, %v10812_v59 }
 0xf1b   : > { %6047 = vperm.xlu0 %9061, %v13899_v39  }
 0xf1c   : > { %6204 = vperm.xlu1 %9063, %v13895_v47  }
 0xf1d   : > { %v14072_v56 = vpop.permute.xlu1 %5930 }
 0xf1e   : > { %16126 = vst [vmem:[#allocation15_spill] sm:$0xff] %v14072_v56 }
 0xf1f   : > { %6053 = vperm.xlu0 %9061, %v13907_v24  }
 0xf20   : > { %6207 = vperm.xlu1 %9063, %v13899_v39  }
 0xf21   : > { %v14076_v26 = vpop.permute.xlu1 %5933 }
 0xf23   : > { %6059 = vperm.xlu0 %9061, %v13915_v41  }
 0xf24   : > { %6213 = vperm.xlu1 %9063, %v13907_v24  }
 0xf25   : > { %v14080_v11 = vpop.permute.xlu1 %5936 }
 0xf26   : > { %16127 = vst [vmem:[#allocation148_spill] sm:$0xff] %v14080_v11 }
 0xf27   : > { %6065 = vperm.xlu0 %9061, %v13919_v58  }
 0xf28   : > { %6219 = vperm.xlu1 %9063, %v13915_v41  }
 0xf29   : > { %v14084_v19 = vpop.permute.xlu1 %5939 }
 0xf2a   : > { %16128 = vst [vmem:[#allocation165_spill] sm:$0xff] %v14084_v19 }
 0xf2b   : > { %6071 = vperm.xlu0 %9061, %v13927_v22  }
 0xf2c   : > { %6225 = vperm.xlu1 %9063, %v13919_v58  }
 0xf2d   : > { %v14088_v25 = vpop.permute.xlu1 %5958 }
 0xf2f   : > { %6077 = vperm.xlu0 %9061, %v13935_v15  }
 0xf30   : > { %6231 = vperm.xlu1 %9063, %v13927_v22  }
 0xf31   : > { %v14092_v61 = vpop.permute.xlu1 %5962 }
 0xf32   : > { %v6022_v60 = vsel %vm5942_vm10, %v14092_v61, 0.0 }
 0xf33   : > { %6083 = vperm.xlu0 %9061, %v13943_v4  }
 0xf34   : > { %6237 = vperm.xlu1 %9063, %v13935_v15  }
 0xf35   : > { %v14096_v18 = vpop.permute.xlu1 %5966 }
 0xf36   : > { %v6023_v13 = vsel %vm5943_vm4, %v14096_v18, 0.0 }
 0xf37   : > { %6106 = vperm.xlu0 %9061, %v13951_v10  }
 0xf38   : > { %6243 = vperm.xlu1 %9063, %v13943_v4  }
 0xf39   : > { %v14100_v63 = vpop.permute.xlu1 %5970 }
 0xf3a   : > { %v6024_v17 = vsel %vm5944_vm12, %v14100_v63, 0.0 }
 0xf3b   : > { %6114 = vperm.xlu0 %9061, %v13959_v40  }
 0xf3c   : > { %6266 = vperm.xlu1 %9063, %v13951_v10  }
 0xf3d   : > { %v14104_v29 = vpop.permute.xlu1 %5978 }
 0xf3e   : > { %v14382_v54 = vsel %vm5946_vm0, %v14104_v29, 0.0 }
 0xf3f   : > { %6122 = vperm.xlu0 %9061, %v13963_v23  }
 0xf40   : > { %6274 = vperm.xlu1 %9063, %v13959_v40  }
 0xf41   : > { %v14108_v9 = vpop.permute.xlu1 %5986 }
 0xf42   : > { %v14385_v2 = vsel %vm5948_vm11, %v14108_v9, 0.0 }
 0xf43   : > { %6130 = vperm.xlu0 %9061, %v13969_v16  }
 0xf44   : > { %6282 = vperm.xlu1 %9063, %v13963_v23  }
 0xf45   : > { %v14112_v20 = vpop.permute.xlu1 %5994 }
 0xf46   : > { %v14388_v14 = vsel %vm5950_vm2, %v14112_v20, 0.0 }
 0xf47   : > { %6138 = vperm.xlu0 %9061, %v13974_v53  }
 0xf48   : > { %6290 = vperm.xlu1 %9063, %v13969_v16  }
 0xf49   : > { %v14116_v21 = vpop.permute.xlu1 %6002 }
 0xf4b   : > { %6146 = vperm.xlu0 %9061, %v13980_v35  }
 0xf4c   : > { %6298 = vperm.xlu1 %9063, %v13974_v53  }
 0xf4d   : > { %v14120_v8 = vpop.permute.xlu1 %6010 }
 0xf4f   : > { %6154 = vperm.xlu0 %9061, %v13986_v55  }
 0xf50   : > { %6306 = vperm.xlu1 %9063, %v13980_v35  }
 0xf51   : > { %v14124_v12 = vpop.permute.xlu1 %6018 }
 0xf52   : > { %16129 = vst [vmem:[#allocation10_spill] sm:$0xff] %v14124_v12 }
 0xf53   : > { %6162 = vperm.xlu0 %9061, %v13992_v44  }
 0xf54   : > { %6314 = vperm.xlu1 %9063, %v13986_v55  }
 0xf56   : > { %v14128_v7 = vpop.permute.xlu1 %6041 }
 0xf57   : > { %9064 = vset.pattern.permute.xlu0 %v9806_v31  ;;  %vm6086_vm4 = vcmp.eq.s32.totalorder %v14128_v7, %v10812_v59 }
 0xf58   : > { %6322 = vperm.xlu1 %9063, %v13992_v44   ;;  %6201 = vperm.xlu0 %9064, %v13891_v51  }
 0xf5a   : > { %v14132_v1 = vpop.permute.xlu1 %6044 }
 0xf5c   : > { %9066 = vset.pattern.permute.xlu1 %v9807_v32  ;;  %6210 = vperm.xlu0 %9064, %v13903_v3  }
 0xf5d   : > { %6361 = vperm.xlu1 %9066, %v13891_v51  }
 0xf5e   : > { %v14136_v49 = vpop.permute.xlu1 %6050 }
 0xf60   : > { %6216 = vperm.xlu0 %9064, %v13911_v33  }
 0xf61   : > { %6364 = vperm.xlu1 %9066, %v13895_v47  }
 0xf62   : > { %v14140_v5 = vpop.permute.xlu1 %6056 }
 0xf64   : > { %6222 = vperm.xlu0 %9064, %v14007_v48  }
 0xf65   : > { %6370 = vperm.xlu1 %9066, %v13903_v3  }
 0xf66   : > { %v14144_v31 = vpop.permute.xlu1 %6062 }
 0xf67   : > { %vm6093_vm10 = vcmp.eq.s32.totalorder %v14144_v31, %v10812_v59 }
 0xf68   : > { %6228 = vperm.xlu0 %9064, %v13923_v34  }
 0xf69   : > { %6376 = vperm.xlu1 %9066, %v13911_v33  }
 0xf6a   : > { %v14148_v12 = vpop.permute.xlu1 %6068 }
 0xf6b   : > { %16130 = vst [vmem:[#allocation23_spill] sm:$0xff] %v14148_v12 }
 0xf6c   : > { %6234 = vperm.xlu0 %9064, %v13931_v0  }
 0xf6d   : > { %6382 = vperm.xlu1 %9066, %v14007_v48  }
 0xf6e   : > { %v14152_v51 = vpop.permute.xlu1 %6074 }
 0xf6f   : > { %16131 = vst [vmem:[#allocation9_spill] sm:$0xff] %v14152_v51 }
 0xf70   : > { %6240 = vperm.xlu0 %9064, %v13939_v46  }
 0xf71   : > { %6388 = vperm.xlu1 %9066, %v13923_v34   ;;  %v5884_v47 = vpop.xlane.xlu0 %5883 }
 0xf72   : > { %v5885_v3 = vrot.slane %v5884_v47, 4  ;;  %v14156_v19 = vpop.permute.xlu1 %6080 }
 0xf73   : > { %16132 = vst [vmem:[#allocation24_spill] sm:$0xff] %v14156_v19 }
 0xf74   : > { %v5886_v11 = vadd.f32 %v5885_v3, %v5884_v47  ;;  %6262 = vperm.xlu0 %9064, %v13947_v52  }
 0xf75   : > { %6394 = vperm.xlu1 %9066, %v13931_v0  }
 0xf76   : > { %v14160_v33 = vpop.permute.xlu1 %6102  ;;  %v5887_v56 = vrot.slane %v5886_v11, 2 }
 0xf78   : > { %6270 = vperm.xlu0 %9064, %v13955_v62   ;;  %v5888_v48 = vadd.f32 %v5887_v56, %v5886_v11 }
 0xf79   : > { %6400 = vperm.xlu1 %9066, %v13939_v46   ;;  %v14164_v51 = vpop.permute.xlu0 %5918 }
 0xf7a   : > { %v14166_v34 = vpop.permute.xlu1 %6110  ;;  %v5889_v12 = vrot.slane %v5888_v48, 1 }
 0xf7c   : > { %6278 = vperm.xlu0 %9064, %v14025_v38   ;;  %v5890_v47 = vadd.f32 %v5889_v12, %v5888_v48 }
 0xf7d   : > { %6422 = vperm.xlu1 %9066, %v13947_v52   ;;  %v14170_v3 = vpop.permute.xlu0 %5974 }
 0xf7e   : > { %v14172_v0 = vpop.permute.xlu1 %6118  ;;  %8954 = vpush %v5890_v47  ;;  %v6025_v9 = vsel %vm5945_vm1, %v14170_v3, 0.0  ;;  %vm5949_vm1 = vcmp.eq.s32.totalorder %v14164_v51, %v10812_v59 }
 0xf80   : > { %6286 = vperm.xlu0 %9064, %v14032_v30  }
 0xf81   : > { %6430 = vperm.xlu1 %9066, %v13955_v62   ;;  %v14176_v46 = vpop.permute.xlu0 %5982 }
 0xf82   : > { %v14178_v56 = vpop.permute.xlu1 %6126  ;;  %v6027_v63 = vsel %vm5947_vm15, %v14176_v46, 0.0 }
 0xf84   : > { %6294 = vperm.xlu0 %9064, %v14039_v43  }
 0xf85   : > { %6438 = vperm.xlu1 %9066, %v14025_v38   ;;  %v14182_v12 = vpop.permute.xlu0 %5990 }
 0xf86   : > { %v14184_v52 = vpop.permute.xlu1 %6134  ;;  %v6029_v50 = vsel %vm5949_vm1, %v14182_v12, 0.0 }
 0xf88   : > { %6302 = vperm.xlu0 %9064, %v14046_v28  }
 0xf89   : > { %6446 = vperm.xlu1 %9066, %v14032_v30   ;;  %v14188_v11 = vpop.permute.xlu0 %5998 }
 0xf8a   : > { %v14190_v48 = vpop.permute.xlu1 %6142  ;;  %v14447_v12 = vsel %vm5951_vm13, %v14188_v11, 0.0 }
 0xf8b   : > { %16133 = vst [vmem:[#allocation42_spill] sm:$0xff] %v14190_v48 }
 0xf8c   : > { %6310 = vperm.xlu0 %9064, %v14053_v36  }
 0xf8d   : > { %6454 = vperm.xlu1 %9066, %v14039_v43   ;;  %v14194_v62 = vpop.permute.xlu0 %6006 }
 0xf8e   : > { %16134 = vst [vmem:[#allocation38_spill] sm:$0xff] %v14194_v62  ;;  %v14196_v47 = vpop.permute.xlu1 %6150 }
 0xf8f   : > { %16135 = vst [vmem:[#allocation36_spill] sm:$0xff] %v14196_v47 }
 0xf90   : > { %6318 = vperm.xlu0 %9064, %v14060_v27  }
 0xf91   : > { %6462 = vperm.xlu1 %9066, %v14046_v28   ;;  %v14200_v38 = vpop.permute.xlu0 %6014 }
 0xf92   : > { %16136 = vst [vmem:[#allocation115_spill] sm:$0xff] %v14200_v38  ;;  %v14202_v19 = vpop.permute.xlu1 %6158 }
 0xf93   : > { %16137 = vst [vmem:[#allocation122_spill] sm:$0xff] %v14202_v19 }
 0xf94   : > { %9065 = vset.pattern.permute.xlu0 %v9807_v32 }
 0xf95   : > { %6470 = vperm.xlu1 %9066, %v14053_v36   ;;  %6358 = vperm.xlu0 %9065, %v13887_v45  }
 0xf96   : > { %v14206_v30 = vpop.permute.xlu0 %6038 }
 0xf97   : > { %v14208_v43 = vpop.permute.xlu1 %6198  ;;  %vm6085_vm9 = vcmp.eq.s32.totalorder %v14206_v30, %v10812_v59 }
 0xf98   : > { %vm6245_vm3 = vcmp.eq.s32.totalorder %v14208_v43, %v10812_v59 }
 0xf99   : > { %6478 = vperm.xlu1 %9066, %v14060_v27   ;;  %6367 = vperm.xlu0 %9065, %v13899_v39  }
 0xf9a   : > { %v14212_v47 = vpop.permute.xlu0 %6047 }
 0xf9b   : > { %v14214_v28 = vpop.permute.xlu1 %6204 }
 0xf9c   : > { %vm6247_vm11 = vcmp.eq.s32.totalorder %v14214_v28, %v10812_v59 }
 0xf9d   : > { %6373 = vperm.xlu0 %9065, %v13907_v24  }
 0xf9e   : > { %v14217_v19 = vpop.permute.xlu0 %6053 }
 0xf9f   : > { %v14219_v32 = vpop.permute.xlu1 %6207 }
 0xfa0   : > { %vm6248_vm2 = vcmp.eq.s32.totalorder %v14219_v32, %v10812_v59 }
 0xfa1   : > { %6379 = vperm.xlu0 %9065, %v13915_v41  }
 0xfa2   : > { %v14222_v45 = vpop.permute.xlu0 %6059 }
 0xfa3   : > { %16138 = vst [vmem:[#allocation40_spill] sm:$0xff] %v14222_v45  ;;  %v14224_v36 = vpop.permute.xlu1 %6213 }
 0xfa5   : > { %6385 = vperm.xlu0 %9065, %v13919_v58  }
 0xfa6   : > { %v14227_v27 = vpop.permute.xlu0 %6065 }
 0xfa7   : > { %16139 = vst [vmem:[#allocation48_spill] sm:$0xff] %v14227_v27  ;;  %v14229_v39 = vpop.permute.xlu1 %6219 }
 0xfa8   : > { %16140 = vst [vmem:[#allocation87_spill] sm:$0xff] %v14229_v39 }
 0xfa9   : > { %6391 = vperm.xlu0 %9065, %v13927_v22  }
 0xfaa   : > { %v14232_v38 = vpop.permute.xlu0 %6071 }
 0xfab   : > { %16141 = vst [vmem:[#allocation81_spill] sm:$0xff] %v14232_v38  ;;  %v14234_v24 = vpop.permute.xlu1 %6225 }
 0xfac   : > { %16142 = vst [vmem:[#allocation83_spill] sm:$0xff] %v14234_v24 }
 0xfad   : > { %6397 = vperm.xlu0 %9065, %v13935_v15  }
 0xfae   : > { %v14237_v62 = vpop.permute.xlu0 %6077 }
 0xfaf   : > { %16143 = vst [vmem:[#allocation26_spill] sm:$0xff] %v14237_v62  ;;  %v14239_v41 = vpop.permute.xlu1 %6231 }
 0xfb0   : > { %16144 = vst [vmem:[#allocation101_spill] sm:$0xff] %v14239_v41 }
 0xfb1   : > { %6403 = vperm.xlu0 %9065, %v13943_v4  }
 0xfb2   : > { %v14242_v45 = vpop.permute.xlu0 %6083 }
 0xfb3   : > { %16145 = vst [vmem:[#allocation44_spill] sm:$0xff] %v14242_v45  ;;  %v14244_v58 = vpop.permute.xlu1 %6237 }
 0xfb4   : > { %16146 = vst [vmem:[#allocation60_spill] sm:$0xff] %v14244_v58 }
 0xfb5   : > { %6426 = vperm.xlu0 %9065, %v13951_v10  }
 0xfb6   : > { %v14247_v27 = vpop.permute.xlu0 %6106 }
 0xfb7   : > { %v14249_v22 = vpop.permute.xlu1 %6243  ;;  %v6166_v18 = vsel %vm6086_vm4, %v14247_v27, 0.0  ;;  %vm6090_vm4 = vcmp.eq.s32.totalorder %v14217_v19, %v10812_v59 }
 0xfb8   : > { %16147 = vst [vmem:[#allocation62_spill] sm:$0xff] %v14249_v22 }
 0xfb9   : > { %6434 = vperm.xlu0 %9065, %v13959_v40  }
 0xfba   : > { %v14252_v38 = vpop.permute.xlu0 %6114 }
 0xfbb   : > { %v14254_v15 = vpop.permute.xlu1 %6266 }
 0xfbd   : > { %6442 = vperm.xlu0 %9065, %v13963_v23  }
 0xfbe   : > { %v14257_v62 = vpop.permute.xlu0 %6122 }
 0xfbf   : > { %16148 = vst [vmem:[#allocation105_spill] sm:$0xff] %v14257_v62  ;;  %v14259_v4 = vpop.permute.xlu1 %6274 }
 0xfc1   : > { %6450 = vperm.xlu0 %9065, %v13969_v16  }
 0xfc2   : > { %v14262_v45 = vpop.permute.xlu0 %6130 }
 0xfc3   : > { %16149 = vst [vmem:[#allocation56_spill] sm:$0xff] %v14262_v45  ;;  %v14264_v10 = vpop.permute.xlu1 %6282 }
 0xfc4   : > { %16150 = vst [vmem:[#allocation78_spill] sm:$0xff] %v14264_v10 }
 0xfc5   : > { %6458 = vperm.xlu0 %9065, %v13974_v53  }
 0xfc6   : > { %v14267_v22 = vpop.permute.xlu0 %6138 }
 0xfc7   : > { %16151 = vst [vmem:[#allocation89_spill] sm:$0xff] %v14267_v22  ;;  %v14269_v40 = vpop.permute.xlu1 %6290 }
 0xfc8   : > { %16152 = vst [vmem:[#allocation79_spill] sm:$0xff] %v14269_v40 }
 0xfc9   : > { %6466 = vperm.xlu0 %9065, %v13980_v35  }
 0xfca   : > { %v14272_v58 = vpop.permute.xlu0 %6146 }
 0xfcb   : > { %16153 = vst [vmem:[#allocation46_spill] sm:$0xff] %v14272_v58  ;;  %v14274_v23 = vpop.permute.xlu1 %6298 }
 0xfcc   : > { %16154 = vst [vmem:[#allocation75_spill] sm:$0xff] %v14274_v23 }
 0xfcd   : > { %6474 = vperm.xlu0 %9065, %v13986_v55  }
 0xfce   : > { %v14277_v41 = vpop.permute.xlu0 %6154 }
 0xfcf   : > { %16155 = vst [vmem:[#allocation119_spill] sm:$0xff] %v14277_v41  ;;  %v14282_v45 = vpop.permute.xlu1 %6306 }
 0xfd0   : > { %16157 = vst [vmem:[#allocation77_spill] sm:$0xff] %v14282_v45 }
 0xfd1   : > { %6482 = vperm.xlu0 %9065, %v13992_v44  }
 0xfd2   : > { %v14280_v16 = vpop.permute.xlu0 %6162 }
 0xfd3   : > { %16156 = vst [vmem:[#allocation37_spill] sm:$0xff] %v14280_v16  ;;  %v14286_v22 = vpop.permute.xlu1 %6314 }
 0xfd4   : > { %16158 = vst [vmem:[#allocation93_spill] sm:$0xff] %v14286_v22 }
 0xfd7   : > { %v14284_v53 = vpop.permute.xlu0 %6201  ;;  %v14290_v35 = vpop.permute.xlu1 %6322 }
 0xfd8   : > { %16159 = vst [vmem:[#allocation39_spill] sm:$0xff] %v14290_v35  ;;  %vm6246_vm0 = vcmp.eq.s32.totalorder %v14284_v53, %v10812_v59  ;;  %v16183_v53 = vld [vmem:[#allocation78_spill] sm:$0xff] }
 0xfd9   : > { %v6326_v42 = vsel %vm6246_vm0, %v14254_v15, 0.0 }
 0xfdb   : > { %v14288_v40 = vpop.permute.xlu0 %6210 }
 0xfdc   : > { %v14296_v55 = vpop.permute.xlu1 %6361  ;;  %vm6249_vm13 = vcmp.eq.s32.totalorder %v14288_v40, %v10812_v59 }
 0xfdf   : > { %v14292_v58 = vpop.permute.xlu0 %6216 }
 0xfe0   : > { %16160 = vst [vmem:[#allocation54_spill] sm:$0xff] %v14292_v58  ;;  %v14300_v44 = vpop.permute.xlu1 %6364 }
 0xfe1   : > { %vm6407_vm15 = vcmp.eq.s32.totalorder %v14300_v44, %v10812_v59 }
 0xfe3   : > { %v14294_v23 = vpop.permute.xlu0 %6222 }
 0xfe4   : > { %16161 = vst [vmem:[#allocation58_spill] sm:$0xff] %v14294_v23  ;;  %v14306_v24 = vpop.permute.xlu1 %6370 }
 0xfe7   : > { %v14298_v41 = vpop.permute.xlu0 %6228  ;;  %v16184_v44 = vld [vmem:[#allocation54_spill] sm:$0xff] }
 0xfe8   : > { %16162 = vst [vmem:[#allocation52_spill] sm:$0xff] %v14298_v41  ;;  %v14308_v10 = vpop.permute.xlu1 %6376 }
 0xfe9   : > { %16165 = vst [vmem:[#allocation88_spill] sm:$0xff] %v14308_v10 }
 0xfeb   : > { %v14302_v16 = vpop.permute.xlu0 %6234 }
 0xfec   : > { %16163 = vst [vmem:[#allocation70_spill] sm:$0xff] %v14302_v16  ;;  %v14314_v23 = vpop.permute.xlu1 %6382 }
 0xfed   : > { %16167 = vst [vmem:[#allocation76_spill] sm:$0xff] %v14314_v23  ;;  %v6165_v23 = vsel %vm6085_vm9, %v14160_v33, 0.0  ;;  %vm5954_vm9 = vcmp.eq.s32.totalorder %v14076_v26, %v10812_v59  ;;  %v6173_v26 = vsel %vm6093_vm10, %v14184_v52, 0.0  ;;  %vm6409_vm10 = vcmp.eq.s32.totalorder %v14306_v24, %v10812_v59 }
 0xfef   : > { %v14304_v45 = vpop.permute.xlu0 %6240 }
 0xff0   : > { %16164 = vst [vmem:[#allocation91_spill] sm:$0xff] %v14304_v45  ;;  %v14318_v41 = vpop.permute.xlu1 %6388 }
 0xff1   : > { %16169 = vst [vmem:[#allocation50_spill] sm:$0xff] %v14318_v41 }
 0xff3   : > { %v6263_v22 = vpop.permute.xlu0 %6262 }
 0xff4   : > { %v14324_v45 = vpop.permute.xlu1 %6394 }
 0xff5   : > { %16172 = vst [vmem:[#allocation84_spill] sm:$0xff] %v14324_v45  ;;  %v6325_v45 = vsel %vm6245_vm3, %v6263_v22, 0.0  ;;  %vm6089_vm3 = vcmp.eq.s32.totalorder %v14136_v49, %v10812_v59  ;;  %v16180_v22 = vld [vmem:[#allocation42_spill] sm:$0xff] }
 0xff6   : > { %v6169_v20 = vsel %vm6089_vm3, %v14172_v0, 0.0  ;;  %v6182_v0 = vadd.f32 %v6166_v18, %v6022_v60 }
 0xff7   : > { %v14310_v35 = vpop.permute.xlu0 %6270  ;;  %v6185_v7 = vadd.f32 %v6169_v20, %v6025_v9  ;;  %v16189_v20 = vld [vmem:[#allocation83_spill] sm:$0xff] }
 0xff8   : > { %v14330_v10 = vpop.permute.xlu1 %6400  ;;  %v6327_v46 = vsel %vm6247_vm11, %v14310_v35, 0.0  ;;  %v6342_v28 = vadd.f32 %v6326_v42, %v6182_v0  ;;  %v16193_v42 = vld [vmem:[#allocation76_spill] sm:$0xff] }
 0xff9   : > { %16174 = vst [vmem:[#allocation107_spill] sm:$0xff] %v14330_v10 }
 0xffb   : > { %v14312_v58 = vpop.permute.xlu0 %6278 }
 0xffc   : > { %16166 = vst [vmem:[#allocation86_spill] sm:$0xff] %v14312_v58 }
 0xfff   : > { %v14316_v62 = vpop.permute.xlu0 %6286 }
0x1000   : > { %16168 = vst [vmem:[#allocation73_spill] sm:$0xff] %v14316_v62  ;;  %v6423_v62 = vpop.permute.xlu1 %6422 }
0x1003   : > { %v14320_v39 = vpop.permute.xlu0 %6294  ;;  %v16179_v27 = vld [vmem:[#allocation86_spill] sm:$0xff] }
0x1004   : > { %16170 = vst [vmem:[#allocation64_spill] sm:$0xff] %v14320_v39 }
0x1007   : > { %v14322_v16 = vpop.permute.xlu0 %6302 }
0x1008   : > { %16171 = vst [vmem:[#allocation68_spill] sm:$0xff] %v14322_v16  ;;  %v6021_v16 = vsel %vm5941_vm7, %v14088_v25, 0.0  ;;  %v6431_v25 = vpop.permute.xlu1 %6430  ;;  %vm6087_vm7 = vcmp.eq.s32.totalorder %v14132_v1, %v10812_v59  ;;  %v14391_v1 = vsel %vm5952_vm5, %v14116_v21, 0.0  ;;  %v14409_v21 = vsel %vm5954_vm9, %v14120_v8, 0.0 }
0x1009   : > { %v6181_v41 = vadd.f32 %v6165_v23, %v6021_v16  ;;  %v6167_v29 = vsel %vm6087_vm7, %v14166_v34, 0.0  ;;  %v16177_v34 = vld [vmem:[#allocation15_spill] sm:$0xff]  ;;  %vm6088_vm9 = vcmp.eq.s32.totalorder %v14212_v47, %v10812_v59  ;;  %vm6250_vm7 = vcmp.eq.s32.totalorder %v14224_v36, %v10812_v59  ;;  %v16186_v36 = vld [vmem:[#allocation40_spill] sm:$0xff] }
0x100a   : > { %v6183_v61 = vadd.f32 %v6167_v29, %v6023_v13  ;;  %vm5953_vm5 = vcmp.eq.s32.totalorder %v16177_v34, %v10812_v59  ;;  %v6168_v52 = vsel %vm6088_vm9, %v14252_v38, 0.0  ;;  %v6328_v47 = vsel %vm6248_vm2, %v14259_v4, 0.0  ;;  %v16181_v4 = vld [vmem:[#allocation87_spill] sm:$0xff]  ;;  %v16188_v29 = vld [vmem:[#allocation38_spill] sm:$0xff] }
0x100b   : > { %v14326_v48 = vpop.permute.xlu0 %6310  ;;  %v6341_v39 = vadd.f32 %v6325_v45, %v6181_v41  ;;  %v6487_v32 = vsel %vm6407_vm15, %v6431_v25, 0.0  ;;  %v6184_v38 = vadd.f32 %v6168_v52, %v6024_v17  ;;  %vm6252_vm0 = vcmp.eq.s32.totalorder %v16181_v4, %v10812_v59  ;;  %v16187_v17 = vld [vmem:[#allocation73_spill] sm:$0xff]  ;;  %v16194_v52 = vld [vmem:[#allocation148_spill] sm:$0xff] }
0x100c   : > { %16173 = vst [vmem:[#allocation66_spill] sm:$0xff] %v14326_v48  ;;  %v6439_v6 = vpop.permute.xlu1 %6438  ;;  %v6343_v37 = vadd.f32 %v6327_v46, %v6183_v61  ;;  %v6330_v19 = vsel %vm6250_vm7, %v16183_v53, 0.0  ;;  %vm6092_vm2 = vcmp.eq.s32.totalorder %v16186_v36, %v10812_v59  ;;  %v6033_v9 = vsel %vm5953_vm5, %v16188_v29, 0.0  ;;  %v16191_v61 = vld [vmem:[#allocation79_spill] sm:$0xff]  ;;  %v16204_v53 = vld [vmem:[#allocation81_spill] sm:$0xff] }
0x100d   : > { %v6344_v16 = vadd.f32 %v6328_v47, %v6184_v38  ;;  %v6489_v35 = vsel %vm6409_vm10, %v6439_v6, 0.0  ;;  %vm6254_vm15 = vcmp.eq.s32.totalorder %v16189_v20, %v10812_v59  ;;  %vm6413_vm7 = vcmp.eq.s32.totalorder %v16193_v42, %v10812_v59  ;;  %v16200_v38 = vld [vmem:[#allocation89_spill] sm:$0xff]  ;;  %v16211_v20 = vld [vmem:[#allocation26_spill] sm:$0xff] }
0x100e   : > { %v6503_v24 = vadd.f32 %v6487_v32, %v6343_v37  ;;  %v16198_v37 = vld [vmem:[#allocation36_spill] sm:$0xff] }
0x100f   : > { %v14332_v58 = vpop.permute.xlu0 %6318 }
0x1010   : > { %16175 = vst [vmem:[#allocation25_spill] sm:$0xff] %v14332_v58  ;;  %v6447_v51 = vpop.permute.xlu1 %6446 }
0x1014   : > { %v6359_v48 = vpop.permute.xlu0 %6358  ;;  %v6455_v23 = vpop.permute.xlu1 %6454 }
0x1015   : > { %vm6405_vm8 = vcmp.eq.s32.totalorder %v6359_v48, %v10812_v59  ;;  %v6493_v4 = vsel %vm6413_vm7, %v6455_v23, 0.0 }
0x1016   : > { %v6485_v30 = vsel %vm6405_vm8, %v6423_v62, 0.0  ;;  %vm6091_vm8 = vcmp.eq.s32.totalorder %v14140_v5, %v10812_v59  ;;  %v16176_v5 = vld [vmem:[#allocation23_spill] sm:$0xff]  ;;  %v16178_v62 = vld [vmem:[#allocation9_spill] sm:$0xff] }
0x1017   : > { %v6501_v10 = vadd.f32 %v6485_v30, %v6341_v39  ;;  %vm6095_vm12 = vcmp.eq.s32.totalorder %v16176_v5, %v10812_v59  ;;  %v6171_v8 = vsel %vm6091_vm8, %v14178_v56, 0.0  ;;  %v14441_v56 = vadd.f32 %v6173_v26, %v6029_v50  ;;  %v16185_v30 = vld [vmem:[#allocation88_spill] sm:$0xff]  ;;  %v16192_v26 = vld [vmem:[#allocation58_spill] sm:$0xff] }
0x1018   : > { %v14341_v58 = vpop.permute.xlu0 %6367  ;;  %v6187_v3 = vadd.f32 %v6171_v8, %v6027_v63  ;;  %vm6097_vm3 = vcmp.eq.s32.totalorder %v16178_v62, %v10812_v59  ;;  %vm6406_vm8 = vcmp.eq.s32.totalorder %v14296_v55, %v10812_v59  ;;  %v6329_v39 = vsel %vm6249_vm13, %v16179_v27, 0.0  ;;  %v16190_v5 = vld [vmem:[#allocation56_spill] sm:$0xff]  ;;  %v6463_v0 = vpop.permute.xlu1 %6462 }
0x1019   : > { %8836 = vmatprep.mubr.msk.f32.mxu1 %vm2060_vm14, %v6501_v10  ;;  %v6175_v15 = vsel %vm6095_vm12, %v16180_v22, 0.0  ;;  %v16182_v10 = vld [vmem:[#allocation105_spill] sm:$0xff]  ;;  %vm6408_vm1 = vcmp.eq.s32.totalorder %v14341_v58, %v10812_v59  ;;  %vm6251_vm12 = vcmp.eq.s32.totalorder %v16184_v44, %v10812_v59  ;;  %vm6411_vm11 = vcmp.eq.s32.totalorder %v16185_v30, %v10812_v59  ;;  %v16201_v22 = vld [vmem:[#allocation75_spill] sm:$0xff]  ;;  %v16206_v30 = vld [vmem:[#allocation46_spill] sm:$0xff] }
0x101a   : > { %v6170_v40 = vsel %vm6090_vm4, %v16182_v10, 0.0  ;;  %v6345_v25 = vadd.f32 %v6329_v39, %v6185_v7  ;;  %v6331_v58 = vsel %vm6251_vm12, %v16187_v17, 0.0  ;;  %v6172_v63 = vsel %vm6092_vm2, %v16190_v5, 0.0  ;;  %v16202_v10 = vld [vmem:[#allocation52_spill] sm:$0xff]  ;;  %v16208_v17 = vld [vmem:[#allocation77_spill] sm:$0xff] }
0x101b   : > { %v6186_v13 = vadd.f32 %v6170_v40, %v14382_v54  ;;  %v6332_v54 = vsel %vm6252_vm0, %v16191_v61, 0.0  ;;  %v6491_v7 = vsel %vm6411_vm11, %v6447_v51, 0.0  ;;  %vm6253_vm5 = vcmp.eq.s32.totalorder %v16192_v26, %v10812_v59  ;;  %v16195_v51 = vld [vmem:[#allocation24_spill] sm:$0xff]  ;;  %v16203_v40 = vld [vmem:[#allocation50_spill] sm:$0xff] }
0x101c   : > { %v14344_v33 = vpop.permute.xlu0 %6373  ;;  %v6505_v8 = vadd.f32 %v6489_v35, %v6345_v25  ;;  %v6347_v34 = vadd.f32 %v6331_v58, %v6187_v3  ;;  %vm6099_vm13 = vcmp.eq.s32.totalorder %v16195_v51, %v10812_v59  ;;  %v6188_v47 = vadd.f32 %v6172_v63, %v14385_v2  ;;  %v6471_v36 = vpop.permute.xlu1 %6470  ;;  %v16212_v63 = vld [vmem:[#allocation66_spill] sm:$0xff] }
0x101d   : > { %v6346_v18 = vadd.f32 %v6330_v19, %v6186_v13  ;;  %vm6410_vm9 = vcmp.eq.s32.totalorder %v14344_v33, %v10812_v59  ;;  %v16196_v33 = vld [vmem:[#allocation48_spill] sm:$0xff]  ;;  %v6177_v3 = vsel %vm6097_vm3, %v16198_v37, 0.0  ;;  %v6334_v2 = vsel %vm6254_vm15, %v16201_v22, 0.0 }
0x101e   : > { %vm6094_vm10 = vcmp.eq.s32.totalorder %v16196_v33, %v10812_v59  ;;  %v6507_v39 = vadd.f32 %v6491_v7, %v6347_v34  ;;  %vm6255_vm3 = vcmp.eq.s32.totalorder %v16202_v10, %v10812_v59  ;;  %vm6096_vm12 = vcmp.eq.s32.totalorder %v16204_v53, %v10812_v59  ;;  %v16216_v34 = vld [vmem:[#allocation60_spill] sm:$0xff]  ;;  %v16224_v10 = vld [vmem:[#allocation10_spill] sm:$0xff] }
0x101f   : > { %v6174_v27 = vsel %vm6094_vm10, %v16200_v38, 0.0  ;;  %v6193_v44 = vadd.f32 %v6177_v3, %v6033_v9  ;;  %v6176_v25 = vsel %vm6096_vm12, %v16206_v30, 0.0  ;;  %vm6258_vm7 = vcmp.eq.s32.totalorder %v16216_v34, %v10812_v59  ;;  %v16220_v3 = vld [vmem:[#allocation25_spill] sm:$0xff] }
0x1020   : > { %v14346_v57 = vpop.permute.xlu0 %6379  ;;  %v6190_v23 = vadd.f32 %v6174_v27, %v14388_v14  ;;  %v6192_v5 = vadd.f32 %v6176_v25, %v14391_v1  ;;  %v16221_v27 = vld [vmem:[#allocation37_spill] sm:$0xff] }
0x1021   : > { %vm6412_vm0 = vcmp.eq.s32.totalorder %v14346_v57, %v10812_v59  ;;  %v16205_v57 = vld [vmem:[#allocation68_spill] sm:$0xff] }
0x1022   : > { %v6335_v19 = vsel %vm6255_vm3, %v16205_v57, 0.0  ;;  %v6350_v13 = vadd.f32 %v6334_v2, %v6190_v23  ;;  %v16223_v2 = vld [vmem:[#allocation62_spill] sm:$0xff] }
0x1024   : > { %v14348_v43 = vpop.permute.xlu0 %6385 }
0x1025   : > { %vm6414_vm2 = vcmp.eq.s32.totalorder %v14348_v43, %v10812_v59 }
0x1028   : > { %v14358_v48 = vpop.permute.xlu0 %6391 }
0x1029   : > { %vm6416_vm10 = vcmp.eq.s32.totalorder %v14358_v48, %v10812_v59 }
0x102c   : > { %v14395_v49 = vpop.permute.xlu0 %6397 }
0x102d   : > { %vm6418_vm3 = vcmp.eq.s32.totalorder %v14395_v49, %v10812_v59 }
0x1030   : > { %v14427_v31 = vpop.permute.xlu0 %6403 }
0x1034   : > { %v6427_v45 = vpop.permute.xlu0 %6426 }
0x1035   : > { %v6486_v11 = vsel %vm6406_vm8, %v6427_v45, 0.0  ;;  %vm5955_vm8 = vcmp.eq.s32.totalorder %v16194_v52, %v10812_v59  ;;  %v16217_v52 = vld [vmem:[#allocation93_spill] sm:$0xff] }
0x1036   : > { %v6502_v41 = vadd.f32 %v6486_v11, %v6342_v28  ;;  %v16197_v28 = vld [vmem:[#allocation64_spill] sm:$0xff]  ;;  %v16199_v11 = vld [vmem:[#allocation101_spill] sm:$0xff]  ;;  %v6338_v33 = vsel %vm6258_vm7, %v16217_v52, 0.0 }
0x1037   : > { %v6333_v32 = vsel %vm6253_vm5, %v16197_v28, 0.0  ;;  %vm6256_vm4 = vcmp.eq.s32.totalorder %v16199_v11, %v10812_v59  ;;  %vm6098_vm5 = vcmp.eq.s32.totalorder %v16211_v20, %v10812_v59  ;;  %v6479_v28 = vpop.permute.xlu1 %6478 }
0x1038   : > { %8837 = vmatmul.mubr.msk.f32.vlgmr.msra.gmra.mrb[40].mxu1 %vm2060_vm14, %v6502_v41  ;;  %v6435_v55 = vpop.permute.xlu0 %6434  ;;  %v6348_v41 = vadd.f32 %v6332_v54, %v6188_v47  ;;  %v6336_v58 = vsel %vm6256_vm4, %v16208_v17, 0.0  ;;  %v16214_v54 = vld [vmem:[#allocation122_spill] sm:$0xff]  ;;  %v16218_v47 = vld [vmem:[#allocation91_spill] sm:$0xff] }
0x1039   : > { %v6488_v60 = vsel %vm6408_vm1, %v6435_v55, 0.0  ;;  %8839 = vmatprep.mubr.msk.f32.mxu1 %vm2060_vm14, %v6503_v24  ;;  %vm6415_vm1 = vcmp.eq.s32.totalorder %v16203_v40, %v10812_v59  ;;  %v6349_v24 = vadd.f32 %v6333_v32, %v14441_v56  ;;  %v6191_v55 = vadd.f32 %v6175_v15, %v14447_v12  ;;  %v16207_v56 = vld [vmem:[#allocation165_spill] sm:$0xff]  ;;  %v16209_v15 = vld [vmem:[#allocation70_spill] sm:$0xff] }
0x103a   : > { %v6504_v6 = vadd.f32 %v6488_v60, %v6344_v16  ;;  %vm5956_vm11 = vcmp.eq.s32.totalorder %v16207_v56, %v10812_v59  ;;  %v6495_v14 = vsel %vm6415_vm1, %v6463_v0, 0.0  ;;  %vm6257_vm15 = vcmp.eq.s32.totalorder %v16209_v15, %v10812_v59  ;;  %v16229_v15 = vld [vmem:[#allocation19_spill] sm:$0xff] }
0x103b   : > { %v6509_v60 = vadd.f32 %v6493_v4, %v6349_v24  ;;  %v6351_v29 = vadd.f32 %v6335_v19, %v6191_v55  ;;  %v6337_v43 = vsel %vm6257_vm15, %v16212_v63, 0.0  ;;  %v6179_v7 = vsel %vm6099_vm13, %v16214_v54, 0.0  ;;  %v16225_v24 = vld [vmem:[#allocation39_spill] sm:$0xff]  ;;  %v16231_v63 = vld [vmem:[#allocation21_spill] sm:$0xff] }
0x103c   : > { %8840 = vmatmul.mubr.msk.f32.gmra.mrb[42].mxu1 %vm2060_vm14, %v6504_v6  ;;  %v6443_v50 = vpop.permute.xlu0 %6442  ;;  %v16210_v6 = vld [vmem:[#allocation84_spill] sm:$0xff]  ;;  %v6352_v1 = vadd.f32 %v6336_v58, %v6192_v5  ;;  %v6353_v51 = vadd.f32 %v6337_v43, %v6193_v44  ;;  %v6036_v40 = vsel %vm5956_vm11, %v16224_v10, 0.0  ;;  %vm6420_vm1 = vcmp.eq.s32.totalorder %v14427_v31, %v10812_v59 }
0x103d   : > { %v6490_v46 = vsel %vm6410_vm9, %v6443_v50, 0.0  ;;  %8842 = vmatprep.mubr.msk.f32.mxu1 %vm2060_vm14, %v6505_v8  ;;  %vm6417_vm9 = vcmp.eq.s32.totalorder %v16210_v6, %v10812_v59  ;;  %v16215_v50 = vld [vmem:[#allocation119_spill] sm:$0xff]  ;;  %v6511_v42 = vadd.f32 %v6495_v14, %v6351_v29  ;;  %v16228_v14 = vld [vmem:[#allocation18_spill] sm:$0xff] }
0x103e   : > { %v6506_v45 = vadd.f32 %v6490_v46, %v6346_v18  ;;  %v16213_v18 = vld [vmem:[#allocation115_spill] sm:$0xff]  ;;  %v6178_v26 = vsel %vm6098_vm5, %v16215_v50, 0.0  ;;  %v6497_v0 = vsel %vm6417_vm9, %v6471_v36, 0.0 }
0x103f   : > { %v6035_v61 = vsel %vm5955_vm8, %v16213_v18, 0.0  ;;  %vm6259_vm8 = vcmp.eq.s32.totalorder %v16218_v47, %v10812_v59  ;;  %v6194_v37 = vadd.f32 %v6178_v26, %v14409_v21  ;;  %v6513_v22 = vadd.f32 %v6497_v0, %v6353_v51  ;;  %v16232_v18 = vld [vmem:[#allocation22_spill] sm:$0xff]  ;;  %v16235_v0 = vld [vmem:[#allocation29_spill] sm:$0xff] }
0x1040   : > { %8843 = vmatmul.mubr.msk.f32.gmra.mrb[44].mxu1 %vm2060_vm14, %v6506_v45  ;;  %v6451_v62 = vpop.permute.xlu0 %6450  ;;  %v16219_v45 = vld [vmem:[#allocation44_spill] sm:$0xff]  ;;  %v6339_v48 = vsel %vm6259_vm8, %v16220_v3, 0.0  ;;  %v6195_v38 = vadd.f32 %v6179_v7, %v6035_v61  ;;  %v16233_v7 = vld [vmem:[#allocation27_spill] sm:$0xff] }
0x1041   : > { %v6492_v16 = vsel %vm6412_vm0, %v6451_v62, 0.0  ;;  %8845 = vmatprep.mubr.msk.f32.mxu1 %vm2060_vm14, %v6507_v39  ;;  %vm6100_vm13 = vcmp.eq.s32.totalorder %v16219_v45, %v10812_v59  ;;  %vm6260_vm0 = vcmp.eq.s32.totalorder %v16223_v2, %v10812_v59  ;;  %v6354_v4 = vadd.f32 %v6338_v33, %v6194_v37  ;;  %v16236_v33 = vld [vmem:[#allocation30_spill] sm:$0xff]  ;;  %v16238_v37 = vld [vmem:[#allocation32_spill] sm:$0xff]  ;;  %v16241_v2 = vld [vmem:[#allocation35_spill] sm:$0xff] }
0x1042   : > { %v6508_v35 = vadd.f32 %v6492_v16, %v6348_v41  ;;  %v6180_v39 = vsel %vm6100_vm13, %v16221_v27, 0.0  ;;  %v16222_v41 = vld [vmem:[#allocation107_spill] sm:$0xff]  ;;  %v6340_v16 = vsel %vm6260_vm0, %v16225_v24, 0.0  ;;  %v6355_v53 = vadd.f32 %v6339_v48, %v6195_v38 }
0x1043   : > { %vm6419_vm4 = vcmp.eq.s32.totalorder %v16222_v41, %v10812_v59  ;;  %v6196_v57 = vadd.f32 %v6180_v39, %v6036_v40  ;;  %v16240_v39 = vld [vmem:[#allocation34_spill] sm:$0xff] }
0x1044   : > { %8846 = vmatmul.mubr.msk.f32.gmra.mrb[46].mxu1 %vm2060_vm14, %v6508_v35  ;;  %v6459_v12 = vpop.permute.xlu0 %6458  ;;  %v6499_v62 = vsel %vm6419_vm4, %v6479_v28, 0.0  ;;  %v16237_v28 = vld [vmem:[#allocation31_spill] sm:$0xff] }
0x1045   : > { %v6494_v9 = vsel %vm6414_vm2, %v6459_v12, 0.0  ;;  %8848 = vmatprep.mubr.msk.f32.mxu1 %vm2060_vm14, %v6509_v60  ;;  %v6515_v35 = vadd.f32 %v6499_v62, %v6355_v53  ;;  %v6356_v55 = vadd.f32 %v6340_v16, %v6196_v57  ;;  %v16226_v60 = vld [vmem:[#allocation16_spill] sm:$0xff]  ;;  %v15381_v62 = vmov 17  }
0x1046   : > { %v6510_v8 = vadd.f32 %v6494_v9, %v6350_v13  ;;  %v16227_v13 = vld [vmem:[#allocation17_spill] sm:$0xff]  ;;  %v16230_v9 = vld [vmem:[#allocation20_spill] sm:$0xff]  ;;  %9067 = vset.pattern.permute.xlu0 %v15381_v62  ;;  %9068 = vset.pattern.permute.xlu1 %v15381_v62 }
0x1048   : > { %8849 = vmatmul.mubr.msk.f32.gmra.mrb[48].mxu1 %vm2060_vm14, %v6510_v8  ;;  %v6467_v46 = vpop.permute.xlu0 %6466 }
0x1049   : > { %v6496_v32 = vsel %vm6416_vm10, %v6467_v46, 0.0  ;;  %8851 = vmatprep.mubr.msk.f32.mxu1 %vm2060_vm14, %v6511_v42  ;;  %v16234_v42 = vld [vmem:[#allocation28_spill] sm:$0xff] }
0x104a   : > { %v6512_v11 = vadd.f32 %v6496_v32, %v6352_v1 }
0x104c   : > { %8852 = vmatmul.mubr.msk.f32.gmra.mrb[50].mxu1 %vm2060_vm14, %v6512_v11  ;;  %v6475_v21 = vpop.permute.xlu0 %6474  ;;  %v16239_v11 = vld [vmem:[#allocation33_spill] sm:$0xff] }
0x104d   : > { %v6498_v23 = vsel %vm6418_vm3, %v6475_v21, 0.0  ;;  %8854 = vmatprep.mubr.msk.f32.mxu1 %vm2060_vm14, %v6513_v22 }
0x104e   : > { %v6514_v19 = vadd.f32 %v6498_v23, %v6354_v4 }
0x1050   : > { %8855 = vmatmul.mubr.msk.f32.gmra.mrb[52].mxu1 %vm2060_vm14, %v6514_v19  ;;  %v6483_v49 = vpop.permute.xlu0 %6482 }
0x1051   : > { %v6500_v44 = vsel %vm6420_vm1, %v6483_v49, 0.0  ;;  %8857 = vmatprep.mubr.msk.f32.mxu1 %vm2060_vm14, %v6515_v35 }
0x1052   : > { %v6516_v30 = vadd.f32 %v6500_v44, %v6356_v55 }
0x1054   : > { %8858 = vmatmul.mubr.msk.f32.gmra.mrb[54].mxu1 %vm2060_vm14, %v6516_v30 }
0x110b   : > { %v8838_v25 = vpop.f32.mrb[40].mxu1 }
0x110c   : > { %v6711_v36 = vmul.f32 %v8838_v25, %v16226_v60  ;;  %v6631_v56 = vpop.f32.mrb[41].mxu1 }
0x110d   : > { %v6710_v17 = vmul.f32 %v6631_v56, %v16227_v13 }
0x110e   : > { %6728 = vadd.xlane.f32.xlu0 %v6711_v36 }
0x110f   : > { %6726 = vadd.xlane.f32.xlu1 %v6710_v17  ;;  %v8841_v58 = vpop.f32.mrb[42].mxu1 }
0x1110   : > { %v6713_v31 = vmul.f32 %v8841_v58, %v16228_v14  ;;  %v6641_v12 = vpop.f32.mrb[43].mxu1 }
0x1111   : > { %v6712_v6 = vmul.f32 %v6641_v12, %v16229_v15 }
0x1113   : > { %6732 = vadd.xlane.f32.xlu1 %v6713_v31  ;;  %6730 = vadd.xlane.f32.xlu0 %v6712_v6  ;;  %v8844_v29 = vpop.f32.mrb[44].mxu1 }
0x1114   : > { %v6715_v20 = vmul.f32 %v8844_v29, %v16230_v9  ;;  %v6651_v5 = vpop.f32.mrb[45].mxu1 }
0x1115   : > { %v6714_v43 = vmul.f32 %v6651_v5, %v16231_v63 }
0x1117   : > { %6736 = vadd.xlane.f32.xlu1 %v6715_v20  ;;  %6734 = vadd.xlane.f32.xlu0 %v6714_v43  ;;  %v8847_v8 = vpop.f32.mrb[46].mxu1 }
0x1118   : > { %v6717_v61 = vmul.f32 %v8847_v8, %v16232_v18  ;;  %v6661_v54 = vpop.f32.mrb[47].mxu1 }
0x1119   : > { %v6716_v50 = vmul.f32 %v6661_v54, %v16233_v7 }
0x111b   : > { %6740 = vadd.xlane.f32.xlu1 %v6717_v61  ;;  %6738 = vadd.xlane.f32.xlu0 %v6716_v50  ;;  %v8850_v26 = vpop.f32.mrb[48].mxu1 }
0x111c   : > { %v6719_v34 = vmul.f32 %v8850_v26, %v16234_v42  ;;  %v6671_v1 = vpop.f32.mrb[49].mxu1 }
0x111d   : > { %v6718_v46 = vmul.f32 %v6671_v1, %v16235_v0 }
0x111f   : > { %6744 = vadd.xlane.f32.xlu1 %v6719_v34  ;;  %6742 = vadd.xlane.f32.xlu0 %v6718_v46  ;;  %v8853_v52 = vpop.f32.mrb[50].mxu1 }
0x1120   : > { %v6721_v47 = vmul.f32 %v8853_v52, %v16236_v33  ;;  %v6681_v51 = vpop.f32.mrb[51].mxu1  ;;  %v16248_v33 = vmov 19  }
0x1121   : > { %v6720_v32 = vmul.f32 %v6681_v51, %v16237_v28 }
0x1123   : > { %6748 = vadd.xlane.f32.xlu1 %v6721_v47  ;;  %6746 = vadd.xlane.f32.xlu0 %v6720_v32  ;;  %v8856_v45 = vpop.f32.mrb[52].mxu1 }
0x1124   : > { %v6723_v3 = vmul.f32 %v8856_v45, %v16238_v37  ;;  %v6691_v48 = vpop.f32.mrb[53].mxu1 }
0x1125   : > { %v6722_v38 = vmul.f32 %v6691_v48, %v16239_v11 }
0x1127   : > { %6752 = vadd.xlane.f32.xlu1 %v6723_v3  ;;  %6750 = vadd.xlane.f32.xlu0 %v6722_v38  ;;  %v8859_v27 = vpop.f32.mrb[54].mxu1 }
0x1128   : > { %v6725_v41 = vmul.f32 %v8859_v27, %v16240_v39  ;;  %v6701_v22 = vpop.f32.mrb[55].mxu1  ;;  %v16246_v39 = vmov 18  }
0x1129   : > { %v6724_v4 = vmul.f32 %v6701_v22, %v16241_v2 }
0x112b   : > { %6756 = vadd.xlane.f32.xlu1 %v6725_v41  ;;  %6754 = vadd.xlane.f32.xlu0 %v6724_v4 }
0x119b   : > { %v6729_v21 = vpop.xlane.xlu0 %6728 }
0x119c   : > { %v6759_v10 = vsub.f32 0.0, %v6729_v21  ;;  %v6727_v40 = vpop.xlane.xlu1 %6726 }
0x119d   : > { %v6758_v24 = vsub.f32 0.0, %v6727_v40 }
0x119e   : > { %v8480_v16 = vclamps-f32 %v6759_v10, 10.0 }
0x119f   : > { %v8479_v53 = vclamps-f32 %v6758_v24, 10.0 }
0x11a0   : > { %v6807_v23 = vsub.f32 0.0, %v8480_v16  ;;  %v6733_v57 = vpop.xlane.xlu1 %6732  ;;  %v6731_v19 = vpop.xlane.xlu0 %6730 }
0x11a1   : > { %v6806_v35 = vsub.f32 0.0, %v8479_v53  ;;  %v6761_v55 = vsub.f32 0.0, %v6733_v57  ;;  %v6760_v49 = vsub.f32 0.0, %v6731_v19 }
0x11a2   : > { %v6824_v44 = vmul.f32 1.442695, %v6807_v23 }
0x11a3   : > { %v6822_v30 = vmul.f32 1.442695, %v6806_v35  ;;  %v8482_v25 = vclamps-f32 %v6761_v55, 10.0  ;;  %v8481_v36 = vclamps-f32 %v6760_v49, 10.0 }
0x11a4   : > { %9389 = vpow2.f32 %v6824_v44  ;;  %v6737_v56 = vpop.xlane.xlu1 %6736  ;;  %v6735_v17 = vpop.xlane.xlu0 %6734 }
0x11a5   : > { %9391 = vpow2.f32 %v6822_v30  ;;  %v6809_v58 = vsub.f32 0.0, %v8482_v25  ;;  %v6808_v31 = vsub.f32 0.0, %v8481_v36  ;;  %v6763_v12 = vsub.f32 0.0, %v6737_v56 }
0x11a6   : > { %v6762_v6 = vsub.f32 0.0, %v6735_v17 }
0x11a7   : > { %v6828_v29 = vmul.f32 1.442695, %v6809_v58  ;;  %v6826_v20 = vmul.f32 1.442695, %v6808_v31  ;;  %v8484_v5 = vclamps-f32 %v6763_v12, 10.0 }
0x11a8   : > { %v8483_v43 = vclamps-f32 %v6762_v6, 10.0  ;;  %v6741_v8 = vpop.xlane.xlu1 %6740  ;;  %v6739_v61 = vpop.xlane.xlu0 %6738 }
0x11a9   : > { %9393 = vpow2.f32 %v6828_v29  ;;  %v6811_v54 = vsub.f32 0.0, %v8484_v5  ;;  %v6765_v50 = vsub.f32 0.0, %v6741_v8  ;;  %v6764_v26 = vsub.f32 0.0, %v6739_v61 }
0x11aa   : > { %9395 = vpow2.f32 %v6826_v20  ;;  %v6810_v34 = vsub.f32 0.0, %v8483_v43 }
0x11ab   : > { %v6832_v1 = vmul.f32 1.442695, %v6811_v54  ;;  %v8486_v46 = vclamps-f32 %v6765_v50, 10.0  ;;  %v8485_v52 = vclamps-f32 %v6764_v26, 10.0 }
0x11ac   : > { %v6830_v47 = vmul.f32 1.442695, %v6810_v34  ;;  %v6745_v51 = vpop.xlane.xlu1 %6744  ;;  %v6743_v32 = vpop.xlane.xlu0 %6742 }
0x11ad   : > { %9397 = vpow2.f32 %v6832_v1  ;;  %v6813_v45 = vsub.f32 0.0, %v8486_v46  ;;  %v6812_v3 = vsub.f32 0.0, %v8485_v52  ;;  %v6767_v48 = vsub.f32 0.0, %v6745_v51 }
0x11ae   : > { %v9390_v38 = vpop.eup %9389  ;;  %9399 = vpow2.f32 %v6830_v47  ;;  %v6766_v27 = vsub.f32 0.0, %v6743_v32 }
0x11af   : > { %v9392_v41 = vpop.eup %9391  ;;  %v6855_v22 = vadd.f32 1.0, %v9390_v38  ;;  %v6836_v4 = vmul.f32 1.442695, %v6813_v45  ;;  %v8488_v21 = vclamps-f32 %v6767_v48, 10.0  ;;  %v6834_v40 = vmul.f32 1.442695, %v6812_v3 }
0x11b0   : > { %v6854_v10 = vadd.f32 1.0, %v9392_v41  ;;  %v8487_v24 = vclamps-f32 %v6766_v27, 10.0  ;;  %v6749_v16 = vpop.xlane.xlu1 %6748  ;;  %v6747_v53 = vpop.xlane.xlu0 %6746 }
0x11b1   : > { %9401 = vlog2.f32 %v6855_v22  ;;  %v6815_v23 = vsub.f32 0.0, %v8488_v21  ;;  %v6769_v57 = vsub.f32 0.0, %v6749_v16  ;;  %v6768_v19 = vsub.f32 0.0, %v6747_v53  ;;  %v9661_v53 = vld [vmem:[%s11607_s24 + $0x8] sm:$0xff] }
0x11b2   : > { %9403 = vlog2.f32 %v6854_v10  ;;  %v6814_v35 = vsub.f32 0.0, %v8487_v24 }
0x11b3   : > { %v9394_v55 = vpop.eup %9393  ;;  %9405 = vpow2.f32 %v6836_v4  ;;  %v6840_v49 = vmul.f32 1.442695, %v6815_v23  ;;  %v8490_v44 = vclamps-f32 %v6769_v57, 10.0  ;;  %v8489_v30 = vclamps-f32 %v6768_v19, 10.0 }
0x11b4   : > { %v9396_v25 = vpop.eup %9395  ;;  %v6857_v36 = vadd.f32 1.0, %v9394_v55  ;;  %9407 = vpow2.f32 %v6834_v40  ;;  %v6838_v56 = vmul.f32 1.442695, %v6814_v35  ;;  %v6753_v17 = vpop.xlane.xlu1 %6752 }
0x11b5   : > { %v6751_v58 = vpop.xlane.xlu0 %6750  ;;  %v6856_v31 = vadd.f32 1.0, %v9396_v25  ;;  %9409 = vpow2.f32 %v6840_v49  ;;  %v6817_v12 = vsub.f32 0.0, %v8490_v44  ;;  %v6816_v6 = vsub.f32 0.0, %v8489_v30  ;;  %v9662_v30 = vld [vmem:[%s11607_s24] sm:$0xff] }
0x11b6   : > { %9411 = vlog2.f32 %v6857_v36  ;;  %v6771_v29 = vsub.f32 0.0, %v6753_v17  ;;  %v6770_v20 = vsub.f32 0.0, %v6751_v58 }
0x11b7   : > { %v9398_v5 = vpop.eup %9397  ;;  %9413 = vlog2.f32 %v6856_v31  ;;  %v6844_v43 = vmul.f32 1.442695, %v6817_v12  ;;  %v6842_v8 = vmul.f32 1.442695, %v6816_v6  ;;  %v9663_v6 = vld [vmem:[%s11607_s24 + $0x18] sm:$0xff] }
0x11b8   : > { %v9400_v61 = vpop.eup %9399  ;;  %v6859_v54 = vadd.f32 1.0, %v9398_v5  ;;  %9415 = vpow2.f32 %v6838_v56  ;;  %v8492_v50 = vclamps-f32 %v6771_v29, 10.0  ;;  %v8491_v26 = vclamps-f32 %v6770_v20, 10.0  ;;  %v6757_v34 = vpop.xlane.xlu1 %6756 }
0x11b9   : > { %v6755_v1 = vpop.xlane.xlu0 %6754  ;;  %v6858_v46 = vadd.f32 1.0, %v9400_v61  ;;  %9417 = vpow2.f32 %v6844_v43  ;;  %v6773_v52 = vsub.f32 0.0, %v6757_v34  ;;  %v9664_v43 = vld [vmem:[%s11607_s24 + $0x10] sm:$0xff] }
0x11ba   : > { %v6772_v47 = vsub.f32 0.0, %v6755_v1  ;;  %9419 = vlog2.f32 %v6859_v54  ;;  %v6819_v51 = vsub.f32 0.0, %v8492_v50  ;;  %v6818_v32 = vsub.f32 0.0, %v8491_v26  ;;  %v9665_v1 = vld [vmem:[%s11607_s24 + $0x28] sm:$0xff] }
0x11bb   : > { %v9402_v45 = vpop.eup %9401  ;;  %9421 = vlog2.f32 %v6858_v46  ;;  %v8494_v3 = vclamps-f32 %v6773_v52, 10.0 }
0x11bc   : > { %v8493_v48 = vclamps-f32 %v6772_v47, 10.0  ;;  %v9404_v38 = vpop.eup %9403  ;;  %9423 = vpow2.f32 %v6842_v8  ;;  %v6848_v27 = vmul.f32 1.442695, %v6819_v51  ;;  %v6846_v41 = vmul.f32 1.442695, %v6818_v32  ;;  %v9666_v47 = vld [vmem:[%s11607_s24 + $0x20] sm:$0xff] }
0x11bd   : > { %v6873_v22 = vmul.f32 0.6931472, %v9402_v45  ;;  %v9406_v4 = vpop.eup %9405  ;;  %v6821_v21 = vsub.f32 0.0, %v8494_v3  ;;  %v6871_v40 = vmul.f32 0.6931472, %v9404_v38 }
0x11be   : > { %v6820_v10 = vsub.f32 0.0, %v8493_v48  ;;  %v9408_v24 = vpop.eup %9407  ;;  %v6861_v16 = vadd.f32 1.0, %v9406_v4  ;;  %9425 = vpow2.f32 %v6848_v27 }
0x11bf   : > { %v6903_v23 = vmul.f32 %v9661_v53, %v6873_v22  ;;  %v9410_v57 = vpop.eup %9409  ;;  %v6860_v19 = vadd.f32 1.0, %v9408_v24  ;;  %9427 = vpow2.f32 %v6846_v41  ;;  %v6852_v35 = vmul.f32 1.442695, %v6821_v21  ;;  %v9667_v21 = vld [vmem:[%s11607_s24 + $0x38] sm:$0xff]  ;;  %v9668_v53 = vld [vmem:[%s11607_s24 + $0x30] sm:$0xff] }
0x11c0   : > { %v9412_v55 = vpop.eup %9411  ;;  %9429 = vlog2.f32 %v6861_v16  ;;  %v6863_v49 = vadd.f32 1.0, %v9410_v57  ;;  %v6850_v44 = vmul.f32 1.442695, %v6820_v10  ;;  %v6902_v25 = vmul.f32 %v9662_v30, %v6871_v40 }
0x11c1   : > { %6936 = vrot.lane.b32.xlu1 %v6903_v23, %s9809_s27  ;;  %v9414_v36 = vpop.eup %9413  ;;  %9431 = vlog2.f32 %v6860_v19  ;;  %v6877_v56 = vmul.f32 0.6931472, %v9412_v55 }
0x11c2   : > { %v9416_v17 = vpop.eup %9415  ;;  %9433 = vlog2.f32 %v6863_v49  ;;  %6934 = vrot.lane.b32.xlu0 %v6902_v25, %s9809_s27  ;;  %v6875_v58 = vmul.f32 0.6931472, %v9414_v36  ;;  %v9670_v25 = vld [vmem:[%s11607_s24 + $0x40] sm:$0xff] }
0x11c3   : > { %v9418_v31 = vpop.eup %9417  ;;  %v6862_v12 = vadd.f32 1.0, %v9416_v17  ;;  %9435 = vpow2.f32 %v6852_v35  ;;  %v6905_v29 = vmul.f32 %v9663_v6, %v6877_v56  ;;  %v9669_v35 = vld [vmem:[%s11607_s24 + $0x48] sm:$0xff]  ;;  %v9671_v17 = vld [vmem:[%s11607_s24 + $0x58] sm:$0xff] }
0x11c4   : > { %v9420_v20 = vpop.eup %9419  ;;  %v6865_v5 = vadd.f32 1.0, %v9418_v31  ;;  %9437 = vpow2.f32 %v6850_v44  ;;  %v6904_v8 = vmul.f32 %v9664_v43, %v6875_v58 }
0x11c5   : > { %v9422_v61 = vpop.eup %9421  ;;  %9439 = vlog2.f32 %v6862_v12  ;;  %v6881_v54 = vmul.f32 0.6931472, %v9420_v20 }
0x11c6   : > { %v9424_v50 = vpop.eup %9423  ;;  %9441 = vlog2.f32 %v6865_v5  ;;  %6940 = vrot.lane.b32.xlu0 %v6905_v29, %s9809_s27  ;;  %6938 = vrot.lane.b32.xlu1 %v6904_v8, %s9809_s27  ;;  %v6879_v26 = vmul.f32 0.6931472, %v9422_v61  ;;  %v9672_v29 = vld [vmem:[%s11607_s24 + $0x50] sm:$0xff]  ;;  %v9673_v8 = vld [vmem:[%s11607_s24 + $0x68] sm:$0xff] }
0x11c7   : > { %v6864_v34 = vadd.f32 1.0, %v9424_v50  ;;  %v6907_v46 = vmul.f32 %v9665_v1, %v6881_v54  ;;  %v9674_v54 = vld [vmem:[%s11607_s24 + $0x60] sm:$0xff] }
0x11c8   : > { %v9426_v52 = vpop.eup %9425  ;;  %v6906_v51 = vmul.f32 %v9666_v47, %v6879_v26 }
0x11c9   : > { %v9428_v32 = vpop.eup %9427  ;;  %9443 = vlog2.f32 %v6864_v34  ;;  %v6867_v45 = vadd.f32 1.0, %v9426_v52  ;;  %v9675_v52 = vld [vmem:[%s11607_s24 + $0x78] sm:$0xff] }
0x11ca   : > { %v9430_v3 = vpop.eup %9429  ;;  %v6866_v48 = vadd.f32 1.0, %v9428_v32  ;;  %6944 = vrot.lane.b32.xlu0 %v6907_v46, %s9809_s27  ;;  %6942 = vrot.lane.b32.xlu1 %v6906_v51, %s9809_s27  ;;  %v9676_v51 = vld [vmem:[%s11607_s24 + $0x70] sm:$0xff] }
0x11cb   : > { %v9432_v38 = vpop.eup %9431  ;;  %9445 = vlog2.f32 %v6867_v45  ;;  %v6885_v27 = vmul.f32 0.6931472, %v9430_v3  ;;  %v14656_v45 = vld [vmem:[%s11482_s29] sm:$0xff]  ;;  %v14660_v3 = vld [vmem:[%s11482_s29 + $0x8] sm:$0xff] }
0x11cc   : > { %v9434_v41 = vpop.eup %9433  ;;  %9447 = vlog2.f32 %v6866_v48  ;;  %v6883_v22 = vmul.f32 0.6931472, %v9432_v38  ;;  %v14664_v48 = vld [vmem:[%s11535_s17 + $0x8] sm:$0xff]  ;;  %v14668_v38 = vld [vmem:[%s11482_s29 + $0x10] sm:$0xff] }
0x11cd   : > { %v9436_v4 = vpop.eup %9435  ;;  %v6909_v10 = vmul.f32 %v9667_v21, %v6885_v27  ;;  %v6889_v40 = vmul.f32 0.6931472, %v9434_v41  ;;  %v14672_v27 = vld [vmem:[%s11535_s17 + $0x10] sm:$0xff]  ;;  %v14676_v41 = vld [vmem:[%s11482_s29 + $0x28] sm:$0xff] }
0x11ce   : > { %v9438_v24 = vpop.eup %9437  ;;  %v6869_v16 = vadd.f32 1.0, %v9436_v4  ;;  %v6908_v23 = vmul.f32 %v9668_v53, %v6883_v22  ;;  %v14680_v22 = vld [vmem:[%s11482_s29 + $0x30] sm:$0xff]  ;;  %v14688_v21 = vld [vmem:[%s11482_s29 + $0x48] sm:$0xff] }
0x11cf   : > { %v9440_v57 = vpop.eup %9439  ;;  %v6868_v19 = vadd.f32 1.0, %v9438_v24  ;;  %6948 = vrot.lane.b32.xlu0 %v6909_v10, %s9809_s27  ;;  %v6911_v55 = vmul.f32 %v9669_v35, %v6889_v40  ;;  %v14684_v4 = vld [vmem:[%s11535_s17 + $0x30] sm:$0xff]  ;;  %v14700_v24 = vld [vmem:[%s11482_s29 + $0x68] sm:$0xff]  ;;  %v14724_v35 = vld [vmem:[%s11535_s17 + $0x18] sm:$0xff] }
0x11d0   : > { %v9442_v49 = vpop.eup %9441  ;;  %9449 = vlog2.f32 %v6869_v16  ;;  %6946 = vrot.lane.b32.xlu1 %v6908_v23, %s9809_s27  ;;  %v6887_v44 = vmul.f32 0.6931472, %v9440_v57  ;;  %v14692_v10 = vld [vmem:[%s11482_s29 + $0x50] sm:$0xff]  ;;  %v15379_v23 = vmov 16   ;;  %v14715_v57 = vld [vmem:[%s11535_s17] sm:$0xff] }
0x11d1   : > { %9451 = vlog2.f32 %v6868_v19  ;;  %v6893_v30 = vmul.f32 0.6931472, %v9442_v49  ;;  %v14696_v40 = vld [vmem:[%s11535_s17 + $0x50] sm:$0xff]  ;;  %v14720_v19 = vld [vmem:[%s11482_s29 + $0x18] sm:$0xff] }
0x11d2   : > { %v6910_v36 = vmul.f32 %v9670_v25, %v6887_v44  ;;  %v14704_v16 = vld [vmem:[%s11482_s29 + $0x70] sm:$0xff]  ;;  %v14728_v44 = vld [vmem:[%s11482_s29 + $0x20] sm:$0xff] }
0x11d3   : > { %v9444_v56 = vpop.eup %9443  ;;  %6952 = vrot.lane.b32.xlu0 %v6911_v55, %s9809_s27  ;;  %v6913_v58 = vmul.f32 %v9671_v17, %v6893_v30  ;;  %v14708_v53 = vld [vmem:[%s11535_s17 + $0x70] sm:$0xff] }
0x11d4   : > { %6950 = vrot.lane.b32.xlu1 %v6910_v36, %s9809_s27  ;;  %v6891_v31 = vmul.f32 0.6931472, %v9444_v56 }
0x11d5   : > { %v9446_v12 = vpop.eup %9445 }
0x11d6   : > { %v9448_v6 = vpop.eup %9447  ;;  %v6912_v20 = vmul.f32 %v9672_v29, %v6891_v31  ;;  %v6897_v5 = vmul.f32 0.6931472, %v9446_v12 }
0x11d7   : > { %6956 = vrot.lane.b32.xlu0 %v6913_v58, %s9809_s27  ;;  %v6895_v43 = vmul.f32 0.6931472, %v9448_v6  ;;  %v14734_v58 = vld [vmem:[%s11482_s29 + $0x38] sm:$0xff] }
0x11d8   : > { %6954 = vrot.lane.b32.xlu1 %v6912_v20, %s9809_s27  ;;  %v6915_v61 = vmul.f32 %v9673_v8, %v6897_v5 }
0x11d9   : > { %v6914_v50 = vmul.f32 %v9674_v54, %v6895_v43  ;;  %v14740_v43 = vld [vmem:[%s11535_s17 + $0x38] sm:$0xff] }
0x11da   : > { %v9450_v26 = vpop.eup %9449 }
0x11db   : > { %v9452_v34 = vpop.eup %9451  ;;  %6960 = vrot.lane.b32.xlu0 %v6915_v61, %s9809_s27  ;;  %v6901_v1 = vmul.f32 0.6931472, %v9450_v26  ;;  %v14746_v26 = vld [vmem:[%s11482_s29 + $0x40] sm:$0xff] }
0x11dc   : > { %6958 = vrot.lane.b32.xlu1 %v6914_v50, %s9809_s27  ;;  %v6899_v46 = vmul.f32 0.6931472, %v9452_v34 }
0x11dd   : > { %v6917_v47 = vmul.f32 %v9675_v52, %v6901_v1 }
0x11de   : > { %v6916_v32 = vmul.f32 %v9676_v51, %v6899_v46 }
0x11df   : > { %6964 = vrot.lane.b32.xlu0 %v6917_v47, %s9809_s27  ;;  %v14751_v47 = vld [vmem:[%s11482_s29 + $0x58] sm:$0xff] }
0x11e0   : > { %6962 = vrot.lane.b32.xlu1 %v6916_v32, %s9809_s27 }
0x11e3   : > { %7168 = vperm.xlu0 %9067, %v14656_v45  }
0x11e7   : > { %7171 = vperm.xlu0 %9067, %v14660_v3  }
0x11eb   : > { %7236 = vperm.xlu0 %9067, %v14664_v48  }
0x11ef   : > { %7174 = vperm.xlu0 %9067, %v14668_v38  }
0x11f3   : > { %7240 = vperm.xlu0 %9067, %v14672_v27  }
0x11f7   : > { %7183 = vperm.xlu0 %9067, %v14676_v41  }
0x11fb   : > { %7186 = vperm.xlu0 %9067, %v14680_v22  }
0x11ff   : > { %7256 = vperm.xlu0 %9067, %v14684_v4  }
0x1203   : > { %7195 = vperm.xlu0 %9067, %v14688_v21  }
0x1207   : > { %7198 = vperm.xlu0 %9067, %v14692_v10  }
0x120b   : > { %7272 = vperm.xlu0 %9067, %v14696_v40  }
0x120f   : > { %7207 = vperm.xlu0 %9067, %v14700_v24  }
0x1213   : > { %7210 = vperm.xlu0 %9067, %v14704_v16  }
0x1217   : > { %7288 = vperm.xlu0 %9067, %v14708_v53  }
0x121b   : > { %9126 = vset.pattern.permute.xlu0 %v15379_v23 }
0x121c   : > { %7024 = vperm.xlu0 %9126, %v14656_v45  }
0x1220   : > { %7027 = vperm.xlu0 %9126, %v14660_v3  }
0x1224   : > { %7088 = vperm.xlu0 %9126, %v14715_v57  }
0x1228   : > { %7092 = vperm.xlu0 %9126, %v14664_v48  }
0x122c   : > { %7033 = vperm.xlu0 %9126, %v14720_v19  }
0x1230   : > { %7100 = vperm.xlu0 %9126, %v14724_v35  }
0x1233   : > { %v6937_v55 = vpop.permute.xlu1 %6936 }
0x1234   : > { %v6935_v49 = vpop.permute.xlu0 %6934  ;;  %7036 = vperm.xlu0 %9126, %v14728_v44   ;;  %v6983_v30 = vsel %vm2446_vm6, %v6937_v55, 0.0 }
0x1235   : > { %v6982_v25 = vsel %vm2446_vm6, %v6935_v49, 0.0 }
0x1236   : > { %v6984_v36 = vadd.f32 %v6983_v30, %v6982_v25 }
0x1238   : > { %v6939_v56 = vpop.permute.xlu1 %6938  ;;  %v6941_v17 = vpop.permute.xlu0 %6940  ;;  %7045 = vperm.xlu0 %9126, %v14734_v58  }
0x1239   : > { %v6985_v31 = vsel %vm2446_vm6, %v6939_v56, 0.0  ;;  %v6987_v6 = vsel %vm2446_vm6, %v6941_v17, 0.0 }
0x123a   : > { %v6986_v12 = vadd.f32 %v6985_v31, %v6984_v36  ;;  %v14757_v36 = vld [vmem:[%s11535_s17 + $0x58] sm:$0xff] }
0x123c   : > { %v6988_v29 = vadd.f32 %v6987_v6, %v6986_v12  ;;  %v6943_v20 = vpop.permute.xlu1 %6942  ;;  %v6945_v5 = vpop.permute.xlu0 %6944  ;;  %7116 = vperm.xlu0 %9126, %v14740_v43  }
0x123d   : > { %v6989_v8 = vsel %vm2446_vm6, %v6943_v20, 0.0  ;;  %v6991_v54 = vsel %vm2446_vm6, %v6945_v5, 0.0  ;;  %v14763_v20 = vld [vmem:[%s11482_s29 + $0x60] sm:$0xff] }
0x123e   : > { %v6990_v61 = vadd.f32 %v6989_v8, %v6988_v29 }
0x1240   : > { %v6992_v50 = vadd.f32 %v6991_v54, %v6990_v61  ;;  %7048 = vperm.xlu0 %9126, %v14746_v26  }
0x1241   : > { %v6949_v34 = vpop.permute.xlu0 %6948 }
0x1242   : > { %v6947_v1 = vpop.permute.xlu1 %6946  ;;  %v6995_v51 = vsel %vm2446_vm6, %v6949_v34, 0.0 }
0x1243   : > { %v6993_v46 = vsel %vm2446_vm6, %v6947_v1, 0.0  ;;  %v14769_v1 = vld [vmem:[%s11482_s29 + $0x78] sm:$0xff]  ;;  %s8949_s29 = spop %8948 }
0x1244   : > { %v6994_v52 = vadd.f32 %v6993_v46, %v6992_v50  ;;  %7057 = vperm.xlu0 %9126, %v14751_v47   ;;  %s8951_s14 = spop %8950 }
0x1245   : > { %v6953_v32 = vpop.permute.xlu0 %6952  ;;  %s3632_s21 = sadd.f32 %s8951_s14, %s8949_s29  ;;  %s8156_s29 = scalar_lea.sflag [#allocation3], %s420_s16 }
0x1246   : > { %v6996_v55 = vadd.f32 %v6995_v51, %v6994_v52  ;;  %v6951_v49 = vpop.permute.xlu1 %6950  ;;  %v6999_v56 = vsel %vm2446_vm6, %v6953_v32, 0.0 }
0x1247   : > { %v6997_v30 = vsel %vm2446_vm6, %v6951_v49, 0.0 }
0x1248   : > { %v6998_v25 = vadd.f32 %v6997_v30, %v6996_v55  ;;  %7132 = vperm.xlu0 %9126, %v14757_v36   ;;  %v14775_v30 = vld [vmem:[%s11535_s17 + $0x78] sm:$0xff] }
0x1249   : > { %v6957_v17 = vpop.permute.xlu0 %6956 }
0x124a   : > { %v7000_v31 = vadd.f32 %v6999_v56, %v6998_v25  ;;  %v6955_v12 = vpop.permute.xlu1 %6954  ;;  %v7003_v5 = vsel %vm2446_vm6, %v6957_v17, 0.0  ;;  %v15383_v17 = vmov 18  }
0x124b   : > { %v7001_v6 = vsel %vm2446_vm6, %v6955_v12, 0.0 }
0x124c   : > { %v7002_v29 = vadd.f32 %v7001_v6, %v7000_v31  ;;  %7060 = vperm.xlu0 %9126, %v14763_v20   ;;  %v14783_v31 = vld [vmem:[%s11535_s17 + $0x20] sm:$0xff] }
0x124d   : > { %v6961_v8 = vpop.permute.xlu0 %6960 }
0x124e   : > { %v7004_v61 = vadd.f32 %v7003_v5, %v7002_v29  ;;  %v6959_v54 = vpop.permute.xlu1 %6958  ;;  %v7007_v46 = vsel %vm2446_vm6, %v6961_v8, 0.0  ;;  %v14793_v29 = vld [vmem:[%s11535_s17 + $0x40] sm:$0xff] }
0x124f   : > { %v7005_v50 = vsel %vm2446_vm6, %v6959_v54, 0.0 }
0x1250   : > { %v7006_v34 = vadd.f32 %v7005_v50, %v7004_v61  ;;  %7069 = vperm.xlu0 %9126, %v14769_v1   ;;  %v14804_v61 = vld [vmem:[%s11535_s17 + $0x60] sm:$0xff] }
0x1251   : > { %v6965_v32 = vpop.permute.xlu0 %6964 }
0x1252   : > { %v7008_v52 = vadd.f32 %v7007_v46, %v7006_v34  ;;  %v6963_v51 = vpop.permute.xlu1 %6962  ;;  %v7011_v25 = vsel %vm2446_vm6, %v6965_v32, 0.0  ;;  %v15377_v34 = vmov 19  }
0x1253   : > { %v7009_v55 = vsel %vm2446_vm6, %v6963_v51, 0.0 }
0x1254   : > { %v7010_v49 = vadd.f32 %v7009_v55, %v7008_v52  ;;  %7148 = vperm.xlu0 %9126, %v14775_v30  }
0x1256   : > { %v7012_v56 = vadd.f32 %v7011_v25, %v7010_v49  ;;  %v14850_v25 = vld [vmem:[%s11535_s17 + $0x48] sm:$0xff] }
0x1258   : > { %7013 = vadd.xlane.f32.xlu1 %v7012_v56  ;;  %9128 = vset.pattern.permute.xlu0 %v15383_v17 }
0x1259   : > { %7331 = vperm.xlu0 %9128, %v14660_v3  }
0x125d   : > { %7340 = vperm.xlu0 %9128, %v14728_v44  }
0x1261   : > { %7408 = vperm.xlu0 %9128, %v14783_v31  }
0x1262   : > { %v14786_v12 = vpop.permute.xlu0 %7168 }
0x1263   : > { %vm7215_vm13 = vcmp.eq.s32.totalorder %v14786_v12, %v10812_v59 }
0x1265   : > { %7352 = vperm.xlu0 %9128, %v14746_v26  }
0x1266   : > { %v14789_v6 = vpop.permute.xlu0 %7171 }
0x1267   : > { %vm7216_vm8 = vcmp.eq.s32.totalorder %v14789_v6, %v10812_v59 }
0x1269   : > { %7232 = vperm.xlu1 %9068, %v14715_v57   ;;  %7424 = vperm.xlu0 %9128, %v14793_v29  }
0x126a   : > { %v14796_v5 = vpop.permute.xlu0 %7236 }
0x126d   : > { %9069 = vset.pattern.permute.xlu1 %v15383_v17  ;;  %7364 = vperm.xlu0 %9128, %v14763_v20  }
0x126e   : > { %7328 = vperm.xlu1 %9069, %v14656_v45   ;;  %v14801_v8 = vpop.permute.xlu0 %7174 }
0x1271   : > { %7440 = vperm.xlu0 %9128, %v14804_v61  }
0x1272   : > { %7392 = vperm.xlu1 %9069, %v14715_v57   ;;  %v14808_v54 = vpop.permute.xlu0 %7240 }
0x1275   : > { %7452 = vperm.xlu0 %9128, %v14775_v30  }
0x1276   : > { %9070 = vset.pattern.permute.xlu1 %v15379_v23  ;;  %v14812_v50 = vpop.permute.xlu0 %7183 }
0x1277   : > { %7030 = vperm.xlu1 %9070, %v14668_v38  }
0x1279   : > { %9131 = vset.pattern.permute.xlu0 %v15377_v34 }
0x127a   : > { %7556 = vperm.xlu0 %9131, %v14664_v48   ;;  %v14817_v46 = vpop.permute.xlu0 %7186 }
0x127b   : > { %9071 = vset.pattern.permute.xlu1 %v15383_v17 }
0x127c   : > { %7396 = vperm.xlu1 %9071, %v14664_v48   ;;  %v14834_v48 = vld [vmem:[%s11535_s17 + $0x28] sm:$0xff] }
0x127e   : > { %v14821_v52 = vpop.permute.xlu0 %7256  ;;  %7494 = vperm.xlu0 %9131, %v14668_v38  }
0x1280   : > { %9072 = vset.pattern.permute.xlu1 %v15377_v34 }
0x1281   : > { %7488 = vperm.xlu1 %9072, %v14656_v45  }
0x1282   : > { %v14826_v51 = vpop.permute.xlu0 %7195  ;;  %7560 = vperm.xlu0 %9131, %v14672_v27  }
0x1285   : > { %9073 = vset.pattern.permute.xlu1 %v15379_v23 }
0x1286   : > { %7096 = vperm.xlu1 %9073, %v14672_v27   ;;  %v14831_v32 = vpop.permute.xlu0 %7198  ;;  %7572 = vperm.xlu0 %9131, %v14834_v48  }
0x128a   : > { %9074 = vset.pattern.permute.xlu1 %v15381_v62  ;;  %v14838_v55 = vpop.permute.xlu0 %7272  ;;  %7506 = vperm.xlu0 %9131, %v14680_v22  }
0x128b   : > { %7177 = vperm.xlu1 %9074, %v14720_v19  }
0x128e   : > { %v14842_v45 = vpop.permute.xlu0 %7207  ;;  %7576 = vperm.xlu0 %9131, %v14684_v4  }
0x128f   : > { %16242 = vst [vmem:[#allocation74_spill] sm:$0xff] %v14842_v45  ;;  %9075 = vset.pattern.permute.xlu1 %v15377_v34 }
0x1290   : > { %7491 = vperm.xlu1 %9075, %v14660_v3   ;;  %v14865_v3 = vld [vmem:[%s11535_s17 + $0x68] sm:$0xff]  ;;  %s8953_s17 = spop %8952 }
0x1291   : > { %s8955_s23 = spop %8954  ;;  %s4762_s22 = sadd.f32 %s8953_s17, %s3632_s21 }
0x1292   : > { %v14847_v49 = vpop.permute.xlu0 %7210  ;;  %7588 = vperm.xlu0 %9131, %v14850_v25  }
0x1293   : > { %16243 = vst [vmem:[#allocation103_spill] sm:$0xff] %v14847_v49  ;;  %s5892_s26 = sadd.f32 %s8955_s23, %s4762_s22 }
0x1294   : > { %7552 = vperm.xlu1 %9075, %v14715_v57  }
0x1296   : > { %v14854_v56 = vpop.permute.xlu0 %7288  ;;  %7518 = vperm.xlu0 %9131, %v14692_v10  }
0x1297   : > { %16244 = vst [vmem:[#allocation117_spill] sm:$0xff] %v14854_v56 }
0x1298   : > { %9076 = vset.pattern.permute.xlu1 %v15381_v62 }
0x1299   : > { %7244 = vperm.xlu1 %9076, %v14724_v35  }
0x129a   : > { %7592 = vperm.xlu0 %9131, %v14696_v40  }
0x129b   : > { %v14860_v34 = vpop.permute.xlu0 %7024 }
0x129c   : > { %vm7071_vm4 = vcmp.eq.s32.totalorder %v14860_v34, %v10812_v59 }
0x129d   : > { %9077 = vset.pattern.permute.xlu1 %v15383_v17  ;;  %v16245_v17 = vmov 17  }
0x129e   : > { %7334 = vperm.xlu1 %9077, %v14668_v38   ;;  %7604 = vperm.xlu0 %9131, %v14865_v3  }
0x129f   : > { %v7028_v57 = vpop.permute.xlu0 %7027 }
0x12a0   : > { %vm7072_vm12 = vcmp.eq.s32.totalorder %v7028_v57, %v10812_v59 }
0x12a2   : > { %7337 = vperm.xlu1 %9077, %v14720_v19   ;;  %7608 = vperm.xlu0 %9131, %v14708_v53  }
0x12a3   : > { %v14870_v23 = vpop.permute.xlu0 %7088 }
0x12a6   : > { %7400 = vperm.xlu1 %9077, %v14672_v27   ;;  %v16247_v27 = vmov 16  }
0x12a7   : > { %v7093_v62 = vpop.permute.xlu0 %7092 }
0x12a8   : > { %v14874_v2 = vsel %vm7072_vm12, %v7093_v62, 0.0 }
0x12aa   : > { %9078 = vset.pattern.permute.xlu1 %v16245_v17 }
0x12ab   : > { %7180 = vperm.xlu1 %9078, %v14728_v44   ;;  %v7034_v38 = vpop.permute.xlu0 %7033 }
0x12ac   : > { %vm7074_vm11 = vcmp.eq.s32.totalorder %v7034_v38, %v10812_v59 }
0x12af   : > { %9079 = vset.pattern.permute.xlu1 %v16246_v39  ;;  %v7101_v11 = vpop.permute.xlu0 %7100 }
0x12b0   : > { %7404 = vperm.xlu1 %9079, %v14724_v35   ;;  %v14881_v37 = vsel %vm7074_vm11, %v7101_v11, 0.0  ;;  %vm7217_vm11 = vcmp.eq.s32.totalorder %v14801_v8, %v10812_v59 }
0x12b3   : > { %v14883_v57 = vpop.permute.xlu0 %7036 }
0x12b4   : > { %9080 = vset.pattern.permute.xlu1 %v16247_v27 }
0x12b5   : > { %7039 = vperm.xlu1 %9080, %v14676_v41  }
0x12b7   : > { %v7046_v62 = vpop.permute.xlu0 %7045 }
0x12b8   : > { %vm7078_vm2 = vcmp.eq.s32.totalorder %v7046_v62, %v10812_v59 }
0x12b9   : > { %7104 = vperm.xlu1 %9080, %v14783_v31  }
0x12bb   : > { %v7117_v28 = vpop.permute.xlu0 %7116 }
0x12bc   : > { %v14889_v38 = vsel %vm7078_vm2, %v7117_v28, 0.0 }
0x12bd   : > { %9081 = vset.pattern.permute.xlu1 %v16245_v17 }
0x12be   : > { %7248 = vperm.xlu1 %9081, %v14783_v31  }
0x12bf   : > { %v14893_v11 = vpop.permute.xlu0 %7048 }
0x12c2   : > { %9082 = vset.pattern.permute.xlu1 %v16248_v33 }
0x12c3   : > { %7497 = vperm.xlu1 %9082, %v14720_v19   ;;  %v7058_v0 = vpop.permute.xlu0 %7057 }
0x12c4   : > { %vm7082_vm15 = vcmp.eq.s32.totalorder %v7058_v0, %v10812_v59 }
0x12c7   : > { %9083 = vset.pattern.permute.xlu1 %v16247_v27  ;;  %v7133_v42 = vpop.permute.xlu0 %7132 }
0x12c8   : > { %7108 = vperm.xlu1 %9083, %v14834_v48   ;;  %v14900_v28 = vsel %vm7082_vm15, %v7133_v42, 0.0 }
0x12cb   : > { %v14902_v62 = vpop.permute.xlu0 %7060 }
0x12cc   : > { %9084 = vset.pattern.permute.xlu1 %v16245_v17 }
0x12cd   : > { %7252 = vperm.xlu1 %9084, %v14834_v48  }
0x12cf   : > { %v7070_v7 = vpop.permute.xlu0 %7069 }
0x12d0   : > { %vm7086_vm9 = vcmp.eq.s32.totalorder %v7070_v7, %v10812_v59 }
0x12d1   : > { %9085 = vset.pattern.permute.xlu1 %v16248_v33 }
0x12d2   : > { %7564 = vperm.xlu1 %9085, %v14724_v35  }
0x12d3   : > { %v7149_v0 = vpop.permute.xlu0 %7148 }
0x12d4   : > { %v14909_v19 = vsel %vm7086_vm9, %v7149_v0, 0.0 }
0x12d5   : > { %16249 = vst [vmem:[#allocation95_spill] sm:$0xff] %v14909_v19 }
0x12d6   : > { %9086 = vset.pattern.permute.xlu1 %v16246_v39 }
0x12d7   : > { %7343 = vperm.xlu1 %9086, %v14676_v41  }
0x12d8   : > { %v14913_v42 = vpop.permute.xlu0 %7331 }
0x12d9   : > { %vm7376_vm0 = vcmp.eq.s32.totalorder %v14913_v42, %v10812_v59 }
0x12db   : > { %9087 = vset.pattern.permute.xlu1 %v16247_v27 }
0x12dc   : > { %7042 = vperm.xlu1 %9087, %v14680_v22   ;;  %v7341_v18 = vpop.permute.xlu0 %7340 }
0x12dd   : > { %vm7379_vm5 = vcmp.eq.s32.totalorder %v7341_v18, %v10812_v59 }
0x12e0   : > { %9088 = vset.pattern.permute.xlu1 %v16246_v39  ;;  %v7409_v7 = vpop.permute.xlu0 %7408 }
0x12e1   : > { %7412 = vperm.xlu1 %9088, %v14834_v48   ;;  %v14920_v35 = vsel %vm7379_vm5, %v7409_v7, 0.0  ;;  %vm7075_vm5 = vcmp.eq.s32.totalorder %v14883_v57, %v10812_v59 }
0x12e4   : > { %v7353_v0 = vpop.permute.xlu0 %7352 }
0x12e5   : > { %9089 = vset.pattern.permute.xlu1 %v16248_v33  ;;  %v7014_v19 = vpop.xlane.xlu1 %7013  ;;  %vm7383_vm7 = vcmp.eq.s32.totalorder %v7353_v0, %v10812_v59 }
0x12e6   : > { %v7015_v56 = vrot.slane %v7014_v19, 4  ;;  %7500 = vperm.xlu1 %9089, %v14728_v44  }
0x12e8   : > { %v7016_v49 = vadd.f32 %v7015_v56, %v7014_v19  ;;  %v7425_v63 = vpop.permute.xlu0 %7424 }
0x12e9   : > { %v7233_v9 = vpop.permute.xlu1 %7232  ;;  %v14925_v18 = vsel %vm7383_vm7, %v7425_v63, 0.0 }
0x12ea   : > { %9090 = vset.pattern.permute.xlu1 %v16247_v27  ;;  %v7017_v45 = vrot.slane %v7016_v49, 2 }
0x12eb   : > { %7112 = vperm.xlu1 %9090, %v14684_v4  }
0x12ec   : > { %v7018_v48 = vadd.f32 %v7017_v45, %v7016_v49  ;;  %v7365_v7 = vpop.permute.xlu0 %7364 }
0x12ed   : > { %v7329_v15 = vpop.permute.xlu1 %7328  ;;  %vm7387_vm10 = vcmp.eq.s32.totalorder %v7365_v7, %v10812_v59  ;;  %v7295_v7 = vsel %vm7215_vm13, %v7233_v9, 0.0 }
0x12ee   : > { %v7019_v14 = vrot.slane %v7018_v48, 1  ;;  %vm7375_vm3 = vcmp.eq.s32.totalorder %v7329_v15, %v10812_v59 }
0x12ef   : > { %9091 = vset.pattern.permute.xlu1 %v16245_v17 }
0x12f0   : > { %7189 = vperm.xlu1 %9091, %v14734_v58   ;;  %v7020_v44 = vadd.f32 %v7019_v14, %v7018_v48  ;;  %v7441_v56 = vpop.permute.xlu0 %7440 }
0x12f1   : > { %v7393_v19 = vpop.permute.xlu1 %7392  ;;  %v14932_v63 = vsel %vm7387_vm10, %v7441_v56, 0.0 }
0x12f2   : > { %8956 = vpush %v7020_v44  ;;  %v7455_v44 = vsel %vm7375_vm3, %v7393_v19, 0.0 }
0x12f4   : > { %9092 = vset.pattern.permute.xlu1 %v16248_v33  ;;  %v14946_v48 = vpop.permute.xlu0 %7452 }
0x12f5   : > { %7503 = vperm.xlu1 %9092, %v14676_v41   ;;  %16250 = vst [vmem:[#allocation120_spill] sm:$0xff] %v14946_v48 }
0x12f6   : > { %v7031_v45 = vpop.permute.xlu1 %7030 }
0x12f7   : > { %vm7073_vm2 = vcmp.eq.s32.totalorder %v7031_v45, %v10812_v59 }
0x12f9   : > { %7568 = vperm.xlu1 %9092, %v14783_v31   ;;  %v7151_v31 = vsel %vm7071_vm4, %v14870_v23, 0.0  ;;  %vm7220_vm4 = vcmp.eq.s32.totalorder %v14812_v50, %v10812_v59 }
0x12fb   : > { %v7397_v49 = vpop.permute.xlu1 %7396 }
0x12fc   : > { %v7456_v34 = vsel %vm7376_vm0, %v7397_v49, 0.0 }
0x12fd   : > { %9093 = vset.pattern.permute.xlu1 %v16245_v17 }
0x12fe   : > { %7260 = vperm.xlu1 %9093, %v14740_v43  }
0x1300   : > { %v7489_v0 = vpop.permute.xlu1 %7488 }
0x1301   : > { %vm7535_vm12 = vcmp.eq.s32.totalorder %v7489_v0, %v10812_v59 }
0x1302   : > { %9094 = vset.pattern.permute.xlu1 %v16246_v39 }
0x1303   : > { %7346 = vperm.xlu1 %9094, %v14680_v22   ;;  %v7296_v22 = vsel %vm7216_vm8, %v14796_v5, 0.0  ;;  %v7311_v5 = vadd.f32 %v7295_v7, %v7151_v31  ;;  %v7297_v31 = vsel %vm7217_vm11, %v14808_v54, 0.0  ;;  %vm7221_vm11 = vcmp.eq.s32.totalorder %v14817_v46, %v10812_v59 }
0x1304   : > { %v7312_v12 = vadd.f32 %v7296_v22, %v14874_v2 }
0x1305   : > { %v7097_v14 = vpop.permute.xlu1 %7096  ;;  %v7471_v23 = vadd.f32 %v7455_v44, %v7311_v5 }
0x1306   : > { %v7472_v56 = vadd.f32 %v7456_v34, %v7312_v12 }
0x1307   : > { %7349 = vperm.xlu1 %9094, %v14734_v58  }
0x130a   : > { %v14944_v41 = vpop.permute.xlu1 %7177 }
0x130b   : > { %7416 = vperm.xlu1 %9094, %v14684_v4   ;;  %v7557_v4 = vpop.permute.xlu0 %7556  ;;  %vm7218_vm10 = vcmp.eq.s32.totalorder %v14944_v41, %v10812_v59 }
0x130f   : > { %9095 = vset.pattern.permute.xlu1 %v16245_v17  ;;  %v7492_v6 = vpop.permute.xlu1 %7491  ;;  %v7495_v0 = vpop.permute.xlu0 %7494 }
0x1310   : > { %7192 = vperm.xlu1 %9095, %v14746_v26   ;;  %vm7536_vm1 = vcmp.eq.s32.totalorder %v7492_v6, %v10812_v59  ;;  %vm7537_vm15 = vcmp.eq.s32.totalorder %v7495_v0, %v10812_v59 }
0x1311   : > { %v7616_v9 = vsel %vm7536_vm1, %v7557_v4, 0.0 }
0x1312   : > { %v7632_v2 = vadd.f32 %v7616_v9, %v7472_v56 }
0x1313   : > { %v7553_v42 = vpop.permute.xlu1 %7552  ;;  %v7561_v7 = vpop.permute.xlu0 %7560 }
0x1314   : > { %v7615_v15 = vsel %vm7535_vm12, %v7553_v42, 0.0  ;;  %9096 = vset.pattern.permute.xlu1 %v16246_v39  ;;  %v7617_v4 = vsel %vm7537_vm15, %v7561_v7, 0.0 }
0x1315   : > { %v7631_v48 = vadd.f32 %v7615_v15, %v7471_v23  ;;  %7420 = vperm.xlu1 %9096, %v14740_v43  }
0x1317   : > { %8868 = vmatprep.mubr.msk.f32.mxu0 %vm2060_vm14, %v7631_v48  ;;  %v7153_v48 = vsel %vm7073_vm2, %v7097_v14, 0.0 }
0x1318   : > { %v7245_v19 = vpop.permute.xlu1 %7244  ;;  %8869 = vmatmul.mubr.msk.f32.vlgmr.msra.gmra.mrb[40].mxu0 %vm2060_vm14, %v7632_v2  ;;  %v7313_v6 = vadd.f32 %v7297_v31, %v7153_v48 }
0x1319   : > { %9097 = vset.pattern.permute.xlu1 %v16247_v27  ;;  %v7298_v15 = vsel %vm7218_vm10, %v7245_v19, 0.0 }
0x131a   : > { %7051 = vperm.xlu1 %9097, %v14688_v21  }
0x131d   : > { %v7335_v49 = vpop.permute.xlu1 %7334 }
0x131e   : > { %7120 = vperm.xlu1 %9097, %v14793_v29   ;;  %vm7377_vm9 = vcmp.eq.s32.totalorder %v7335_v49, %v10812_v59 }
0x1321   : > { %v7338_v22 = vpop.permute.xlu1 %7337 }
0x1322   : > { %9098 = vset.pattern.permute.xlu1 %v16245_v17  ;;  %vm7378_vm8 = vcmp.eq.s32.totalorder %v7338_v22, %v10812_v59 }
0x1323   : > { %7264 = vperm.xlu1 %9098, %v14793_v29   ;;  %s8957_s25 = spop %8956 }
0x1324   : > { %s7022_s27 = sadd.f32 %s8957_s25, %s5892_s26 }
0x1325   : > { %v7401_v12 = vpop.permute.xlu1 %7400 }
0x1326   : > { %v7457_v44 = vsel %vm7377_vm9, %v7401_v12, 0.0 }
0x1327   : > { %v7473_v8 = vadd.f32 %v7457_v44, %v7313_v6  ;;  %9099 = vset.pattern.permute.xlu1 %v16248_v33 }
0x1328   : > { %7509 = vperm.xlu1 %9099, %v14734_v58  }
0x1329   : > { %v7633_v54 = vadd.f32 %v7617_v4, %v7473_v8 }
0x132a   : > { %v7181_v45 = vpop.permute.xlu1 %7180 }
0x132b   : > { %8871 = vmatprep.mubr.msk.f32.mxu0 %vm2060_vm14, %v7633_v54  ;;  %vm7219_vm7 = vcmp.eq.s32.totalorder %v7181_v45, %v10812_v59 }
0x132c   : > { %9100 = vset.pattern.permute.xlu1 %v16247_v27 }
0x132d   : > { %7124 = vperm.xlu1 %9100, %v14850_v25  }
0x132f   : > { %v7405_v14 = vpop.permute.xlu1 %7404 }
0x1330   : > { %v7458_v49 = vsel %vm7378_vm8, %v7405_v14, 0.0 }
0x1331   : > { %9101 = vset.pattern.permute.xlu1 %v16245_v17 }
0x1332   : > { %7268 = vperm.xlu1 %9101, %v14850_v25  }
0x1334   : > { %v7040_v5 = vpop.permute.xlu1 %7039 }
0x1335   : > { %vm7076_vm0 = vcmp.eq.s32.totalorder %v7040_v5, %v10812_v59 }
0x1336   : > { %9102 = vset.pattern.permute.xlu1 %v16248_v33 }
0x1337   : > { %7580 = vperm.xlu1 %9102, %v14740_v43  }
0x1338   : > { %v7105_v34 = vpop.permute.xlu1 %7104 }
0x1339   : > { %v7155_v23 = vsel %vm7075_vm5, %v7105_v34, 0.0  ;;  %vm7079_vm5 = vcmp.eq.s32.totalorder %v14893_v11, %v10812_v59 }
0x133b   : > { %9103 = vset.pattern.permute.xlu1 %v16246_v39 }
0x133c   : > { %7355 = vperm.xlu1 %9103, %v14688_v21  }
0x133d   : > { %v7249_v58 = vpop.permute.xlu1 %7248 }
0x133e   : > { %v7299_v9 = vsel %vm7219_vm7, %v7249_v58, 0.0 }
0x133f   : > { %v7315_v42 = vadd.f32 %v7299_v9, %v7155_v23  ;;  %v7301_v23 = vsel %vm7221_vm11, %v14821_v52, 0.0 }
0x1340   : > { %9104 = vset.pattern.permute.xlu1 %v16247_v27 }
0x1341   : > { %7054 = vperm.xlu1 %9104, %v14692_v10   ;;  %v7475_v43 = vadd.f32 %v14920_v35, %v7315_v42  ;;  %v7314_v35 = vadd.f32 %v7298_v15, %v14881_v37 }
0x1342   : > { %v7498_v56 = vpop.permute.xlu1 %7497 }
0x1343   : > { %vm7538_vm13 = vcmp.eq.s32.totalorder %v7498_v56, %v10812_v59 }
0x1345   : > { %9105 = vset.pattern.permute.xlu1 %v16246_v39 }
0x1346   : > { %7428 = vperm.xlu1 %9105, %v14850_v25   ;;  %v7474_v25 = vadd.f32 %v7458_v49, %v7314_v35 }
0x1347   : > { %v7109_v57 = vpop.permute.xlu1 %7108 }
0x1348   : > { %v7156_v6 = vsel %vm7076_vm0, %v7109_v57, 0.0 }
0x134a   : > { %9106 = vset.pattern.permute.xlu1 %v16248_v33 }
0x134b   : > { %7512 = vperm.xlu1 %9106, %v14746_v26  }
0x134c   : > { %v7253_v2 = vpop.permute.xlu1 %7252 }
0x134f   : > { %9107 = vset.pattern.permute.xlu1 %v16247_v27 }
0x1350   : > { %7128 = vperm.xlu1 %9107, %v14696_v40  }
0x1351   : > { %v7565_v0 = vpop.permute.xlu1 %7564 }
0x1352   : > { %v7618_v31 = vsel %vm7538_vm13, %v7565_v0, 0.0 }
0x1353   : > { %v7634_v48 = vadd.f32 %v7618_v31, %v7474_v25 }
0x1354   : > { %9108 = vset.pattern.permute.xlu1 %v16245_v17 }
0x1355   : > { %7201 = vperm.xlu1 %9108, %v14751_v47   ;;  %8872 = vmatmul.mubr.msk.f32.gmra.mrb[42].mxu0 %vm2060_vm14, %v7634_v48 }
0x1356   : > { %v7344_v26 = vpop.permute.xlu1 %7343 }
0x1357   : > { %vm7380_vm3 = vcmp.eq.s32.totalorder %v7344_v26, %v10812_v59 }
0x1359   : > { %9109 = vset.pattern.permute.xlu1 %v16248_v33 }
0x135a   : > { %7515 = vperm.xlu1 %9109, %v14688_v21   ;;  %v7300_v21 = vsel %vm7220_vm4, %v7253_v2, 0.0  ;;  %vm7224_vm4 = vcmp.eq.s32.totalorder %v14826_v51, %v10812_v59 }
0x135b   : > { %v7043_v37 = vpop.permute.xlu1 %7042  ;;  %v7316_v44 = vadd.f32 %v7300_v21, %v7156_v6 }
0x135c   : > { %vm7077_vm2 = vcmp.eq.s32.totalorder %v7043_v37, %v10812_v59 }
0x135e   : > { %7584 = vperm.xlu1 %9109, %v14793_v29  }
0x1360   : > { %v7413_v41 = vpop.permute.xlu1 %7412 }
0x1361   : > { %v7460_v12 = vsel %vm7380_vm3, %v7413_v41, 0.0 }
0x1362   : > { %9110 = vset.pattern.permute.xlu1 %v16245_v17  ;;  %v7476_v4 = vadd.f32 %v7460_v12, %v7316_v44 }
0x1363   : > { %7276 = vperm.xlu1 %9110, %v14757_v36  }
0x1365   : > { %v7501_v19 = vpop.permute.xlu1 %7500 }
0x1366   : > { %vm7539_vm12 = vcmp.eq.s32.totalorder %v7501_v19, %v10812_v59 }
0x1367   : > { %9111 = vset.pattern.permute.xlu1 %v16246_v39 }
0x1368   : > { %7358 = vperm.xlu1 %9111, %v14692_v10   ;;  %v7573_v10 = vpop.permute.xlu0 %7572 }
0x136a   : > { %v7113_v22 = vpop.permute.xlu1 %7112 }
0x136b   : > { %v7157_v9 = vsel %vm7077_vm2, %v7113_v22, 0.0  ;;  %vm7225_vm2 = vcmp.eq.s32.totalorder %v14831_v32, %v10812_v59 }
0x136c   : > { %7361 = vperm.xlu1 %9111, %v14751_v47   ;;  %v7507_v34 = vpop.permute.xlu0 %7506 }
0x136d   : > { %vm7541_vm15 = vcmp.eq.s32.totalorder %v7507_v34, %v10812_v59 }
0x136f   : > { %v15017_v7 = vpop.permute.xlu1 %7189 }
0x1370   : > { %7432 = vperm.xlu1 %9111, %v14696_v40   ;;  %v7577_v42 = vpop.permute.xlu0 %7576  ;;  %vm7222_vm10 = vcmp.eq.s32.totalorder %v15017_v7, %v10812_v59 }
0x1371   : > { %v7621_v15 = vsel %vm7541_vm15, %v7577_v42, 0.0 }
0x1374   : > { %9112 = vset.pattern.permute.xlu1 %v16245_v17  ;;  %v7504_v29 = vpop.permute.xlu1 %7503 }
0x1375   : > { %7204 = vperm.xlu1 %9112, %v14763_v20   ;;  %vm7540_vm1 = vcmp.eq.s32.totalorder %v7504_v29, %v10812_v59 }
0x1376   : > { %v7620_v40 = vsel %vm7540_vm1, %v7573_v10, 0.0 }
0x1377   : > { %v7636_v45 = vadd.f32 %v7620_v40, %v7476_v4 }
0x1378   : > { %v7569_v50 = vpop.permute.xlu1 %7568 }
0x1379   : > { %v7619_v8 = vsel %vm7539_vm12, %v7569_v50, 0.0  ;;  %9113 = vset.pattern.permute.xlu1 %v16246_v39 }
0x137a   : > { %v7635_v54 = vadd.f32 %v7619_v8, %v7475_v43  ;;  %7436 = vperm.xlu1 %9113, %v14757_v36   ;;  %v7317_v43 = vadd.f32 %v7301_v23, %v7157_v9 }
0x137c   : > { %8874 = vmatprep.mubr.msk.f32.mxu0 %vm2060_vm14, %v7635_v54 }
0x137d   : > { %v7261_v14 = vpop.permute.xlu1 %7260  ;;  %8875 = vmatmul.mubr.msk.f32.gmra.mrb[44].mxu0 %vm2060_vm14, %v7636_v45 }
0x137e   : > { %9114 = vset.pattern.permute.xlu1 %v16247_v27  ;;  %v7302_v37 = vsel %vm7222_vm10, %v7261_v14, 0.0 }
0x137f   : > { %7063 = vperm.xlu1 %9114, %v14700_v24  }
0x1382   : > { %v7347_v5 = vpop.permute.xlu1 %7346 }
0x1383   : > { %7136 = vperm.xlu1 %9114, %v14804_v61   ;;  %vm7381_vm9 = vcmp.eq.s32.totalorder %v7347_v5, %v10812_v59 }
0x1386   : > { %v7350_v58 = vpop.permute.xlu1 %7349 }
0x1387   : > { %9115 = vset.pattern.permute.xlu1 %v16245_v17  ;;  %vm7382_vm8 = vcmp.eq.s32.totalorder %v7350_v58, %v10812_v59 }
0x1388   : > { %7280 = vperm.xlu1 %9115, %v14804_v61  }
0x138a   : > { %v7417_v56 = vpop.permute.xlu1 %7416 }
0x138b   : > { %v7461_v57 = vsel %vm7381_vm9, %v7417_v56, 0.0 }
0x138c   : > { %v7477_v46 = vadd.f32 %v7461_v57, %v7317_v43  ;;  %9116 = vset.pattern.permute.xlu1 %v16248_v33 }
0x138d   : > { %7521 = vperm.xlu1 %9116, %v14751_v47  }
0x138e   : > { %v7637_v52 = vadd.f32 %v7621_v15, %v7477_v46 }
0x138f   : > { %v7193_v2 = vpop.permute.xlu1 %7192 }
0x1390   : > { %8877 = vmatprep.mubr.msk.f32.mxu0 %vm2060_vm14, %v7637_v52  ;;  %vm7223_vm7 = vcmp.eq.s32.totalorder %v7193_v2, %v10812_v59 }
0x1391   : > { %9117 = vset.pattern.permute.xlu1 %v16247_v27 }
0x1392   : > { %7140 = vperm.xlu1 %9117, %v14865_v3  }
0x1394   : > { %v7421_v49 = vpop.permute.xlu1 %7420 }
0x1395   : > { %v7462_v19 = vsel %vm7382_vm8, %v7421_v49, 0.0 }
0x1396   : > { %9118 = vset.pattern.permute.xlu1 %v16245_v17 }
0x1397   : > { %7284 = vperm.xlu1 %9118, %v14865_v3  }
0x1399   : > { %v7052_v35 = vpop.permute.xlu1 %7051 }
0x139a   : > { %vm7080_vm0 = vcmp.eq.s32.totalorder %v7052_v35, %v10812_v59 }
0x139b   : > { %9119 = vset.pattern.permute.xlu1 %v16248_v33 }
0x139c   : > { %7596 = vperm.xlu1 %9119, %v14757_v36  }
0x139d   : > { %v7121_v25 = vpop.permute.xlu1 %7120 }
0x139e   : > { %v7159_v0 = vsel %vm7079_vm5, %v7121_v25, 0.0 }
0x13a0   : > { %9120 = vset.pattern.permute.xlu1 %v16246_v39 }
0x13a1   : > { %7367 = vperm.xlu1 %9120, %v14700_v24  }
0x13a2   : > { %v7265_v47 = vpop.permute.xlu1 %7264 }
0x13a3   : > { %v7303_v31 = vsel %vm7223_vm7, %v7265_v47, 0.0  ;;  %vm7083_vm7 = vcmp.eq.s32.totalorder %v14902_v62, %v10812_v59 }
0x13a4   : > { %v7319_v48 = vadd.f32 %v7303_v31, %v7159_v0 }
0x13a5   : > { %9121 = vset.pattern.permute.xlu1 %v16247_v27 }
0x13a6   : > { %7066 = vperm.xlu1 %9121, %v14704_v16   ;;  %v7479_v36 = vadd.f32 %v14925_v18, %v7319_v48  ;;  %v7318_v18 = vadd.f32 %v7302_v37, %v14889_v38 }
0x13a7   : > { %v7510_v26 = vpop.permute.xlu1 %7509 }
0x13a8   : > { %vm7542_vm13 = vcmp.eq.s32.totalorder %v7510_v26, %v10812_v59 }
0x13aa   : > { %9122 = vset.pattern.permute.xlu1 %v16246_v39 }
0x13ab   : > { %7444 = vperm.xlu1 %9122, %v14865_v3   ;;  %v7478_v3 = vadd.f32 %v7462_v19, %v7318_v18  ;;  %v16251_v18 = vld [vmem:[#allocation18_spill] sm:$0xff] }
0x13ac   : > { %v7125_v11 = vpop.permute.xlu1 %7124 }
0x13af   : > { %9123 = vset.pattern.permute.xlu1 %v16248_v33 }
0x13b0   : > { %7524 = vperm.xlu1 %9123, %v14763_v20  }
0x13b1   : > { %v7269_v41 = vpop.permute.xlu1 %7268 }
0x13b4   : > { %9124 = vset.pattern.permute.xlu1 %v16247_v27 }
0x13b5   : > { %7144 = vperm.xlu1 %9124, %v14708_v53  }
0x13b6   : > { %v7581_v22 = vpop.permute.xlu1 %7580 }
0x13b7   : > { %v7622_v21 = vsel %vm7542_vm13, %v7581_v22, 0.0  ;;  %v16252_v22 = vld [vmem:[#allocation19_spill] sm:$0xff] }
0x13b8   : > { %v7638_v29 = vadd.f32 %v7622_v21, %v7478_v3 }
0x13b9   : > { %9125 = vset.pattern.permute.xlu1 %v16245_v17 }
0x13ba   : > { %7213 = vperm.xlu1 %9125, %v14769_v1   ;;  %8878 = vmatmul.mubr.msk.f32.gmra.mrb[46].mxu0 %vm2060_vm14, %v7638_v29 }
0x13bb   : > { %v7356_v20 = vpop.permute.xlu1 %7355 }
0x13bc   : > { %vm7384_vm3 = vcmp.eq.s32.totalorder %v7356_v20, %v10812_v59 }
0x13be   : > { %9127 = vset.pattern.permute.xlu1 %v16248_v33 }
0x13bf   : > { %7527 = vperm.xlu1 %9127, %v14700_v24   ;;  %v7304_v24 = vsel %vm7224_vm4, %v7269_v41, 0.0 }
0x13c0   : > { %v7055_v27 = vpop.permute.xlu1 %7054 }
0x13c1   : > { %vm7081_vm15 = vcmp.eq.s32.totalorder %v7055_v27, %v10812_v59 }
0x13c3   : > { %7600 = vperm.xlu1 %9127, %v14804_v61   ;;  %v7160_v61 = vsel %vm7080_vm0, %v7125_v11, 0.0 }
0x13c4   : > { %v7320_v44 = vadd.f32 %v7304_v24, %v7160_v61 }
0x13c5   : > { %v7429_v38 = vpop.permute.xlu1 %7428 }
0x13c6   : > { %v7464_v12 = vsel %vm7384_vm3, %v7429_v38, 0.0 }
0x13c7   : > { %9129 = vset.pattern.permute.xlu1 %v16245_v17  ;;  %v7480_v40 = vadd.f32 %v7464_v12, %v7320_v44 }
0x13c8   : > { %7292 = vperm.xlu1 %9129, %v14775_v30  }
0x13ca   : > { %v7513_v7 = vpop.permute.xlu1 %7512 }
0x13cb   : > { %vm7543_vm12 = vcmp.eq.s32.totalorder %v7513_v7, %v10812_v59  ;;  %v16253_v7 = vld [vmem:[#allocation74_spill] sm:$0xff] }
0x13cc   : > { %9130 = vset.pattern.permute.xlu1 %v16246_v39  ;;  %v7589_v39 = vpop.permute.xlu0 %7588  ;;  %vm7228_vm4 = vcmp.eq.s32.totalorder %v16253_v7, %v10812_v59 }
0x13cd   : > { %7370 = vperm.xlu1 %9130, %v14704_v16  }
0x13cf   : > { %v7129_v10 = vpop.permute.xlu1 %7128 }
0x13d0   : > { %v7519_v14 = vpop.permute.xlu0 %7518  ;;  %v7161_v34 = vsel %vm7081_vm15, %v7129_v10, 0.0 }
0x13d1   : > { %7373 = vperm.xlu1 %9130, %v14769_v1   ;;  %vm7545_vm9 = vcmp.eq.s32.totalorder %v7519_v14, %v10812_v59 }
0x13d4   : > { %v7202_v6 = vpop.permute.xlu1 %7201  ;;  %v7593_v9 = vpop.permute.xlu0 %7592 }
0x13d5   : > { %7448 = vperm.xlu1 %9130, %v14708_v53   ;;  %vm7226_vm11 = vcmp.eq.s32.totalorder %v7202_v6, %v10812_v59  ;;  %v7625_v56 = vsel %vm7545_vm9, %v7593_v9, 0.0 }
0x13d8   : > { %v7605_v61 = vpop.permute.xlu0 %7604 }
0x13d9   : > { %9132 = vset.pattern.permute.xlu1 %v16248_v33  ;;  %v7516_v17 = vpop.permute.xlu1 %7515 }
0x13da   : > { %vm7544_vm1 = vcmp.eq.s32.totalorder %v7516_v17, %v10812_v59  ;;  %7530 = vperm.xlu1 %9132, %v14704_v16  }
0x13db   : > { %v7624_v53 = vsel %vm7544_vm1, %v7589_v39, 0.0 }
0x13dc   : > { %v7640_v4 = vadd.f32 %v7624_v53, %v7480_v40 }
0x13dd   : > { %v7585_v51 = vpop.permute.xlu1 %7584 }
0x13de   : > { %v7623_v50 = vsel %vm7543_vm12, %v7585_v51, 0.0  ;;  %7533 = vperm.xlu1 %9132, %v14769_v1  }
0x13df   : > { %v7639_v33 = vadd.f32 %v7623_v50, %v7479_v36 }
0x13e1   : > { %8880 = vmatprep.mubr.msk.f32.mxu0 %vm2060_vm14, %v7639_v33 }
0x13e2   : > { %7612 = vperm.xlu1 %9132, %v14775_v30   ;;  %v7277_v16 = vpop.permute.xlu1 %7276  ;;  %8881 = vmatmul.mubr.msk.f32.gmra.mrb[48].mxu0 %vm2060_vm14, %v7640_v4 }
0x13e3   : > { %v7306_v8 = vsel %vm7226_vm11, %v7277_v16, 0.0 }
0x13e4   : > { %v7322_v54 = vadd.f32 %v7306_v8, %v14900_v28  ;;  %v7305_v28 = vsel %vm7225_vm2, %v14838_v55, 0.0 }
0x13e5   : > { %v7321_v42 = vadd.f32 %v7305_v28, %v7161_v34  ;;  %v16256_v34 = vld [vmem:[#allocation103_spill] sm:$0xff] }
0x13e6   : > { %vm7229_vm11 = vcmp.eq.s32.totalorder %v16256_v34, %v10812_v59 }
0x13e7   : > { %v7359_v45 = vpop.permute.xlu1 %7358 }
0x13e8   : > { %vm7385_vm5 = vcmp.eq.s32.totalorder %v7359_v45, %v10812_v59 }
0x13eb   : > { %v7362_v1 = vpop.permute.xlu1 %7361  ;;  %v8870_v5 = vpop.f32.mrb[40].mxu0 }
0x13ec   : > { %v7841_v58 = vmul.f32 %v8870_v5, %v16226_v60  ;;  %v7761_v23 = vpop.f32.mrb[41].mxu0  ;;  %vm7386_vm8 = vcmp.eq.s32.totalorder %v7362_v1, %v10812_v59  ;;  %v16255_v1 = vld [vmem:[#allocation21_spill] sm:$0xff] }
0x13ed   : > { %v7840_v30 = vmul.f32 %v7761_v23, %v16227_v13 }
0x13ee   : > { %7858 = vadd.xlane.f32.xlu0 %v7841_v58 }
0x13ef   : > { %v7433_v32 = vpop.permute.xlu1 %7432 }
0x13f0   : > { %v7465_v43 = vsel %vm7385_vm5, %v7433_v32, 0.0 }
0x13f1   : > { %v7481_v57 = vadd.f32 %v7465_v43, %v7321_v42  ;;  %v7609_v43 = vpop.permute.xlu0 %7608 }
0x13f3   : > { %v7641_v15 = vadd.f32 %v7625_v56, %v7481_v57 }
0x13f4   : > { %v7205_v46 = vpop.permute.xlu1 %7204 }
0x13f5   : > { %8883 = vmatprep.mubr.msk.f32.mxu0 %vm2060_vm14, %v7641_v15  ;;  %vm7227_vm10 = vcmp.eq.s32.totalorder %v7205_v46, %v10812_v59 }
0x13f9   : > { %v7437_v60 = vpop.permute.xlu1 %7436 }
0x13fa   : > { %v7466_v48 = vsel %vm7386_vm8, %v7437_v60, 0.0 }
0x13fb   : > { %v7482_v36 = vadd.f32 %v7466_v48, %v7322_v54  ;;  %v16254_v54 = vld [vmem:[#allocation20_spill] sm:$0xff] }
0x13fe   : > { %v7064_v52 = vpop.permute.xlu1 %7063 }
0x13ff   : > { %vm7084_vm0 = vcmp.eq.s32.totalorder %v7064_v52, %v10812_v59  ;;  %v16258_v52 = vld [vmem:[#allocation120_spill] sm:$0xff] }
0x1402   : > { %v7137_v13 = vpop.permute.xlu1 %7136 }
0x1403   : > { %v7163_v2 = vsel %vm7083_vm7, %v7137_v13, 0.0 }
0x1406   : > { %7856 = vadd.xlane.f32.xlu1 %v7840_v30  ;;  %v16257_v30 = vld [vmem:[#allocation117_spill] sm:$0xff] }
0x1407   : > { %v7281_v55 = vpop.permute.xlu1 %7280  ;;  %v7309_v9 = vsel %vm7229_vm11, %v16257_v30, 0.0 }
0x1408   : > { %v7307_v49 = vsel %vm7227_vm10, %v7281_v55, 0.0  ;;  %v16259_v55 = vld [vmem:[#allocation95_spill] sm:$0xff] }
0x1409   : > { %v7323_v35 = vadd.f32 %v7307_v49, %v7163_v2 }
0x140b   : > { %v7483_v25 = vadd.f32 %v14932_v63, %v7323_v35 }
0x140c   : > { %v7522_v47 = vpop.permute.xlu1 %7521 }
0x140d   : > { %vm7546_vm13 = vcmp.eq.s32.totalorder %v7522_v47, %v10812_v59 }
0x1411   : > { %v7141_v0 = vpop.permute.xlu1 %7140 }
0x1412   : > { %v7164_v24 = vsel %vm7084_vm0, %v7141_v0, 0.0 }
0x1416   : > { %v7285_v31 = vpop.permute.xlu1 %7284 }
0x1417   : > { %v7308_v10 = vsel %vm7228_vm4, %v7285_v31, 0.0  ;;  %v16260_v31 = vld [vmem:[#allocation22_spill] sm:$0xff] }
0x1418   : > { %v7324_v39 = vadd.f32 %v7308_v10, %v7164_v24  ;;  %v16266_v24 = vld [vmem:[#allocation32_spill] sm:$0xff] }
0x141b   : > { %v7597_v26 = vpop.permute.xlu1 %7596 }
0x141c   : > { %v7626_v11 = vsel %vm7546_vm13, %v7597_v26, 0.0  ;;  %v16261_v26 = vld [vmem:[#allocation27_spill] sm:$0xff] }
0x141d   : > { %v7642_v62 = vadd.f32 %v7626_v11, %v7482_v36 }
0x141f   : > { %8884 = vmatmul.mubr.msk.f32.gmra.mrb[50].mxu0 %vm2060_vm14, %v7642_v62 }
0x1420   : > { %v7368_v37 = vpop.permute.xlu1 %7367 }
0x1421   : > { %vm7388_vm3 = vcmp.eq.s32.totalorder %v7368_v37, %v10812_v59  ;;  %v16262_v37 = vld [vmem:[#allocation28_spill] sm:$0xff] }
0x1425   : > { %v7067_v41 = vpop.permute.xlu1 %7066 }
0x1426   : > { %vm7085_vm2 = vcmp.eq.s32.totalorder %v7067_v41, %v10812_v59 }
0x1428   : > { %v8873_v19 = vpop.f32.mrb[42].mxu0 }
0x1429   : > { %v7843_v3 = vmul.f32 %v8873_v19, %v16251_v18  ;;  %v7771_v63 = vpop.f32.mrb[43].mxu0  ;;  %v16263_v18 = vld [vmem:[#allocation29_spill] sm:$0xff] }
0x142a   : > { %v7842_v21 = vmul.f32 %v7771_v63, %v16252_v22  ;;  %v7445_v29 = vpop.permute.xlu1 %7444  ;;  %v16264_v63 = vld [vmem:[#allocation30_spill] sm:$0xff] }
0x142b   : > { %7862 = vadd.xlane.f32.xlu1 %v7843_v3  ;;  %v7468_v17 = vsel %vm7388_vm3, %v7445_v29, 0.0  ;;  %v16265_v29 = vld [vmem:[#allocation31_spill] sm:$0xff] }
0x142c   : > { %7860 = vadd.xlane.f32.xlu0 %v7842_v21  ;;  %v7484_v53 = vadd.f32 %v7468_v17, %v7324_v39 }
0x142f   : > { %v7525_v20 = vpop.permute.xlu1 %7524 }
0x1430   : > { %vm7547_vm12 = vcmp.eq.s32.totalorder %v7525_v20, %v10812_v59 }
0x1434   : > { %v7145_v27 = vpop.permute.xlu1 %7144 }
0x1435   : > { %v7165_v23 = vsel %vm7085_vm2, %v7145_v27, 0.0 }
0x1436   : > { %v7325_v42 = vadd.f32 %v7309_v9, %v7165_v23 }
0x1439   : > { %v7214_v38 = vpop.permute.xlu1 %7213 }
0x143a   : > { %vm7230_vm5 = vcmp.eq.s32.totalorder %v7214_v38, %v10812_v59 }
0x143e   : > { %v7528_v6 = vpop.permute.xlu1 %7527 }
0x143f   : > { %vm7548_vm1 = vcmp.eq.s32.totalorder %v7528_v6, %v10812_v59 }
0x1440   : > { %v7628_v12 = vsel %vm7548_vm1, %v7605_v61, 0.0 }
0x1441   : > { %v7644_v50 = vadd.f32 %v7628_v12, %v7484_v53 }
0x1442   : > { %v7601_v44 = vpop.permute.xlu1 %7600 }
0x1443   : > { %v7627_v51 = vsel %vm7547_vm12, %v7601_v44, 0.0  ;;  %v16267_v44 = vld [vmem:[#allocation33_spill] sm:$0xff] }
0x1444   : > { %v7643_v40 = vadd.f32 %v7627_v51, %v7483_v25 }
0x1446   : > { %8886 = vmatprep.mubr.msk.f32.mxu0 %vm2060_vm14, %v7643_v40 }
0x1447   : > { %v7293_v33 = vpop.permute.xlu1 %7292  ;;  %8887 = vmatmul.mubr.msk.f32.gmra.mrb[52].mxu0 %vm2060_vm14, %v7644_v50 }
0x1448   : > { %v7310_v15 = vsel %vm7230_vm5, %v7293_v33, 0.0 }
0x1449   : > { %v7326_v2 = vadd.f32 %v7310_v15, %v16259_v55 }
0x144c   : > { %v7371_v4 = vpop.permute.xlu1 %7370 }
0x144d   : > { %vm7389_vm15 = vcmp.eq.s32.totalorder %v7371_v4, %v10812_v59 }
0x1450   : > { %v7374_v16 = vpop.permute.xlu1 %7373  ;;  %v8876_v8 = vpop.f32.mrb[44].mxu0 }
0x1451   : > { %v7845_v45 = vmul.f32 %v8876_v8, %v16254_v54  ;;  %v7781_v14 = vpop.f32.mrb[45].mxu0  ;;  %vm7390_vm7 = vcmp.eq.s32.totalorder %v7374_v16, %v10812_v59 }
0x1452   : > { %v7844_v5 = vmul.f32 %v7781_v14, %v16255_v1  ;;  %v7470_v13 = vsel %vm7390_vm7, %v16258_v52, 0.0 }
0x1453   : > { %7866 = vadd.xlane.f32.xlu1 %v7845_v45  ;;  %v7486_v49 = vadd.f32 %v7470_v13, %v7326_v2 }
0x1454   : > { %v7449_v58 = vpop.permute.xlu1 %7448  ;;  %7864 = vadd.xlane.f32.xlu0 %v7844_v5 }
0x1455   : > { %v7469_v28 = vsel %vm7389_vm15, %v7449_v58, 0.0 }
0x1456   : > { %v7485_v56 = vadd.f32 %v7469_v28, %v7325_v42 }
0x1459   : > { %v7531_v32 = vpop.permute.xlu1 %7530 }
0x145a   : > { %vm7549_vm9 = vcmp.eq.s32.totalorder %v7531_v32, %v10812_v59 }
0x145b   : > { %v7629_v57 = vsel %vm7549_vm9, %v7609_v43, 0.0 }
0x145c   : > { %v7645_v46 = vadd.f32 %v7629_v57, %v7485_v56 }
0x145d   : > { %v7534_v60 = vpop.permute.xlu1 %7533 }
0x145e   : > { %8889 = vmatprep.mubr.msk.f32.mxu0 %vm2060_vm14, %v7645_v46  ;;  %vm7550_vm10 = vcmp.eq.s32.totalorder %v7534_v60, %v10812_v59 }
0x1461   : > { %v7613_v35 = vpop.permute.xlu1 %7612 }
0x1462   : > { %v7630_v25 = vsel %vm7550_vm10, %v7613_v35, 0.0 }
0x1463   : > { %v7646_v47 = vadd.f32 %v7630_v25, %v7486_v49 }
0x1465   : > { %8890 = vmatmul.mubr.msk.f32.gmra.mrb[54].mxu0 %vm2060_vm14, %v7646_v47 }
0x147b   : > { %v7859_v27 = vpop.xlane.xlu0 %7858 }
0x147c   : > { %v7889_v38 = vsub.f32 0.0, %v7859_v27 }
0x147e   : > { %v8512_v61 = vclamps-f32 %v7889_v38, 10.0 }
0x1480   : > { %v7937_v33 = vsub.f32 0.0, %v8512_v61 }
0x1482   : > { %v7954_v1 = vmul.f32 1.442695, %v7937_v33 }
0x1484   : > { %9453 = vpow2.f32 %v7954_v1 }
0x148d   : > { %v8879_v0 = vpop.f32.mrb[46].mxu0 }
0x148e   : > { %v7847_v48 = vmul.f32 %v8879_v0, %v16260_v31  ;;  %v7791_v36 = vpop.f32.mrb[47].mxu0  ;;  %v9454_v35 = vpop.eup %9453 }
0x148f   : > { %v7846_v11 = vmul.f32 %v7791_v36, %v16261_v26  ;;  %v7985_v0 = vadd.f32 1.0, %v9454_v35  ;;  %v9715_v35 = vld [vmem:[%s11607_s24 + $0x28] sm:$0xff] }
0x1490   : > { %7870 = vadd.xlane.f32.xlu1 %v7847_v48 }
0x1491   : > { %7868 = vadd.xlane.f32.xlu0 %v7846_v11 }
0x1493   : > { %v7857_v6 = vpop.xlane.xlu1 %7856 }
0x1494   : > { %v7888_v40 = vsub.f32 0.0, %v7857_v6 }
0x1496   : > { %v8511_v54 = vclamps-f32 %v7888_v40, 10.0 }
0x1498   : > { %v7936_v23 = vsub.f32 0.0, %v8511_v54 }
0x149a   : > { %v7952_v56 = vmul.f32 1.442695, %v7936_v23 }
0x14b5   : > { %v8882_v62 = vpop.f32.mrb[48].mxu0 }
0x14b6   : > { %v7849_v41 = vmul.f32 %v8882_v62, %v16262_v37  ;;  %v7801_v19 = vpop.f32.mrb[49].mxu0  ;;  %v16268_v62 = vld [vmem:[#allocation34_spill] sm:$0xff] }
0x14b7   : > { %v7848_v3 = vmul.f32 %v7801_v19, %v16263_v18  ;;  %v16269_v18 = vld [vmem:[#allocation35_spill] sm:$0xff] }
0x14b8   : > { %7874 = vadd.xlane.f32.xlu1 %v7849_v41  ;;  %v7863_v50 = vpop.xlane.xlu1 %7862 }
0x14b9   : > { %7872 = vadd.xlane.f32.xlu0 %v7848_v3  ;;  %v7861_v7 = vpop.xlane.xlu0 %7860  ;;  %v7891_v45 = vsub.f32 0.0, %v7863_v50 }
0x14ba   : > { %v7890_v12 = vsub.f32 0.0, %v7861_v7 }
0x14bb   : > { %v8514_v30 = vclamps-f32 %v7891_v45, 10.0 }
0x14bc   : > { %v8513_v4 = vclamps-f32 %v7890_v12, 10.0 }
0x14bd   : > { %v7939_v57 = vsub.f32 0.0, %v8514_v30 }
0x14be   : > { %v7938_v5 = vsub.f32 0.0, %v8513_v4  ;;  %v9709_v4 = vld [vmem:[%s11607_s24 + $0x8] sm:$0xff] }
0x14bf   : > { %v7958_v13 = vmul.f32 1.442695, %v7939_v57 }
0x14c0   : > { %v7956_v42 = vmul.f32 1.442695, %v7938_v5 }
0x14c2   : > { %9455 = vpow2.f32 %v7956_v42 }
0x14c3   : > { %9457 = vpow2.f32 %v7952_v56  ;;  %v9712_v56 = vld [vmem:[%s11607_s24 + $0x20] sm:$0xff] }
0x14cc   : > { %v9456_v31 = vpop.eup %9455 }
0x14cd   : > { %v9458_v36 = vpop.eup %9457  ;;  %v7986_v11 = vadd.f32 1.0, %v9456_v31 }
0x14e0   : > { %v7867_v14 = vpop.xlane.xlu1 %7866 }
0x14e1   : > { %v7865_v51 = vpop.xlane.xlu0 %7864  ;;  %v7893_v9 = vsub.f32 0.0, %v7867_v14 }
0x14e2   : > { %v7892_v16 = vsub.f32 0.0, %v7865_v51 }
0x14e3   : > { %v8516_v15 = vclamps-f32 %v7893_v9, 10.0 }
0x14e4   : > { %v8515_v34 = vclamps-f32 %v7892_v16, 10.0 }
0x14e5   : > { %v7941_v55 = vsub.f32 0.0, %v8516_v15 }
0x14e6   : > { %v7940_v32 = vsub.f32 0.0, %v8515_v34 }
0x14e7   : > { %v7962_v25 = vmul.f32 1.442695, %v7941_v55 }
0x14e8   : > { %v7960_v60 = vmul.f32 1.442695, %v7940_v32 }
0x14ea   : > { %9459 = vpow2.f32 %v7960_v60 }
0x14eb   : > { %9461 = vpow2.f32 %v7958_v13  ;;  %v9714_v13 = vld [vmem:[%s11607_s24 + $0x30] sm:$0xff] }
0x14f2   : > { %v8885_v59 = vpop.f32.mrb[50].mxu0 }
0x14f3   : > { %v7851_v22 = vmul.f32 %v8885_v59, %v16264_v63  ;;  %v7811_v21 = vpop.f32.mrb[51].mxu0  ;;  %v7984_v59 = vadd.f32 1.0, %v9458_v36 }
0x14f4   : > { %v7850_v20 = vmul.f32 %v7811_v21, %v16265_v29  ;;  %v9460_v19 = vpop.eup %9459 }
0x14f5   : > { %7878 = vadd.xlane.f32.xlu1 %v7851_v22  ;;  %v9462_v63 = vpop.eup %9461  ;;  %v7988_v22 = vadd.f32 1.0, %v9460_v19 }
0x14f6   : > { %7876 = vadd.xlane.f32.xlu0 %v7850_v20  ;;  %v7987_v29 = vadd.f32 1.0, %v9462_v63 }
0x151a   : > { %v8888_v10 = vpop.f32.mrb[52].mxu0 }
0x151b   : > { %v7853_v17 = vmul.f32 %v8888_v10, %v16266_v24  ;;  %v7821_v39 = vpop.f32.mrb[53].mxu0 }
0x151c   : > { %v7852_v53 = vmul.f32 %v7821_v39, %v16267_v44 }
0x151d   : > { %7882 = vadd.xlane.f32.xlu1 %v7853_v17  ;;  %v7871_v28 = vpop.xlane.xlu1 %7870 }
0x151e   : > { %7880 = vadd.xlane.f32.xlu0 %v7852_v53  ;;  %v7869_v8 = vpop.xlane.xlu0 %7868  ;;  %v7895_v46 = vsub.f32 0.0, %v7871_v28  ;;  %v9711_v28 = vld [vmem:[%s11607_s24] sm:$0xff] }
0x151f   : > { %v7894_v58 = vsub.f32 0.0, %v7869_v8 }
0x1520   : > { %v8518_v2 = vclamps-f32 %v7895_v46, 10.0  ;;  %v9713_v46 = vld [vmem:[%s11607_s24 + $0x18] sm:$0xff] }
0x1521   : > { %v8517_v43 = vclamps-f32 %v7894_v58, 10.0  ;;  %v9710_v58 = vld [vmem:[%s11607_s24 + $0x10] sm:$0xff] }
0x1522   : > { %v7943_v47 = vsub.f32 0.0, %v8518_v2 }
0x1523   : > { %v7942_v52 = vsub.f32 0.0, %v8517_v43 }
0x1524   : > { %v7966_v48 = vmul.f32 1.442695, %v7943_v47 }
0x1525   : > { %v7964_v49 = vmul.f32 1.442695, %v7942_v52 }
0x1527   : > { %9463 = vpow2.f32 %v7964_v49 }
0x1528   : > { %9465 = vpow2.f32 %v7962_v25 }
0x1529   : > { %9467 = vlog2.f32 %v7985_v0 }
0x152a   : > { %9469 = vpow2.f32 %v7966_v48  ;;  %v9716_v48 = vld [vmem:[%s11607_s24 + $0x38] sm:$0xff] }
0x152b   : > { %9471 = vlog2.f32 %v7986_v11 }
0x152c   : > { %9473 = vlog2.f32 %v7984_v59 }
0x152d   : > { %9475 = vlog2.f32 %v7988_v22 }
0x152e   : > { %9477 = vlog2.f32 %v7987_v29 }
0x1531   : > { %v9464_v21 = vpop.eup %9463 }
0x1532   : > { %v9466_v20 = vpop.eup %9465  ;;  %v7990_v27 = vadd.f32 1.0, %v9464_v21 }
0x1533   : > { %v9468_v38 = vpop.eup %9467  ;;  %v7989_v7 = vadd.f32 1.0, %v9466_v20 }
0x1534   : > { %v9470_v10 = vpop.eup %9469  ;;  %9479 = vlog2.f32 %v7990_v27  ;;  %v8003_v24 = vmul.f32 0.6931472, %v9468_v38 }
0x1535   : > { %v9472_v61 = vpop.eup %9471  ;;  %9481 = vlog2.f32 %v7989_v7  ;;  %v7991_v12 = vadd.f32 1.0, %v9470_v10 }
0x1536   : > { %v9474_v51 = vpop.eup %9473  ;;  %v8005_v50 = vmul.f32 0.6931472, %v9472_v61  ;;  %v8033_v16 = vmul.f32 %v9709_v4, %v8003_v24 }
0x1537   : > { %v9476_v8 = vpop.eup %9475  ;;  %9483 = vlog2.f32 %v7991_v12  ;;  %v8001_v45 = vmul.f32 0.6931472, %v9474_v51  ;;  %v9719_v51 = vld [vmem:[%s11607_s24 + $0x58] sm:$0xff] }
0x1538   : > { %v8891_v26 = vpop.f32.mrb[54].mxu0  ;;  %v9478_v1 = vpop.eup %9477  ;;  %v8009_v34 = vmul.f32 0.6931472, %v9476_v8  ;;  %v8034_v23 = vmul.f32 %v9710_v58, %v8005_v50  ;;  %v9720_v50 = vld [vmem:[%s11607_s24 + $0x50] sm:$0xff] }
0x1539   : > { %v7855_v37 = vmul.f32 %v8891_v26, %v16268_v62  ;;  %v7831_v41 = vpop.f32.mrb[55].mxu0  ;;  %v8007_v9 = vmul.f32 0.6931472, %v9478_v1  ;;  %v8032_v42 = vmul.f32 %v9711_v28, %v8001_v45 }
0x153a   : > { %v7854_v3 = vmul.f32 %v7831_v41, %v16269_v18  ;;  %v8036_v57 = vmul.f32 %v9712_v56, %v8009_v34  ;;  %v9717_v41 = vld [vmem:[%s11607_s24 + $0x48] sm:$0xff]  ;;  %v9718_v18 = vld [vmem:[%s11607_s24 + $0x40] sm:$0xff] }
0x153b   : > { %7886 = vadd.xlane.f32.xlu1 %v7855_v37  ;;  %v8035_v60 = vmul.f32 %v9713_v46, %v8007_v9 }
0x153c   : > { %7884 = vadd.xlane.f32.xlu0 %v7854_v3 }
0x153e   : > { %v9480_v30 = vpop.eup %9479 }
0x153f   : > { %v9482_v32 = vpop.eup %9481  ;;  %v8013_v43 = vmul.f32 0.6931472, %v9480_v30 }
0x1540   : > { %v8011_v15 = vmul.f32 0.6931472, %v9482_v32 }
0x1541   : > { %v9484_v52 = vpop.eup %9483  ;;  %v8038_v55 = vmul.f32 %v9714_v13, %v8013_v43 }
0x1542   : > { %v8015_v49 = vmul.f32 0.6931472, %v9484_v52  ;;  %v8037_v25 = vmul.f32 %v9715_v35, %v8011_v15 }
0x1544   : > { %v8039_v36 = vmul.f32 %v9716_v48, %v8015_v49 }
0x1545   : > { %v7875_v6 = vpop.xlane.xlu1 %7874 }
0x1546   : > { %v7897_v17 = vsub.f32 0.0, %v7875_v6  ;;  %v7873_v39 = vpop.xlane.xlu0 %7872 }
0x1547   : > { %v7896_v44 = vsub.f32 0.0, %v7873_v39 }
0x1548   : > { %v8520_v53 = vclamps-f32 %v7897_v17, 10.0 }
0x1549   : > { %v8519_v40 = vclamps-f32 %v7896_v44, 10.0 }
0x154a   : > { %v7945_v33 = vsub.f32 0.0, %v8520_v53 }
0x154b   : > { %v7944_v54 = vsub.f32 0.0, %v8519_v40 }
0x154c   : > { %v7970_v14 = vmul.f32 1.442695, %v7945_v33  ;;  %8066 = vrot.lane.b32.xlu1 %v8033_v16, %s9813_s28 }
0x154d   : > { %v7968_v5 = vmul.f32 1.442695, %v7944_v54 }
0x154e   : > { %9485 = vpow2.f32 %v7970_v14 }
0x154f   : > { %9487 = vpow2.f32 %v7968_v5 }
0x1550   : > { %8068 = vrot.lane.b32.xlu1 %v8034_v23, %s9813_s28 }
0x1552   : > { %8064 = vrot.lane.b32.xlu0 %v8032_v42, %s9813_s28 }
0x1554   : > { %8072 = vrot.lane.b32.xlu1 %v8036_v57, %s9813_s28 }
0x1556   : > { %8070 = vrot.lane.b32.xlu0 %v8035_v60, %s9813_s28 }
0x1558   : > { %v9486_v2 = vpop.eup %9485  ;;  %8076 = vrot.lane.b32.xlu1 %v8038_v55, %s9813_s28 }
0x1559   : > { %v9488_v47 = vpop.eup %9487  ;;  %v7993_v0 = vadd.f32 1.0, %v9486_v2  ;;  %v9721_v2 = vld [vmem:[%s11607_s24 + $0x68] sm:$0xff] }
0x155a   : > { %v7992_v31 = vadd.f32 1.0, %v9488_v47  ;;  %8074 = vrot.lane.b32.xlu0 %v8037_v25, %s9813_s28  ;;  %v9722_v25 = vld [vmem:[%s11607_s24 + $0x60] sm:$0xff] }
0x155b   : > { %9489 = vlog2.f32 %v7993_v0 }
0x155c   : > { %9491 = vlog2.f32 %v7992_v31 }
0x155e   : > { %8078 = vrot.lane.b32.xlu0 %v8039_v36, %s9813_s28 }
0x1565   : > { %v9490_v26 = vpop.eup %9489 }
0x1566   : > { %v9492_v11 = vpop.eup %9491  ;;  %v8019_v62 = vmul.f32 0.6931472, %v9490_v26 }
0x1567   : > { %v8017_v37 = vmul.f32 0.6931472, %v9492_v11 }
0x1568   : > { %v8041_v19 = vmul.f32 %v9717_v41, %v8019_v62 }
0x1569   : > { %v8040_v3 = vmul.f32 %v9718_v18, %v8017_v37  ;;  %v9723_v18 = vld [vmem:[%s11607_s24 + $0x78] sm:$0xff] }
0x156a   : > { %8082 = vrot.lane.b32.xlu0 %v8041_v19, %s9813_s28 }
0x156b   : > { %8080 = vrot.lane.b32.xlu1 %v8040_v3, %s9813_s28 }
0x1582   : > { %v7879_v59 = vpop.xlane.xlu1 %7878 }
0x1583   : > { %v7899_v63 = vsub.f32 0.0, %v7879_v59  ;;  %v7877_v22 = vpop.xlane.xlu0 %7876  ;;  %v9724_v59 = vld [vmem:[%s11607_s24 + $0x70] sm:$0xff]  ;;  %s8304_s24 = sshll.u32 %s420_s16, 3 }
0x1584   : > { %v7898_v21 = vsub.f32 0.0, %v7877_v22  ;;  %s422_s0 = scalar_lea.vmem [#allocation2], %s8304_s24 }
0x1585   : > { %v8522_v29 = vclamps-f32 %v7899_v63, 10.0  ;;  %s8169_s1 = sshll.u32 %s422_s0, 4  ;;  %s15203_s1 = int_to_ptr.vmem [resolvable:$true] %s8169_s1 }
0x1586   : > { %v8521_v20 = vclamps-f32 %v7898_v21, 10.0  ;;  %s9725_s14 = scalar_lea.vmem %s15203_s1, 128 }
0x1587   : > { %v7947_v27 = vsub.f32 0.0, %v8522_v29  ;;  %p9726_p11 = scmp.ne.s32.totalorder %s15203_s1, %s9725_s14 }
0x1588   : > { %v7946_v38 = vsub.f32 0.0, %v8521_v20 }
0x1589   : > { %v7974_v7 = vmul.f32 1.442695, %v7947_v27  ;;  %p9727_p12 = pnand %p9726_p11, %p9903_p5 }
0x158a   : > { %v7972_v10 = vmul.f32 1.442695, %v7946_v38 }
0x158b   : > { %9493 = vpow2.f32 %v7974_v7  ;;  %p9728_p13 = pneg %p9727_p12 }
0x158c   : > { %9495 = vpow2.f32 %v7972_v10 }
0x1595   : > { %v9494_v6 = vpop.eup %9493 }
0x1596   : > { %v9496_v24 = vpop.eup %9495  ;;  %v7995_v17 = vadd.f32 1.0, %v9494_v6 }
0x1597   : > { %v7994_v39 = vadd.f32 1.0, %v9496_v24 }
0x1598   : > { %9497 = vlog2.f32 %v7995_v17 }
0x1599   : > { %9499 = vlog2.f32 %v7994_v39 }
0x15a2   : > { %v9498_v61 = vpop.eup %9497 }
0x15a3   : > { %v9500_v12 = vpop.eup %9499  ;;  %v8023_v44 = vmul.f32 0.6931472, %v9498_v61 }
0x15a4   : > { %v8021_v53 = vmul.f32 0.6931472, %v9500_v12 }
0x15a5   : > { %v8043_v40 = vmul.f32 %v9719_v51, %v8023_v44 }
0x15a6   : > { %v8042_v33 = vmul.f32 %v9720_v50, %v8021_v53 }
0x15a7   : > { %8086 = vrot.lane.b32.xlu0 %v8043_v40, %s9813_s28 }
0x15a8   : > { %8084 = vrot.lane.b32.xlu1 %v8042_v33, %s9813_s28 }
0x15aa   : > { %v7883_v4 = vpop.xlane.xlu1 %7882 }
0x15ab   : > { %v7901_v16 = vsub.f32 0.0, %v7883_v4  ;;  %v7881_v8 = vpop.xlane.xlu0 %7880 }
0x15ac   : > { %v7900_v54 = vsub.f32 0.0, %v7881_v8 }
0x15ad   : > { %v8524_v45 = vclamps-f32 %v7901_v16, 10.0 }
0x15ae   : > { %v8523_v14 = vclamps-f32 %v7900_v54, 10.0 }
0x15af   : > { %v7949_v1 = vsub.f32 0.0, %v8524_v45 }
0x15b0   : > { %v7948_v5 = vsub.f32 0.0, %v8523_v14 }
0x15b1   : > { %v7978_v34 = vmul.f32 1.442695, %v7949_v1 }
0x15b2   : > { %v7976_v58 = vmul.f32 1.442695, %v7948_v5 }
0x15b3   : > { %9501 = vpow2.f32 %v7978_v34 }
0x15b4   : > { %9503 = vpow2.f32 %v7976_v58 }
0x15bd   : > { %v9502_v23 = vpop.eup %9501 }
0x15be   : > { %v9504_v30 = vpop.eup %9503  ;;  %v7997_v9 = vadd.f32 1.0, %v9502_v23 }
0x15bf   : > { %v7996_v28 = vadd.f32 1.0, %v9504_v30 }
0x15c0   : > { %9505 = vlog2.f32 %v7997_v9 }
0x15c1   : > { %9507 = vlog2.f32 %v7996_v28 }
0x15c8   : > { %v7887_v42 = vpop.xlane.xlu1 %7886 }
0x15c9   : > { %v7903_v32 = vsub.f32 0.0, %v7887_v42  ;;  %v7885_v43 = vpop.xlane.xlu0 %7884 }
0x15ca   : > { %v9506_v56 = vpop.eup %9505  ;;  %v7902_v57 = vsub.f32 0.0, %v7885_v43 }
0x15cb   : > { %v9508_v15 = vpop.eup %9507  ;;  %v8027_v46 = vmul.f32 0.6931472, %v9506_v56  ;;  %v8526_v60 = vclamps-f32 %v7903_v32, 10.0 }
0x15cc   : > { %v8025_v52 = vmul.f32 0.6931472, %v9508_v15  ;;  %v8525_v13 = vclamps-f32 %v7902_v57, 10.0  ;;  %v8067_v22 = vpop.permute.xlu1 %8066 }
0x15cd   : > { %v7951_v55 = vsub.f32 0.0, %v8526_v60  ;;  %v8045_v49 = vmul.f32 %v9721_v2, %v8027_v46  ;;  %v8065_v21 = vpop.permute.xlu0 %8064  ;;  %v8113_v29 = vsel %vm2446_vm6, %v8067_v22, 0.0 }
0x15ce   : > { %v7950_v35 = vsub.f32 0.0, %v8525_v13  ;;  %v8044_v47 = vmul.f32 %v9722_v25, %v8025_v52  ;;  %v8112_v20 = vsel %vm2446_vm6, %v8065_v21, 0.0 }
0x15cf   : > { %v7982_v0 = vmul.f32 1.442695, %v7951_v55  ;;  %8090 = vrot.lane.b32.xlu0 %v8045_v49, %s9813_s28  ;;  %v8114_v38 = vadd.f32 %v8113_v29, %v8112_v20 }
0x15d0   : > { %v7980_v31 = vmul.f32 1.442695, %v7950_v35  ;;  %8088 = vrot.lane.b32.xlu1 %v8044_v47, %s9813_s28  ;;  %v8069_v27 = vpop.permute.xlu1 %8068 }
0x15d1   : > { %9509 = vpow2.f32 %v7982_v0  ;;  %v8115_v7 = vsel %vm2446_vm6, %v8069_v27, 0.0  ;;  %v8071_v10 = vpop.permute.xlu0 %8070 }
0x15d2   : > { %9511 = vpow2.f32 %v7980_v31  ;;  %v8116_v6 = vadd.f32 %v8115_v7, %v8114_v38  ;;  %v8117_v24 = vsel %vm2446_vm6, %v8071_v10, 0.0 }
0x15d4   : > { %v8073_v17 = vpop.permute.xlu1 %8072  ;;  %v8118_v39 = vadd.f32 %v8117_v24, %v8116_v6 }
0x15d5   : > { %v8119_v61 = vsel %vm2446_vm6, %v8073_v17, 0.0  ;;  %v8075_v12 = vpop.permute.xlu0 %8074 }
0x15d6   : > { %v8120_v44 = vadd.f32 %v8119_v61, %v8118_v39  ;;  %v8121_v53 = vsel %vm2446_vm6, %v8075_v12, 0.0 }
0x15d8   : > { %v8077_v51 = vpop.permute.xlu1 %8076  ;;  %v8122_v40 = vadd.f32 %v8121_v53, %v8120_v44 }
0x15d9   : > { %v8123_v50 = vsel %vm2446_vm6, %v8077_v51, 0.0  ;;  %v8079_v33 = vpop.permute.xlu0 %8078 }
0x15da   : > { %v8124_v4 = vadd.f32 %v8123_v50, %v8122_v40  ;;  %v8125_v16 = vsel %vm2446_vm6, %v8079_v33, 0.0 }
0x15db   : > { %v9510_v48 = vpop.eup %9509 }
0x15dc   : > { %v9512_v36 = vpop.eup %9511  ;;  %v7999_v26 = vadd.f32 1.0, %v9510_v48  ;;  %v8126_v54 = vadd.f32 %v8125_v16, %v8124_v4 }
0x15dd   : > { %v7998_v11 = vadd.f32 1.0, %v9512_v36  ;;  %v8081_v8 = vpop.permute.xlu1 %8080  ;;  %v8083_v1 = vpop.permute.xlu0 %8082 }
0x15de   : > { %9513 = vlog2.f32 %v7999_v26  ;;  %v8127_v45 = vsel %vm2446_vm6, %v8081_v8, 0.0  ;;  %v8129_v34 = vsel %vm2446_vm6, %v8083_v1, 0.0 }
0x15df   : > { %9515 = vlog2.f32 %v7998_v11  ;;  %v8128_v14 = vadd.f32 %v8127_v45, %v8126_v54 }
0x15e1   : > { %v8130_v23 = vadd.f32 %v8129_v34, %v8128_v14 }
0x15e8   : > { %v9514_v62 = vpop.eup %9513 }
0x15e9   : > { %v9516_v37 = vpop.eup %9515  ;;  %v8031_v41 = vmul.f32 0.6931472, %v9514_v62 }
0x15ea   : > { %v8029_v19 = vmul.f32 0.6931472, %v9516_v37 }
0x15eb   : > { %v8047_v3 = vmul.f32 %v9723_v18, %v8031_v41 }
0x15ec   : > { %v8046_v63 = vmul.f32 %v9724_v59, %v8029_v19 }
0x15ed   : > { %8094 = vrot.lane.b32.xlu0 %v8047_v3, %s9813_s28 }
0x15ee   : > { %8092 = vrot.lane.b32.xlu1 %v8046_v63, %s9813_s28  ;;  %s8528_s28 = sshll.u32 %s9886_s13, 7  ;;  %s9814_s13 = smov [#allocation2]  }
0x15ef   : > { %s15201_s6 = scalar_lea.hbm %s15252_s9, %s8528_s28 }
0x1619   : > { %v8087_v30 = vpop.permute.xlu0 %8086 }
0x161a   : > { %v8085_v5 = vpop.permute.xlu1 %8084  ;;  %v8133_v42 = vsel %vm2446_vm6, %v8087_v30, 0.0 }
0x161b   : > { %v8131_v58 = vsel %vm2446_vm6, %v8085_v5, 0.0 }
0x161c   : > { %v8132_v9 = vadd.f32 %v8131_v58, %v8130_v23 }
0x161e   : > { %v8134_v43 = vadd.f32 %v8133_v42, %v8132_v9 }
0x1641   : > { %v8091_v56 = vpop.permute.xlu0 %8090 }
0x1642   : > { %v8089_v28 = vpop.permute.xlu1 %8088  ;;  %v8137_v15 = vsel %vm2446_vm6, %v8091_v56, 0.0 }
0x1643   : > { %v8135_v32 = vsel %vm2446_vm6, %v8089_v28, 0.0 }
0x1644   : > { %v8136_v57 = vadd.f32 %v8135_v32, %v8134_v43 }
0x1646   : > { %v8138_v52 = vadd.f32 %v8137_v15, %v8136_v57 }
0x165f   : > { %v8095_v46 = vpop.permute.xlu0 %8094 }
0x1660   : > { %v8093_v60 = vpop.permute.xlu1 %8092  ;;  %v8141_v2 = vsel %vm2446_vm6, %v8095_v46, 0.0 }
0x1661   : > { %v8139_v13 = vsel %vm2446_vm6, %v8093_v60, 0.0 }
0x1662   : > { %v8140_v55 = vadd.f32 %v8139_v13, %v8138_v52 }
0x1664   : > { %v8142_v49 = vadd.f32 %v8141_v2, %v8140_v55 }
0x1666   : > { %8143 = vadd.xlane.f32.xlu1 %v8142_v49 }
0x16f3   : > { %v8144_v35 = vpop.xlane.xlu1 %8143 }
0x16f4   : > { %v8145_v25 = vrot.slane %v8144_v35, 4 }
0x16f6   : > { %v8146_v47 = vadd.f32 %v8145_v25, %v8144_v35 }
0x16f8   : > { %v8147_v0 = vrot.slane %v8146_v47, 2 }
0x16fa   : > { %v8148_v31 = vadd.f32 %v8147_v0, %v8146_v47 }
0x16fc   : > { %v8149_v48 = vrot.slane %v8148_v31, 1 }
0x16fe   : > { %v8150_v36 = vadd.f32 %v8149_v48, %v8148_v31 }
0x1700   : > { %8958 = vpush %v8150_v36 }
0x1731   : > { %s8959_s2 = spop %8958 }
0x1732   : > { %s8152_s3 = sadd.f32 %s8959_s2, %s7022_s27  ;;  %s9729_s2 = sshll.u32 %s9814_s13, 4  ;;  %s9730_s2 = int_to_ptr.vmem [resolvable:$false] %s9729_s2 }
0x1733   : > { %s9731_s17 = scalar_lea.vmem %s9730_s2, 256  ;;  %p9732_p0 = scmp.lt.s32.totalorder %s15203_s1, %s9730_s2 }
0x1734   : > { %v8153_v26 = vstv %s8152_s3  ;;  %p9733_p1 = scmp.lt.s32.totalorder %s9731_s17, %s9725_s14 }
0x1735   : > { %8154 = vst [vmem:[%s422_s0] sm:$0xff] %v8153_v26 }
0x1736   : > { %p9734_p2 = por %p9733_p1, %p9732_p0 }
0x1738   : > { %p9735_p3 = pnand %p9734_p2, %p9728_p13 }
0x173a   : > { %9738 = shalt.err (!%p9735_p3)
}
0x173b   : > { %s9739_s0 = scalar_lea.hbm %s15201_s6, 128  ;;  %s9743_s5 = scalar_lea.hbm %s15252_s9, 256 }
0x173c   : > { %p9740_p4 = scmp.ne.s32.totalorder %s15201_s6, %s9739_s0  ;;  %p9744_p9 = scmp.lt.u32.totalorder %s15201_s6, %s15252_s9 }
0x173d   : > { %p9745_p10 = scmp.lt.u32.totalorder %s9743_s5, %s9739_s0  ;;  %p9747_p12 = scmp.lt.u32.totalorder %s9739_s0, %s15201_s6 }
0x173e   : > { %p9741_p7 = pnand %p9740_p4, %p9903_p5 }
0x173f   : > { %p9746_p11 = por %p9745_p10, %p9744_p9 }
0x1740   : > { %p9742_p8 = pneg %p9741_p7 }
0x1741   : > { %p9748_p13 = por %p9747_p12, %p9746_p11 }
0x1743   : > { %p9749_p0 = pnand %p9748_p13, %p9742_p8 }
0x1745   : > { %9752 = shalt.err (!%p9749_p0)
}
0x1746   : > { %8960 = dma.vmem_to_hbm [thread:$0]  (%p9903_p5), %s15203_s1, 128, %s15201_s6, %s8156_s29  }
0x1747 PF: > { %p8966_p1 = scmp.ge.s32.totalorder %s9787_s12, 2  ;;  %s8181_s23 = sand.u32 1, %s9775_s30  }
0x1748   : > { %s8182_s24 = scalar_lea.sflag [#allocation3], %s8181_s23 }
0x1749   : > { %p8963_p2 = pnand %p8966_p1, %p9907_p6 }
0x174b   : > { %9770 = dma.done.wait (!%p8963_p2), %s8182_s24, 128  }
0x174c   : > { %9772 = vsyncadd (!%p8963_p2), %s8182_s24, 4294967168  ;;  %p19_p3 = scmp.ge.s32.totalorder %s9890_s15, 4   ;;  %s16270_s30 = smov %s9779_s10 }
0x174d   : > { %s16271_s10 = smov %s9783_s11  ;;  %s16272_s11 = smov %s9901_s18 }
0x174e   : > { %s16273_s12 = smov %s9890_s15  ;;  %21 = sbr.rel (!%p19_p3) target bundleno = 11 (0xb), region = 109 }
0x1755   :  { %8187 = vsyncpa [#allocation3], 1 }
0x1756   :  { %8189 = vsyncpa [#allocation3 + $0x1], 1 }

</bundles_post_ra>
